<compile_context>
chip_gen: v7x
topology: tpu7x:2x2x1
jax: 0.10.0
libtpu: 0.0.40
codegen_flags: <defaults>
</compile_context>

<pallas_src>
import functools
import math

import jax
import jax.numpy as jnp
from jax.experimental import pallas as pl
from jax.experimental.pallas import tpu as pltpu


# 48 MiB: fits v5e/v6e (128 MiB physical VMEM) and v7x (64 MiB physical VMEM per TC).
_VMEM_LIMIT = 48 * 1024 * 1024


def _round_up(x, m):
    return ((x + m - 1) // m) * m


# ----------------------------------------------------------------------------
# Pallas kernels
# ----------------------------------------------------------------------------
def _matmul_affine_kernel(a_ref, w_ref, scale_ref, shift_ref, o_ref, acc_ref, *, relu):
    """Tiled (M,N,K) matmul; bf16 inputs, f32 accumulator; affine (+ReLU) epilogue."""
    @pl.when(pl.program_id(2) == 0)
    def _init():
        acc_ref[...] = jnp.zeros_like(acc_ref)

    acc_ref[...] += jnp.dot(a_ref[...], w_ref[...],
                            preferred_element_type=jnp.float32)

    @pl.when(pl.program_id(2) == pl.num_programs(2) - 1)
    def _finish():
        y = acc_ref[...] * scale_ref[...] + shift_ref[...]
        if relu:
            y = jnp.maximum(y, 0.0)
        o_ref[...] = y.astype(o_ref.dtype)


def _make_conv_row_kernel(relu, has_res):
    """Fused conv + BN (+ residual) (+ ReLU).

    One output row per (n, oh) grid point; grid axis 2 runs over the kh kernel-row
    taps and accumulates partial (OW, kw*C) @ (kw*C, Cout) matmuls into VMEM scratch.
    """
    def kernel(*refs):
        if has_res:
            x_ref, w_ref, scale_ref, shift_ref, res_ref, o_ref, acc_ref = refs
        else:
            x_ref, w_ref, scale_ref, shift_ref, o_ref, acc_ref = refs

        tap = pl.program_id(2)

        @pl.when(tap == 0)
        def _init():
            acc_ref[...] = jnp.zeros_like(acc_ref)

        xv = x_ref[...].reshape(x_ref.shape[2], x_ref.shape[3])   # (OW, kw*C)  bf16
        wv = w_ref[...].reshape(w_ref.shape[1], w_ref.shape[2])   # (kw*C, Cout) bf16
        acc_ref[...] += jnp.dot(xv, wv, preferred_element_type=jnp.float32)

        @pl.when(tap == pl.num_programs(2) - 1)
        def _finish():
            y = acc_ref[...] * scale_ref[...] + shift_ref[...]
            if has_res:
                y = y + res_ref[...].reshape(y.shape)
            if relu:
                y = jnp.maximum(y, 0.0)
            o_ref[...] = y.reshape(o_ref.shape).astype(o_ref.dtype)

    return kernel


def _maxpool_row_kernel(x0_ref, x1_ref, x2_ref, o_ref):
    o_ref[...] = jnp.maximum(jnp.maximum(x0_ref[...], x1_ref[...]), x2_ref[...])


def _avgpool_kernel(x_ref, o_ref, *, inv_hw):
    o_ref[...] = jnp.sum(x_ref[...], axis=1, keepdims=True) * inv_hw


# ----------------------------------------------------------------------------
# Pallas wrappers
# ----------------------------------------------------------------------------
def matmul_affine(a, w, scale, shift, relu, tm=256, tn=256, tk=256):
    """(M,K)@(K,N) tiled over an (M,N,K) grid with a VMEM f32 accumulator and a
    per-output-channel affine (+ ReLU) epilogue.  Inputs are zero-padded up to
    lane/sublane-aligned tiles (lane-dense stores) and cast to bf16 for the MXU."""
    M, K = a.shape
    K2, N = w.shape
    assert K == K2
    tm = min(tm, _round_up(M, 8))
    tn = min(tn, _round_up(N, 128))
    tk = min(tk, _round_up(K, 128))
    Mp, Kp, Np = _round_up(M, tm), _round_up(K, tk), _round_up(N, tn)

    a_p = jnp.pad(a.astype(jnp.bfloat16), ((0, Mp - M), (0, Kp - K)))
    w_p = jnp.pad(w.astype(jnp.bfloat16), ((0, Kp - K), (0, Np - N)))
    scale_p = jnp.pad(scale.astype(jnp.float32), ((0, 0), (0, Np - N)))
    shift_p = jnp.pad(shift.astype(jnp.float32), ((0, 0), (0, Np - N)))

    out = pl.pallas_call(
        functools.partial(_matmul_affine_kernel, relu=relu),
        out_shape=jax.ShapeDtypeStruct((Mp, Np), jnp.float32),
        grid=(Mp // tm, Np // tn, Kp // tk),
        in_specs=[
            pl.BlockSpec((tm, tk), lambda i, j, k: (i, k)),
            pl.BlockSpec((tk, tn), lambda i, j, k: (k, j)),
            pl.BlockSpec((1, tn), lambda i, j, k: (0, j)),   # K-invariant scale
            pl.BlockSpec((1, tn), lambda i, j, k: (0, j)),   # K-invariant shift
        ],
        out_specs=pl.BlockSpec((tm, tn), lambda i, j, k: (i, j)),
        scratch_shapes=[pltpu.VMEM((tm, tn), jnp.float32)],
        compiler_params=pltpu.CompilerParams(
            dimension_semantics=("parallel", "parallel", "arbitrary"),
            vmem_limit_bytes=_VMEM_LIMIT),
    )(a_p, w_p, scale_p, shift_p)
    return out[:M, :N]


def linear(x, w, b, relu):
    n_out = w.shape[1]
    scale = jnp.ones((1, n_out), jnp.float32)
    return matmul_affine(x, w, scale, b.reshape(1, n_out), relu)


def conv_bn(x, p, stride, padding, relu, residual=None):
    """Conv2d + folded BN (+ residual add) (+ ReLU) as one fused Pallas kernel.

    x: (N,H,W,C) f32.  p["w"]: (kh, kw*C, Cout) bf16.  p["scale"]/["shift"]: (1, Cout) f32.
    """
    N, H, W, C = x.shape
    kh, kwC, cout = p["w"].shape
    kw = kwC // C

    xb = x.astype(jnp.bfloat16)
    if padding:
        xb = jnp.pad(xb, ((0, 0), (padding, padding), (padding, padding), (0, 0)))
    Hp, Wp = H + 2 * padding, W + 2 * padding
    OH = (Hp - kh) // stride + 1
    OW = (Wp - kw) // stride + 1

    # Width-only unfold (kw-fold, bf16).  The kh tap axis is fused into the kernel
    # grid, so the full kh*kw im2col matrix never hits HBM.
    if kw == 1 and stride == 1:
        xw = xb                                               # (N, Hp, OW, C)
    else:
        cols = [xb[:, :, j:j + stride * (OW - 1) + 1:stride, :] for j in range(kw)]
        xw = jnp.stack(cols, axis=3).reshape(N, Hp, OW, kw * C)

    in_specs = [
        pl.BlockSpec((1, 1, OW, kw * C),
                     lambda n, oh, i: (n, stride * oh + i, 0, 0)),
        pl.BlockSpec((1, kw * C, cout), lambda n, oh, i: (i, 0, 0)),
        pl.BlockSpec((1, cout), lambda n, oh, i: (0, 0)),
        pl.BlockSpec((1, cout), lambda n, oh, i: (0, 0)),
    ]
    args = [xw, p["w"], p["scale"], p["shift"]]
    if residual is not None:
        in_specs.append(pl.BlockSpec((1, 1, OW, cout),
                                     lambda n, oh, i: (n, oh, 0, 0)))
        args.append(residual.astype(jnp.float32))

    return pl.pallas_call(
        _make_conv_row_kernel(relu, residual is not None),
        out_shape=jax.ShapeDtypeStruct((N, OH, OW, cout), jnp.float32),
        grid=(N, OH, kh),
        in_specs=in_specs,
        out_specs=pl.BlockSpec((1, 1, OW, cout), lambda n, oh, i: (n, oh, 0, 0)),
        scratch_shapes=[pltpu.VMEM((OW, cout), jnp.float32)],
        compiler_params=pltpu.CompilerParams(
            dimension_semantics=("parallel", "parallel", "arbitrary"),
            vmem_limit_bytes=_VMEM_LIMIT),
    )(*args)


def maxpool(x, k=3, stride=2, padding=1):
    """3x3/s2/p1 max pool: width taps reduced in fused XLA glue, height taps reduced
    in a Pallas kernel tiled over (N, OH) output rows (no transposes, no 9x patches)."""
    N, H, W, C = x.shape
    Hp = H + 2 * padding
    OH = (Hp - k) // stride + 1
    OW = (W + 2 * padding - k) // stride + 1
    xp = jnp.pad(x, ((0, 0), (padding, padding), (padding, padding), (0, 0)),
                 constant_values=-jnp.inf)
    cols = [xp[:, :, j:j + stride * (OW - 1) + 1:stride, :] for j in range(k)]
    xm = jnp.maximum(jnp.maximum(cols[0], cols[1]), cols[2])   # (N, Hp, OW, C)

    return pl.pallas_call(
        _maxpool_row_kernel,
        out_shape=jax.ShapeDtypeStruct((N, OH, OW, C), jnp.float32),
        grid=(N, OH),
        in_specs=[
            pl.BlockSpec((1, 1, OW, C), lambda n, oh: (n, stride * oh, 0, 0)),
            pl.BlockSpec((1, 1, OW, C), lambda n, oh: (n, stride * oh + 1, 0, 0)),
            pl.BlockSpec((1, 1, OW, C), lambda n, oh: (n, stride * oh + 2, 0, 0)),
        ],
        out_specs=pl.BlockSpec((1, 1, OW, C), lambda n, oh: (n, oh, 0, 0)),
        compiler_params=pltpu.CompilerParams(
            dimension_semantics=("parallel", "parallel"),
            vmem_limit_bytes=_VMEM_LIMIT),
    )(xm, xm, xm)


def global_avgpool(x):
    # nn.AdaptiveAvgPool2d((1,1)) + torch.flatten(feat, 1); tiled per image.
    N, H, W, C = x.shape
    hw = H * W
    x2 = x.reshape(N, hw, C)
    out = pl.pallas_call(
        functools.partial(_avgpool_kernel, inv_hw=1.0 / hw),
        out_shape=jax.ShapeDtypeStruct((N, 1, C), jnp.float32),
        grid=(N,),
        in_specs=[pl.BlockSpec((1, hw, C), lambda n: (n, 0, 0))],
        out_specs=pl.BlockSpec((1, 1, C), lambda n: (n, 0, 0)),
        compiler_params=pltpu.CompilerParams(
            dimension_semantics=("parallel",),
            vmem_limit_bytes=_VMEM_LIMIT),
    )(x2)
    return out.reshape(N, C)


def basic_block(x, p, stride):
    out = conv_bn(x, p["conv1"], stride=stride, padding=1, relu=True)
    if p["down"] is not None:
        identity = conv_bn(x, p["down"], stride=stride, padding=0, relu=False)
    else:
        identity = x
    # conv2 + BN + residual add + ReLU fused in one kernel epilogue.
    return conv_bn(out, p["conv2"], stride=1, padding=1, relu=True, residual=identity)


# ----------------------------------------------------------------------------
# Full forward (resnet18 backbone w/o fc  +  Linear->ReLU->Linear head)
# ----------------------------------------------------------------------------
def resnet_simclr_forward(x_nchw, params):
    x = jnp.transpose(x_nchw, (0, 2, 3, 1)).astype(jnp.float32)      # NCHW -> NHWC
    x = conv_bn(x, params["stem"], stride=2, padding=3, relu=True)   # 7x7 s2 p3 + bn + relu
    x = maxpool(x, 3, 2, 1)
    first_stride = {"layer1": 1, "layer2": 2, "layer3": 2, "layer4": 2}
    for name in ("layer1", "layer2", "layer3", "layer4"):
        b0, b1 = params[name]
        x = basic_block(x, b0, first_stride[name])
        x = basic_block(x, b1, 1)
    feat = global_avgpool(x)                                         # (N, 512)
    h = linear(feat, params["head"]["w1"], params["head"]["b1"], relu=True)
    out = linear(h, params["head"]["w2"], params["head"]["b2"], relu=False)
    return out


# ----------------------------------------------------------------------------
# Deterministic synthetic parameter init (shapes of torchvision resnet18)
# ----------------------------------------------------------------------------
def init_params(key, out_dim=3):
    keys = iter(jax.random.split(key, 96))

    def conv_bn_p(kh, kw, cin, cout):
        wkey, bkey = next(keys), next(keys)
        w = jax.random.normal(wkey, (kh, kw, cin, cout), jnp.float32) * math.sqrt(
            2.0 / (kh * kw * cin))
        k1, k2, k3, k4 = jax.random.split(bkey, 4)
        gamma = 1.0 + 0.1 * jax.random.normal(k1, (cout,), jnp.float32)
        beta = 0.1 * jax.random.normal(k2, (cout,), jnp.float32)
        rmean = 0.1 * jax.random.normal(k3, (cout,), jnp.float32)
        rvar = 1.0 + 0.1 * jax.random.uniform(k4, (cout,), jnp.float32)
        eps = 1e-5
        scale = gamma / jnp.sqrt(rvar + eps)
        shift = beta - rmean * scale
        return {
            # (kh, kw*cin, cout): one (kw*cin, cout) matmul operand per kernel-row tap.
            "w": w.reshape(kh, kw * cin, cout).astype(jnp.bfloat16),
            "scale": scale.reshape(1, cout),
            "shift": shift.reshape(1, cout),
        }

    def block_p(cin, cout, downsample):
        return {
            "conv1": conv_bn_p(3, 3, cin, cout),
            "conv2": conv_bn_p(3, 3, cout, cout),
            "down": conv_bn_p(1, 1, cin, cout) if downsample else None,
        }

    params = {"stem": conv_bn_p(7, 7, 3, 64)}
    params["layer1"] = [block_p(64, 64, False), block_p(64, 64, False)]
    params["layer2"] = [block_p(64, 128, True), block_p(128, 128, False)]
    params["layer3"] = [block_p(128, 256, True), block_p(256, 256, False)]
    params["layer4"] = [block_p(256, 512, True), block_p(512, 512, False)]

    dim_mlp = 512
    k1, k2, k3, k4 = next(keys), next(keys), next(keys), next(keys)
    params["head"] = {
        "w1": (jax.random.normal(k1, (dim_mlp, dim_mlp), jnp.float32)
               / math.sqrt(dim_mlp)).astype(jnp.bfloat16),
        "b1": 0.01 * jax.random.normal(k2, (dim_mlp,), jnp.float32),
        "w2": (jax.random.normal(k3, (dim_mlp, out_dim), jnp.float32)
               / math.sqrt(dim_mlp)).astype(jnp.bfloat16),
        "b2": 0.01 * jax.random.normal(k4, (out_dim,), jnp.float32),
    }
    return params


if __name__ == "__main__":
    root_key = jax.random.PRNGKey(0)
    params = init_params(root_key, out_dim=3)
    x = jax.random.normal(jax.random.fold_in(root_key, 123), (2, 3, 16, 16), jnp.float32)

    forward = jax.jit(resnet_simclr_forward)
    out = jax.block_until_ready(forward(x, params))

    assert out.shape == (2, 3), out.shape
    assert out.dtype == jnp.float32
    assert bool(jnp.all(jnp.isfinite(out)))
    print("KERNEL_OK")
</pallas_src>

<mosaic_0001>
module attributes {stable_mosaic.version = 11 : i64} {
  func.func @kernel(%arg0: i32, %arg1: i32, %arg2: i32, %arg3: memref<1x1x8x21xbf16, #tpu.memory_space<vmem>>, %arg4: memref<1x21x64xbf16, #tpu.memory_space<vmem>>, %arg5: memref<1x64xf32, #tpu.memory_space<vmem>>, %arg6: memref<1x64xf32, #tpu.memory_space<vmem>>, %arg7: memref<1x1x8x64xf32, #tpu.memory_space<vmem>>, %arg8: memref<8x64xf32, #tpu.memory_space<vmem>>) attributes {dimension_semantics = [#tpu.dimension_semantics<parallel>, #tpu.dimension_semantics<parallel>, #tpu.dimension_semantics<arbitrary>], iteration_bounds = array<i64: 2, 8, 7>, scalar_prefetch = 0 : i64, scratch_operands = 1 : i64, tpu.core_type = #tpu.core_type<tc>, window_params = [{transform_indices = @transform_0, window_bounds = array<i64: 1, 1, 8, 21>}, {transform_indices = @transform_1, window_bounds = array<i64: 1, 21, 64>}, {pipeline_mode = #tpu.pipeline_mode<synchronous>, transform_indices = @transform_2, window_bounds = array<i64: 1, 64>}, {pipeline_mode = #tpu.pipeline_mode<synchronous>, transform_indices = @transform_3, window_bounds = array<i64: 1, 64>}, {transform_indices = @transform_4, window_bounds = array<i64: 1, 1, 8, 64>}]} {
    %c0_i32 = arith.constant 0 : i32
    %0 = arith.cmpi eq, %arg2, %c0_i32 : i32
    %1 = arith.extui %0 : i1 to i32
    %c0_i32_0 = arith.constant 0 : i32
    %2 = arith.cmpi ne, %1, %c0_i32_0 : i32
    scf.if %2 {
      %cst_12 = arith.constant 0.000000e+00 : f32
      %14 = vector.broadcast %cst_12 : f32 to vector<8x64xf32>
      %c0_13 = arith.constant 0 : index
      %c0_14 = arith.constant 0 : index
      %15 = vector.load %arg8[%c0_13, %c0_14] : memref<8x64xf32, #tpu.memory_space<vmem>>, vector<8x64xf32>
      tpu.vector_store %arg8[%c0_13, %c0_14], %14 {strides = array<i32>} : memref<8x64xf32, #tpu.memory_space<vmem>>, vector<8x64xf32>,
    } else {
    }
    %c0 = arith.constant 0 : index
    %c0_1 = arith.constant 0 : index
    %c0_2 = arith.constant 0 : index
    %c0_3 = arith.constant 0 : index
    %3 = vector.load %arg3[%c0, %c0_1, %c0_2, %c0_3] : memref<1x1x8x21xbf16, #tpu.memory_space<vmem>>, vector<1x1x8x21xbf16>
    %4 = vector.shape_cast %3 : vector<1x1x8x21xbf16> to vector<8x21xbf16>
    %c0_4 = arith.constant 0 : index
    %c0_5 = arith.constant 0 : index
    %c0_6 = arith.constant 0 : index
    %5 = vector.load %arg4[%c0_4, %c0_5, %c0_6] : memref<1x21x64xbf16, #tpu.memory_space<vmem>>, vector<1x21x64xbf16>
    %6 = vector.shape_cast %5 : vector<1x21x64xbf16> to vector<21x64xbf16>
    %c0_7 = arith.constant 0 : index
    %c0_8 = arith.constant 0 : index
    %7 = vector.load %arg8[%c0_7, %c0_8] : memref<8x64xf32, #tpu.memory_space<vmem>>, vector<8x64xf32>
    %cst = arith.constant dense<0.000000e+00> : vector<8x64xf32>
    %8 = tpu.matmul %4, %6, %cst {dimension_numbers = #tpu.dot_dimension_numbers<[1], [0], [0], [1], [0, 0, 1, 1], [], []>} : vector<8x21xbf16>, vector<21x64xbf16>, vector<8x64xf32> -> vector<8x64xf32>
    %9 = arith.addf %7, %8 : vector<8x64xf32>
    %c0_9 = arith.constant 0 : index
    %c0_10 = arith.constant 0 : index
    %10 = vector.load %arg8[%c0_9, %c0_10] : memref<8x64xf32, #tpu.memory_space<vmem>>, vector<8x64xf32>
    tpu.vector_store %arg8[%c0_9, %c0_10], %9 {strides = array<i32>} : memref<8x64xf32, #tpu.memory_space<vmem>>, vector<8x64xf32>,
    %c6_i32 = arith.constant 6 : i32
    %11 = arith.cmpi eq, %arg2, %c6_i32 : i32
    %12 = arith.extui %11 : i1 to i32
    %c0_i32_11 = arith.constant 0 : i32
    %13 = arith.cmpi ne, %12, %c0_i32_11 : i32
    scf.if %13 {
      %c0_12 = arith.constant 0 : index
      %c0_13 = arith.constant 0 : index
      %14 = vector.load %arg8[%c0_12, %c0_13] : memref<8x64xf32, #tpu.memory_space<vmem>>, vector<8x64xf32>
      %c0_14 = arith.constant 0 : index
      %c0_15 = arith.constant 0 : index
      %15 = vector.load %arg5[%c0_14, %c0_15] : memref<1x64xf32, #tpu.memory_space<vmem>>, vector<1x64xf32>
      %16 = vector.broadcast %15 : vector<1x64xf32> to vector<8x64xf32>
      %17 = arith.mulf %14, %16 : vector<8x64xf32>
      %c0_16 = arith.constant 0 : index
      %c0_17 = arith.constant 0 : index
      %18 = vector.load %arg6[%c0_16, %c0_17] : memref<1x64xf32, #tpu.memory_space<vmem>>, vector<1x64xf32>
      %19 = vector.broadcast %18 : vector<1x64xf32> to vector<8x64xf32>
      %20 = arith.addf %17, %19 : vector<8x64xf32>
      %cst_18 = arith.constant 0.000000e+00 : f32
      %21 = vector.broadcast %cst_18 : f32 to vector<8x64xf32>
      %22 = arith.maximumf %20, %21 : vector<8x64xf32>
      %23 = vector.shape_cast %22 : vector<8x64xf32> to vector<1x1x8x64xf32>
      %c0_19 = arith.constant 0 : index
      %c0_20 = arith.constant 0 : index
      %c0_21 = arith.constant 0 : index
      %c0_22 = arith.constant 0 : index
      %24 = vector.load %arg7[%c0_19, %c0_20, %c0_21, %c0_22] : memref<1x1x8x64xf32, #tpu.memory_space<vmem>>, vector<1x1x8x64xf32>
      tpu.vector_store %arg7[%c0_19, %c0_20, %c0_21, %c0_22], %23 {strides = array<i32>} : memref<1x1x8x64xf32, #tpu.memory_space<vmem>>, vector<1x1x8x64xf32>,
    } else {
    }
    return
  }
  func.func @transform_0(%arg0: i32, %arg1: i32, %arg2: i32) -> (i32, i32, i32, i32) {
    %c2_i32 = arith.constant 2 : i32
    %0 = arith.muli %c2_i32, %arg1 : i32
    %1 = arith.addi %0, %arg2 : i32
    %c0_i32 = arith.constant 0 : i32
    %c0_i32_0 = arith.constant 0 : i32
    %c0_i32_1 = arith.constant 0 : i32
    return %arg0, %1, %c0_i32, %c0_i32_0 : i32, i32, i32, i32
  }
  func.func @transform_1(%arg0: i32, %arg1: i32, %arg2: i32) -> (i32, i32, i32) {
    %c0_i32 = arith.constant 0 : i32
    %c0_i32_0 = arith.constant 0 : i32
    %c0_i32_1 = arith.constant 0 : i32
    return %arg2, %c0_i32, %c0_i32_0 : i32, i32, i32
  }
  func.func @transform_2(%arg0: i32, %arg1: i32, %arg2: i32) -> (i32, i32) {
    %c0_i32 = arith.constant 0 : i32
    %c0_i32_0 = arith.constant 0 : i32
    %c0_i32_1 = arith.constant 0 : i32
    return %c0_i32, %c0_i32_0 : i32, i32
  }
  func.func @transform_3(%arg0: i32, %arg1: i32, %arg2: i32) -> (i32, i32) {
    %c0_i32 = arith.constant 0 : i32
    %c0_i32_0 = arith.constant 0 : i32
    %c0_i32_1 = arith.constant 0 : i32
    return %c0_i32, %c0_i32_0 : i32, i32
  }
  func.func @transform_4(%arg0: i32, %arg1: i32, %arg2: i32) -> (i32, i32, i32, i32) {
    %c0_i32 = arith.constant 0 : i32
    %c0_i32_0 = arith.constant 0 : i32
    %c0_i32_1 = arith.constant 0 : i32
    return %arg0, %arg1, %c0_i32, %c0_i32_0 : i32, i32, i32, i32
  }
}

module attributes {stable_mosaic.version = 11 : i64} {
  func.func @_maxpool_row_kernel(%arg0: i32, %arg1: i32, %arg2: memref<1x1x4x64xf32, #tpu.memory_space<vmem>>, %arg3: memref<1x1x4x64xf32, #tpu.memory_space<vmem>>, %arg4: memref<1x1x4x64xf32, #tpu.memory_space<vmem>>, %arg5: memref<1x1x4x64xf32, #tpu.memory_space<vmem>>) attributes {dimension_semantics = [#tpu.dimension_semantics<parallel>, #tpu.dimension_semantics<parallel>], iteration_bounds = array<i64: 2, 4>, scalar_prefetch = 0 : i64, scratch_operands = 0 : i64, tpu.core_type = #tpu.core_type<tc>, window_params = [{transform_indices = @transform_0, window_bounds = array<i64: 1, 1, 4, 64>}, {transform_indices = @transform_1, window_bounds = array<i64: 1, 1, 4, 64>}, {transform_indices = @transform_2, window_bounds = array<i64: 1, 1, 4, 64>}, {transform_indices = @transform_3, window_bounds = array<i64: 1, 1, 4, 64>}]} {
    %c0 = arith.constant 0 : index
    %c0_0 = arith.constant 0 : index
    %c0_1 = arith.constant 0 : index
    %c0_2 = arith.constant 0 : index
    %0 = vector.load %arg2[%c0, %c0_0, %c0_1, %c0_2] : memref<1x1x4x64xf32, #tpu.memory_space<vmem>>, vector<1x1x4x64xf32>
    %c0_3 = arith.constant 0 : index
    %c0_4 = arith.constant 0 : index
    %c0_5 = arith.constant 0 : index
    %c0_6 = arith.constant 0 : index
    %1 = vector.load %arg3[%c0_3, %c0_4, %c0_5, %c0_6] : memref<1x1x4x64xf32, #tpu.memory_space<vmem>>, vector<1x1x4x64xf32>
    %2 = arith.maximumf %0, %1 : vector<1x1x4x64xf32>
    %c0_7 = arith.constant 0 : index
    %c0_8 = arith.constant 0 : index
    %c0_9 = arith.constant 0 : index
    %c0_10 = arith.constant 0 : index
    %3 = vector.load %arg4[%c0_7, %c0_8, %c0_9, %c0_10] : memref<1x1x4x64xf32, #tpu.memory_space<vmem>>, vector<1x1x4x64xf32>
    %4 = arith.maximumf %2, %3 : vector<1x1x4x64xf32>
    %c0_11 = arith.constant 0 : index
    %c0_12 = arith.constant 0 : index
    %c0_13 = arith.constant 0 : index
    %c0_14 = arith.constant 0 : index
    %5 = vector.load %arg5[%c0_11, %c0_12, %c0_13, %c0_14] : memref<1x1x4x64xf32, #tpu.memory_space<vmem>>, vector<1x1x4x64xf32>
    tpu.vector_store %arg5[%c0_11, %c0_12, %c0_13, %c0_14], %4 {strides = array<i32>} : memref<1x1x4x64xf32, #tpu.memory_space<vmem>>, vector<1x1x4x64xf32>,
    return
  }
  func.func @transform_0(%arg0: i32, %arg1: i32) -> (i32, i32, i32, i32) {
    %c2_i32 = arith.constant 2 : i32
    %0 = arith.muli %c2_i32, %arg1 : i32
    %c0_i32 = arith.constant 0 : i32
    %c0_i32_0 = arith.constant 0 : i32
    %c0_i32_1 = arith.constant 0 : i32
    return %arg0, %0, %c0_i32, %c0_i32_0 : i32, i32, i32, i32
  }
  func.func @transform_1(%arg0: i32, %arg1: i32) -> (i32, i32, i32, i32) {
    %c2_i32 = arith.constant 2 : i32
    %0 = arith.muli %c2_i32, %arg1 : i32
    %c1_i32 = arith.constant 1 : i32
    %1 = arith.addi %0, %c1_i32 : i32
    %c0_i32 = arith.constant 0 : i32
    %c0_i32_0 = arith.constant 0 : i32
    %c0_i32_1 = arith.constant 0 : i32
    return %arg0, %1, %c0_i32, %c0_i32_0 : i32, i32, i32, i32
  }
  func.func @transform_2(%arg0: i32, %arg1: i32) -> (i32, i32, i32, i32) {
    %c2_i32 = arith.constant 2 : i32
    %0 = arith.muli %c2_i32, %arg1 : i32
    %c2_i32_0 = arith.constant 2 : i32
    %1 = arith.addi %0, %c2_i32_0 : i32
    %c0_i32 = arith.constant 0 : i32
    %c0_i32_1 = arith.constant 0 : i32
    %c0_i32_2 = arith.constant 0 : i32
    return %arg0, %1, %c0_i32, %c0_i32_1 : i32, i32, i32, i32
  }
  func.func @transform_3(%arg0: i32, %arg1: i32) -> (i32, i32, i32, i32) {
    %c0_i32 = arith.constant 0 : i32
    %c0_i32_0 = arith.constant 0 : i32
    %c0_i32_1 = arith.constant 0 : i32
    return %arg0, %arg1, %c0_i32, %c0_i32_0 : i32, i32, i32, i32
  }
}

module attributes {stable_mosaic.version = 11 : i64} {
  func.func @kernel(%arg0: i32, %arg1: i32, %arg2: i32, %arg3: memref<1x1x4x192xbf16, #tpu.memory_space<vmem>>, %arg4: memref<1x192x64xbf16, #tpu.memory_space<vmem>>, %arg5: memref<1x64xf32, #tpu.memory_space<vmem>>, %arg6: memref<1x64xf32, #tpu.memory_space<vmem>>, %arg7: memref<1x1x4x64xf32, #tpu.memory_space<vmem>>, %arg8: memref<4x64xf32, #tpu.memory_space<vmem>>) attributes {dimension_semantics = [#tpu.dimension_semantics<parallel>, #tpu.dimension_semantics<parallel>, #tpu.dimension_semantics<arbitrary>], iteration_bounds = array<i64: 2, 4, 3>, scalar_prefetch = 0 : i64, scratch_operands = 1 : i64, tpu.core_type = #tpu.core_type<tc>, window_params = [{transform_indices = @transform_0, window_bounds = array<i64: 1, 1, 4, 192>}, {transform_indices = @transform_1, window_bounds = array<i64: 1, 192, 64>}, {pipeline_mode = #tpu.pipeline_mode<synchronous>, transform_indices = @transform_2, window_bounds = array<i64: 1, 64>}, {pipeline_mode = #tpu.pipeline_mode<synchronous>, transform_indices = @transform_3, window_bounds = array<i64: 1, 64>}, {transform_indices = @transform_4, window_bounds = array<i64: 1, 1, 4, 64>}]} {
    %c0_i32 = arith.constant 0 : i32
    %0 = arith.cmpi eq, %arg2, %c0_i32 : i32
    %1 = arith.extui %0 : i1 to i32
    %c0_i32_0 = arith.constant 0 : i32
    %2 = arith.cmpi ne, %1, %c0_i32_0 : i32
    scf.if %2 {
      %cst_12 = arith.constant 0.000000e+00 : f32
      %14 = vector.broadcast %cst_12 : f32 to vector<4x64xf32>
      %c0_13 = arith.constant 0 : index
      %c0_14 = arith.constant 0 : index
      %15 = vector.load %arg8[%c0_13, %c0_14] : memref<4x64xf32, #tpu.memory_space<vmem>>, vector<4x64xf32>
      tpu.vector_store %arg8[%c0_13, %c0_14], %14 {strides = array<i32>} : memref<4x64xf32, #tpu.memory_space<vmem>>, vector<4x64xf32>,
    } else {
    }
    %c0 = arith.constant 0 : index
    %c0_1 = arith.constant 0 : index
    %c0_2 = arith.constant 0 : index
    %c0_3 = arith.constant 0 : index
    %3 = vector.load %arg3[%c0, %c0_1, %c0_2, %c0_3] : memref<1x1x4x192xbf16, #tpu.memory_space<vmem>>, vector<1x1x4x192xbf16>
    %4 = vector.shape_cast %3 : vector<1x1x4x192xbf16> to vector<4x192xbf16>
    %c0_4 = arith.constant 0 : index
    %c0_5 = arith.constant 0 : index
    %c0_6 = arith.constant 0 : index
    %5 = vector.load %arg4[%c0_4, %c0_5, %c0_6] : memref<1x192x64xbf16, #tpu.memory_space<vmem>>, vector<1x192x64xbf16>
    %6 = vector.shape_cast %5 : vector<1x192x64xbf16> to vector<192x64xbf16>
    %c0_7 = arith.constant 0 : index
    %c0_8 = arith.constant 0 : index
    %7 = vector.load %arg8[%c0_7, %c0_8] : memref<4x64xf32, #tpu.memory_space<vmem>>, vector<4x64xf32>
    %cst = arith.constant dense<0.000000e+00> : vector<4x64xf32>
    %8 = tpu.matmul %4, %6, %cst {dimension_numbers = #tpu.dot_dimension_numbers<[1], [0], [0], [1], [0, 0, 1, 1], [], []>} : vector<4x192xbf16>, vector<192x64xbf16>, vector<4x64xf32> -> vector<4x64xf32>
    %9 = arith.addf %7, %8 : vector<4x64xf32>
    %c0_9 = arith.constant 0 : index
    %c0_10 = arith.constant 0 : index
    %10 = vector.load %arg8[%c0_9, %c0_10] : memref<4x64xf32, #tpu.memory_space<vmem>>, vector<4x64xf32>
    tpu.vector_store %arg8[%c0_9, %c0_10], %9 {strides = array<i32>} : memref<4x64xf32, #tpu.memory_space<vmem>>, vector<4x64xf32>,
    %c2_i32 = arith.constant 2 : i32
    %11 = arith.cmpi eq, %arg2, %c2_i32 : i32
    %12 = arith.extui %11 : i1 to i32
    %c0_i32_11 = arith.constant 0 : i32
    %13 = arith.cmpi ne, %12, %c0_i32_11 : i32
    scf.if %13 {
      %c0_12 = arith.constant 0 : index
      %c0_13 = arith.constant 0 : index
      %14 = vector.load %arg8[%c0_12, %c0_13] : memref<4x64xf32, #tpu.memory_space<vmem>>, vector<4x64xf32>
      %c0_14 = arith.constant 0 : index
      %c0_15 = arith.constant 0 : index
      %15 = vector.load %arg5[%c0_14, %c0_15] : memref<1x64xf32, #tpu.memory_space<vmem>>, vector<1x64xf32>
      %16 = vector.broadcast %15 : vector<1x64xf32> to vector<4x64xf32>
      %17 = arith.mulf %14, %16 : vector<4x64xf32>
      %c0_16 = arith.constant 0 : index
      %c0_17 = arith.constant 0 : index
      %18 = vector.load %arg6[%c0_16, %c0_17] : memref<1x64xf32, #tpu.memory_space<vmem>>, vector<1x64xf32>
      %19 = vector.broadcast %18 : vector<1x64xf32> to vector<4x64xf32>
      %20 = arith.addf %17, %19 : vector<4x64xf32>
      %cst_18 = arith.constant 0.000000e+00 : f32
      %21 = vector.broadcast %cst_18 : f32 to vector<4x64xf32>
      %22 = arith.maximumf %20, %21 : vector<4x64xf32>
      %23 = vector.shape_cast %22 : vector<4x64xf32> to vector<1x1x4x64xf32>
      %c0_19 = arith.constant 0 : index
      %c0_20 = arith.constant 0 : index
      %c0_21 = arith.constant 0 : index
      %c0_22 = arith.constant 0 : index
      %24 = vector.load %arg7[%c0_19, %c0_20, %c0_21, %c0_22] : memref<1x1x4x64xf32, #tpu.memory_space<vmem>>, vector<1x1x4x64xf32>
      tpu.vector_store %arg7[%c0_19, %c0_20, %c0_21, %c0_22], %23 {strides = array<i32>} : memref<1x1x4x64xf32, #tpu.memory_space<vmem>>, vector<1x1x4x64xf32>,
    } else {
    }
    return
  }
  func.func @transform_0(%arg0: i32, %arg1: i32, %arg2: i32) -> (i32, i32, i32, i32) {
    %c1_i32 = arith.constant 1 : i32
    %0 = arith.muli %c1_i32, %arg1 : i32
    %1 = arith.addi %0, %arg2 : i32
    %c0_i32 = arith.constant 0 : i32
    %c0_i32_0 = arith.constant 0 : i32
    %c0_i32_1 = arith.constant 0 : i32
    return %arg0, %1, %c0_i32, %c0_i32_0 : i32, i32, i32, i32
  }
  func.func @transform_1(%arg0: i32, %arg1: i32, %arg2: i32) -> (i32, i32, i32) {
    %c0_i32 = arith.constant 0 : i32
    %c0_i32_0 = arith.constant 0 : i32
    %c0_i32_1 = arith.constant 0 : i32
    return %arg2, %c0_i32, %c0_i32_0 : i32, i32, i32
  }
  func.func @transform_2(%arg0: i32, %arg1: i32, %arg2: i32) -> (i32, i32) {
    %c0_i32 = arith.constant 0 : i32
    %c0_i32_0 = arith.constant 0 : i32
    %c0_i32_1 = arith.constant 0 : i32
    return %c0_i32, %c0_i32_0 : i32, i32
  }
  func.func @transform_3(%arg0: i32, %arg1: i32, %arg2: i32) -> (i32, i32) {
    %c0_i32 = arith.constant 0 : i32
    %c0_i32_0 = arith.constant 0 : i32
    %c0_i32_1 = arith.constant 0 : i32
    return %c0_i32, %c0_i32_0 : i32, i32
  }
  func.func @transform_4(%arg0: i32, %arg1: i32, %arg2: i32) -> (i32, i32, i32, i32) {
    %c0_i32 = arith.constant 0 : i32
    %c0_i32_0 = arith.constant 0 : i32
    %c0_i32_1 = arith.constant 0 : i32
    return %arg0, %arg1, %c0_i32, %c0_i32_0 : i32, i32, i32, i32
  }
}

module attributes {stable_mosaic.version = 11 : i64} {
  func.func @kernel(%arg0: i32, %arg1: i32, %arg2: i32, %arg3: memref<1x1x4x192xbf16, #tpu.memory_space<vmem>>, %arg4: memref<1x192x64xbf16, #tpu.memory_space<vmem>>, %arg5: memref<1x64xf32, #tpu.memory_space<vmem>>, %arg6: memref<1x64xf32, #tpu.memory_space<vmem>>, %arg7: memref<1x1x4x64xf32, #tpu.memory_space<vmem>>, %arg8: memref<1x1x4x64xf32, #tpu.memory_space<vmem>>, %arg9: memref<4x64xf32, #tpu.memory_space<vmem>>) attributes {dimension_semantics = [#tpu.dimension_semantics<parallel>, #tpu.dimension_semantics<parallel>, #tpu.dimension_semantics<arbitrary>], iteration_bounds = array<i64: 2, 4, 3>, scalar_prefetch = 0 : i64, scratch_operands = 1 : i64, tpu.core_type = #tpu.core_type<tc>, window_params = [{transform_indices = @transform_0, window_bounds = array<i64: 1, 1, 4, 192>}, {transform_indices = @transform_1, window_bounds = array<i64: 1, 192, 64>}, {pipeline_mode = #tpu.pipeline_mode<synchronous>, transform_indices = @transform_2, window_bounds = array<i64: 1, 64>}, {pipeline_mode = #tpu.pipeline_mode<synchronous>, transform_indices = @transform_3, window_bounds = array<i64: 1, 64>}, {transform_indices = @transform_4, window_bounds = array<i64: 1, 1, 4, 64>}, {transform_indices = @transform_5, window_bounds = array<i64: 1, 1, 4, 64>}]} {
    %c0_i32 = arith.constant 0 : i32
    %0 = arith.cmpi eq, %arg2, %c0_i32 : i32
    %1 = arith.extui %0 : i1 to i32
    %c0_i32_0 = arith.constant 0 : i32
    %2 = arith.cmpi ne, %1, %c0_i32_0 : i32
    scf.if %2 {
      %cst_12 = arith.constant 0.000000e+00 : f32
      %14 = vector.broadcast %cst_12 : f32 to vector<4x64xf32>
      %c0_13 = arith.constant 0 : index
      %c0_14 = arith.constant 0 : index
      %15 = vector.load %arg9[%c0_13, %c0_14] : memref<4x64xf32, #tpu.memory_space<vmem>>, vector<4x64xf32>
      tpu.vector_store %arg9[%c0_13, %c0_14], %14 {strides = array<i32>} : memref<4x64xf32, #tpu.memory_space<vmem>>, vector<4x64xf32>,
    } else {
    }
    %c0 = arith.constant 0 : index
    %c0_1 = arith.constant 0 : index
    %c0_2 = arith.constant 0 : index
    %c0_3 = arith.constant 0 : index
    %3 = vector.load %arg3[%c0, %c0_1, %c0_2, %c0_3] : memref<1x1x4x192xbf16, #tpu.memory_space<vmem>>, vector<1x1x4x192xbf16>
    %4 = vector.shape_cast %3 : vector<1x1x4x192xbf16> to vector<4x192xbf16>
    %c0_4 = arith.constant 0 : index
    %c0_5 = arith.constant 0 : index
    %c0_6 = arith.constant 0 : index
    %5 = vector.load %arg4[%c0_4, %c0_5, %c0_6] : memref<1x192x64xbf16, #tpu.memory_space<vmem>>, vector<1x192x64xbf16>
    %6 = vector.shape_cast %5 : vector<1x192x64xbf16> to vector<192x64xbf16>
    %c0_7 = arith.constant 0 : index
    %c0_8 = arith.constant 0 : index
    %7 = vector.load %arg9[%c0_7, %c0_8] : memref<4x64xf32, #tpu.memory_space<vmem>>, vector<4x64xf32>
    %cst = arith.constant dense<0.000000e+00> : vector<4x64xf32>
    %8 = tpu.matmul %4, %6, %cst {dimension_numbers = #tpu.dot_dimension_numbers<[1], [0], [0], [1], [0, 0, 1, 1], [], []>} : vector<4x192xbf16>, vector<192x64xbf16>, vector<4x64xf32> -> vector<4x64xf32>
    %9 = arith.addf %7, %8 : vector<4x64xf32>
    %c0_9 = arith.constant 0 : index
    %c0_10 = arith.constant 0 : index
    %10 = vector.load %arg9[%c0_9, %c0_10] : memref<4x64xf32, #tpu.memory_space<vmem>>, vector<4x64xf32>
    tpu.vector_store %arg9[%c0_9, %c0_10], %9 {strides = array<i32>} : memref<4x64xf32, #tpu.memory_space<vmem>>, vector<4x64xf32>,
    %c2_i32 = arith.constant 2 : i32
    %11 = arith.cmpi eq, %arg2, %c2_i32 : i32
    %12 = arith.extui %11 : i1 to i32
    %c0_i32_11 = arith.constant 0 : i32
    %13 = arith.cmpi ne, %12, %c0_i32_11 : i32
    scf.if %13 {
      %c0_12 = arith.constant 0 : index
      %c0_13 = arith.constant 0 : index
      %14 = vector.load %arg9[%c0_12, %c0_13] : memref<4x64xf32, #tpu.memory_space<vmem>>, vector<4x64xf32>
      %c0_14 = arith.constant 0 : index
      %c0_15 = arith.constant 0 : index
      %15 = vector.load %arg5[%c0_14, %c0_15] : memref<1x64xf32, #tpu.memory_space<vmem>>, vector<1x64xf32>
      %16 = vector.broadcast %15 : vector<1x64xf32> to vector<4x64xf32>
      %17 = arith.mulf %14, %16 : vector<4x64xf32>
      %c0_16 = arith.constant 0 : index
      %c0_17 = arith.constant 0 : index
      %18 = vector.load %arg6[%c0_16, %c0_17] : memref<1x64xf32, #tpu.memory_space<vmem>>, vector<1x64xf32>
      %19 = vector.broadcast %18 : vector<1x64xf32> to vector<4x64xf32>
      %20 = arith.addf %17, %19 : vector<4x64xf32>
      %c0_18 = arith.constant 0 : index
      %c0_19 = arith.constant 0 : index
      %c0_20 = arith.constant 0 : index
      %c0_21 = arith.constant 0 : index
      %21 = vector.load %arg7[%c0_18, %c0_19, %c0_20, %c0_21] : memref<1x1x4x64xf32, #tpu.memory_space<vmem>>, vector<1x1x4x64xf32>
      %22 = vector.shape_cast %21 : vector<1x1x4x64xf32> to vector<4x64xf32>
      %23 = arith.addf %20, %22 : vector<4x64xf32>
      %cst_22 = arith.constant 0.000000e+00 : f32
      %24 = vector.broadcast %cst_22 : f32 to vector<4x64xf32>
      %25 = arith.maximumf %23, %24 : vector<4x64xf32>
      %26 = vector.shape_cast %25 : vector<4x64xf32> to vector<1x1x4x64xf32>
      %c0_23 = arith.constant 0 : index
      %c0_24 = arith.constant 0 : index
      %c0_25 = arith.constant 0 : index
      %c0_26 = arith.constant 0 : index
      %27 = vector.load %arg8[%c0_23, %c0_24, %c0_25, %c0_26] : memref<1x1x4x64xf32, #tpu.memory_space<vmem>>, vector<1x1x4x64xf32>
      tpu.vector_store %arg8[%c0_23, %c0_24, %c0_25, %c0_26], %26 {strides = array<i32>} : memref<1x1x4x64xf32, #tpu.memory_space<vmem>>, vector<1x1x4x64xf32>,
    } else {
    }
    return
  }
  func.func @transform_0(%arg0: i32, %arg1: i32, %arg2: i32) -> (i32, i32, i32, i32) {
    %c1_i32 = arith.constant 1 : i32
    %0 = arith.muli %c1_i32, %arg1 : i32
    %1 = arith.addi %0, %arg2 : i32
    %c0_i32 = arith.constant 0 : i32
    %c0_i32_0 = arith.constant 0 : i32
    %c0_i32_1 = arith.constant 0 : i32
    return %arg0, %1, %c0_i32, %c0_i32_0 : i32, i32, i32, i32
  }
  func.func @transform_1(%arg0: i32, %arg1: i32, %arg2: i32) -> (i32, i32, i32) {
    %c0_i32 = arith.constant 0 : i32
    %c0_i32_0 = arith.constant 0 : i32
    %c0_i32_1 = arith.constant 0 : i32
    return %arg2, %c0_i32, %c0_i32_0 : i32, i32, i32
  }
  func.func @transform_2(%arg0: i32, %arg1: i32, %arg2: i32) -> (i32, i32) {
    %c0_i32 = arith.constant 0 : i32
    %c0_i32_0 = arith.constant 0 : i32
    %c0_i32_1 = arith.constant 0 : i32
    return %c0_i32, %c0_i32_0 : i32, i32
  }
  func.func @transform_3(%arg0: i32, %arg1: i32, %arg2: i32) -> (i32, i32) {
    %c0_i32 = arith.constant 0 : i32
    %c0_i32_0 = arith.constant 0 : i32
    %c0_i32_1 = arith.constant 0 : i32
    return %c0_i32, %c0_i32_0 : i32, i32
  }
  func.func @transform_4(%arg0: i32, %arg1: i32, %arg2: i32) -> (i32, i32, i32, i32) {
    %c0_i32 = arith.constant 0 : i32
    %c0_i32_0 = arith.constant 0 : i32
    %c0_i32_1 = arith.constant 0 : i32
    return %arg0, %arg1, %c0_i32, %c0_i32_0 : i32, i32, i32, i32
  }
  func.func @transform_5(%arg0: i32, %arg1: i32, %arg2: i32) -> (i32, i32, i32, i32) {
    %c0_i32 = arith.constant 0 : i32
    %c0_i32_0 = arith.constant 0 : i32
    %c0_i32_1 = arith.constant 0 : i32
    return %arg0, %arg1, %c0_i32, %c0_i32_0 : i32, i32, i32, i32
  }
}

module attributes {stable_mosaic.version = 11 : i64} {
  func.func @kernel(%arg0: i32, %arg1: i32, %arg2: i32, %arg3: memref<1x1x4x192xbf16, #tpu.memory_space<vmem>>, %arg4: memref<1x192x64xbf16, #tpu.memory_space<vmem>>, %arg5: memref<1x64xf32, #tpu.memory_space<vmem>>, %arg6: memref<1x64xf32, #tpu.memory_space<vmem>>, %arg7: memref<1x1x4x64xf32, #tpu.memory_space<vmem>>, %arg8: memref<4x64xf32, #tpu.memory_space<vmem>>) attributes {dimension_semantics = [#tpu.dimension_semantics<parallel>, #tpu.dimension_semantics<parallel>, #tpu.dimension_semantics<arbitrary>], iteration_bounds = array<i64: 2, 4, 3>, scalar_prefetch = 0 : i64, scratch_operands = 1 : i64, tpu.core_type = #tpu.core_type<tc>, window_params = [{transform_indices = @transform_0, window_bounds = array<i64: 1, 1, 4, 192>}, {transform_indices = @transform_1, window_bounds = array<i64: 1, 192, 64>}, {pipeline_mode = #tpu.pipeline_mode<synchronous>, transform_indices = @transform_2, window_bounds = array<i64: 1, 64>}, {pipeline_mode = #tpu.pipeline_mode<synchronous>, transform_indices = @transform_3, window_bounds = array<i64: 1, 64>}, {transform_indices = @transform_4, window_bounds = array<i64: 1, 1, 4, 64>}]} {
    %c0_i32 = arith.constant 0 : i32
    %0 = arith.cmpi eq, %arg2, %c0_i32 : i32
    %1 = arith.extui %0 : i1 to i32
    %c0_i32_0 = arith.constant 0 : i32
    %2 = arith.cmpi ne, %1, %c0_i32_0 : i32
    scf.if %2 {
      %cst_12 = arith.constant 0.000000e+00 : f32
      %14 = vector.broadcast %cst_12 : f32 to vector<4x64xf32>
      %c0_13 = arith.constant 0 : index
      %c0_14 = arith.constant 0 : index
      %15 = vector.load %arg8[%c0_13, %c0_14] : memref<4x64xf32, #tpu.memory_space<vmem>>, vector<4x64xf32>
      tpu.vector_store %arg8[%c0_13, %c0_14], %14 {strides = array<i32>} : memref<4x64xf32, #tpu.memory_space<vmem>>, vector<4x64xf32>,
    } else {
    }
    %c0 = arith.constant 0 : index
    %c0_1 = arith.constant 0 : index
    %c0_2 = arith.constant 0 : index
    %c0_3 = arith.constant 0 : index
    %3 = vector.load %arg3[%c0, %c0_1, %c0_2, %c0_3] : memref<1x1x4x192xbf16, #tpu.memory_space<vmem>>, vector<1x1x4x192xbf16>
    %4 = vector.shape_cast %3 : vector<1x1x4x192xbf16> to vector<4x192xbf16>
    %c0_4 = arith.constant 0 : index
    %c0_5 = arith.constant 0 : index
    %c0_6 = arith.constant 0 : index
    %5 = vector.load %arg4[%c0_4, %c0_5, %c0_6] : memref<1x192x64xbf16, #tpu.memory_space<vmem>>, vector<1x192x64xbf16>
    %6 = vector.shape_cast %5 : vector<1x192x64xbf16> to vector<192x64xbf16>
    %c0_7 = arith.constant 0 : index
    %c0_8 = arith.constant 0 : index
    %7 = vector.load %arg8[%c0_7, %c0_8] : memref<4x64xf32, #tpu.memory_space<vmem>>, vector<4x64xf32>
    %cst = arith.constant dense<0.000000e+00> : vector<4x64xf32>
    %8 = tpu.matmul %4, %6, %cst {dimension_numbers = #tpu.dot_dimension_numbers<[1], [0], [0], [1], [0, 0, 1, 1], [], []>} : vector<4x192xbf16>, vector<192x64xbf16>, vector<4x64xf32> -> vector<4x64xf32>
    %9 = arith.addf %7, %8 : vector<4x64xf32>
    %c0_9 = arith.constant 0 : index
    %c0_10 = arith.constant 0 : index
    %10 = vector.load %arg8[%c0_9, %c0_10] : memref<4x64xf32, #tpu.memory_space<vmem>>, vector<4x64xf32>
    tpu.vector_store %arg8[%c0_9, %c0_10], %9 {strides = array<i32>} : memref<4x64xf32, #tpu.memory_space<vmem>>, vector<4x64xf32>,
    %c2_i32 = arith.constant 2 : i32
    %11 = arith.cmpi eq, %arg2, %c2_i32 : i32
    %12 = arith.extui %11 : i1 to i32
    %c0_i32_11 = arith.constant 0 : i32
    %13 = arith.cmpi ne, %12, %c0_i32_11 : i32
    scf.if %13 {
      %c0_12 = arith.constant 0 : index
      %c0_13 = arith.constant 0 : index
      %14 = vector.load %arg8[%c0_12, %c0_13] : memref<4x64xf32, #tpu.memory_space<vmem>>, vector<4x64xf32>
      %c0_14 = arith.constant 0 : index
      %c0_15 = arith.constant 0 : index
      %15 = vector.load %arg5[%c0_14, %c0_15] : memref<1x64xf32, #tpu.memory_space<vmem>>, vector<1x64xf32>
      %16 = vector.broadcast %15 : vector<1x64xf32> to vector<4x64xf32>
      %17 = arith.mulf %14, %16 : vector<4x64xf32>
      %c0_16 = arith.constant 0 : index
      %c0_17 = arith.constant 0 : index
      %18 = vector.load %arg6[%c0_16, %c0_17] : memref<1x64xf32, #tpu.memory_space<vmem>>, vector<1x64xf32>
      %19 = vector.broadcast %18 : vector<1x64xf32> to vector<4x64xf32>
      %20 = arith.addf %17, %19 : vector<4x64xf32>
      %cst_18 = arith.constant 0.000000e+00 : f32
      %21 = vector.broadcast %cst_18 : f32 to vector<4x64xf32>
      %22 = arith.maximumf %20, %21 : vector<4x64xf32>
      %23 = vector.shape_cast %22 : vector<4x64xf32> to vector<1x1x4x64xf32>
      %c0_19 = arith.constant 0 : index
      %c0_20 = arith.constant 0 : index
      %c0_21 = arith.constant 0 : index
      %c0_22 = arith.constant 0 : index
      %24 = vector.load %arg7[%c0_19, %c0_20, %c0_21, %c0_22] : memref<1x1x4x64xf32, #tpu.memory_space<vmem>>, vector<1x1x4x64xf32>
      tpu.vector_store %arg7[%c0_19, %c0_20, %c0_21, %c0_22], %23 {strides = array<i32>} : memref<1x1x4x64xf32, #tpu.memory_space<vmem>>, vector<1x1x4x64xf32>,
    } else {
    }
    return
  }
  func.func @transform_0(%arg0: i32, %arg1: i32, %arg2: i32) -> (i32, i32, i32, i32) {
    %c1_i32 = arith.constant 1 : i32
    %0 = arith.muli %c1_i32, %arg1 : i32
    %1 = arith.addi %0, %arg2 : i32
    %c0_i32 = arith.constant 0 : i32
    %c0_i32_0 = arith.constant 0 : i32
    %c0_i32_1 = arith.constant 0 : i32
    return %arg0, %1, %c0_i32, %c0_i32_0 : i32, i32, i32, i32
  }
  func.func @transform_1(%arg0: i32, %arg1: i32, %arg2: i32) -> (i32, i32, i32) {
    %c0_i32 = arith.constant 0 : i32
    %c0_i32_0 = arith.constant 0 : i32
    %c0_i32_1 = arith.constant 0 : i32
    return %arg2, %c0_i32, %c0_i32_0 : i32, i32, i32
  }
  func.func @transform_2(%arg0: i32, %arg1: i32, %arg2: i32) -> (i32, i32) {
    %c0_i32 = arith.constant 0 : i32
    %c0_i32_0 = arith.constant 0 : i32
    %c0_i32_1 = arith.constant 0 : i32
    return %c0_i32, %c0_i32_0 : i32, i32
  }
  func.func @transform_3(%arg0: i32, %arg1: i32, %arg2: i32) -> (i32, i32) {
    %c0_i32 = arith.constant 0 : i32
    %c0_i32_0 = arith.constant 0 : i32
    %c0_i32_1 = arith.constant 0 : i32
    return %c0_i32, %c0_i32_0 : i32, i32
  }
  func.func @transform_4(%arg0: i32, %arg1: i32, %arg2: i32) -> (i32, i32, i32, i32) {
    %c0_i32 = arith.constant 0 : i32
    %c0_i32_0 = arith.constant 0 : i32
    %c0_i32_1 = arith.constant 0 : i32
    return %arg0, %arg1, %c0_i32, %c0_i32_0 : i32, i32, i32, i32
  }
}

module attributes {stable_mosaic.version = 11 : i64} {
  func.func @kernel(%arg0: i32, %arg1: i32, %arg2: i32, %arg3: memref<1x1x2x192xbf16, #tpu.memory_space<vmem>>, %arg4: memref<1x192x128xbf16, #tpu.memory_space<vmem>>, %arg5: memref<1x128xf32, #tpu.memory_space<vmem>>, %arg6: memref<1x128xf32, #tpu.memory_space<vmem>>, %arg7: memref<1x1x2x128xf32, #tpu.memory_space<vmem>>, %arg8: memref<2x128xf32, #tpu.memory_space<vmem>>) attributes {dimension_semantics = [#tpu.dimension_semantics<parallel>, #tpu.dimension_semantics<parallel>, #tpu.dimension_semantics<arbitrary>], iteration_bounds = array<i64: 2, 2, 3>, scalar_prefetch = 0 : i64, scratch_operands = 1 : i64, tpu.core_type = #tpu.core_type<tc>, window_params = [{transform_indices = @transform_0, window_bounds = array<i64: 1, 1, 2, 192>}, {transform_indices = @transform_1, window_bounds = array<i64: 1, 192, 128>}, {pipeline_mode = #tpu.pipeline_mode<synchronous>, transform_indices = @transform_2, window_bounds = array<i64: 1, 128>}, {pipeline_mode = #tpu.pipeline_mode<synchronous>, transform_indices = @transform_3, window_bounds = array<i64: 1, 128>}, {transform_indices = @transform_4, window_bounds = array<i64: 1, 1, 2, 128>}]} {
    %c0_i32 = arith.constant 0 : i32
    %0 = arith.cmpi eq, %arg2, %c0_i32 : i32
    %1 = arith.extui %0 : i1 to i32
    %c0_i32_0 = arith.constant 0 : i32
    %2 = arith.cmpi ne, %1, %c0_i32_0 : i32
    scf.if %2 {
      %cst_12 = arith.constant 0.000000e+00 : f32
      %14 = vector.broadcast %cst_12 : f32 to vector<2x128xf32>
      %c0_13 = arith.constant 0 : index
      %c0_14 = arith.constant 0 : index
      %15 = vector.load %arg8[%c0_13, %c0_14] : memref<2x128xf32, #tpu.memory_space<vmem>>, vector<2x128xf32>
      tpu.vector_store %arg8[%c0_13, %c0_14], %14 {strides = array<i32>} : memref<2x128xf32, #tpu.memory_space<vmem>>, vector<2x128xf32>,
    } else {
    }
    %c0 = arith.constant 0 : index
    %c0_1 = arith.constant 0 : index
    %c0_2 = arith.constant 0 : index
    %c0_3 = arith.constant 0 : index
    %3 = vector.load %arg3[%c0, %c0_1, %c0_2, %c0_3] : memref<1x1x2x192xbf16, #tpu.memory_space<vmem>>, vector<1x1x2x192xbf16>
    %4 = vector.shape_cast %3 : vector<1x1x2x192xbf16> to vector<2x192xbf16>
    %c0_4 = arith.constant 0 : index
    %c0_5 = arith.constant 0 : index
    %c0_6 = arith.constant 0 : index
    %5 = vector.load %arg4[%c0_4, %c0_5, %c0_6] : memref<1x192x128xbf16, #tpu.memory_space<vmem>>, vector<1x192x128xbf16>
    %6 = vector.shape_cast %5 : vector<1x192x128xbf16> to vector<192x128xbf16>
    %c0_7 = arith.constant 0 : index
    %c0_8 = arith.constant 0 : index
    %7 = vector.load %arg8[%c0_7, %c0_8] : memref<2x128xf32, #tpu.memory_space<vmem>>, vector<2x128xf32>
    %cst = arith.constant dense<0.000000e+00> : vector<2x128xf32>
    %8 = tpu.matmul %4, %6, %cst {dimension_numbers = #tpu.dot_dimension_numbers<[1], [0], [0], [1], [0, 0, 1, 1], [], []>} : vector<2x192xbf16>, vector<192x128xbf16>, vector<2x128xf32> -> vector<2x128xf32>
    %9 = arith.addf %7, %8 : vector<2x128xf32>
    %c0_9 = arith.constant 0 : index
    %c0_10 = arith.constant 0 : index
    %10 = vector.load %arg8[%c0_9, %c0_10] : memref<2x128xf32, #tpu.memory_space<vmem>>, vector<2x128xf32>
    tpu.vector_store %arg8[%c0_9, %c0_10], %9 {strides = array<i32>} : memref<2x128xf32, #tpu.memory_space<vmem>>, vector<2x128xf32>,
    %c2_i32 = arith.constant 2 : i32
    %11 = arith.cmpi eq, %arg2, %c2_i32 : i32
    %12 = arith.extui %11 : i1 to i32
    %c0_i32_11 = arith.constant 0 : i32
    %13 = arith.cmpi ne, %12, %c0_i32_11 : i32
    scf.if %13 {
      %c0_12 = arith.constant 0 : index
      %c0_13 = arith.constant 0 : index
      %14 = vector.load %arg8[%c0_12, %c0_13] : memref<2x128xf32, #tpu.memory_space<vmem>>, vector<2x128xf32>
      %c0_14 = arith.constant 0 : index
      %c0_15 = arith.constant 0 : index
      %15 = vector.load %arg5[%c0_14, %c0_15] : memref<1x128xf32, #tpu.memory_space<vmem>>, vector<1x128xf32>
      %16 = vector.broadcast %15 : vector<1x128xf32> to vector<2x128xf32>
      %17 = arith.mulf %14, %16 : vector<2x128xf32>
      %c0_16 = arith.constant 0 : index
      %c0_17 = arith.constant 0 : index
      %18 = vector.load %arg6[%c0_16, %c0_17] : memref<1x128xf32, #tpu.memory_space<vmem>>, vector<1x128xf32>
      %19 = vector.broadcast %18 : vector<1x128xf32> to vector<2x128xf32>
      %20 = arith.addf %17, %19 : vector<2x128xf32>
      %cst_18 = arith.constant 0.000000e+00 : f32
      %21 = vector.broadcast %cst_18 : f32 to vector<2x128xf32>
      %22 = arith.maximumf %20, %21 : vector<2x128xf32>
      %23 = vector.shape_cast %22 : vector<2x128xf32> to vector<1x1x2x128xf32>
      %c0_19 = arith.constant 0 : index
      %c0_20 = arith.constant 0 : index
      %c0_21 = arith.constant 0 : index
      %c0_22 = arith.constant 0 : index
      %24 = vector.load %arg7[%c0_19, %c0_20, %c0_21, %c0_22] : memref<1x1x2x128xf32, #tpu.memory_space<vmem>>, vector<1x1x2x128xf32>
      tpu.vector_store %arg7[%c0_19, %c0_20, %c0_21, %c0_22], %23 {strides = array<i32>} : memref<1x1x2x128xf32, #tpu.memory_space<vmem>>, vector<1x1x2x128xf32>,
    } else {
    }
    return
  }
  func.func @transform_0(%arg0: i32, %arg1: i32, %arg2: i32) -> (i32, i32, i32, i32) {
    %c2_i32 = arith.constant 2 : i32
    %0 = arith.muli %c2_i32, %arg1 : i32
    %1 = arith.addi %0, %arg2 : i32
    %c0_i32 = arith.constant 0 : i32
    %c0_i32_0 = arith.constant 0 : i32
    %c0_i32_1 = arith.constant 0 : i32
    return %arg0, %1, %c0_i32, %c0_i32_0 : i32, i32, i32, i32
  }
  func.func @transform_1(%arg0: i32, %arg1: i32, %arg2: i32) -> (i32, i32, i32) {
    %c0_i32 = arith.constant 0 : i32
    %c0_i32_0 = arith.constant 0 : i32
    %c0_i32_1 = arith.constant 0 : i32
    return %arg2, %c0_i32, %c0_i32_0 : i32, i32, i32
  }
  func.func @transform_2(%arg0: i32, %arg1: i32, %arg2: i32) -> (i32, i32) {
    %c0_i32 = arith.constant 0 : i32
    %c0_i32_0 = arith.constant 0 : i32
    %c0_i32_1 = arith.constant 0 : i32
    return %c0_i32, %c0_i32_0 : i32, i32
  }
  func.func @transform_3(%arg0: i32, %arg1: i32, %arg2: i32) -> (i32, i32) {
    %c0_i32 = arith.constant 0 : i32
    %c0_i32_0 = arith.constant 0 : i32
    %c0_i32_1 = arith.constant 0 : i32
    return %c0_i32, %c0_i32_0 : i32, i32
  }
  func.func @transform_4(%arg0: i32, %arg1: i32, %arg2: i32) -> (i32, i32, i32, i32) {
    %c0_i32 = arith.constant 0 : i32
    %c0_i32_0 = arith.constant 0 : i32
    %c0_i32_1 = arith.constant 0 : i32
    return %arg0, %arg1, %c0_i32, %c0_i32_0 : i32, i32, i32, i32
  }
}

module attributes {stable_mosaic.version = 11 : i64} {
  func.func @kernel(%arg0: i32, %arg1: i32, %arg2: i32, %arg3: memref<1x1x2x384xbf16, #tpu.memory_space<vmem>>, %arg4: memref<1x384x128xbf16, #tpu.memory_space<vmem>>, %arg5: memref<1x128xf32, #tpu.memory_space<vmem>>, %arg6: memref<1x128xf32, #tpu.memory_space<vmem>>, %arg7: memref<1x1x2x128xf32, #tpu.memory_space<vmem>>, %arg8: memref<1x1x2x128xf32, #tpu.memory_space<vmem>>, %arg9: memref<2x128xf32, #tpu.memory_space<vmem>>) attributes {dimension_semantics = [#tpu.dimension_semantics<parallel>, #tpu.dimension_semantics<parallel>, #tpu.dimension_semantics<arbitrary>], iteration_bounds = array<i64: 2, 2, 3>, scalar_prefetch = 0 : i64, scratch_operands = 1 : i64, tpu.core_type = #tpu.core_type<tc>, window_params = [{transform_indices = @transform_0, window_bounds = array<i64: 1, 1, 2, 384>}, {transform_indices = @transform_1, window_bounds = array<i64: 1, 384, 128>}, {pipeline_mode = #tpu.pipeline_mode<synchronous>, transform_indices = @transform_2, window_bounds = array<i64: 1, 128>}, {pipeline_mode = #tpu.pipeline_mode<synchronous>, transform_indices = @transform_3, window_bounds = array<i64: 1, 128>}, {transform_indices = @transform_4, window_bounds = array<i64: 1, 1, 2, 128>}, {transform_indices = @transform_5, window_bounds = array<i64: 1, 1, 2, 128>}]} {
    %c0_i32 = arith.constant 0 : i32
    %0 = arith.cmpi eq, %arg2, %c0_i32 : i32
    %1 = arith.extui %0 : i1 to i32
    %c0_i32_0 = arith.constant 0 : i32
    %2 = arith.cmpi ne, %1, %c0_i32_0 : i32
    scf.if %2 {
      %cst_12 = arith.constant 0.000000e+00 : f32
      %14 = vector.broadcast %cst_12 : f32 to vector<2x128xf32>
      %c0_13 = arith.constant 0 : index
      %c0_14 = arith.constant 0 : index
      %15 = vector.load %arg9[%c0_13, %c0_14] : memref<2x128xf32, #tpu.memory_space<vmem>>, vector<2x128xf32>
      tpu.vector_store %arg9[%c0_13, %c0_14], %14 {strides = array<i32>} : memref<2x128xf32, #tpu.memory_space<vmem>>, vector<2x128xf32>,
    } else {
    }
    %c0 = arith.constant 0 : index
    %c0_1 = arith.constant 0 : index
    %c0_2 = arith.constant 0 : index
    %c0_3 = arith.constant 0 : index
    %3 = vector.load %arg3[%c0, %c0_1, %c0_2, %c0_3] : memref<1x1x2x384xbf16, #tpu.memory_space<vmem>>, vector<1x1x2x384xbf16>
    %4 = vector.shape_cast %3 : vector<1x1x2x384xbf16> to vector<2x384xbf16>
    %c0_4 = arith.constant 0 : index
    %c0_5 = arith.constant 0 : index
    %c0_6 = arith.constant 0 : index
    %5 = vector.load %arg4[%c0_4, %c0_5, %c0_6] : memref<1x384x128xbf16, #tpu.memory_space<vmem>>, vector<1x384x128xbf16>
    %6 = vector.shape_cast %5 : vector<1x384x128xbf16> to vector<384x128xbf16>
    %c0_7 = arith.constant 0 : index
    %c0_8 = arith.constant 0 : index
    %7 = vector.load %arg9[%c0_7, %c0_8] : memref<2x128xf32, #tpu.memory_space<vmem>>, vector<2x128xf32>
    %cst = arith.constant dense<0.000000e+00> : vector<2x128xf32>
    %8 = tpu.matmul %4, %6, %cst {dimension_numbers = #tpu.dot_dimension_numbers<[1], [0], [0], [1], [0, 0, 1, 1], [], []>} : vector<2x384xbf16>, vector<384x128xbf16>, vector<2x128xf32> -> vector<2x128xf32>
    %9 = arith.addf %7, %8 : vector<2x128xf32>
    %c0_9 = arith.constant 0 : index
    %c0_10 = arith.constant 0 : index
    %10 = vector.load %arg9[%c0_9, %c0_10] : memref<2x128xf32, #tpu.memory_space<vmem>>, vector<2x128xf32>
    tpu.vector_store %arg9[%c0_9, %c0_10], %9 {strides = array<i32>} : memref<2x128xf32, #tpu.memory_space<vmem>>, vector<2x128xf32>,
    %c2_i32 = arith.constant 2 : i32
    %11 = arith.cmpi eq, %arg2, %c2_i32 : i32
    %12 = arith.extui %11 : i1 to i32
    %c0_i32_11 = arith.constant 0 : i32
    %13 = arith.cmpi ne, %12, %c0_i32_11 : i32
    scf.if %13 {
      %c0_12 = arith.constant 0 : index
      %c0_13 = arith.constant 0 : index
      %14 = vector.load %arg9[%c0_12, %c0_13] : memref<2x128xf32, #tpu.memory_space<vmem>>, vector<2x128xf32>
      %c0_14 = arith.constant 0 : index
      %c0_15 = arith.constant 0 : index
      %15 = vector.load %arg5[%c0_14, %c0_15] : memref<1x128xf32, #tpu.memory_space<vmem>>, vector<1x128xf32>
      %16 = vector.broadcast %15 : vector<1x128xf32> to vector<2x128xf32>
      %17 = arith.mulf %14, %16 : vector<2x128xf32>
      %c0_16 = arith.constant 0 : index
      %c0_17 = arith.constant 0 : index
      %18 = vector.load %arg6[%c0_16, %c0_17] : memref<1x128xf32, #tpu.memory_space<vmem>>, vector<1x128xf32>
      %19 = vector.broadcast %18 : vector<1x128xf32> to vector<2x128xf32>
      %20 = arith.addf %17, %19 : vector<2x128xf32>
      %c0_18 = arith.constant 0 : index
      %c0_19 = arith.constant 0 : index
      %c0_20 = arith.constant 0 : index
      %c0_21 = arith.constant 0 : index
      %21 = vector.load %arg7[%c0_18, %c0_19, %c0_20, %c0_21] : memref<1x1x2x128xf32, #tpu.memory_space<vmem>>, vector<1x1x2x128xf32>
      %22 = vector.shape_cast %21 : vector<1x1x2x128xf32> to vector<2x128xf32>
      %23 = arith.addf %20, %22 : vector<2x128xf32>
      %cst_22 = arith.constant 0.000000e+00 : f32
      %24 = vector.broadcast %cst_22 : f32 to vector<2x128xf32>
      %25 = arith.maximumf %23, %24 : vector<2x128xf32>
      %26 = vector.shape_cast %25 : vector<2x128xf32> to vector<1x1x2x128xf32>
      %c0_23 = arith.constant 0 : index
      %c0_24 = arith.constant 0 : index
      %c0_25 = arith.constant 0 : index
      %c0_26 = arith.constant 0 : index
      %27 = vector.load %arg8[%c0_23, %c0_24, %c0_25, %c0_26] : memref<1x1x2x128xf32, #tpu.memory_space<vmem>>, vector<1x1x2x128xf32>
      tpu.vector_store %arg8[%c0_23, %c0_24, %c0_25, %c0_26], %26 {strides = array<i32>} : memref<1x1x2x128xf32, #tpu.memory_space<vmem>>, vector<1x1x2x128xf32>,
    } else {
    }
    return
  }
  func.func @transform_0(%arg0: i32, %arg1: i32, %arg2: i32) -> (i32, i32, i32, i32) {
    %c1_i32 = arith.constant 1 : i32
    %0 = arith.muli %c1_i32, %arg1 : i32
    %1 = arith.addi %0, %arg2 : i32
    %c0_i32 = arith.constant 0 : i32
    %c0_i32_0 = arith.constant 0 : i32
    %c0_i32_1 = arith.constant 0 : i32
    return %arg0, %1, %c0_i32, %c0_i32_0 : i32, i32, i32, i32
  }
  func.func @transform_1(%arg0: i32, %arg1: i32, %arg2: i32) -> (i32, i32, i32) {
    %c0_i32 = arith.constant 0 : i32
    %c0_i32_0 = arith.constant 0 : i32
    %c0_i32_1 = arith.constant 0 : i32
    return %arg2, %c0_i32, %c0_i32_0 : i32, i32, i32
  }
  func.func @transform_2(%arg0: i32, %arg1: i32, %arg2: i32) -> (i32, i32) {
    %c0_i32 = arith.constant 0 : i32
    %c0_i32_0 = arith.constant 0 : i32
    %c0_i32_1 = arith.constant 0 : i32
    return %c0_i32, %c0_i32_0 : i32, i32
  }
  func.func @transform_3(%arg0: i32, %arg1: i32, %arg2: i32) -> (i32, i32) {
    %c0_i32 = arith.constant 0 : i32
    %c0_i32_0 = arith.constant 0 : i32
    %c0_i32_1 = arith.constant 0 : i32
    return %c0_i32, %c0_i32_0 : i32, i32
  }
  func.func @transform_4(%arg0: i32, %arg1: i32, %arg2: i32) -> (i32, i32, i32, i32) {
    %c0_i32 = arith.constant 0 : i32
    %c0_i32_0 = arith.constant 0 : i32
    %c0_i32_1 = arith.constant 0 : i32
    return %arg0, %arg1, %c0_i32, %c0_i32_0 : i32, i32, i32, i32
  }
  func.func @transform_5(%arg0: i32, %arg1: i32, %arg2: i32) -> (i32, i32, i32, i32) {
    %c0_i32 = arith.constant 0 : i32
    %c0_i32_0 = arith.constant 0 : i32
    %c0_i32_1 = arith.constant 0 : i32
    return %arg0, %arg1, %c0_i32, %c0_i32_0 : i32, i32, i32, i32
  }
}

module attributes {stable_mosaic.version = 11 : i64} {
  func.func @kernel(%arg0: i32, %arg1: i32, %arg2: i32, %arg3: memref<1x1x2x384xbf16, #tpu.memory_space<vmem>>, %arg4: memref<1x384x128xbf16, #tpu.memory_space<vmem>>, %arg5: memref<1x128xf32, #tpu.memory_space<vmem>>, %arg6: memref<1x128xf32, #tpu.memory_space<vmem>>, %arg7: memref<1x1x2x128xf32, #tpu.memory_space<vmem>>, %arg8: memref<2x128xf32, #tpu.memory_space<vmem>>) attributes {dimension_semantics = [#tpu.dimension_semantics<parallel>, #tpu.dimension_semantics<parallel>, #tpu.dimension_semantics<arbitrary>], iteration_bounds = array<i64: 2, 2, 3>, scalar_prefetch = 0 : i64, scratch_operands = 1 : i64, tpu.core_type = #tpu.core_type<tc>, window_params = [{transform_indices = @transform_0, window_bounds = array<i64: 1, 1, 2, 384>}, {transform_indices = @transform_1, window_bounds = array<i64: 1, 384, 128>}, {pipeline_mode = #tpu.pipeline_mode<synchronous>, transform_indices = @transform_2, window_bounds = array<i64: 1, 128>}, {pipeline_mode = #tpu.pipeline_mode<synchronous>, transform_indices = @transform_3, window_bounds = array<i64: 1, 128>}, {transform_indices = @transform_4, window_bounds = array<i64: 1, 1, 2, 128>}]} {
    %c0_i32 = arith.constant 0 : i32
    %0 = arith.cmpi eq, %arg2, %c0_i32 : i32
    %1 = arith.extui %0 : i1 to i32
    %c0_i32_0 = arith.constant 0 : i32
    %2 = arith.cmpi ne, %1, %c0_i32_0 : i32
    scf.if %2 {
      %cst_12 = arith.constant 0.000000e+00 : f32
      %14 = vector.broadcast %cst_12 : f32 to vector<2x128xf32>
      %c0_13 = arith.constant 0 : index
      %c0_14 = arith.constant 0 : index
      %15 = vector.load %arg8[%c0_13, %c0_14] : memref<2x128xf32, #tpu.memory_space<vmem>>, vector<2x128xf32>
      tpu.vector_store %arg8[%c0_13, %c0_14], %14 {strides = array<i32>} : memref<2x128xf32, #tpu.memory_space<vmem>>, vector<2x128xf32>,
    } else {
    }
    %c0 = arith.constant 0 : index
    %c0_1 = arith.constant 0 : index
    %c0_2 = arith.constant 0 : index
    %c0_3 = arith.constant 0 : index
    %3 = vector.load %arg3[%c0, %c0_1, %c0_2, %c0_3] : memref<1x1x2x384xbf16, #tpu.memory_space<vmem>>, vector<1x1x2x384xbf16>
    %4 = vector.shape_cast %3 : vector<1x1x2x384xbf16> to vector<2x384xbf16>
    %c0_4 = arith.constant 0 : index
    %c0_5 = arith.constant 0 : index
    %c0_6 = arith.constant 0 : index
    %5 = vector.load %arg4[%c0_4, %c0_5, %c0_6] : memref<1x384x128xbf16, #tpu.memory_space<vmem>>, vector<1x384x128xbf16>
    %6 = vector.shape_cast %5 : vector<1x384x128xbf16> to vector<384x128xbf16>
    %c0_7 = arith.constant 0 : index
    %c0_8 = arith.constant 0 : index
    %7 = vector.load %arg8[%c0_7, %c0_8] : memref<2x128xf32, #tpu.memory_space<vmem>>, vector<2x128xf32>
    %cst = arith.constant dense<0.000000e+00> : vector<2x128xf32>
    %8 = tpu.matmul %4, %6, %cst {dimension_numbers = #tpu.dot_dimension_numbers<[1], [0], [0], [1], [0, 0, 1, 1], [], []>} : vector<2x384xbf16>, vector<384x128xbf16>, vector<2x128xf32> -> vector<2x128xf32>
    %9 = arith.addf %7, %8 : vector<2x128xf32>
    %c0_9 = arith.constant 0 : index
    %c0_10 = arith.constant 0 : index
    %10 = vector.load %arg8[%c0_9, %c0_10] : memref<2x128xf32, #tpu.memory_space<vmem>>, vector<2x128xf32>
    tpu.vector_store %arg8[%c0_9, %c0_10], %9 {strides = array<i32>} : memref<2x128xf32, #tpu.memory_space<vmem>>, vector<2x128xf32>,
    %c2_i32 = arith.constant 2 : i32
    %11 = arith.cmpi eq, %arg2, %c2_i32 : i32
    %12 = arith.extui %11 : i1 to i32
    %c0_i32_11 = arith.constant 0 : i32
    %13 = arith.cmpi ne, %12, %c0_i32_11 : i32
    scf.if %13 {
      %c0_12 = arith.constant 0 : index
      %c0_13 = arith.constant 0 : index
      %14 = vector.load %arg8[%c0_12, %c0_13] : memref<2x128xf32, #tpu.memory_space<vmem>>, vector<2x128xf32>
      %c0_14 = arith.constant 0 : index
      %c0_15 = arith.constant 0 : index
      %15 = vector.load %arg5[%c0_14, %c0_15] : memref<1x128xf32, #tpu.memory_space<vmem>>, vector<1x128xf32>
      %16 = vector.broadcast %15 : vector<1x128xf32> to vector<2x128xf32>
      %17 = arith.mulf %14, %16 : vector<2x128xf32>
      %c0_16 = arith.constant 0 : index
      %c0_17 = arith.constant 0 : index
      %18 = vector.load %arg6[%c0_16, %c0_17] : memref<1x128xf32, #tpu.memory_space<vmem>>, vector<1x128xf32>
      %19 = vector.broadcast %18 : vector<1x128xf32> to vector<2x128xf32>
      %20 = arith.addf %17, %19 : vector<2x128xf32>
      %cst_18 = arith.constant 0.000000e+00 : f32
      %21 = vector.broadcast %cst_18 : f32 to vector<2x128xf32>
      %22 = arith.maximumf %20, %21 : vector<2x128xf32>
      %23 = vector.shape_cast %22 : vector<2x128xf32> to vector<1x1x2x128xf32>
      %c0_19 = arith.constant 0 : index
      %c0_20 = arith.constant 0 : index
      %c0_21 = arith.constant 0 : index
      %c0_22 = arith.constant 0 : index
      %24 = vector.load %arg7[%c0_19, %c0_20, %c0_21, %c0_22] : memref<1x1x2x128xf32, #tpu.memory_space<vmem>>, vector<1x1x2x128xf32>
      tpu.vector_store %arg7[%c0_19, %c0_20, %c0_21, %c0_22], %23 {strides = array<i32>} : memref<1x1x2x128xf32, #tpu.memory_space<vmem>>, vector<1x1x2x128xf32>,
    } else {
    }
    return
  }
  func.func @transform_0(%arg0: i32, %arg1: i32, %arg2: i32) -> (i32, i32, i32, i32) {
    %c1_i32 = arith.constant 1 : i32
    %0 = arith.muli %c1_i32, %arg1 : i32
    %1 = arith.addi %0, %arg2 : i32
    %c0_i32 = arith.constant 0 : i32
    %c0_i32_0 = arith.constant 0 : i32
    %c0_i32_1 = arith.constant 0 : i32
    return %arg0, %1, %c0_i32, %c0_i32_0 : i32, i32, i32, i32
  }
  func.func @transform_1(%arg0: i32, %arg1: i32, %arg2: i32) -> (i32, i32, i32) {
    %c0_i32 = arith.constant 0 : i32
    %c0_i32_0 = arith.constant 0 : i32
    %c0_i32_1 = arith.constant 0 : i32
    return %arg2, %c0_i32, %c0_i32_0 : i32, i32, i32
  }
  func.func @transform_2(%arg0: i32, %arg1: i32, %arg2: i32) -> (i32, i32) {
    %c0_i32 = arith.constant 0 : i32
    %c0_i32_0 = arith.constant 0 : i32
    %c0_i32_1 = arith.constant 0 : i32
    return %c0_i32, %c0_i32_0 : i32, i32
  }
  func.func @transform_3(%arg0: i32, %arg1: i32, %arg2: i32) -> (i32, i32) {
    %c0_i32 = arith.constant 0 : i32
    %c0_i32_0 = arith.constant 0 : i32
    %c0_i32_1 = arith.constant 0 : i32
    return %c0_i32, %c0_i32_0 : i32, i32
  }
  func.func @transform_4(%arg0: i32, %arg1: i32, %arg2: i32) -> (i32, i32, i32, i32) {
    %c0_i32 = arith.constant 0 : i32
    %c0_i32_0 = arith.constant 0 : i32
    %c0_i32_1 = arith.constant 0 : i32
    return %arg0, %arg1, %c0_i32, %c0_i32_0 : i32, i32, i32, i32
  }
}

module attributes {stable_mosaic.version = 11 : i64} {
  func.func @kernel(%arg0: i32, %arg1: i32, %arg2: i32, %arg3: memref<1x1x2x64xbf16, #tpu.memory_space<vmem>>, %arg4: memref<1x64x128xbf16, #tpu.memory_space<vmem>>, %arg5: memref<1x128xf32, #tpu.memory_space<vmem>>, %arg6: memref<1x128xf32, #tpu.memory_space<vmem>>, %arg7: memref<1x1x2x128xf32, #tpu.memory_space<vmem>>, %arg8: memref<2x128xf32, #tpu.memory_space<vmem>>) attributes {dimension_semantics = [#tpu.dimension_semantics<parallel>, #tpu.dimension_semantics<parallel>, #tpu.dimension_semantics<arbitrary>], iteration_bounds = array<i64: 2, 2, 1>, scalar_prefetch = 0 : i64, scratch_operands = 1 : i64, tpu.core_type = #tpu.core_type<tc>, window_params = [{transform_indices = @transform_0, window_bounds = array<i64: 1, 1, 2, 64>}, {transform_indices = @transform_1, window_bounds = array<i64: 1, 64, 128>}, {pipeline_mode = #tpu.pipeline_mode<synchronous>, transform_indices = @transform_2, window_bounds = array<i64: 1, 128>}, {pipeline_mode = #tpu.pipeline_mode<synchronous>, transform_indices = @transform_3, window_bounds = array<i64: 1, 128>}, {transform_indices = @transform_4, window_bounds = array<i64: 1, 1, 2, 128>}]} {
    %c0_i32 = arith.constant 0 : i32
    %0 = arith.cmpi eq, %arg2, %c0_i32 : i32
    %1 = arith.extui %0 : i1 to i32
    %c0_i32_0 = arith.constant 0 : i32
    %2 = arith.cmpi ne, %1, %c0_i32_0 : i32
    scf.if %2 {
      %cst_13 = arith.constant 0.000000e+00 : f32
      %14 = vector.broadcast %cst_13 : f32 to vector<2x128xf32>
      %c0_14 = arith.constant 0 : index
      %c0_15 = arith.constant 0 : index
      %15 = vector.load %arg8[%c0_14, %c0_15] : memref<2x128xf32, #tpu.memory_space<vmem>>, vector<2x128xf32>
      tpu.vector_store %arg8[%c0_14, %c0_15], %14 {strides = array<i32>} : memref<2x128xf32, #tpu.memory_space<vmem>>, vector<2x128xf32>,
    } else {
    }
    %c0 = arith.constant 0 : index
    %c0_1 = arith.constant 0 : index
    %c0_2 = arith.constant 0 : index
    %c0_3 = arith.constant 0 : index
    %3 = vector.load %arg3[%c0, %c0_1, %c0_2, %c0_3] : memref<1x1x2x64xbf16, #tpu.memory_space<vmem>>, vector<1x1x2x64xbf16>
    %4 = vector.shape_cast %3 : vector<1x1x2x64xbf16> to vector<2x64xbf16>
    %c0_4 = arith.constant 0 : index
    %c0_5 = arith.constant 0 : index
    %c0_6 = arith.constant 0 : index
    %5 = vector.load %arg4[%c0_4, %c0_5, %c0_6] : memref<1x64x128xbf16, #tpu.memory_space<vmem>>, vector<1x64x128xbf16>
    %6 = vector.shape_cast %5 : vector<1x64x128xbf16> to vector<64x128xbf16>
    %c0_7 = arith.constant 0 : index
    %c0_8 = arith.constant 0 : index
    %7 = vector.load %arg8[%c0_7, %c0_8] : memref<2x128xf32, #tpu.memory_space<vmem>>, vector<2x128xf32>
    %cst = arith.constant dense<0.000000e+00> : vector<2x128xf32>
    %8 = tpu.matmul %4, %6, %cst {dimension_numbers = #tpu.dot_dimension_numbers<[1], [0], [0], [1], [0, 0, 1, 1], [], []>} : vector<2x64xbf16>, vector<64x128xbf16>, vector<2x128xf32> -> vector<2x128xf32>
    %9 = arith.addf %7, %8 : vector<2x128xf32>
    %c0_9 = arith.constant 0 : index
    %c0_10 = arith.constant 0 : index
    %10 = vector.load %arg8[%c0_9, %c0_10] : memref<2x128xf32, #tpu.memory_space<vmem>>, vector<2x128xf32>
    tpu.vector_store %arg8[%c0_9, %c0_10], %9 {strides = array<i32>} : memref<2x128xf32, #tpu.memory_space<vmem>>, vector<2x128xf32>,
    %c0_i32_11 = arith.constant 0 : i32
    %11 = arith.cmpi eq, %arg2, %c0_i32_11 : i32
    %12 = arith.extui %11 : i1 to i32
    %c0_i32_12 = arith.constant 0 : i32
    %13 = arith.cmpi ne, %12, %c0_i32_12 : i32
    scf.if %13 {
      %c0_13 = arith.constant 0 : index
      %c0_14 = arith.constant 0 : index
      %14 = vector.load %arg8[%c0_13, %c0_14] : memref<2x128xf32, #tpu.memory_space<vmem>>, vector<2x128xf32>
      %c0_15 = arith.constant 0 : index
      %c0_16 = arith.constant 0 : index
      %15 = vector.load %arg5[%c0_15, %c0_16] : memref<1x128xf32, #tpu.memory_space<vmem>>, vector<1x128xf32>
      %16 = vector.broadcast %15 : vector<1x128xf32> to vector<2x128xf32>
      %17 = arith.mulf %14, %16 : vector<2x128xf32>
      %c0_17 = arith.constant 0 : index
      %c0_18 = arith.constant 0 : index
      %18 = vector.load %arg6[%c0_17, %c0_18] : memref<1x128xf32, #tpu.memory_space<vmem>>, vector<1x128xf32>
      %19 = vector.broadcast %18 : vector<1x128xf32> to vector<2x128xf32>
      %20 = arith.addf %17, %19 : vector<2x128xf32>
      %21 = vector.shape_cast %20 : vector<2x128xf32> to vector<1x1x2x128xf32>
      %c0_19 = arith.constant 0 : index
      %c0_20 = arith.constant 0 : index
      %c0_21 = arith.constant 0 : index
      %c0_22 = arith.constant 0 : index
      %22 = vector.load %arg7[%c0_19, %c0_20, %c0_21, %c0_22] : memref<1x1x2x128xf32, #tpu.memory_space<vmem>>, vector<1x1x2x128xf32>
      tpu.vector_store %arg7[%c0_19, %c0_20, %c0_21, %c0_22], %21 {strides = array<i32>} : memref<1x1x2x128xf32, #tpu.memory_space<vmem>>, vector<1x1x2x128xf32>,
    } else {
    }
    return
  }
  func.func @transform_0(%arg0: i32, %arg1: i32, %arg2: i32) -> (i32, i32, i32, i32) {
    %c2_i32 = arith.constant 2 : i32
    %0 = arith.muli %c2_i32, %arg1 : i32
    %1 = arith.addi %0, %arg2 : i32
    %c0_i32 = arith.constant 0 : i32
    %c0_i32_0 = arith.constant 0 : i32
    %c0_i32_1 = arith.constant 0 : i32
    return %arg0, %1, %c0_i32, %c0_i32_0 : i32, i32, i32, i32
  }
  func.func @transform_1(%arg0: i32, %arg1: i32, %arg2: i32) -> (i32, i32, i32) {
    %c0_i32 = arith.constant 0 : i32
    %c0_i32_0 = arith.constant 0 : i32
    %c0_i32_1 = arith.constant 0 : i32
    return %arg2, %c0_i32, %c0_i32_0 : i32, i32, i32
  }
  func.func @transform_2(%arg0: i32, %arg1: i32, %arg2: i32) -> (i32, i32) {
    %c0_i32 = arith.constant 0 : i32
    %c0_i32_0 = arith.constant 0 : i32
    %c0_i32_1 = arith.constant 0 : i32
    return %c0_i32, %c0_i32_0 : i32, i32
  }
  func.func @transform_3(%arg0: i32, %arg1: i32, %arg2: i32) -> (i32, i32) {
    %c0_i32 = arith.constant 0 : i32
    %c0_i32_0 = arith.constant 0 : i32
    %c0_i32_1 = arith.constant 0 : i32
    return %c0_i32, %c0_i32_0 : i32, i32
  }
  func.func @transform_4(%arg0: i32, %arg1: i32, %arg2: i32) -> (i32, i32, i32, i32) {
    %c0_i32 = arith.constant 0 : i32
    %c0_i32_0 = arith.constant 0 : i32
    %c0_i32_1 = arith.constant 0 : i32
    return %arg0, %arg1, %c0_i32, %c0_i32_0 : i32, i32, i32, i32
  }
}

module attributes {stable_mosaic.version = 11 : i64} {
  func.func @kernel(%arg0: i32, %arg1: i32, %arg2: i32, %arg3: memref<1x1x1x384xbf16, #tpu.memory_space<vmem>>, %arg4: memref<1x384x256xbf16, #tpu.memory_space<vmem>>, %arg5: memref<1x256xf32, #tpu.memory_space<vmem>>, %arg6: memref<1x256xf32, #tpu.memory_space<vmem>>, %arg7: memref<1x1x1x256xf32, #tpu.memory_space<vmem>>, %arg8: memref<1x256xf32, #tpu.memory_space<vmem>>) attributes {dimension_semantics = [#tpu.dimension_semantics<parallel>, #tpu.dimension_semantics<parallel>, #tpu.dimension_semantics<arbitrary>], iteration_bounds = array<i64: 2, 1, 3>, scalar_prefetch = 0 : i64, scratch_operands = 1 : i64, tpu.core_type = #tpu.core_type<tc>, window_params = [{transform_indices = @transform_0, window_bounds = array<i64: 1, 1, 1, 384>}, {transform_indices = @transform_1, window_bounds = array<i64: 1, 384, 256>}, {pipeline_mode = #tpu.pipeline_mode<synchronous>, transform_indices = @transform_2, window_bounds = array<i64: 1, 256>}, {pipeline_mode = #tpu.pipeline_mode<synchronous>, transform_indices = @transform_3, window_bounds = array<i64: 1, 256>}, {transform_indices = @transform_4, window_bounds = array<i64: 1, 1, 1, 256>}]} {
    %c0_i32 = arith.constant 0 : i32
    %0 = arith.cmpi eq, %arg2, %c0_i32 : i32
    %1 = arith.extui %0 : i1 to i32
    %c0_i32_0 = arith.constant 0 : i32
    %2 = arith.cmpi ne, %1, %c0_i32_0 : i32
    scf.if %2 {
      %cst_12 = arith.constant 0.000000e+00 : f32
      %14 = vector.broadcast %cst_12 : f32 to vector<1x256xf32>
      %c0_13 = arith.constant 0 : index
      %c0_14 = arith.constant 0 : index
      %15 = vector.load %arg8[%c0_13, %c0_14] : memref<1x256xf32, #tpu.memory_space<vmem>>, vector<1x256xf32>
      tpu.vector_store %arg8[%c0_13, %c0_14], %14 {strides = array<i32>} : memref<1x256xf32, #tpu.memory_space<vmem>>, vector<1x256xf32>,
    } else {
    }
    %c0 = arith.constant 0 : index
    %c0_1 = arith.constant 0 : index
    %c0_2 = arith.constant 0 : index
    %c0_3 = arith.constant 0 : index
    %3 = vector.load %arg3[%c0, %c0_1, %c0_2, %c0_3] : memref<1x1x1x384xbf16, #tpu.memory_space<vmem>>, vector<1x1x1x384xbf16>
    %4 = vector.shape_cast %3 : vector<1x1x1x384xbf16> to vector<1x384xbf16>
    %c0_4 = arith.constant 0 : index
    %c0_5 = arith.constant 0 : index
    %c0_6 = arith.constant 0 : index
    %5 = vector.load %arg4[%c0_4, %c0_5, %c0_6] : memref<1x384x256xbf16, #tpu.memory_space<vmem>>, vector<1x384x256xbf16>
    %6 = vector.shape_cast %5 : vector<1x384x256xbf16> to vector<384x256xbf16>
    %c0_7 = arith.constant 0 : index
    %c0_8 = arith.constant 0 : index
    %7 = vector.load %arg8[%c0_7, %c0_8] : memref<1x256xf32, #tpu.memory_space<vmem>>, vector<1x256xf32>
    %cst = arith.constant dense<0.000000e+00> : vector<1x256xf32>
    %8 = tpu.matmul %4, %6, %cst {dimension_numbers = #tpu.dot_dimension_numbers<[1], [0], [0], [1], [0, 0, 1, 1], [], []>} : vector<1x384xbf16>, vector<384x256xbf16>, vector<1x256xf32> -> vector<1x256xf32>
    %9 = arith.addf %7, %8 : vector<1x256xf32>
    %c0_9 = arith.constant 0 : index
    %c0_10 = arith.constant 0 : index
    %10 = vector.load %arg8[%c0_9, %c0_10] : memref<1x256xf32, #tpu.memory_space<vmem>>, vector<1x256xf32>
    tpu.vector_store %arg8[%c0_9, %c0_10], %9 {strides = array<i32>} : memref<1x256xf32, #tpu.memory_space<vmem>>, vector<1x256xf32>,
    %c2_i32 = arith.constant 2 : i32
    %11 = arith.cmpi eq, %arg2, %c2_i32 : i32
    %12 = arith.extui %11 : i1 to i32
    %c0_i32_11 = arith.constant 0 : i32
    %13 = arith.cmpi ne, %12, %c0_i32_11 : i32
    scf.if %13 {
      %c0_12 = arith.constant 0 : index
      %c0_13 = arith.constant 0 : index
      %14 = vector.load %arg8[%c0_12, %c0_13] : memref<1x256xf32, #tpu.memory_space<vmem>>, vector<1x256xf32>
      %c0_14 = arith.constant 0 : index
      %c0_15 = arith.constant 0 : index
      %15 = vector.load %arg5[%c0_14, %c0_15] : memref<1x256xf32, #tpu.memory_space<vmem>>, vector<1x256xf32>
      %16 = arith.mulf %14, %15 : vector<1x256xf32>
      %c0_16 = arith.constant 0 : index
      %c0_17 = arith.constant 0 : index
      %17 = vector.load %arg6[%c0_16, %c0_17] : memref<1x256xf32, #tpu.memory_space<vmem>>, vector<1x256xf32>
      %18 = arith.addf %16, %17 : vector<1x256xf32>
      %cst_18 = arith.constant 0.000000e+00 : f32
      %19 = vector.broadcast %cst_18 : f32 to vector<1x256xf32>
      %20 = arith.maximumf %18, %19 : vector<1x256xf32>
      %21 = vector.shape_cast %20 : vector<1x256xf32> to vector<1x1x1x256xf32>
      %c0_19 = arith.constant 0 : index
      %c0_20 = arith.constant 0 : index
      %c0_21 = arith.constant 0 : index
      %c0_22 = arith.constant 0 : index
      %22 = vector.load %arg7[%c0_19, %c0_20, %c0_21, %c0_22] : memref<1x1x1x256xf32, #tpu.memory_space<vmem>>, vector<1x1x1x256xf32>
      tpu.vector_store %arg7[%c0_19, %c0_20, %c0_21, %c0_22], %21 {strides = array<i32>} : memref<1x1x1x256xf32, #tpu.memory_space<vmem>>, vector<1x1x1x256xf32>,
    } else {
    }
    return
  }
  func.func @transform_0(%arg0: i32, %arg1: i32, %arg2: i32) -> (i32, i32, i32, i32) {
    %c2_i32 = arith.constant 2 : i32
    %0 = arith.muli %c2_i32, %arg1 : i32
    %1 = arith.addi %0, %arg2 : i32
    %c0_i32 = arith.constant 0 : i32
    %c0_i32_0 = arith.constant 0 : i32
    %c0_i32_1 = arith.constant 0 : i32
    return %arg0, %1, %c0_i32, %c0_i32_0 : i32, i32, i32, i32
  }
  func.func @transform_1(%arg0: i32, %arg1: i32, %arg2: i32) -> (i32, i32, i32) {
    %c0_i32 = arith.constant 0 : i32
    %c0_i32_0 = arith.constant 0 : i32
    %c0_i32_1 = arith.constant 0 : i32
    return %arg2, %c0_i32, %c0_i32_0 : i32, i32, i32
  }
  func.func @transform_2(%arg0: i32, %arg1: i32, %arg2: i32) -> (i32, i32) {
    %c0_i32 = arith.constant 0 : i32
    %c0_i32_0 = arith.constant 0 : i32
    %c0_i32_1 = arith.constant 0 : i32
    return %c0_i32, %c0_i32_0 : i32, i32
  }
  func.func @transform_3(%arg0: i32, %arg1: i32, %arg2: i32) -> (i32, i32) {
    %c0_i32 = arith.constant 0 : i32
    %c0_i32_0 = arith.constant 0 : i32
    %c0_i32_1 = arith.constant 0 : i32
    return %c0_i32, %c0_i32_0 : i32, i32
  }
  func.func @transform_4(%arg0: i32, %arg1: i32, %arg2: i32) -> (i32, i32, i32, i32) {
    %c0_i32 = arith.constant 0 : i32
    %c0_i32_0 = arith.constant 0 : i32
    %c0_i32_1 = arith.constant 0 : i32
    return %arg0, %arg1, %c0_i32, %c0_i32_0 : i32, i32, i32, i32
  }
}

module attributes {stable_mosaic.version = 11 : i64} {
  func.func @kernel(%arg0: i32, %arg1: i32, %arg2: i32, %arg3: memref<1x1x1x768xbf16, #tpu.memory_space<vmem>>, %arg4: memref<1x768x256xbf16, #tpu.memory_space<vmem>>, %arg5: memref<1x256xf32, #tpu.memory_space<vmem>>, %arg6: memref<1x256xf32, #tpu.memory_space<vmem>>, %arg7: memref<1x1x1x256xf32, #tpu.memory_space<vmem>>, %arg8: memref<1x1x1x256xf32, #tpu.memory_space<vmem>>, %arg9: memref<1x256xf32, #tpu.memory_space<vmem>>) attributes {dimension_semantics = [#tpu.dimension_semantics<parallel>, #tpu.dimension_semantics<parallel>, #tpu.dimension_semantics<arbitrary>], iteration_bounds = array<i64: 2, 1, 3>, scalar_prefetch = 0 : i64, scratch_operands = 1 : i64, tpu.core_type = #tpu.core_type<tc>, window_params = [{transform_indices = @transform_0, window_bounds = array<i64: 1, 1, 1, 768>}, {transform_indices = @transform_1, window_bounds = array<i64: 1, 768, 256>}, {pipeline_mode = #tpu.pipeline_mode<synchronous>, transform_indices = @transform_2, window_bounds = array<i64: 1, 256>}, {pipeline_mode = #tpu.pipeline_mode<synchronous>, transform_indices = @transform_3, window_bounds = array<i64: 1, 256>}, {transform_indices = @transform_4, window_bounds = array<i64: 1, 1, 1, 256>}, {transform_indices = @transform_5, window_bounds = array<i64: 1, 1, 1, 256>}]} {
    %c0_i32 = arith.constant 0 : i32
    %0 = arith.cmpi eq, %arg2, %c0_i32 : i32
    %1 = arith.extui %0 : i1 to i32
    %c0_i32_0 = arith.constant 0 : i32
    %2 = arith.cmpi ne, %1, %c0_i32_0 : i32
    scf.if %2 {
      %cst_12 = arith.constant 0.000000e+00 : f32
      %14 = vector.broadcast %cst_12 : f32 to vector<1x256xf32>
      %c0_13 = arith.constant 0 : index
      %c0_14 = arith.constant 0 : index
      %15 = vector.load %arg9[%c0_13, %c0_14] : memref<1x256xf32, #tpu.memory_space<vmem>>, vector<1x256xf32>
      tpu.vector_store %arg9[%c0_13, %c0_14], %14 {strides = array<i32>} : memref<1x256xf32, #tpu.memory_space<vmem>>, vector<1x256xf32>,
    } else {
    }
    %c0 = arith.constant 0 : index
    %c0_1 = arith.constant 0 : index
    %c0_2 = arith.constant 0 : index
    %c0_3 = arith.constant 0 : index
    %3 = vector.load %arg3[%c0, %c0_1, %c0_2, %c0_3] : memref<1x1x1x768xbf16, #tpu.memory_space<vmem>>, vector<1x1x1x768xbf16>
    %4 = vector.shape_cast %3 : vector<1x1x1x768xbf16> to vector<1x768xbf16>
    %c0_4 = arith.constant 0 : index
    %c0_5 = arith.constant 0 : index
    %c0_6 = arith.constant 0 : index
    %5 = vector.load %arg4[%c0_4, %c0_5, %c0_6] : memref<1x768x256xbf16, #tpu.memory_space<vmem>>, vector<1x768x256xbf16>
    %6 = vector.shape_cast %5 : vector<1x768x256xbf16> to vector<768x256xbf16>
    %c0_7 = arith.constant 0 : index
    %c0_8 = arith.constant 0 : index
    %7 = vector.load %arg9[%c0_7, %c0_8] : memref<1x256xf32, #tpu.memory_space<vmem>>, vector<1x256xf32>
    %cst = arith.constant dense<0.000000e+00> : vector<1x256xf32>
    %8 = tpu.matmul %4, %6, %cst {dimension_numbers = #tpu.dot_dimension_numbers<[1], [0], [0], [1], [0, 0, 1, 1], [], []>} : vector<1x768xbf16>, vector<768x256xbf16>, vector<1x256xf32> -> vector<1x256xf32>
    %9 = arith.addf %7, %8 : vector<1x256xf32>
    %c0_9 = arith.constant 0 : index
    %c0_10 = arith.constant 0 : index
    %10 = vector.load %arg9[%c0_9, %c0_10] : memref<1x256xf32, #tpu.memory_space<vmem>>, vector<1x256xf32>
    tpu.vector_store %arg9[%c0_9, %c0_10], %9 {strides = array<i32>} : memref<1x256xf32, #tpu.memory_space<vmem>>, vector<1x256xf32>,
    %c2_i32 = arith.constant 2 : i32
    %11 = arith.cmpi eq, %arg2, %c2_i32 : i32
    %12 = arith.extui %11 : i1 to i32
    %c0_i32_11 = arith.constant 0 : i32
    %13 = arith.cmpi ne, %12, %c0_i32_11 : i32
    scf.if %13 {
      %c0_12 = arith.constant 0 : index
      %c0_13 = arith.constant 0 : index
      %14 = vector.load %arg9[%c0_12, %c0_13] : memref<1x256xf32, #tpu.memory_space<vmem>>, vector<1x256xf32>
      %c0_14 = arith.constant 0 : index
      %c0_15 = arith.constant 0 : index
      %15 = vector.load %arg5[%c0_14, %c0_15] : memref<1x256xf32, #tpu.memory_space<vmem>>, vector<1x256xf32>
      %16 = arith.mulf %14, %15 : vector<1x256xf32>
      %c0_16 = arith.constant 0 : index
      %c0_17 = arith.constant 0 : index
      %17 = vector.load %arg6[%c0_16, %c0_17] : memref<1x256xf32, #tpu.memory_space<vmem>>, vector<1x256xf32>
      %18 = arith.addf %16, %17 : vector<1x256xf32>
      %c0_18 = arith.constant 0 : index
      %c0_19 = arith.constant 0 : index
      %c0_20 = arith.constant 0 : index
      %c0_21 = arith.constant 0 : index
      %19 = vector.load %arg7[%c0_18, %c0_19, %c0_20, %c0_21] : memref<1x1x1x256xf32, #tpu.memory_space<vmem>>, vector<1x1x1x256xf32>
      %20 = vector.shape_cast %19 : vector<1x1x1x256xf32> to vector<1x256xf32>
      %21 = arith.addf %18, %20 : vector<1x256xf32>
      %cst_22 = arith.constant 0.000000e+00 : f32
      %22 = vector.broadcast %cst_22 : f32 to vector<1x256xf32>
      %23 = arith.maximumf %21, %22 : vector<1x256xf32>
      %24 = vector.shape_cast %23 : vector<1x256xf32> to vector<1x1x1x256xf32>
      %c0_23 = arith.constant 0 : index
      %c0_24 = arith.constant 0 : index
      %c0_25 = arith.constant 0 : index
      %c0_26 = arith.constant 0 : index
      %25 = vector.load %arg8[%c0_23, %c0_24, %c0_25, %c0_26] : memref<1x1x1x256xf32, #tpu.memory_space<vmem>>, vector<1x1x1x256xf32>
      tpu.vector_store %arg8[%c0_23, %c0_24, %c0_25, %c0_26], %24 {strides = array<i32>} : memref<1x1x1x256xf32, #tpu.memory_space<vmem>>, vector<1x1x1x256xf32>,
    } else {
    }
    return
  }
  func.func @transform_0(%arg0: i32, %arg1: i32, %arg2: i32) -> (i32, i32, i32, i32) {
    %c1_i32 = arith.constant 1 : i32
    %0 = arith.muli %c1_i32, %arg1 : i32
    %1 = arith.addi %0, %arg2 : i32
    %c0_i32 = arith.constant 0 : i32
    %c0_i32_0 = arith.constant 0 : i32
    %c0_i32_1 = arith.constant 0 : i32
    return %arg0, %1, %c0_i32, %c0_i32_0 : i32, i32, i32, i32
  }
  func.func @transform_1(%arg0: i32, %arg1: i32, %arg2: i32) -> (i32, i32, i32) {
    %c0_i32 = arith.constant 0 : i32
    %c0_i32_0 = arith.constant 0 : i32
    %c0_i32_1 = arith.constant 0 : i32
    return %arg2, %c0_i32, %c0_i32_0 : i32, i32, i32
  }
  func.func @transform_2(%arg0: i32, %arg1: i32, %arg2: i32) -> (i32, i32) {
    %c0_i32 = arith.constant 0 : i32
    %c0_i32_0 = arith.constant 0 : i32
    %c0_i32_1 = arith.constant 0 : i32
    return %c0_i32, %c0_i32_0 : i32, i32
  }
  func.func @transform_3(%arg0: i32, %arg1: i32, %arg2: i32) -> (i32, i32) {
    %c0_i32 = arith.constant 0 : i32
    %c0_i32_0 = arith.constant 0 : i32
    %c0_i32_1 = arith.constant 0 : i32
    return %c0_i32, %c0_i32_0 : i32, i32
  }
  func.func @transform_4(%arg0: i32, %arg1: i32, %arg2: i32) -> (i32, i32, i32, i32) {
    %c0_i32 = arith.constant 0 : i32
    %c0_i32_0 = arith.constant 0 : i32
    %c0_i32_1 = arith.constant 0 : i32
    return %arg0, %arg1, %c0_i32, %c0_i32_0 : i32, i32, i32, i32
  }
  func.func @transform_5(%arg0: i32, %arg1: i32, %arg2: i32) -> (i32, i32, i32, i32) {
    %c0_i32 = arith.constant 0 : i32
    %c0_i32_0 = arith.constant 0 : i32
    %c0_i32_1 = arith.constant 0 : i32
    return %arg0, %arg1, %c0_i32, %c0_i32_0 : i32, i32, i32, i32
  }
}

module attributes {stable_mosaic.version = 11 : i64} {
  func.func @kernel(%arg0: i32, %arg1: i32, %arg2: i32, %arg3: memref<1x1x1x128xbf16, #tpu.memory_space<vmem>>, %arg4: memref<1x128x256xbf16, #tpu.memory_space<vmem>>, %arg5: memref<1x256xf32, #tpu.memory_space<vmem>>, %arg6: memref<1x256xf32, #tpu.memory_space<vmem>>, %arg7: memref<1x1x1x256xf32, #tpu.memory_space<vmem>>, %arg8: memref<1x256xf32, #tpu.memory_space<vmem>>) attributes {dimension_semantics = [#tpu.dimension_semantics<parallel>, #tpu.dimension_semantics<parallel>, #tpu.dimension_semantics<arbitrary>], iteration_bounds = array<i64: 2, 1, 1>, scalar_prefetch = 0 : i64, scratch_operands = 1 : i64, tpu.core_type = #tpu.core_type<tc>, window_params = [{transform_indices = @transform_0, window_bounds = array<i64: 1, 1, 1, 128>}, {transform_indices = @transform_1, window_bounds = array<i64: 1, 128, 256>}, {pipeline_mode = #tpu.pipeline_mode<synchronous>, transform_indices = @transform_2, window_bounds = array<i64: 1, 256>}, {pipeline_mode = #tpu.pipeline_mode<synchronous>, transform_indices = @transform_3, window_bounds = array<i64: 1, 256>}, {transform_indices = @transform_4, window_bounds = array<i64: 1, 1, 1, 256>}]} {
    %c0_i32 = arith.constant 0 : i32
    %0 = arith.cmpi eq, %arg2, %c0_i32 : i32
    %1 = arith.extui %0 : i1 to i32
    %c0_i32_0 = arith.constant 0 : i32
    %2 = arith.cmpi ne, %1, %c0_i32_0 : i32
    scf.if %2 {
      %cst_13 = arith.constant 0.000000e+00 : f32
      %14 = vector.broadcast %cst_13 : f32 to vector<1x256xf32>
      %c0_14 = arith.constant 0 : index
      %c0_15 = arith.constant 0 : index
      %15 = vector.load %arg8[%c0_14, %c0_15] : memref<1x256xf32, #tpu.memory_space<vmem>>, vector<1x256xf32>
      tpu.vector_store %arg8[%c0_14, %c0_15], %14 {strides = array<i32>} : memref<1x256xf32, #tpu.memory_space<vmem>>, vector<1x256xf32>,
    } else {
    }
    %c0 = arith.constant 0 : index
    %c0_1 = arith.constant 0 : index
    %c0_2 = arith.constant 0 : index
    %c0_3 = arith.constant 0 : index
    %3 = vector.load %arg3[%c0, %c0_1, %c0_2, %c0_3] : memref<1x1x1x128xbf16, #tpu.memory_space<vmem>>, vector<1x1x1x128xbf16>
    %4 = vector.shape_cast %3 : vector<1x1x1x128xbf16> to vector<1x128xbf16>
    %c0_4 = arith.constant 0 : index
    %c0_5 = arith.constant 0 : index
    %c0_6 = arith.constant 0 : index
    %5 = vector.load %arg4[%c0_4, %c0_5, %c0_6] : memref<1x128x256xbf16, #tpu.memory_space<vmem>>, vector<1x128x256xbf16>
    %6 = vector.shape_cast %5 : vector<1x128x256xbf16> to vector<128x256xbf16>
    %c0_7 = arith.constant 0 : index
    %c0_8 = arith.constant 0 : index
    %7 = vector.load %arg8[%c0_7, %c0_8] : memref<1x256xf32, #tpu.memory_space<vmem>>, vector<1x256xf32>
    %cst = arith.constant dense<0.000000e+00> : vector<1x256xf32>
    %8 = tpu.matmul %4, %6, %cst {dimension_numbers = #tpu.dot_dimension_numbers<[1], [0], [0], [1], [0, 0, 1, 1], [], []>} : vector<1x128xbf16>, vector<128x256xbf16>, vector<1x256xf32> -> vector<1x256xf32>
    %9 = arith.addf %7, %8 : vector<1x256xf32>
    %c0_9 = arith.constant 0 : index
    %c0_10 = arith.constant 0 : index
    %10 = vector.load %arg8[%c0_9, %c0_10] : memref<1x256xf32, #tpu.memory_space<vmem>>, vector<1x256xf32>
    tpu.vector_store %arg8[%c0_9, %c0_10], %9 {strides = array<i32>} : memref<1x256xf32, #tpu.memory_space<vmem>>, vector<1x256xf32>,
    %c0_i32_11 = arith.constant 0 : i32
    %11 = arith.cmpi eq, %arg2, %c0_i32_11 : i32
    %12 = arith.extui %11 : i1 to i32
    %c0_i32_12 = arith.constant 0 : i32
    %13 = arith.cmpi ne, %12, %c0_i32_12 : i32
    scf.if %13 {
      %c0_13 = arith.constant 0 : index
      %c0_14 = arith.constant 0 : index
      %14 = vector.load %arg8[%c0_13, %c0_14] : memref<1x256xf32, #tpu.memory_space<vmem>>, vector<1x256xf32>
      %c0_15 = arith.constant 0 : index
      %c0_16 = arith.constant 0 : index
      %15 = vector.load %arg5[%c0_15, %c0_16] : memref<1x256xf32, #tpu.memory_space<vmem>>, vector<1x256xf32>
      %16 = arith.mulf %14, %15 : vector<1x256xf32>
      %c0_17 = arith.constant 0 : index
      %c0_18 = arith.constant 0 : index
      %17 = vector.load %arg6[%c0_17, %c0_18] : memref<1x256xf32, #tpu.memory_space<vmem>>, vector<1x256xf32>
      %18 = arith.addf %16, %17 : vector<1x256xf32>
      %19 = vector.shape_cast %18 : vector<1x256xf32> to vector<1x1x1x256xf32>
      %c0_19 = arith.constant 0 : index
      %c0_20 = arith.constant 0 : index
      %c0_21 = arith.constant 0 : index
      %c0_22 = arith.constant 0 : index
      %20 = vector.load %arg7[%c0_19, %c0_20, %c0_21, %c0_22] : memref<1x1x1x256xf32, #tpu.memory_space<vmem>>, vector<1x1x1x256xf32>
      tpu.vector_store %arg7[%c0_19, %c0_20, %c0_21, %c0_22], %19 {strides = array<i32>} : memref<1x1x1x256xf32, #tpu.memory_space<vmem>>, vector<1x1x1x256xf32>,
    } else {
    }
    return
  }
  func.func @transform_0(%arg0: i32, %arg1: i32, %arg2: i32) -> (i32, i32, i32, i32) {
    %c2_i32 = arith.constant 2 : i32
    %0 = arith.muli %c2_i32, %arg1 : i32
    %1 = arith.addi %0, %arg2 : i32
    %c0_i32 = arith.constant 0 : i32
    %c0_i32_0 = arith.constant 0 : i32
    %c0_i32_1 = arith.constant 0 : i32
    return %arg0, %1, %c0_i32, %c0_i32_0 : i32, i32, i32, i32
  }
  func.func @transform_1(%arg0: i32, %arg1: i32, %arg2: i32) -> (i32, i32, i32) {
    %c0_i32 = arith.constant 0 : i32
    %c0_i32_0 = arith.constant 0 : i32
    %c0_i32_1 = arith.constant 0 : i32
    return %arg2, %c0_i32, %c0_i32_0 : i32, i32, i32
  }
  func.func @transform_2(%arg0: i32, %arg1: i32, %arg2: i32) -> (i32, i32) {
    %c0_i32 = arith.constant 0 : i32
    %c0_i32_0 = arith.constant 0 : i32
    %c0_i32_1 = arith.constant 0 : i32
    return %c0_i32, %c0_i32_0 : i32, i32
  }
  func.func @transform_3(%arg0: i32, %arg1: i32, %arg2: i32) -> (i32, i32) {
    %c0_i32 = arith.constant 0 : i32
    %c0_i32_0 = arith.constant 0 : i32
    %c0_i32_1 = arith.constant 0 : i32
    return %c0_i32, %c0_i32_0 : i32, i32
  }
  func.func @transform_4(%arg0: i32, %arg1: i32, %arg2: i32) -> (i32, i32, i32, i32) {
    %c0_i32 = arith.constant 0 : i32
    %c0_i32_0 = arith.constant 0 : i32
    %c0_i32_1 = arith.constant 0 : i32
    return %arg0, %arg1, %c0_i32, %c0_i32_0 : i32, i32, i32, i32
  }
}

module attributes {stable_mosaic.version = 11 : i64} {
  func.func @kernel(%arg0: i32, %arg1: i32, %arg2: i32, %arg3: memref<1x1x1x768xbf16, #tpu.memory_space<vmem>>, %arg4: memref<1x768x256xbf16, #tpu.memory_space<vmem>>, %arg5: memref<1x256xf32, #tpu.memory_space<vmem>>, %arg6: memref<1x256xf32, #tpu.memory_space<vmem>>, %arg7: memref<1x1x1x256xf32, #tpu.memory_space<vmem>>, %arg8: memref<1x256xf32, #tpu.memory_space<vmem>>) attributes {dimension_semantics = [#tpu.dimension_semantics<parallel>, #tpu.dimension_semantics<parallel>, #tpu.dimension_semantics<arbitrary>], iteration_bounds = array<i64: 2, 1, 3>, scalar_prefetch = 0 : i64, scratch_operands = 1 : i64, tpu.core_type = #tpu.core_type<tc>, window_params = [{transform_indices = @transform_0, window_bounds = array<i64: 1, 1, 1, 768>}, {transform_indices = @transform_1, window_bounds = array<i64: 1, 768, 256>}, {pipeline_mode = #tpu.pipeline_mode<synchronous>, transform_indices = @transform_2, window_bounds = array<i64: 1, 256>}, {pipeline_mode = #tpu.pipeline_mode<synchronous>, transform_indices = @transform_3, window_bounds = array<i64: 1, 256>}, {transform_indices = @transform_4, window_bounds = array<i64: 1, 1, 1, 256>}]} {
    %c0_i32 = arith.constant 0 : i32
    %0 = arith.cmpi eq, %arg2, %c0_i32 : i32
    %1 = arith.extui %0 : i1 to i32
    %c0_i32_0 = arith.constant 0 : i32
    %2 = arith.cmpi ne, %1, %c0_i32_0 : i32
    scf.if %2 {
      %cst_12 = arith.constant 0.000000e+00 : f32
      %14 = vector.broadcast %cst_12 : f32 to vector<1x256xf32>
      %c0_13 = arith.constant 0 : index
      %c0_14 = arith.constant 0 : index
      %15 = vector.load %arg8[%c0_13, %c0_14] : memref<1x256xf32, #tpu.memory_space<vmem>>, vector<1x256xf32>
      tpu.vector_store %arg8[%c0_13, %c0_14], %14 {strides = array<i32>} : memref<1x256xf32, #tpu.memory_space<vmem>>, vector<1x256xf32>,
    } else {
    }
    %c0 = arith.constant 0 : index
    %c0_1 = arith.constant 0 : index
    %c0_2 = arith.constant 0 : index
    %c0_3 = arith.constant 0 : index
    %3 = vector.load %arg3[%c0, %c0_1, %c0_2, %c0_3] : memref<1x1x1x768xbf16, #tpu.memory_space<vmem>>, vector<1x1x1x768xbf16>
    %4 = vector.shape_cast %3 : vector<1x1x1x768xbf16> to vector<1x768xbf16>
    %c0_4 = arith.constant 0 : index
    %c0_5 = arith.constant 0 : index
    %c0_6 = arith.constant 0 : index
    %5 = vector.load %arg4[%c0_4, %c0_5, %c0_6] : memref<1x768x256xbf16, #tpu.memory_space<vmem>>, vector<1x768x256xbf16>
    %6 = vector.shape_cast %5 : vector<1x768x256xbf16> to vector<768x256xbf16>
    %c0_7 = arith.constant 0 : index
    %c0_8 = arith.constant 0 : index
    %7 = vector.load %arg8[%c0_7, %c0_8] : memref<1x256xf32, #tpu.memory_space<vmem>>, vector<1x256xf32>
    %cst = arith.constant dense<0.000000e+00> : vector<1x256xf32>
    %8 = tpu.matmul %4, %6, %cst {dimension_numbers = #tpu.dot_dimension_numbers<[1], [0], [0], [1], [0, 0, 1, 1], [], []>} : vector<1x768xbf16>, vector<768x256xbf16>, vector<1x256xf32> -> vector<1x256xf32>
    %9 = arith.addf %7, %8 : vector<1x256xf32>
    %c0_9 = arith.constant 0 : index
    %c0_10 = arith.constant 0 : index
    %10 = vector.load %arg8[%c0_9, %c0_10] : memref<1x256xf32, #tpu.memory_space<vmem>>, vector<1x256xf32>
    tpu.vector_store %arg8[%c0_9, %c0_10], %9 {strides = array<i32>} : memref<1x256xf32, #tpu.memory_space<vmem>>, vector<1x256xf32>,
    %c2_i32 = arith.constant 2 : i32
    %11 = arith.cmpi eq, %arg2, %c2_i32 : i32
    %12 = arith.extui %11 : i1 to i32
    %c0_i32_11 = arith.constant 0 : i32
    %13 = arith.cmpi ne, %12, %c0_i32_11 : i32
    scf.if %13 {
      %c0_12 = arith.constant 0 : index
      %c0_13 = arith.constant 0 : index
      %14 = vector.load %arg8[%c0_12, %c0_13] : memref<1x256xf32, #tpu.memory_space<vmem>>, vector<1x256xf32>
      %c0_14 = arith.constant 0 : index
      %c0_15 = arith.constant 0 : index
      %15 = vector.load %arg5[%c0_14, %c0_15] : memref<1x256xf32, #tpu.memory_space<vmem>>, vector<1x256xf32>
      %16 = arith.mulf %14, %15 : vector<1x256xf32>
      %c0_16 = arith.constant 0 : index
      %c0_17 = arith.constant 0 : index
      %17 = vector.load %arg6[%c0_16, %c0_17] : memref<1x256xf32, #tpu.memory_space<vmem>>, vector<1x256xf32>
      %18 = arith.addf %16, %17 : vector<1x256xf32>
      %cst_18 = arith.constant 0.000000e+00 : f32
      %19 = vector.broadcast %cst_18 : f32 to vector<1x256xf32>
      %20 = arith.maximumf %18, %19 : vector<1x256xf32>
      %21 = vector.shape_cast %20 : vector<1x256xf32> to vector<1x1x1x256xf32>
      %c0_19 = arith.constant 0 : index
      %c0_20 = arith.constant 0 : index
      %c0_21 = arith.constant 0 : index
      %c0_22 = arith.constant 0 : index
      %22 = vector.load %arg7[%c0_19, %c0_20, %c0_21, %c0_22] : memref<1x1x1x256xf32, #tpu.memory_space<vmem>>, vector<1x1x1x256xf32>
      tpu.vector_store %arg7[%c0_19, %c0_20, %c0_21, %c0_22], %21 {strides = array<i32>} : memref<1x1x1x256xf32, #tpu.memory_space<vmem>>, vector<1x1x1x256xf32>,
    } else {
    }
    return
  }
  func.func @transform_0(%arg0: i32, %arg1: i32, %arg2: i32) -> (i32, i32, i32, i32) {
    %c1_i32 = arith.constant 1 : i32
    %0 = arith.muli %c1_i32, %arg1 : i32
    %1 = arith.addi %0, %arg2 : i32
    %c0_i32 = arith.constant 0 : i32
    %c0_i32_0 = arith.constant 0 : i32
    %c0_i32_1 = arith.constant 0 : i32
    return %arg0, %1, %c0_i32, %c0_i32_0 : i32, i32, i32, i32
  }
  func.func @transform_1(%arg0: i32, %arg1: i32, %arg2: i32) -> (i32, i32, i32) {
    %c0_i32 = arith.constant 0 : i32
    %c0_i32_0 = arith.constant 0 : i32
    %c0_i32_1 = arith.constant 0 : i32
    return %arg2, %c0_i32, %c0_i32_0 : i32, i32, i32
  }
  func.func @transform_2(%arg0: i32, %arg1: i32, %arg2: i32) -> (i32, i32) {
    %c0_i32 = arith.constant 0 : i32
    %c0_i32_0 = arith.constant 0 : i32
    %c0_i32_1 = arith.constant 0 : i32
    return %c0_i32, %c0_i32_0 : i32, i32
  }
  func.func @transform_3(%arg0: i32, %arg1: i32, %arg2: i32) -> (i32, i32) {
    %c0_i32 = arith.constant 0 : i32
    %c0_i32_0 = arith.constant 0 : i32
    %c0_i32_1 = arith.constant 0 : i32
    return %c0_i32, %c0_i32_0 : i32, i32
  }
  func.func @transform_4(%arg0: i32, %arg1: i32, %arg2: i32) -> (i32, i32, i32, i32) {
    %c0_i32 = arith.constant 0 : i32
    %c0_i32_0 = arith.constant 0 : i32
    %c0_i32_1 = arith.constant 0 : i32
    return %arg0, %arg1, %c0_i32, %c0_i32_0 : i32, i32, i32, i32
  }
}

module attributes {stable_mosaic.version = 11 : i64} {
  func.func @kernel(%arg0: i32, %arg1: i32, %arg2: i32, %arg3: memref<1x1x1x768xbf16, #tpu.memory_space<vmem>>, %arg4: memref<1x768x512xbf16, #tpu.memory_space<vmem>>, %arg5: memref<1x512xf32, #tpu.memory_space<vmem>>, %arg6: memref<1x512xf32, #tpu.memory_space<vmem>>, %arg7: memref<1x1x1x512xf32, #tpu.memory_space<vmem>>, %arg8: memref<1x512xf32, #tpu.memory_space<vmem>>) attributes {dimension_semantics = [#tpu.dimension_semantics<parallel>, #tpu.dimension_semantics<parallel>, #tpu.dimension_semantics<arbitrary>], iteration_bounds = array<i64: 2, 1, 3>, scalar_prefetch = 0 : i64, scratch_operands = 1 : i64, tpu.core_type = #tpu.core_type<tc>, window_params = [{transform_indices = @transform_0, window_bounds = array<i64: 1, 1, 1, 768>}, {transform_indices = @transform_1, window_bounds = array<i64: 1, 768, 512>}, {pipeline_mode = #tpu.pipeline_mode<synchronous>, transform_indices = @transform_2, window_bounds = array<i64: 1, 512>}, {pipeline_mode = #tpu.pipeline_mode<synchronous>, transform_indices = @transform_3, window_bounds = array<i64: 1, 512>}, {transform_indices = @transform_4, window_bounds = array<i64: 1, 1, 1, 512>}]} {
    %c0_i32 = arith.constant 0 : i32
    %0 = arith.cmpi eq, %arg2, %c0_i32 : i32
    %1 = arith.extui %0 : i1 to i32
    %c0_i32_0 = arith.constant 0 : i32
    %2 = arith.cmpi ne, %1, %c0_i32_0 : i32
    scf.if %2 {
      %cst_12 = arith.constant 0.000000e+00 : f32
      %14 = vector.broadcast %cst_12 : f32 to vector<1x512xf32>
      %c0_13 = arith.constant 0 : index
      %c0_14 = arith.constant 0 : index
      %15 = vector.load %arg8[%c0_13, %c0_14] : memref<1x512xf32, #tpu.memory_space<vmem>>, vector<1x512xf32>
      tpu.vector_store %arg8[%c0_13, %c0_14], %14 {strides = array<i32>} : memref<1x512xf32, #tpu.memory_space<vmem>>, vector<1x512xf32>,
    } else {
    }
    %c0 = arith.constant 0 : index
    %c0_1 = arith.constant 0 : index
    %c0_2 = arith.constant 0 : index
    %c0_3 = arith.constant 0 : index
    %3 = vector.load %arg3[%c0, %c0_1, %c0_2, %c0_3] : memref<1x1x1x768xbf16, #tpu.memory_space<vmem>>, vector<1x1x1x768xbf16>
    %4 = vector.shape_cast %3 : vector<1x1x1x768xbf16> to vector<1x768xbf16>
    %c0_4 = arith.constant 0 : index
    %c0_5 = arith.constant 0 : index
    %c0_6 = arith.constant 0 : index
    %5 = vector.load %arg4[%c0_4, %c0_5, %c0_6] : memref<1x768x512xbf16, #tpu.memory_space<vmem>>, vector<1x768x512xbf16>
    %6 = vector.shape_cast %5 : vector<1x768x512xbf16> to vector<768x512xbf16>
    %c0_7 = arith.constant 0 : index
    %c0_8 = arith.constant 0 : index
    %7 = vector.load %arg8[%c0_7, %c0_8] : memref<1x512xf32, #tpu.memory_space<vmem>>, vector<1x512xf32>
    %cst = arith.constant dense<0.000000e+00> : vector<1x512xf32>
    %8 = tpu.matmul %4, %6, %cst {dimension_numbers = #tpu.dot_dimension_numbers<[1], [0], [0], [1], [0, 0, 1, 1], [], []>} : vector<1x768xbf16>, vector<768x512xbf16>, vector<1x512xf32> -> vector<1x512xf32>
    %9 = arith.addf %7, %8 : vector<1x512xf32>
    %c0_9 = arith.constant 0 : index
    %c0_10 = arith.constant 0 : index
    %10 = vector.load %arg8[%c0_9, %c0_10] : memref<1x512xf32, #tpu.memory_space<vmem>>, vector<1x512xf32>
    tpu.vector_store %arg8[%c0_9, %c0_10], %9 {strides = array<i32>} : memref<1x512xf32, #tpu.memory_space<vmem>>, vector<1x512xf32>,
    %c2_i32 = arith.constant 2 : i32
    %11 = arith.cmpi eq, %arg2, %c2_i32 : i32
    %12 = arith.extui %11 : i1 to i32
    %c0_i32_11 = arith.constant 0 : i32
    %13 = arith.cmpi ne, %12, %c0_i32_11 : i32
    scf.if %13 {
      %c0_12 = arith.constant 0 : index
      %c0_13 = arith.constant 0 : index
      %14 = vector.load %arg8[%c0_12, %c0_13] : memref<1x512xf32, #tpu.memory_space<vmem>>, vector<1x512xf32>
      %c0_14 = arith.constant 0 : index
      %c0_15 = arith.constant 0 : index
      %15 = vector.load %arg5[%c0_14, %c0_15] : memref<1x512xf32, #tpu.memory_space<vmem>>, vector<1x512xf32>
      %16 = arith.mulf %14, %15 : vector<1x512xf32>
      %c0_16 = arith.constant 0 : index
      %c0_17 = arith.constant 0 : index
      %17 = vector.load %arg6[%c0_16, %c0_17] : memref<1x512xf32, #tpu.memory_space<vmem>>, vector<1x512xf32>
      %18 = arith.addf %16, %17 : vector<1x512xf32>
      %cst_18 = arith.constant 0.000000e+00 : f32
      %19 = vector.broadcast %cst_18 : f32 to vector<1x512xf32>
      %20 = arith.maximumf %18, %19 : vector<1x512xf32>
      %21 = vector.shape_cast %20 : vector<1x512xf32> to vector<1x1x1x512xf32>
      %c0_19 = arith.constant 0 : index
      %c0_20 = arith.constant 0 : index
      %c0_21 = arith.constant 0 : index
      %c0_22 = arith.constant 0 : index
      %22 = vector.load %arg7[%c0_19, %c0_20, %c0_21, %c0_22] : memref<1x1x1x512xf32, #tpu.memory_space<vmem>>, vector<1x1x1x512xf32>
      tpu.vector_store %arg7[%c0_19, %c0_20, %c0_21, %c0_22], %21 {strides = array<i32>} : memref<1x1x1x512xf32, #tpu.memory_space<vmem>>, vector<1x1x1x512xf32>,
    } else {
    }
    return
  }
  func.func @transform_0(%arg0: i32, %arg1: i32, %arg2: i32) -> (i32, i32, i32, i32) {
    %c2_i32 = arith.constant 2 : i32
    %0 = arith.muli %c2_i32, %arg1 : i32
    %1 = arith.addi %0, %arg2 : i32
    %c0_i32 = arith.constant 0 : i32
    %c0_i32_0 = arith.constant 0 : i32
    %c0_i32_1 = arith.constant 0 : i32
    return %arg0, %1, %c0_i32, %c0_i32_0 : i32, i32, i32, i32
  }
  func.func @transform_1(%arg0: i32, %arg1: i32, %arg2: i32) -> (i32, i32, i32) {
    %c0_i32 = arith.constant 0 : i32
    %c0_i32_0 = arith.constant 0 : i32
    %c0_i32_1 = arith.constant 0 : i32
    return %arg2, %c0_i32, %c0_i32_0 : i32, i32, i32
  }
  func.func @transform_2(%arg0: i32, %arg1: i32, %arg2: i32) -> (i32, i32) {
    %c0_i32 = arith.constant 0 : i32
    %c0_i32_0 = arith.constant 0 : i32
    %c0_i32_1 = arith.constant 0 : i32
    return %c0_i32, %c0_i32_0 : i32, i32
  }
  func.func @transform_3(%arg0: i32, %arg1: i32, %arg2: i32) -> (i32, i32) {
    %c0_i32 = arith.constant 0 : i32
    %c0_i32_0 = arith.constant 0 : i32
    %c0_i32_1 = arith.constant 0 : i32
    return %c0_i32, %c0_i32_0 : i32, i32
  }
  func.func @transform_4(%arg0: i32, %arg1: i32, %arg2: i32) -> (i32, i32, i32, i32) {
    %c0_i32 = arith.constant 0 : i32
    %c0_i32_0 = arith.constant 0 : i32
    %c0_i32_1 = arith.constant 0 : i32
    return %arg0, %arg1, %c0_i32, %c0_i32_0 : i32, i32, i32, i32
  }
}

module attributes {stable_mosaic.version = 11 : i64} {
  func.func @kernel(%arg0: i32, %arg1: i32, %arg2: i32, %arg3: memref<1x1x1x256xbf16, #tpu.memory_space<vmem>>, %arg4: memref<1x256x512xbf16, #tpu.memory_space<vmem>>, %arg5: memref<1x512xf32, #tpu.memory_space<vmem>>, %arg6: memref<1x512xf32, #tpu.memory_space<vmem>>, %arg7: memref<1x1x1x512xf32, #tpu.memory_space<vmem>>, %arg8: memref<1x512xf32, #tpu.memory_space<vmem>>) attributes {dimension_semantics = [#tpu.dimension_semantics<parallel>, #tpu.dimension_semantics<parallel>, #tpu.dimension_semantics<arbitrary>], iteration_bounds = array<i64: 2, 1, 1>, scalar_prefetch = 0 : i64, scratch_operands = 1 : i64, tpu.core_type = #tpu.core_type<tc>, window_params = [{transform_indices = @transform_0, window_bounds = array<i64: 1, 1, 1, 256>}, {transform_indices = @transform_1, window_bounds = array<i64: 1, 256, 512>}, {pipeline_mode = #tpu.pipeline_mode<synchronous>, transform_indices = @transform_2, window_bounds = array<i64: 1, 512>}, {pipeline_mode = #tpu.pipeline_mode<synchronous>, transform_indices = @transform_3, window_bounds = array<i64: 1, 512>}, {transform_indices = @transform_4, window_bounds = array<i64: 1, 1, 1, 512>}]} {
    %c0_i32 = arith.constant 0 : i32
    %0 = arith.cmpi eq, %arg2, %c0_i32 : i32
    %1 = arith.extui %0 : i1 to i32
    %c0_i32_0 = arith.constant 0 : i32
    %2 = arith.cmpi ne, %1, %c0_i32_0 : i32
    scf.if %2 {
      %cst_13 = arith.constant 0.000000e+00 : f32
      %14 = vector.broadcast %cst_13 : f32 to vector<1x512xf32>
      %c0_14 = arith.constant 0 : index
      %c0_15 = arith.constant 0 : index
      %15 = vector.load %arg8[%c0_14, %c0_15] : memref<1x512xf32, #tpu.memory_space<vmem>>, vector<1x512xf32>
      tpu.vector_store %arg8[%c0_14, %c0_15], %14 {strides = array<i32>} : memref<1x512xf32, #tpu.memory_space<vmem>>, vector<1x512xf32>,
    } else {
    }
    %c0 = arith.constant 0 : index
    %c0_1 = arith.constant 0 : index
    %c0_2 = arith.constant 0 : index
    %c0_3 = arith.constant 0 : index
    %3 = vector.load %arg3[%c0, %c0_1, %c0_2, %c0_3] : memref<1x1x1x256xbf16, #tpu.memory_space<vmem>>, vector<1x1x1x256xbf16>
    %4 = vector.shape_cast %3 : vector<1x1x1x256xbf16> to vector<1x256xbf16>
    %c0_4 = arith.constant 0 : index
    %c0_5 = arith.constant 0 : index
    %c0_6 = arith.constant 0 : index
    %5 = vector.load %arg4[%c0_4, %c0_5, %c0_6] : memref<1x256x512xbf16, #tpu.memory_space<vmem>>, vector<1x256x512xbf16>
    %6 = vector.shape_cast %5 : vector<1x256x512xbf16> to vector<256x512xbf16>
    %c0_7 = arith.constant 0 : index
    %c0_8 = arith.constant 0 : index
    %7 = vector.load %arg8[%c0_7, %c0_8] : memref<1x512xf32, #tpu.memory_space<vmem>>, vector<1x512xf32>
    %cst = arith.constant dense<0.000000e+00> : vector<1x512xf32>
    %8 = tpu.matmul %4, %6, %cst {dimension_numbers = #tpu.dot_dimension_numbers<[1], [0], [0], [1], [0, 0, 1, 1], [], []>} : vector<1x256xbf16>, vector<256x512xbf16>, vector<1x512xf32> -> vector<1x512xf32>
    %9 = arith.addf %7, %8 : vector<1x512xf32>
    %c0_9 = arith.constant 0 : index
    %c0_10 = arith.constant 0 : index
    %10 = vector.load %arg8[%c0_9, %c0_10] : memref<1x512xf32, #tpu.memory_space<vmem>>, vector<1x512xf32>
    tpu.vector_store %arg8[%c0_9, %c0_10], %9 {strides = array<i32>} : memref<1x512xf32, #tpu.memory_space<vmem>>, vector<1x512xf32>,
    %c0_i32_11 = arith.constant 0 : i32
    %11 = arith.cmpi eq, %arg2, %c0_i32_11 : i32
    %12 = arith.extui %11 : i1 to i32
    %c0_i32_12 = arith.constant 0 : i32
    %13 = arith.cmpi ne, %12, %c0_i32_12 : i32
    scf.if %13 {
      %c0_13 = arith.constant 0 : index
      %c0_14 = arith.constant 0 : index
      %14 = vector.load %arg8[%c0_13, %c0_14] : memref<1x512xf32, #tpu.memory_space<vmem>>, vector<1x512xf32>
      %c0_15 = arith.constant 0 : index
      %c0_16 = arith.constant 0 : index
      %15 = vector.load %arg5[%c0_15, %c0_16] : memref<1x512xf32, #tpu.memory_space<vmem>>, vector<1x512xf32>
      %16 = arith.mulf %14, %15 : vector<1x512xf32>
      %c0_17 = arith.constant 0 : index
      %c0_18 = arith.constant 0 : index
      %17 = vector.load %arg6[%c0_17, %c0_18] : memref<1x512xf32, #tpu.memory_space<vmem>>, vector<1x512xf32>
      %18 = arith.addf %16, %17 : vector<1x512xf32>
      %19 = vector.shape_cast %18 : vector<1x512xf32> to vector<1x1x1x512xf32>
      %c0_19 = arith.constant 0 : index
      %c0_20 = arith.constant 0 : index
      %c0_21 = arith.constant 0 : index
      %c0_22 = arith.constant 0 : index
      %20 = vector.load %arg7[%c0_19, %c0_20, %c0_21, %c0_22] : memref<1x1x1x512xf32, #tpu.memory_space<vmem>>, vector<1x1x1x512xf32>
      tpu.vector_store %arg7[%c0_19, %c0_20, %c0_21, %c0_22], %19 {strides = array<i32>} : memref<1x1x1x512xf32, #tpu.memory_space<vmem>>, vector<1x1x1x512xf32>,
    } else {
    }
    return
  }
  func.func @transform_0(%arg0: i32, %arg1: i32, %arg2: i32) -> (i32, i32, i32, i32) {
    %c2_i32 = arith.constant 2 : i32
    %0 = arith.muli %c2_i32, %arg1 : i32
    %1 = arith.addi %0, %arg2 : i32
    %c0_i32 = arith.constant 0 : i32
    %c0_i32_0 = arith.constant 0 : i32
    %c0_i32_1 = arith.constant 0 : i32
    return %arg0, %1, %c0_i32, %c0_i32_0 : i32, i32, i32, i32
  }
  func.func @transform_1(%arg0: i32, %arg1: i32, %arg2: i32) -> (i32, i32, i32) {
    %c0_i32 = arith.constant 0 : i32
    %c0_i32_0 = arith.constant 0 : i32
    %c0_i32_1 = arith.constant 0 : i32
    return %arg2, %c0_i32, %c0_i32_0 : i32, i32, i32
  }
  func.func @transform_2(%arg0: i32, %arg1: i32, %arg2: i32) -> (i32, i32) {
    %c0_i32 = arith.constant 0 : i32
    %c0_i32_0 = arith.constant 0 : i32
    %c0_i32_1 = arith.constant 0 : i32
    return %c0_i32, %c0_i32_0 : i32, i32
  }
  func.func @transform_3(%arg0: i32, %arg1: i32, %arg2: i32) -> (i32, i32) {
    %c0_i32 = arith.constant 0 : i32
    %c0_i32_0 = arith.constant 0 : i32
    %c0_i32_1 = arith.constant 0 : i32
    return %c0_i32, %c0_i32_0 : i32, i32
  }
  func.func @transform_4(%arg0: i32, %arg1: i32, %arg2: i32) -> (i32, i32, i32, i32) {
    %c0_i32 = arith.constant 0 : i32
    %c0_i32_0 = arith.constant 0 : i32
    %c0_i32_1 = arith.constant 0 : i32
    return %arg0, %arg1, %c0_i32, %c0_i32_0 : i32, i32, i32, i32
  }
}

module attributes {stable_mosaic.version = 11 : i64} {
  func.func @kernel(%arg0: i32, %arg1: i32, %arg2: i32, %arg3: memref<1x1x1x1536xbf16, #tpu.memory_space<vmem>>, %arg4: memref<1x1536x512xbf16, #tpu.memory_space<vmem>>, %arg5: memref<1x512xf32, #tpu.memory_space<vmem>>, %arg6: memref<1x512xf32, #tpu.memory_space<vmem>>, %arg7: memref<1x1x1x512xf32, #tpu.memory_space<vmem>>, %arg8: memref<1x1x1x512xf32, #tpu.memory_space<vmem>>, %arg9: memref<1x512xf32, #tpu.memory_space<vmem>>) attributes {dimension_semantics = [#tpu.dimension_semantics<parallel>, #tpu.dimension_semantics<parallel>, #tpu.dimension_semantics<arbitrary>], iteration_bounds = array<i64: 2, 1, 3>, scalar_prefetch = 0 : i64, scratch_operands = 1 : i64, tpu.core_type = #tpu.core_type<tc>, window_params = [{transform_indices = @transform_0, window_bounds = array<i64: 1, 1, 1, 1536>}, {transform_indices = @transform_1, window_bounds = array<i64: 1, 1536, 512>}, {pipeline_mode = #tpu.pipeline_mode<synchronous>, transform_indices = @transform_2, window_bounds = array<i64: 1, 512>}, {pipeline_mode = #tpu.pipeline_mode<synchronous>, transform_indices = @transform_3, window_bounds = array<i64: 1, 512>}, {transform_indices = @transform_4, window_bounds = array<i64: 1, 1, 1, 512>}, {transform_indices = @transform_5, window_bounds = array<i64: 1, 1, 1, 512>}]} {
    %c0_i32 = arith.constant 0 : i32
    %0 = arith.cmpi eq, %arg2, %c0_i32 : i32
    %1 = arith.extui %0 : i1 to i32
    %c0_i32_0 = arith.constant 0 : i32
    %2 = arith.cmpi ne, %1, %c0_i32_0 : i32
    scf.if %2 {
      %cst_12 = arith.constant 0.000000e+00 : f32
      %14 = vector.broadcast %cst_12 : f32 to vector<1x512xf32>
      %c0_13 = arith.constant 0 : index
      %c0_14 = arith.constant 0 : index
      %15 = vector.load %arg9[%c0_13, %c0_14] : memref<1x512xf32, #tpu.memory_space<vmem>>, vector<1x512xf32>
      tpu.vector_store %arg9[%c0_13, %c0_14], %14 {strides = array<i32>} : memref<1x512xf32, #tpu.memory_space<vmem>>, vector<1x512xf32>,
    } else {
    }
    %c0 = arith.constant 0 : index
    %c0_1 = arith.constant 0 : index
    %c0_2 = arith.constant 0 : index
    %c0_3 = arith.constant 0 : index
    %3 = vector.load %arg3[%c0, %c0_1, %c0_2, %c0_3] : memref<1x1x1x1536xbf16, #tpu.memory_space<vmem>>, vector<1x1x1x1536xbf16>
    %4 = vector.shape_cast %3 : vector<1x1x1x1536xbf16> to vector<1x1536xbf16>
    %c0_4 = arith.constant 0 : index
    %c0_5 = arith.constant 0 : index
    %c0_6 = arith.constant 0 : index
    %5 = vector.load %arg4[%c0_4, %c0_5, %c0_6] : memref<1x1536x512xbf16, #tpu.memory_space<vmem>>, vector<1x1536x512xbf16>
    %6 = vector.shape_cast %5 : vector<1x1536x512xbf16> to vector<1536x512xbf16>
    %c0_7 = arith.constant 0 : index
    %c0_8 = arith.constant 0 : index
    %7 = vector.load %arg9[%c0_7, %c0_8] : memref<1x512xf32, #tpu.memory_space<vmem>>, vector<1x512xf32>
    %cst = arith.constant dense<0.000000e+00> : vector<1x512xf32>
    %8 = tpu.matmul %4, %6, %cst {dimension_numbers = #tpu.dot_dimension_numbers<[1], [0], [0], [1], [0, 0, 1, 1], [], []>} : vector<1x1536xbf16>, vector<1536x512xbf16>, vector<1x512xf32> -> vector<1x512xf32>
    %9 = arith.addf %7, %8 : vector<1x512xf32>
    %c0_9 = arith.constant 0 : index
    %c0_10 = arith.constant 0 : index
    %10 = vector.load %arg9[%c0_9, %c0_10] : memref<1x512xf32, #tpu.memory_space<vmem>>, vector<1x512xf32>
    tpu.vector_store %arg9[%c0_9, %c0_10], %9 {strides = array<i32>} : memref<1x512xf32, #tpu.memory_space<vmem>>, vector<1x512xf32>,
    %c2_i32 = arith.constant 2 : i32
    %11 = arith.cmpi eq, %arg2, %c2_i32 : i32
    %12 = arith.extui %11 : i1 to i32
    %c0_i32_11 = arith.constant 0 : i32
    %13 = arith.cmpi ne, %12, %c0_i32_11 : i32
    scf.if %13 {
      %c0_12 = arith.constant 0 : index
      %c0_13 = arith.constant 0 : index
      %14 = vector.load %arg9[%c0_12, %c0_13] : memref<1x512xf32, #tpu.memory_space<vmem>>, vector<1x512xf32>
      %c0_14 = arith.constant 0 : index
      %c0_15 = arith.constant 0 : index
      %15 = vector.load %arg5[%c0_14, %c0_15] : memref<1x512xf32, #tpu.memory_space<vmem>>, vector<1x512xf32>
      %16 = arith.mulf %14, %15 : vector<1x512xf32>
      %c0_16 = arith.constant 0 : index
      %c0_17 = arith.constant 0 : index
      %17 = vector.load %arg6[%c0_16, %c0_17] : memref<1x512xf32, #tpu.memory_space<vmem>>, vector<1x512xf32>
      %18 = arith.addf %16, %17 : vector<1x512xf32>
      %c0_18 = arith.constant 0 : index
      %c0_19 = arith.constant 0 : index
      %c0_20 = arith.constant 0 : index
      %c0_21 = arith.constant 0 : index
      %19 = vector.load %arg7[%c0_18, %c0_19, %c0_20, %c0_21] : memref<1x1x1x512xf32, #tpu.memory_space<vmem>>, vector<1x1x1x512xf32>
      %20 = vector.shape_cast %19 : vector<1x1x1x512xf32> to vector<1x512xf32>
      %21 = arith.addf %18, %20 : vector<1x512xf32>
      %cst_22 = arith.constant 0.000000e+00 : f32
      %22 = vector.broadcast %cst_22 : f32 to vector<1x512xf32>
      %23 = arith.maximumf %21, %22 : vector<1x512xf32>
      %24 = vector.shape_cast %23 : vector<1x512xf32> to vector<1x1x1x512xf32>
      %c0_23 = arith.constant 0 : index
      %c0_24 = arith.constant 0 : index
      %c0_25 = arith.constant 0 : index
      %c0_26 = arith.constant 0 : index
      %25 = vector.load %arg8[%c0_23, %c0_24, %c0_25, %c0_26] : memref<1x1x1x512xf32, #tpu.memory_space<vmem>>, vector<1x1x1x512xf32>
      tpu.vector_store %arg8[%c0_23, %c0_24, %c0_25, %c0_26], %24 {strides = array<i32>} : memref<1x1x1x512xf32, #tpu.memory_space<vmem>>, vector<1x1x1x512xf32>,
    } else {
    }
    return
  }
  func.func @transform_0(%arg0: i32, %arg1: i32, %arg2: i32) -> (i32, i32, i32, i32) {
    %c1_i32 = arith.constant 1 : i32
    %0 = arith.muli %c1_i32, %arg1 : i32
    %1 = arith.addi %0, %arg2 : i32
    %c0_i32 = arith.constant 0 : i32
    %c0_i32_0 = arith.constant 0 : i32
    %c0_i32_1 = arith.constant 0 : i32
    return %arg0, %1, %c0_i32, %c0_i32_0 : i32, i32, i32, i32
  }
  func.func @transform_1(%arg0: i32, %arg1: i32, %arg2: i32) -> (i32, i32, i32) {
    %c0_i32 = arith.constant 0 : i32
    %c0_i32_0 = arith.constant 0 : i32
    %c0_i32_1 = arith.constant 0 : i32
    return %arg2, %c0_i32, %c0_i32_0 : i32, i32, i32
  }
  func.func @transform_2(%arg0: i32, %arg1: i32, %arg2: i32) -> (i32, i32) {
    %c0_i32 = arith.constant 0 : i32
    %c0_i32_0 = arith.constant 0 : i32
    %c0_i32_1 = arith.constant 0 : i32
    return %c0_i32, %c0_i32_0 : i32, i32
  }
  func.func @transform_3(%arg0: i32, %arg1: i32, %arg2: i32) -> (i32, i32) {
    %c0_i32 = arith.constant 0 : i32
    %c0_i32_0 = arith.constant 0 : i32
    %c0_i32_1 = arith.constant 0 : i32
    return %c0_i32, %c0_i32_0 : i32, i32
  }
  func.func @transform_4(%arg0: i32, %arg1: i32, %arg2: i32) -> (i32, i32, i32, i32) {
    %c0_i32 = arith.constant 0 : i32
    %c0_i32_0 = arith.constant 0 : i32
    %c0_i32_1 = arith.constant 0 : i32
    return %arg0, %arg1, %c0_i32, %c0_i32_0 : i32, i32, i32, i32
  }
  func.func @transform_5(%arg0: i32, %arg1: i32, %arg2: i32) -> (i32, i32, i32, i32) {
    %c0_i32 = arith.constant 0 : i32
    %c0_i32_0 = arith.constant 0 : i32
    %c0_i32_1 = arith.constant 0 : i32
    return %arg0, %arg1, %c0_i32, %c0_i32_0 : i32, i32, i32, i32
  }
}

module attributes {stable_mosaic.version = 11 : i64} {
  func.func @kernel(%arg0: i32, %arg1: i32, %arg2: i32, %arg3: memref<1x1x1x1536xbf16, #tpu.memory_space<vmem>>, %arg4: memref<1x1536x512xbf16, #tpu.memory_space<vmem>>, %arg5: memref<1x512xf32, #tpu.memory_space<vmem>>, %arg6: memref<1x512xf32, #tpu.memory_space<vmem>>, %arg7: memref<1x1x1x512xf32, #tpu.memory_space<vmem>>, %arg8: memref<1x512xf32, #tpu.memory_space<vmem>>) attributes {dimension_semantics = [#tpu.dimension_semantics<parallel>, #tpu.dimension_semantics<parallel>, #tpu.dimension_semantics<arbitrary>], iteration_bounds = array<i64: 2, 1, 3>, scalar_prefetch = 0 : i64, scratch_operands = 1 : i64, tpu.core_type = #tpu.core_type<tc>, window_params = [{transform_indices = @transform_0, window_bounds = array<i64: 1, 1, 1, 1536>}, {transform_indices = @transform_1, window_bounds = array<i64: 1, 1536, 512>}, {pipeline_mode = #tpu.pipeline_mode<synchronous>, transform_indices = @transform_2, window_bounds = array<i64: 1, 512>}, {pipeline_mode = #tpu.pipeline_mode<synchronous>, transform_indices = @transform_3, window_bounds = array<i64: 1, 512>}, {transform_indices = @transform_4, window_bounds = array<i64: 1, 1, 1, 512>}]} {
    %c0_i32 = arith.constant 0 : i32
    %0 = arith.cmpi eq, %arg2, %c0_i32 : i32
    %1 = arith.extui %0 : i1 to i32
    %c0_i32_0 = arith.constant 0 : i32
    %2 = arith.cmpi ne, %1, %c0_i32_0 : i32
    scf.if %2 {
      %cst_12 = arith.constant 0.000000e+00 : f32
      %14 = vector.broadcast %cst_12 : f32 to vector<1x512xf32>
      %c0_13 = arith.constant 0 : index
      %c0_14 = arith.constant 0 : index
      %15 = vector.load %arg8[%c0_13, %c0_14] : memref<1x512xf32, #tpu.memory_space<vmem>>, vector<1x512xf32>
      tpu.vector_store %arg8[%c0_13, %c0_14], %14 {strides = array<i32>} : memref<1x512xf32, #tpu.memory_space<vmem>>, vector<1x512xf32>,
    } else {
    }
    %c0 = arith.constant 0 : index
    %c0_1 = arith.constant 0 : index
    %c0_2 = arith.constant 0 : index
    %c0_3 = arith.constant 0 : index
    %3 = vector.load %arg3[%c0, %c0_1, %c0_2, %c0_3] : memref<1x1x1x1536xbf16, #tpu.memory_space<vmem>>, vector<1x1x1x1536xbf16>
    %4 = vector.shape_cast %3 : vector<1x1x1x1536xbf16> to vector<1x1536xbf16>
    %c0_4 = arith.constant 0 : index
    %c0_5 = arith.constant 0 : index
    %c0_6 = arith.constant 0 : index
    %5 = vector.load %arg4[%c0_4, %c0_5, %c0_6] : memref<1x1536x512xbf16, #tpu.memory_space<vmem>>, vector<1x1536x512xbf16>
    %6 = vector.shape_cast %5 : vector<1x1536x512xbf16> to vector<1536x512xbf16>
    %c0_7 = arith.constant 0 : index
    %c0_8 = arith.constant 0 : index
    %7 = vector.load %arg8[%c0_7, %c0_8] : memref<1x512xf32, #tpu.memory_space<vmem>>, vector<1x512xf32>
    %cst = arith.constant dense<0.000000e+00> : vector<1x512xf32>
    %8 = tpu.matmul %4, %6, %cst {dimension_numbers = #tpu.dot_dimension_numbers<[1], [0], [0], [1], [0, 0, 1, 1], [], []>} : vector<1x1536xbf16>, vector<1536x512xbf16>, vector<1x512xf32> -> vector<1x512xf32>
    %9 = arith.addf %7, %8 : vector<1x512xf32>
    %c0_9 = arith.constant 0 : index
    %c0_10 = arith.constant 0 : index
    %10 = vector.load %arg8[%c0_9, %c0_10] : memref<1x512xf32, #tpu.memory_space<vmem>>, vector<1x512xf32>
    tpu.vector_store %arg8[%c0_9, %c0_10], %9 {strides = array<i32>} : memref<1x512xf32, #tpu.memory_space<vmem>>, vector<1x512xf32>,
    %c2_i32 = arith.constant 2 : i32
    %11 = arith.cmpi eq, %arg2, %c2_i32 : i32
    %12 = arith.extui %11 : i1 to i32
    %c0_i32_11 = arith.constant 0 : i32
    %13 = arith.cmpi ne, %12, %c0_i32_11 : i32
    scf.if %13 {
      %c0_12 = arith.constant 0 : index
      %c0_13 = arith.constant 0 : index
      %14 = vector.load %arg8[%c0_12, %c0_13] : memref<1x512xf32, #tpu.memory_space<vmem>>, vector<1x512xf32>
      %c0_14 = arith.constant 0 : index
      %c0_15 = arith.constant 0 : index
      %15 = vector.load %arg5[%c0_14, %c0_15] : memref<1x512xf32, #tpu.memory_space<vmem>>, vector<1x512xf32>
      %16 = arith.mulf %14, %15 : vector<1x512xf32>
      %c0_16 = arith.constant 0 : index
      %c0_17 = arith.constant 0 : index
      %17 = vector.load %arg6[%c0_16, %c0_17] : memref<1x512xf32, #tpu.memory_space<vmem>>, vector<1x512xf32>
      %18 = arith.addf %16, %17 : vector<1x512xf32>
      %cst_18 = arith.constant 0.000000e+00 : f32
      %19 = vector.broadcast %cst_18 : f32 to vector<1x512xf32>
      %20 = arith.maximumf %18, %19 : vector<1x512xf32>
      %21 = vector.shape_cast %20 : vector<1x512xf32> to vector<1x1x1x512xf32>
      %c0_19 = arith.constant 0 : index
      %c0_20 = arith.constant 0 : index
      %c0_21 = arith.constant 0 : index
      %c0_22 = arith.constant 0 : index
      %22 = vector.load %arg7[%c0_19, %c0_20, %c0_21, %c0_22] : memref<1x1x1x512xf32, #tpu.memory_space<vmem>>, vector<1x1x1x512xf32>
      tpu.vector_store %arg7[%c0_19, %c0_20, %c0_21, %c0_22], %21 {strides = array<i32>} : memref<1x1x1x512xf32, #tpu.memory_space<vmem>>, vector<1x1x1x512xf32>,
    } else {
    }
    return
  }
  func.func @transform_0(%arg0: i32, %arg1: i32, %arg2: i32) -> (i32, i32, i32, i32) {
    %c1_i32 = arith.constant 1 : i32
    %0 = arith.muli %c1_i32, %arg1 : i32
    %1 = arith.addi %0, %arg2 : i32
    %c0_i32 = arith.constant 0 : i32
    %c0_i32_0 = arith.constant 0 : i32
    %c0_i32_1 = arith.constant 0 : i32
    return %arg0, %1, %c0_i32, %c0_i32_0 : i32, i32, i32, i32
  }
  func.func @transform_1(%arg0: i32, %arg1: i32, %arg2: i32) -> (i32, i32, i32) {
    %c0_i32 = arith.constant 0 : i32
    %c0_i32_0 = arith.constant 0 : i32
    %c0_i32_1 = arith.constant 0 : i32
    return %arg2, %c0_i32, %c0_i32_0 : i32, i32, i32
  }
  func.func @transform_2(%arg0: i32, %arg1: i32, %arg2: i32) -> (i32, i32) {
    %c0_i32 = arith.constant 0 : i32
    %c0_i32_0 = arith.constant 0 : i32
    %c0_i32_1 = arith.constant 0 : i32
    return %c0_i32, %c0_i32_0 : i32, i32
  }
  func.func @transform_3(%arg0: i32, %arg1: i32, %arg2: i32) -> (i32, i32) {
    %c0_i32 = arith.constant 0 : i32
    %c0_i32_0 = arith.constant 0 : i32
    %c0_i32_1 = arith.constant 0 : i32
    return %c0_i32, %c0_i32_0 : i32, i32
  }
  func.func @transform_4(%arg0: i32, %arg1: i32, %arg2: i32) -> (i32, i32, i32, i32) {
    %c0_i32 = arith.constant 0 : i32
    %c0_i32_0 = arith.constant 0 : i32
    %c0_i32_1 = arith.constant 0 : i32
    return %arg0, %arg1, %c0_i32, %c0_i32_0 : i32, i32, i32, i32
  }
}

module attributes {stable_mosaic.version = 11 : i64} {
  func.func @_avgpool_kernel(%arg0: i32, %arg1: memref<1x1x512xf32, #tpu.memory_space<vmem>>, %arg2: memref<1x1x512xf32, #tpu.memory_space<vmem>>) attributes {dimension_semantics = [#tpu.dimension_semantics<parallel>], iteration_bounds = array<i64: 2>, scalar_prefetch = 0 : i64, scratch_operands = 0 : i64, tpu.core_type = #tpu.core_type<tc>, window_params = [{transform_indices = @transform_0, window_bounds = array<i64: 1, 1, 512>}, {transform_indices = @transform_1, window_bounds = array<i64: 1, 1, 512>}]} {
    %c0 = arith.constant 0 : index
    %c0_0 = arith.constant 0 : index
    %c0_1 = arith.constant 0 : index
    %0 = vector.load %arg1[%c0, %c0_0, %c0_1] : memref<1x1x512xf32, #tpu.memory_space<vmem>>, vector<1x1x512xf32>
    %cst = arith.constant dense<0.000000e+00> : vector<1x512xf32>
    %1 = vector.multi_reduction <add>, %0, %cst [1] : vector<1x1x512xf32> to vector<1x512xf32>
    %2 = vector.shape_cast %1 : vector<1x512xf32> to vector<1x1x512xf32>
    %cst_2 = arith.constant 1.000000e+00 : f32
    %3 = vector.broadcast %cst_2 : f32 to vector<1x1x512xf32>
    %4 = arith.mulf %2, %3 : vector<1x1x512xf32>
    %c0_3 = arith.constant 0 : index
    %c0_4 = arith.constant 0 : index
    %c0_5 = arith.constant 0 : index
    %5 = vector.load %arg2[%c0_3, %c0_4, %c0_5] : memref<1x1x512xf32, #tpu.memory_space<vmem>>, vector<1x1x512xf32>
    tpu.vector_store %arg2[%c0_3, %c0_4, %c0_5], %4 {strides = array<i32>} : memref<1x1x512xf32, #tpu.memory_space<vmem>>, vector<1x1x512xf32>,
    return
  }
  func.func @transform_0(%arg0: i32) -> (i32, i32, i32) {
    %c0_i32 = arith.constant 0 : i32
    %c0_i32_0 = arith.constant 0 : i32
    %c0_i32_1 = arith.constant 0 : i32
    return %arg0, %c0_i32, %c0_i32_0 : i32, i32, i32
  }
  func.func @transform_1(%arg0: i32) -> (i32, i32, i32) {
    %c0_i32 = arith.constant 0 : i32
    %c0_i32_0 = arith.constant 0 : i32
    %c0_i32_1 = arith.constant 0 : i32
    return %arg0, %c0_i32, %c0_i32_0 : i32, i32, i32
  }
}

module attributes {stable_mosaic.version = 11 : i64} {
  func.func @_matmul_affine_kernel(%arg0: i32, %arg1: i32, %arg2: i32, %arg3: memref<8x256xbf16, #tpu.memory_space<vmem>>, %arg4: memref<256x256xbf16, #tpu.memory_space<vmem>>, %arg5: memref<1x256xf32, #tpu.memory_space<vmem>>, %arg6: memref<1x256xf32, #tpu.memory_space<vmem>>, %arg7: memref<8x256xf32, #tpu.memory_space<vmem>>, %arg8: memref<8x256xf32, #tpu.memory_space<vmem>>) attributes {dimension_semantics = [#tpu.dimension_semantics<parallel>, #tpu.dimension_semantics<parallel>, #tpu.dimension_semantics<arbitrary>], iteration_bounds = array<i64: 1, 2, 2>, scalar_prefetch = 0 : i64, scratch_operands = 1 : i64, tpu.core_type = #tpu.core_type<tc>, window_params = [{transform_indices = @transform_0, window_bounds = array<i64: 8, 256>}, {transform_indices = @transform_1, window_bounds = array<i64: 256, 256>}, {transform_indices = @transform_2, window_bounds = array<i64: 1, 256>}, {transform_indices = @transform_3, window_bounds = array<i64: 1, 256>}, {transform_indices = @transform_4, window_bounds = array<i64: 8, 256>}]} {
    %c0_i32 = arith.constant 0 : i32
    %0 = arith.cmpi eq, %arg2, %c0_i32 : i32
    %1 = arith.extui %0 : i1 to i32
    %c0_i32_0 = arith.constant 0 : i32
    %2 = arith.cmpi ne, %1, %c0_i32_0 : i32
    scf.if %2 {
      %cst_9 = arith.constant 0.000000e+00 : f32
      %12 = vector.broadcast %cst_9 : f32 to vector<8x256xf32>
      %c0_10 = arith.constant 0 : index
      %c0_11 = arith.constant 0 : index
      %13 = vector.load %arg8[%c0_10, %c0_11] : memref<8x256xf32, #tpu.memory_space<vmem>>, vector<8x256xf32>
      tpu.vector_store %arg8[%c0_10, %c0_11], %12 {strides = array<i32>} : memref<8x256xf32, #tpu.memory_space<vmem>>, vector<8x256xf32>,
    } else {
    }
    %c0 = arith.constant 0 : index
    %c0_1 = arith.constant 0 : index
    %3 = vector.load %arg8[%c0, %c0_1] : memref<8x256xf32, #tpu.memory_space<vmem>>, vector<8x256xf32>
    %c0_2 = arith.constant 0 : index
    %c0_3 = arith.constant 0 : index
    %4 = vector.load %arg3[%c0_2, %c0_3] : memref<8x256xbf16, #tpu.memory_space<vmem>>, vector<8x256xbf16>
    %c0_4 = arith.constant 0 : index
    %c0_5 = arith.constant 0 : index
    %5 = vector.load %arg4[%c0_4, %c0_5] : memref<256x256xbf16, #tpu.memory_space<vmem>>, vector<256x256xbf16>
    %cst = arith.constant dense<0.000000e+00> : vector<8x256xf32>
    %6 = tpu.matmul %4, %5, %cst {dimension_numbers = #tpu.dot_dimension_numbers<[1], [0], [0], [1], [0, 0, 1, 1], [], []>} : vector<8x256xbf16>, vector<256x256xbf16>, vector<8x256xf32> -> vector<8x256xf32>
    %7 = arith.addf %3, %6 : vector<8x256xf32>
    %c0_6 = arith.constant 0 : index
    %c0_7 = arith.constant 0 : index
    %8 = vector.load %arg8[%c0_6, %c0_7] : memref<8x256xf32, #tpu.memory_space<vmem>>, vector<8x256xf32>
    tpu.vector_store %arg8[%c0_6, %c0_7], %7 {strides = array<i32>} : memref<8x256xf32, #tpu.memory_space<vmem>>, vector<8x256xf32>,
    %c1_i32 = arith.constant 1 : i32
    %9 = arith.cmpi eq, %arg2, %c1_i32 : i32
    %10 = arith.extui %9 : i1 to i32
    %c0_i32_8 = arith.constant 0 : i32
    %11 = arith.cmpi ne, %10, %c0_i32_8 : i32
    scf.if %11 {
      %c0_9 = arith.constant 0 : index
      %c0_10 = arith.constant 0 : index
      %12 = vector.load %arg8[%c0_9, %c0_10] : memref<8x256xf32, #tpu.memory_space<vmem>>, vector<8x256xf32>
      %c0_11 = arith.constant 0 : index
      %c0_12 = arith.constant 0 : index
      %13 = vector.load %arg5[%c0_11, %c0_12] : memref<1x256xf32, #tpu.memory_space<vmem>>, vector<1x256xf32>
      %14 = vector.broadcast %13 : vector<1x256xf32> to vector<8x256xf32>
      %15 = arith.mulf %12, %14 : vector<8x256xf32>
      %c0_13 = arith.constant 0 : index
      %c0_14 = arith.constant 0 : index
      %16 = vector.load %arg6[%c0_13, %c0_14] : memref<1x256xf32, #tpu.memory_space<vmem>>, vector<1x256xf32>
      %17 = vector.broadcast %16 : vector<1x256xf32> to vector<8x256xf32>
      %18 = arith.addf %15, %17 : vector<8x256xf32>
      %cst_15 = arith.constant 0.000000e+00 : f32
      %19 = vector.broadcast %cst_15 : f32 to vector<8x256xf32>
      %20 = arith.maximumf %18, %19 : vector<8x256xf32>
      %c0_16 = arith.constant 0 : index
      %c0_17 = arith.constant 0 : index
      %21 = vector.load %arg7[%c0_16, %c0_17] : memref<8x256xf32, #tpu.memory_space<vmem>>, vector<8x256xf32>
      tpu.vector_store %arg7[%c0_16, %c0_17], %20 {strides = array<i32>} : memref<8x256xf32, #tpu.memory_space<vmem>>, vector<8x256xf32>,
    } else {
    }
    return
  }
  func.func @transform_0(%arg0: i32, %arg1: i32, %arg2: i32) -> (i32, i32) {
    %c0_i32 = arith.constant 0 : i32
    return %arg0, %arg2 : i32, i32
  }
  func.func @transform_1(%arg0: i32, %arg1: i32, %arg2: i32) -> (i32, i32) {
    %c0_i32 = arith.constant 0 : i32
    return %arg2, %arg1 : i32, i32
  }
  func.func @transform_2(%arg0: i32, %arg1: i32, %arg2: i32) -> (i32, i32) {
    %c0_i32 = arith.constant 0 : i32
    %c0_i32_0 = arith.constant 0 : i32
    return %c0_i32, %arg1 : i32, i32
  }
  func.func @transform_3(%arg0: i32, %arg1: i32, %arg2: i32) -> (i32, i32) {
    %c0_i32 = arith.constant 0 : i32
    %c0_i32_0 = arith.constant 0 : i32
    return %c0_i32, %arg1 : i32, i32
  }
  func.func @transform_4(%arg0: i32, %arg1: i32, %arg2: i32) -> (i32, i32) {
    %c0_i32 = arith.constant 0 : i32
    return %arg0, %arg1 : i32, i32
  }
}

module attributes {stable_mosaic.version = 11 : i64} {
  func.func @_matmul_affine_kernel(%arg0: i32, %arg1: i32, %arg2: i32, %arg3: memref<8x256xbf16, #tpu.memory_space<vmem>>, %arg4: memref<256x128xbf16, #tpu.memory_space<vmem>>, %arg5: memref<1x128xf32, #tpu.memory_space<vmem>>, %arg6: memref<1x128xf32, #tpu.memory_space<vmem>>, %arg7: memref<8x128xf32, #tpu.memory_space<vmem>>, %arg8: memref<8x128xf32, #tpu.memory_space<vmem>>) attributes {dimension_semantics = [#tpu.dimension_semantics<parallel>, #tpu.dimension_semantics<parallel>, #tpu.dimension_semantics<arbitrary>], iteration_bounds = array<i64: 1, 1, 2>, scalar_prefetch = 0 : i64, scratch_operands = 1 : i64, tpu.core_type = #tpu.core_type<tc>, window_params = [{transform_indices = @transform_0, window_bounds = array<i64: 8, 256>}, {transform_indices = @transform_1, window_bounds = array<i64: 256, 128>}, {transform_indices = @transform_2, window_bounds = array<i64: 1, 128>}, {transform_indices = @transform_3, window_bounds = array<i64: 1, 128>}, {transform_indices = @transform_4, window_bounds = array<i64: 8, 128>}]} {
    %c0_i32 = arith.constant 0 : i32
    %0 = arith.cmpi eq, %arg2, %c0_i32 : i32
    %1 = arith.extui %0 : i1 to i32
    %c0_i32_0 = arith.constant 0 : i32
    %2 = arith.cmpi ne, %1, %c0_i32_0 : i32
    scf.if %2 {
      %cst_9 = arith.constant 0.000000e+00 : f32
      %12 = vector.broadcast %cst_9 : f32 to vector<8x128xf32>
      %c0_10 = arith.constant 0 : index
      %c0_11 = arith.constant 0 : index
      %13 = vector.load %arg8[%c0_10, %c0_11] : memref<8x128xf32, #tpu.memory_space<vmem>>, vector<8x128xf32>
      tpu.vector_store %arg8[%c0_10, %c0_11], %12 {strides = array<i32>} : memref<8x128xf32, #tpu.memory_space<vmem>>, vector<8x128xf32>,
    } else {
    }
    %c0 = arith.constant 0 : index
    %c0_1 = arith.constant 0 : index
    %3 = vector.load %arg8[%c0, %c0_1] : memref<8x128xf32, #tpu.memory_space<vmem>>, vector<8x128xf32>
    %c0_2 = arith.constant 0 : index
    %c0_3 = arith.constant 0 : index
    %4 = vector.load %arg3[%c0_2, %c0_3] : memref<8x256xbf16, #tpu.memory_space<vmem>>, vector<8x256xbf16>
    %c0_4 = arith.constant 0 : index
    %c0_5 = arith.constant 0 : index
    %5 = vector.load %arg4[%c0_4, %c0_5] : memref<256x128xbf16, #tpu.memory_space<vmem>>, vector<256x128xbf16>
    %cst = arith.constant dense<0.000000e+00> : vector<8x128xf32>
    %6 = tpu.matmul %4, %5, %cst {dimension_numbers = #tpu.dot_dimension_numbers<[1], [0], [0], [1], [0, 0, 1, 1], [], []>} : vector<8x256xbf16>, vector<256x128xbf16>, vector<8x128xf32> -> vector<8x128xf32>
    %7 = arith.addf %3, %6 : vector<8x128xf32>
    %c0_6 = arith.constant 0 : index
    %c0_7 = arith.constant 0 : index
    %8 = vector.load %arg8[%c0_6, %c0_7] : memref<8x128xf32, #tpu.memory_space<vmem>>, vector<8x128xf32>
    tpu.vector_store %arg8[%c0_6, %c0_7], %7 {strides = array<i32>} : memref<8x128xf32, #tpu.memory_space<vmem>>, vector<8x128xf32>,
    %c1_i32 = arith.constant 1 : i32
    %9 = arith.cmpi eq, %arg2, %c1_i32 : i32
    %10 = arith.extui %9 : i1 to i32
    %c0_i32_8 = arith.constant 0 : i32
    %11 = arith.cmpi ne, %10, %c0_i32_8 : i32
    scf.if %11 {
      %c0_9 = arith.constant 0 : index
      %c0_10 = arith.constant 0 : index
      %12 = vector.load %arg8[%c0_9, %c0_10] : memref<8x128xf32, #tpu.memory_space<vmem>>, vector<8x128xf32>
      %c0_11 = arith.constant 0 : index
      %c0_12 = arith.constant 0 : index
      %13 = vector.load %arg5[%c0_11, %c0_12] : memref<1x128xf32, #tpu.memory_space<vmem>>, vector<1x128xf32>
      %14 = vector.broadcast %13 : vector<1x128xf32> to vector<8x128xf32>
      %15 = arith.mulf %12, %14 : vector<8x128xf32>
      %c0_13 = arith.constant 0 : index
      %c0_14 = arith.constant 0 : index
      %16 = vector.load %arg6[%c0_13, %c0_14] : memref<1x128xf32, #tpu.memory_space<vmem>>, vector<1x128xf32>
      %17 = vector.broadcast %16 : vector<1x128xf32> to vector<8x128xf32>
      %18 = arith.addf %15, %17 : vector<8x128xf32>
      %c0_15 = arith.constant 0 : index
      %c0_16 = arith.constant 0 : index
      %19 = vector.load %arg7[%c0_15, %c0_16] : memref<8x128xf32, #tpu.memory_space<vmem>>, vector<8x128xf32>
      tpu.vector_store %arg7[%c0_15, %c0_16], %18 {strides = array<i32>} : memref<8x128xf32, #tpu.memory_space<vmem>>, vector<8x128xf32>,
    } else {
    }
    return
  }
  func.func @transform_0(%arg0: i32, %arg1: i32, %arg2: i32) -> (i32, i32) {
    %c0_i32 = arith.constant 0 : i32
    return %arg0, %arg2 : i32, i32
  }
  func.func @transform_1(%arg0: i32, %arg1: i32, %arg2: i32) -> (i32, i32) {
    %c0_i32 = arith.constant 0 : i32
    return %arg2, %arg1 : i32, i32
  }
  func.func @transform_2(%arg0: i32, %arg1: i32, %arg2: i32) -> (i32, i32) {
    %c0_i32 = arith.constant 0 : i32
    %c0_i32_0 = arith.constant 0 : i32
    return %c0_i32, %arg1 : i32, i32
  }
  func.func @transform_3(%arg0: i32, %arg1: i32, %arg2: i32) -> (i32, i32) {
    %c0_i32 = arith.constant 0 : i32
    %c0_i32_0 = arith.constant 0 : i32
    return %c0_i32, %arg1 : i32, i32
  }
  func.func @transform_4(%arg0: i32, %arg1: i32, %arg2: i32) -> (i32, i32) {
    %c0_i32 = arith.constant 0 : i32
    return %arg0, %arg1 : i32, i32
  }
}

</mosaic_0001>

<bundles_post_ra>
// kernel: resnet_simclr_forward.25
= control target key start
LH: loop header
LB: loop body
LE: loop exit
PB: predicated region body
PF: predicated region fallthrough
CT: control target
= control target key end

     0   :  { %s550_s12 = smov 0   ;;  %s552_s13 = smov 0   ;;  %s612_s0 = inlined_call_operand.vmem [shape: f32[2,10,4,64], index: 0, kind: input, shape index: {}, may-alias: {0,1,2}]   ;;  %s613_s1 = inlined_call_operand.vmem [shape: f32[2,10,4,64], index: 1, kind: input, shape index: {}, may-alias: {0,1,2}]   ;;  %s614_s2 = inlined_call_operand.vmem [shape: f32[2,10,4,64], index: 2, kind: input, shape index: {}, may-alias: {0,1,2}]   ;;  %s615_s3 = inlined_call_operand.vmem [shape: f32[2,4,4,64], index: 3, kind: output, shape index: {}]  }
   0x1   :  { %s554_s14 = smov 0   ;;  %s556_s15 = smov 0  }
   0x2   :  { %s558_s16 = smov 0  }
   0x3 LB: > { %s22_s17 = sadd.s32 1, %s520_s14  ;;  %s25_s18 = sadd.s32 1, %s524_s15  ;;  %s528_s16 = sphi %s558_s16, %s13_s16   ;;  %s524_s15 = sphi %s556_s15, %s619_s15   ;;  %s520_s14 = sphi %s554_s14, %s618_s14   ;;  %s516_s13 = sphi %s552_s13, %s617_s13   ;;  %s512_s12 = sphi %s550_s12, %s616_s12  }
   0x4   : > { %p23_p0 = scmp.ge.s32.totalorder %s22_s17, 4  ;;  %p438_p1 = scmp.ge.s32.totalorder %s528_s16, 1 }
   0x5   : > { %p206_p2 = scmp.lt.s32.totalorder %s528_s16, 9 }
   0x6   : > { %s621_s17 = smov (%p23_p0, %s22_s17), 0  ;;  %s623_s18 = smov (!%p23_p0, %s25_s18), %s524_s15 }
   0x7   : > { %p207_p3 = pnand %p438_p1, %p206_p2  ;;  %p27_p4 = scmp.ge.s32.totalorder %s623_s18, 2 }
   0x8   : > { %s439_s19 = sshll.u32 (!%p207_p3), %s512_s12, 1  ;;  %p258_p5 = scmp.lt.s32.totalorder (!%p207_p3), %s516_s13, 1  ;;  %vm304_vm0 = vcmask (!%p207_p3), 519168  }
   0x9   : > { %s625_s18 = smov (%p27_p4, %s623_s18), 0  ;;  %210 = sbr.rel (%p207_p3) target bundleno = 30 (0x1e), region = 32 }
   0xa   : > { %p260_p6 = scmp.lt.s32.totalorder (!%p207_p3), %s439_s19, 9  ;;  %s268_s20 = sadd.s32 (!%p207_p3), 1, %s439_s19 }
   0xb   : > { %p271_p7 = scmp.lt.s32.totalorder (!%p207_p3), %s268_s20, 9  ;;  %s280_s23 = sadd.s32 (!%p207_p3), 2, %s439_s19 }
   0xc   : > { %p283_p8 = scmp.lt.s32.totalorder (!%p207_p3), %s280_s23, 9  ;;  %p293_p9 = scmp.lt.s32.totalorder (!%p207_p3), %s512_s12, 3 }
  0x10   : > { %s627_s13 = smov (!%p258_p5, %s516_s13), 1  ;;  %s629_s20 = smov (!%p271_p7, %s268_s20), 9 }
  0x11   : > { %s261_s21 = scalar_select %p260_p6, %s439_s19, 9 }
  0x12   : > { %s449_s22 = smul.u32 10, %s627_s13  ;;  %s631_s23 = smov (!%p283_p8, %s280_s23), 9 }
  0x13   : > { %s445_s19 = sshll.u32 %s627_s13, 2  ;;  %s633_s12 = smov (!%p293_p9, %s512_s12), 3 }
  0x14   : > { %s263_s24 = sadd.s32 %s449_s22, %s261_s21  ;;  %s274_s29 = sadd.s32 %s449_s22, %s629_s20 }
  0x15   : > { %s440_s25 = sshll.u32 %s263_s24, 2  ;;  %s442_s30 = sshll.u32 %s274_s29, 2 }
  0x16   : > { %s265_s28 = scalar_lea.vmem %s612_s0, %s440_s25  ;;  %s286_s4 = sadd.s32 %s449_s22, %s631_s23 }
  0x17   : > { %v299_v0 = vld [vmem:[%s265_s28] sm:$0xf]  ;;  %s276_s7 = scalar_lea.vmem %s613_s1, %s442_s30  ;;  %s444_s8 = sshll.u32 %s286_s4, 2 }
  0x18   : > { %s288_s11 = scalar_lea.vmem %s614_s2, %s444_s8  ;;  %v300_v1 = vld [vmem:[%s276_s7] sm:$0xf]  ;;  %s296_s21 = sadd.s32 %s445_s19, %s633_s12 }
  0x19   : > { %v301_v2 = vmax.f32 %v299_v0, %v300_v1  ;;  %v302_v3 = vld [vmem:[%s288_s11] sm:$0xf]  ;;  %s446_s20 = sshll.u32 %s296_s21, 2 }
  0x1a   : > { %s298_s24 = scalar_lea.vmem %s615_s3, %s446_s20 }
  0x1b   : > { %v303_v4 = vmax.f32 %v301_v2, %v302_v3 }
  0x1d   : > { %305 = vst.msk [vmem:[%s298_s24] sm:$0xf] %vm304_vm0, %v303_v4 }
  0x1e PF: > { %s13_s16 = sadd.s32 1, %s528_s16   ;;  %s616_s12 = smov %s520_s14 }
  0x1f   : > { %p10_p10 = scmp.ge.s32.totalorder %s13_s16, 10   ;;  %s617_s13 = smov %s524_s15 }
  0x20   : > { %s618_s14 = smov %s621_s17  ;;  %s619_s15 = smov %s625_s18 }
  0x21   :  { %12 = sbr.rel (!%p10_p10) target bundleno = 3 (0x3), region = 68 }

// kernel: resnet_simclr_forward.24
= control target key start
LH: loop header
LB: loop body
LE: loop exit
PB: predicated region body
PF: predicated region fallthrough
CT: control target
= control target key end

     0   :  { %s1153_s0 = inlined_call_operand.vmem [shape: bf16[2,22,8,21], index: 0, kind: input, shape index: {}]   ;;  %s1154_s1 = inlined_call_operand.hbm [shape: bf16[7,21,64], index: 1, kind: input, shape index: {}]   ;;  %s1155_s2 = inlined_call_operand.hbm [shape: f32[1,64], index: 2, kind: input, shape index: {}]   ;;  %s1156_s3 = inlined_call_operand.hbm [shape: f32[1,64], index: 3, kind: input, shape index: {}]   ;;  %s1157_s4 = inlined_call_operand.vmem [shape: f32[2,8,8,64], index: 4, kind: output, shape index: {}]  }
   0x1   :  { %1163 = sst [smem:[#allocation10_spill]] %s1154_s1 }
   0x2   :  { %1164 = sst [smem:[#allocation11_spill]] %s1155_s2 }
   0x3   :  { %9 = vsyncpa [#allocation4], 0 }
   0x4   :  { %11 = vsyncpa [#allocation4 + $0x1], 0 }
   0x5   :  { %12 = vsyncpa [#allocation6], 0  ;;  %s912_s15 = smov 0   ;;  %s914_s16 = smov 0  }
   0x6   :  { %s916_s17 = smov 0   ;;  %s918_s18 = smov 0  }
   0x7   :  { %s920_s19 = smov 0   ;;  %s922_s20 = smov 0  }
   0x8   :  { %s924_s21 = smov 0   ;;  %s926_s22 = smov 0  }
   0x9   :  { %s928_s23 = smov 0   ;;  %s930_s24 = smov 0  }
   0xa LB: > { %s548_s25 = sadd.s32 4294967295, %s876_s24   ;;  %s76_s26 = sadd.s32 1, %s848_s17  ;;  %s876_s24 = sphi %s930_s24, %s18_s24   ;;  %s872_s23 = sphi %s928_s23, %s1185_s23   ;;  %s868_s22 = sphi %s926_s22, %s1184_s22   ;;  %s864_s21 = sphi %s924_s21, %s1183_s21   ;;  %s860_s20 = sphi %s922_s20, %s1182_s20   ;;  %s856_s19 = sphi %s920_s19, %s1181_s19   ;;  %s852_s18 = sphi %s918_s18, %s1180_s18   ;;  %s848_s17 = sphi %s916_s17, %s1179_s17   ;;  %s844_s16 = sphi %s914_s16, %s1178_s16   ;;  %s840_s15 = sphi %s912_s15, %s1177_s15  }
   0xb   : > { %p83_p0 = scmp.ne.s32.totalorder %s848_s17, %s844_s16  ;;  %p84_p1 = scmp.eq.s32.totalorder %s876_s24, 0 }
   0xc   : > { %p89_p2 = scmp.ne.s32.totalorder %s844_s16, %s840_s15  ;;  %p966_p3 = scmp.eq.s32.totalorder %s548_s25, 0 }
   0xd   : > { %p85_p4 = por %p84_p1, %p83_p0  ;;  %p552_p5 = scmp.ge.s32.totalorder %s876_s24, 1 }
   0xe   : > { %s1165_s27 = scalar_select %p966_p3, 1, 0 }
   0xf   : > { %p973_p6 = por %p966_p3, %p89_p2  ;;  %p170_p7 = scmp.lt.s32.totalorder %s876_s24, 113 }
  0x10   : > { %s878_s30 = smov [#allocation5]   ;;  %p611_p10 = scmp.lt.s32.totalorder %s876_s24, 112 }
  0x11   : > { %s1166_s28 = scalar_select %p973_p6, 1, 0 }
  0x12   : > { %p978_p8 = pnand %p552_p5, %p170_p7  ;;  %s183_s5 = sshll.u32 %s878_s30, 4  ;;  %s184_s5 = int_to_ptr.vmem [resolvable:$true] %s183_s5 }
  0x13   : > { %p991_p12 = pnand %p611_p10, %p85_p4  ;;  %s879_s8 = smov [#allocation7]  }
  0x14   : > { %s1167_s29 = scalar_select %p978_p8, 1, 0 }
  0x15   : > { %p598_p9 = pneg %p978_p8  ;;  %s194_s9 = sshll.u32 %s879_s8, 4  ;;  %s195_s9 = int_to_ptr.vmem [resolvable:$true] %s194_s9 }
  0x16   : > { %s1169_s7 = scalar_select %p991_p12, 1, 0 }
  0x17   : > { %p987_p11 = pnand %p598_p9, %p966_p3  ;;  %s1170_s2 = sld [smem:[#allocation11_spill]] }
  0x19   : > { %p706_p0 = pneg %p987_p11 }
  0x1d   : > { %s704_s12 = scalar_lea.hbm %s1170_s2, 16 }
  0x1e   : > { %p705_p13 = scmp.ne.s32.totalorder %s1170_s2, %s704_s12  ;;  %p711_p4 = scmp.lt.u32.totalorder %s704_s12, %s1170_s2 }
  0x20   : > { %p707_p1 = pnand %p706_p0, %p705_p13 }
  0x22   : > { %p708_p2 = pneg %p707_p1 }
  0x24   : > { %p713_p5 = pnand %p711_p4, %p708_p2 }
  0x26   : > { %716 = shalt.err (!%p713_p5)
}
  0x27   : > { %s717_s30 = scalar_lea.vmem %s184_s5, 16  ;;  %s724_s8 = scalar_lea.vmem %s184_s5, 32 }
  0x28   : > { %p718_p7 = scmp.ne.s32.totalorder %s184_s5, %s717_s30  ;;  %p725_p3 = scmp.lt.s32.totalorder %s184_s5, %s184_s5 }
  0x29   : > { %p726_p6 = scmp.lt.s32.totalorder %s724_s8, %s717_s30 }
  0x2a   : > { %p720_p9 = pnand %p718_p7, %p706_p0 }
  0x2b   : > { %p727_p8 = por %p726_p6, %p725_p3 }
  0x2c   : > { %p721_p10 = pneg %p720_p9 }
  0x2e   : > { %p728_p12 = pnand %p727_p8, %p721_p10 }
  0x30   : > { %731 = shalt.err (!%p728_p12)
}
  0x31   : > { %601 = dma.hbm_to_vmem [thread:$0]  (!%p987_p11), %s1170_s2, 16, %s184_s5, [#allocation6]  }
  0x32   : > { %s732_s14 = scalar_lea.hbm %s1156_s3, 16 }
  0x33   : > { %p733_p13 = scmp.ne.s32.totalorder %s1156_s3, %s732_s14  ;;  %p739_p8 = scmp.lt.u32.totalorder %s732_s14, %s1156_s3 }
  0x35   : > { %p735_p3 = pnand %p733_p13, %p706_p0 }
  0x37   : > { %p736_p6 = pneg %p735_p3 }
  0x39   : > { %p741_p12 = pnand %p739_p8, %p736_p6 }
  0x3b   : > { %744 = shalt.err (!%p741_p12)
}
  0x3c   : > { %s745_s5 = scalar_lea.vmem %s195_s9, 16  ;;  %s752_s10 = scalar_lea.vmem %s195_s9, 32 }
  0x3d   : > { %p746_p1 = scmp.ne.s32.totalorder %s195_s9, %s745_s5  ;;  %p753_p5 = scmp.lt.s32.totalorder %s195_s9, %s195_s9 }
  0x3e   : > { %p754_p7 = scmp.lt.s32.totalorder %s752_s10, %s745_s5 }
  0x3f   : > { %p748_p2 = pnand %p746_p1, %p706_p0 }
  0x40   : > { %p755_p9 = por %p754_p7, %p753_p5 }
  0x41   : > { %p749_p4 = pneg %p748_p2 }
  0x43   : > { %p756_p10 = pnand %p755_p9, %p749_p4 }
  0x45   : > { %759 = shalt.err (!%p756_p10)
}
  0x46   : > { %604 = dma.hbm_to_vmem [thread:$0]  (!%p987_p11), %s1156_s3, 16, %s195_s9, [#allocation6]  }
  0x47   : > { %s33_s13 = sadd.s32 1, %s868_s22  ;;  %s30_s14 = sadd.s32 1, %s864_s21 }
  0x48   : > { %s37_s15 = sadd.s32 1, %s872_s23  ;;  %p31_p0 = scmp.ge.s32.totalorder %s30_s14, 7 }
  0x49   : > { %s220_s25 = sand.u32 1, %s848_s17   ;;  %s585_s8 = smul.u32 192, %s864_s21 }
  0x4a   : > { %s584_s6 = smul.u32 12, %s220_s25  ;;  %s1187_s14 = smov (%p31_p0, %s30_s14), 0 }
  0x4b   : > { %s1189_s13 = smov (!%p31_p0, %s33_s13), %s868_s22  ;;  %s73_s30 = ssub.s32 %s864_s21, %s1187_s14 }
  0x4c   : > { %p35_p13 = scmp.ge.s32.totalorder %s1189_s13, 8  ;;  %p74_p3 = scmp.eq.s32.totalorder %s73_s30, 0 }
  0x4d   : > { %s224_s9 = scalar_lea.vmem [#allocation3], %s584_s6  ;;  %s1171_s1 = sld [smem:[#allocation10_spill]] }
  0x4e   : > { %s231_s5 = sshll.u32 %s224_s9, 4  ;;  %s1191_s13 = smov (%p35_p13, %s1189_s13), 0  ;;  %s1060_s5 = int_to_ptr.vmem [resolvable:$true] %s231_s5 }
  0x4f   : > { %s1193_s15 = smov (!%p35_p13, %s37_s15), %s872_s23  ;;  %s1064_s6 = scalar_lea.sflag [#allocation4], %s220_s25 }
  0x50   : > { %s1053_s10 = scalar_select %p74_p3, %s848_s17, %s76_s26  }
  0x51   : > { %p39_p11 = scmp.ge.s32.totalorder %s1193_s15, 2  ;;  %p1172_p8 = scmp.ne.s32.totalorder %s1169_s7, 0 }
  0x53   : > { %s1058_s2 = scalar_lea.hbm %s1171_s1, %s585_s8  ;;  %s1195_s15 = smov (%p39_p11, %s1193_s15), 0 }
  0x54   : > { %s760_s30 = scalar_lea.hbm %s1058_s2, 192  ;;  %p762_p12 = pneg %p1172_p8 }
  0x55   : > { %p761_p6 = scmp.ne.s32.totalorder %s1058_s2, %s760_s30  ;;  %s765_s9 = scalar_lea.hbm %s1171_s1, 1344 }
  0x56   : > { %p766_p4 = scmp.lt.u32.totalorder %s1058_s2, %s1171_s1  ;;  %p767_p5 = scmp.lt.u32.totalorder %s765_s9, %s760_s30 }
  0x57   : > { %p763_p1 = pnand %p762_p12, %p761_p6  ;;  %p769_p9 = scmp.lt.u32.totalorder %s760_s30, %s1058_s2 }
  0x58   : > { %p768_p7 = por %p767_p5, %p766_p4 }
  0x59   : > { %p764_p2 = pneg %p763_p1 }
  0x5a   : > { %p770_p10 = por %p769_p9, %p768_p7 }
  0x5c   : > { %p771_p0 = pnand %p770_p10, %p764_p2 }
  0x5e   : > { %774 = shalt.err (!%p771_p0)
}
  0x5f   : > { %s775_s25 = scalar_lea.vmem %s1060_s5, 192  ;;  %s880_s26 = smov [#allocation3]  }
  0x60   : > { %p776_p13 = scmp.ne.s32.totalorder %s1060_s5, %s775_s25  ;;  %s780_s8 = sshll.u32 %s880_s26, 4  ;;  %s781_s8 = int_to_ptr.vmem [resolvable:$false] %s780_s8 }
  0x61   : > { %s782_s11 = scalar_lea.vmem %s781_s8, 384  ;;  %p783_p6 = scmp.lt.s32.totalorder %s1060_s5, %s781_s8 }
  0x62   : > { %p778_p3 = pnand %p776_p13, %p762_p12  ;;  %p784_p1 = scmp.lt.s32.totalorder %s782_s11, %s775_s25 }
  0x64   : > { %p779_p11 = pneg %p778_p3  ;;  %p785_p4 = por %p784_p1, %p783_p6 }
  0x66   : > { %p786_p5 = pnand %p785_p4, %p779_p11 }
  0x68   : > { %789 = shalt.err (!%p786_p5)
}
  0x69   : > { %s881_s30 = smov 64   ;;  %s882_s9 = smov 4  }
  0x6a   : > { %608 = dma.hbm_to_vmem [thread:$0]  (!%p1172_p8), %s1058_s2, 192, %s1060_s5, %s1064_s6, %s881_s30, %s881_s30, %s882_s9  }
  0x6b   : > { %p1173_p12 = scmp.ne.s32.totalorder %s1167_s29, 0 }
  0x6c   : > { %s245_s12 = sand.u32 (!%p1173_p12), 1, %s844_s16   ;;  %p1174_p2 = scmp.ne.s32.totalorder (!%p1173_p12), %s1166_s28, 0 }
  0x6d   : > { %243 = sbr.rel (%p1173_p12) target bundleno = 375 (0x177), region = 36  ;;  %s246_s25 = scalar_lea.sflag (!%p1173_p12), [#allocation4], %s245_s12 }
  0x6e   : > { %s1095_s26 = smul.u32 (!%p1173_p12), 12, %s245_s12 }
  0x70   : > { %s249_s8 = scalar_lea.vmem (!%p1173_p12), [#allocation3], %s1095_s26 }
  0x74   : > { %831 = dma.done.wait (%p1174_p2), %s246_s25, 192  }
  0x75   : > { %833 = vsyncadd (%p1174_p2), %s246_s25, 4294967104  ;;  %p1175_p7 = scmp.ne.s32.totalorder %s1165_s27, 0 }
  0x77   : > { %835 = dma.done.wait (%p1175_p7), [#allocation6], 32  }
  0x78   : > { %837 = vsyncadd (%p1175_p7), [#allocation6], 4294967264  ;;  %s560_s2 = sshll.u32 %s856_s19, 1  ;;  %p297_p8 = scmp.lt.s32.totalorder %s860_s20, 1 }
  0x79   : > { %s296_s29 = sadd.s32 %s852_s18, %s560_s2  ;;  %p309_p9 = scmp.lt.s32.totalorder %s856_s19, 7 }
  0x7a   : > { %s1197_s20 = smov (!%p297_p8, %s860_s20), 1  ;;  %p299_p10 = scmp.lt.s32.totalorder %s296_s29, 21 }
  0x7b   : > { %s587_s28 = smul.u32 22, %s1197_s20  ;;  %s562_s7 = sshll.u32 %s1197_s20, 3 }
  0x7c   : > { %s1199_s29 = smov (!%p299_p10, %s296_s29), 21  ;;  %s1201_s19 = smov (!%p309_p9, %s856_s19), 7 }
  0x7d   : > { %s302_s5 = sadd.s32 %s587_s28, %s1199_s29  ;;  %s312_s27 = sadd.s32 %s562_s7, %s1201_s19 }
  0x7e   : > { %s561_s6 = sshll.u32 %s302_s5, 2  ;;  %s563_s12 = sshll.u32 %s312_s27, 3 }
  0x7f   : > { %s304_s9 = scalar_lea.vmem %s1153_s0, %s561_s6  ;;  %s1118_s1 = scalar_lea.vmem %s1157_s4, %s563_s12 }
  0x80   : > { %p564_p0 = scmp.ne.s32.totalorder %s852_s18, 0 }
  0x81   : > { %vm320_vm0 = vcmask (!%p564_p0), 523264   ;;  %v883_v0 = vmov (!%p564_p0), 0.0  }
  0x82   : > { %319 = sbr.rel (%p564_p0) target bundleno = 137 (0x89), region = 52  ;;  %321 = vst.msk [vmem:[#allocation2] sm:$0xff] (!%p564_p0), %vm320_vm0, %v883_v0 }
  0x89 PF: > { %v702_v1 = vld [vmem:[%s249_s8] sm:$0xff]   ;;  %v884_v2 = vmov 0.0   ;;  %v703_v3 = vld [vmem:[%s249_s8 + $0x8] ss:$0 sps:$4 sm:$0x77]   ;;  %vm340_vm1 = vcmask 1041408  }
  0x8a   : > { %576 = vmatprep.subr.bf16.mxu0 %v884_v2  ;;  %vm341_vm2 = vcmask 1042432   ;;  %v885_v4 = vmov 65535   ;;  %vm886_vm3 = vmmov 0   ;;  %v322_v8 = vld [vmem:[%s304_s9] sm:$0xf]  ;;  %vm336_vm4 = vcmask 171008  }
  0x8b   : > { %577 = vmatpush3.bf16.msra.mxu0 %v702_v1  ;;  %v342_v5 = vsel %vm340_vm1, 4294967295, %v885_v4  ;;  %580 = vmatprep.mubr.msk.bf16.mxu0 %vm886_vm3, %v884_v2  ;;  %v326_v9 = vld [vmem:[#allocation2] sm:$0xff]  ;;  %vm388_vm5 = vcmask 523264   ;;  %p568_p13 = scmp.ne.s32.totalorder %s852_s18, 6 }
  0x8c   : > { %578 = vmatprep.subr.bf16.mxu0 %v884_v2  ;;  %v343_v6 = vsel %vm341_vm2, %v342_v5, 0  ;;  %v569_v16 = vld [vmem:[#allocation5] ss:$0 sm:$0xff] (!%p568_p13)  ;;  %v570_v17 = vld [vmem:[#allocation7] ss:$0 sm:$0xff] (!%p568_p13) }
  0x8d   : > { %v345_v7 = vand.u32 %v703_v3, %v343_v6 }
  0x8f   : > { %579 = vmatpush3.bf16.msra.mxu0 %v345_v7 }
  0x92   : > { %581 = vmatmul.mubr.msk.bf16.vlgmr.msra.gmra.mrb[0].mxu0 %vm336_vm4, %v322_v8 }
 0x162   : > { %393 = sbr.rel (%p568_p13) target bundleno = 375 (0x177), region = 56 }
 0x165   : > { %v381_v10 = vpop.f32.mrb[0].mxu0 }
 0x166   : > { %v387_v11 = vadd.f32 %v381_v10, %v326_v9  ;;  %v582_v12 = vpop.f32.mrb[1].mxu0 }
 0x167   : > { %v384_v13 = vpop.f32.mrb[2].mxu0 }
 0x168   : > { %389 = vst.msk [vmem:[#allocation2] sm:$0xff] %vm388_vm5, %v387_v11  ;;  %v583_v14 = vpop.f32.mrb[3].mxu0 }
 0x16f   : > { %v394_v15 = vld [vmem:[#allocation2] sm:$0xff] }
 0x170   : > { %v402_v18 = vmul.f32 %v569_v16, %v394_v15 }
 0x172   : > { %v410_v19 = vadd.f32 %v570_v17, %v402_v18 }
 0x174   : > { %v411_v20 = vmax.f32 %v410_v19, 0.0 }
 0x176   : > { %412 = vst.msk [vmem:[%s1118_s1] sm:$0xff] %vm388_vm5, %v411_v20 }
 0x177 PF: > { %s18_s24 = sadd.s32 1, %s876_s24   ;;  %s1176_s8 = smov %s1195_s15 }
 0x178   : > { %p15_p3 = scmp.ge.s32.totalorder %s18_s24, 114   ;;  %s1177_s15 = smov %s844_s16 }
 0x179   : > { %s1178_s16 = smov %s848_s17  ;;  %s1179_s17 = smov %s1053_s10 }
 0x17a   : > { %s1180_s18 = smov %s864_s21  ;;  %s1181_s19 = smov %s868_s22 }
 0x17b   : > { %s1182_s20 = smov %s872_s23  ;;  %s1183_s21 = smov %s1187_s14 }
 0x17c   : > { %s1184_s22 = smov %s1191_s13  ;;  %s1185_s23 = smov %s1176_s8 }
 0x17d   :  { %17 = sbr.rel (!%p15_p3) target bundleno = 10 (0xa), region = 95 }
 0x184   :  { %440 = vsyncpa [#allocation4], 1 }
 0x185   :  { %442 = vsyncpa [#allocation4 + $0x1], 1 }
 0x186   :  { %443 = vsyncpa [#allocation6], 1 }

// kernel: resnet_simclr_forward.26
= control target key start
LH: loop header
LB: loop body
LE: loop exit
PB: predicated region body
PF: predicated region fallthrough
CT: control target
= control target key end

     0   :  { %s1057_s0 = inlined_call_operand.vmem [shape: bf16[2,6,4,192], index: 0, kind: input, shape index: {}]   ;;  %s1058_s1 = inlined_call_operand.vmem [shape: bf16[3,192,64], index: 1, kind: input, shape index: {}]   ;;  %s1059_s2 = inlined_call_operand.hbm [shape: f32[1,64], index: 2, kind: input, shape index: {}]   ;;  %s1060_s3 = inlined_call_operand.hbm [shape: f32[1,64], index: 3, kind: input, shape index: {}]   ;;  %s1061_s4 = inlined_call_operand.vmem [shape: f32[2,4,4,64], index: 4, kind: output, shape index: {}]  }
   0x1   :  { %1065 = sst [smem:[#allocation9_spill]] %s1059_s2 }
   0x2   :  { %9 = vsyncpa [#allocation4], 0 }
   0x3   :  { %10 = vsyncpa [#allocation6], 0  ;;  %s883_s15 = smov 0   ;;  %s885_s16 = smov 0  }
   0x4   :  { %s887_s17 = smov 0   ;;  %s889_s18 = smov 0  }
   0x5   :  { %s891_s19 = smov 0   ;;  %s893_s20 = smov 0  }
   0x6   :  { %s895_s21 = smov 0  }
   0x7 LB: > { %s607_s22 = sadd.s32 4294967295, %s852_s21   ;;  %s28_s23 = sadd.s32 1, %s840_s18  ;;  %s852_s21 = sphi %s895_s21, %s16_s21   ;;  %s848_s20 = sphi %s893_s20, %s1077_s20   ;;  %s844_s19 = sphi %s891_s19, %s1076_s19   ;;  %s840_s18 = sphi %s889_s18, %s1075_s18   ;;  %s836_s17 = sphi %s887_s17, %s1074_s17   ;;  %s832_s16 = sphi %s885_s16, %s1073_s16   ;;  %s828_s15 = sphi %s883_s15, %s1072_s15  }
   0x8   : > { %p29_p0 = scmp.ge.s32.totalorder %s28_s23, 3  ;;  %s31_s24 = sadd.s32 1, %s844_s19 }
   0x9   : > { %s35_s25 = sadd.s32 1, %s848_s20  ;;  %p609_p1 = scmp.ge.s32.totalorder %s852_s21, 1 }
   0xa   : > { %s1079_s23 = smov (%p29_p0, %s28_s23), 0  ;;  %s1081_s24 = smov (!%p29_p0, %s31_s24), %s844_s19 }
   0xb   : > { %p166_p2 = scmp.lt.s32.totalorder %s852_s21, 25  ;;  %p33_p3 = scmp.ge.s32.totalorder %s1081_s24, 4 }
   0xc   : > { %p927_p4 = scmp.eq.s32.totalorder %s607_s22, 0  ;;  %s854_s28 = smov [#allocation3]  }
   0xd   : > { %p931_p5 = pnand %p609_p1, %p166_p2  ;;  %s1083_s24 = smov (%p33_p3, %s1081_s24), 0 }
   0xe   : > { %s1066_s26 = scalar_select %p927_p4, 1, 0 }
   0xf   : > { %s1067_s27 = scalar_select %p931_p5, 1, 0 }
  0x10   : > { %s1085_s25 = smov (!%p33_p3, %s35_s25), %s848_s20  ;;  %p651_p6 = pneg %p931_p5 }
  0x11   : > { %s179_s29 = sshll.u32 %s854_s28, 4  ;;  %p37_p7 = scmp.ge.s32.totalorder %s1085_s25, 2  ;;  %s180_s29 = int_to_ptr.vmem [resolvable:$true] %s179_s29 }
  0x12   : > { %p942_p8 = pnand %p927_p4, %p651_p6  ;;  %s855_s5 = smov [#allocation5]  }
  0x13   : > { %s1087_s25 = smov (%p37_p7, %s1085_s25), 0  ;;  %s190_s6 = sshll.u32 %s855_s5, 4  ;;  %s191_s6 = int_to_ptr.vmem [resolvable:$true] %s190_s6 }
  0x14   : > { %s1069_s2 = sld [smem:[#allocation9_spill]]  ;;  %p736_p10 = pneg %p942_p8 }
  0x1a   : > { %s734_s9 = scalar_lea.hbm %s1069_s2, 16 }
  0x1b   : > { %p735_p9 = scmp.ne.s32.totalorder %s1069_s2, %s734_s9  ;;  %p741_p13 = scmp.lt.u32.totalorder %s734_s9, %s1069_s2 }
  0x1d   : > { %p737_p11 = pnand %p736_p10, %p735_p9 }
  0x1f   : > { %p738_p12 = pneg %p737_p11 }
  0x21   : > { %p743_p0 = pnand %p741_p13, %p738_p12 }
  0x23   : > { %746 = shalt.err (!%p743_p0)
}
  0x24   : > { %s747_s14 = scalar_lea.vmem %s180_s29, 16  ;;  %s754_s22 = scalar_lea.vmem %s180_s29, 32 }
  0x25   : > { %p748_p1 = scmp.ne.s32.totalorder %s180_s29, %s747_s14  ;;  %p755_p6 = scmp.lt.s32.totalorder %s180_s29, %s180_s29 }
  0x26   : > { %p756_p7 = scmp.lt.s32.totalorder %s754_s22, %s747_s14 }
  0x27   : > { %p750_p2 = pnand %p748_p1, %p736_p10 }
  0x28   : > { %p757_p4 = por %p756_p7, %p755_p6 }
  0x29   : > { %p751_p3 = pneg %p750_p2 }
  0x2b   : > { %p758_p5 = pnand %p757_p4, %p751_p3 }
  0x2d   : > { %761 = shalt.err (!%p758_p5)
}
  0x2e   : > { %654 = dma.hbm_to_vmem [thread:$0]  (!%p942_p8), %s1069_s2, 16, %s180_s29, [#allocation4]  }
  0x2f   : > { %s762_s9 = scalar_lea.hbm %s1060_s3, 16 }
  0x30   : > { %p763_p9 = scmp.ne.s32.totalorder %s1060_s3, %s762_s9  ;;  %p769_p11 = scmp.lt.u32.totalorder %s762_s9, %s1060_s3 }
  0x32   : > { %p765_p4 = pnand %p763_p9, %p736_p10 }
  0x34   : > { %p766_p5 = pneg %p765_p4 }
  0x36   : > { %p771_p12 = pnand %p769_p11, %p766_p5 }
  0x38   : > { %774 = shalt.err (!%p771_p12)
}
  0x39   : > { %s775_s29 = scalar_lea.vmem %s191_s6, 16  ;;  %s782_s14 = scalar_lea.vmem %s191_s6, 32 }
  0x3a   : > { %p776_p13 = scmp.ne.s32.totalorder %s191_s6, %s775_s29  ;;  %p783_p2 = scmp.lt.s32.totalorder %s191_s6, %s191_s6 }
  0x3b   : > { %p784_p3 = scmp.lt.s32.totalorder %s782_s14, %s775_s29 }
  0x3c   : > { %p778_p0 = pnand %p776_p13, %p736_p10 }
  0x3d   : > { %p785_p6 = por %p784_p3, %p783_p2 }
  0x3e   : > { %p779_p1 = pneg %p778_p0 }
  0x40   : > { %p786_p7 = pnand %p785_p6, %p779_p1 }
  0x42   : > { %789 = shalt.err (!%p786_p7)
}
  0x43   : > { %657 = dma.hbm_to_vmem [thread:$0]  (!%p942_p8), %s1060_s3, 16, %s191_s6, [#allocation6]  }
  0x44   : > { %p1070_p9 = scmp.ne.s32.totalorder %s1067_s27, 0 }
  0x45   : > { %p1071_p4 = scmp.ne.s32.totalorder (!%p1070_p9), %s1066_s26, 0 }
  0x46   : > { %225 = sbr.rel (%p1070_p9) target bundleno = 376 (0x178), region = 36 }
  0x4d   : > { %819 = dma.done.wait (%p1071_p4), [#allocation4], 16  }
  0x4e   : > { %821 = vsyncadd (%p1071_p4), [#allocation4], 4294967280 }
  0x4f   : > { %823 = dma.done.wait (%p1071_p4), [#allocation6], 16  }
  0x50   : > { %825 = vsyncadd (%p1071_p4), [#allocation6], 4294967280  ;;  %s268_s27 = sadd.s32 %s828_s15, %s832_s16  ;;  %p269_p8 = scmp.lt.s32.totalorder %s836_s17, 1 }
  0x51   : > { %p271_p10 = scmp.lt.s32.totalorder %s268_s27, 5  ;;  %p279_p5 = scmp.lt.s32.totalorder %s828_s15, 2 }
  0x52   : > { %s1089_s17 = smov (!%p269_p8, %s836_s17), 1  ;;  %p286_p11 = scmp.lt.s32.totalorder %s832_s16, 3 }
  0x53   : > { %s1091_s27 = smov (!%p271_p10, %s268_s27), 5  ;;  %s641_s30 = smul.u32 12, %s1089_s17 }
  0x54   : > { %s616_s6 = sshll.u32 %s1091_s27, 1  ;;  %s619_s10 = sshll.u32 %s1089_s17, 2 }
  0x55   : > { %s275_s5 = sadd.s32 %s641_s30, %s616_s6  ;;  %s1093_s16 = smov (!%p286_p11, %s832_s16), 3 }
  0x56   : > { %s617_s26 = sshll.u32 %s275_s5, 1  ;;  %s289_s13 = sadd.s32 %s619_s10, %s1093_s16 }
  0x57   : > { %s277_s9 = scalar_lea.vmem %s1057_s0, %s617_s26  ;;  %s620_s28 = sshll.u32 %s289_s13, 2 }
  0x58   : > { %s280_s11 = scalar_select %p279_p5, %s828_s15, 2 }
  0x59   : > { %s1019_s30 = scalar_lea.vmem %s1061_s4, %s620_s28  ;;  %p621_p12 = scmp.ne.s32.totalorder %s828_s15, 0 }
  0x5a   : > { %s642_s12 = smul.u32 96, %s280_s11  ;;  %vm297_vm0 = vcmask (!%p621_p12), 519168   ;;  %v856_v0 = vmov (!%p621_p12), 0.0  }
  0x5b   : > { %296 = sbr.rel (%p621_p12) target bundleno = 98 (0x62), region = 48  ;;  %298 = vst.msk [vmem:[#allocation2] sm:$0xf] (!%p621_p12), %vm297_vm0, %v856_v0 }
  0x5c   : > { %s1014_s22 = scalar_lea.vmem %s1058_s1, %s642_s12 }
  0x62 PF: > { %v722_v1 = vld [vmem:[%s1014_s22] sm:$0xff]   ;;  %v857_v2 = vmov 0   ;;  %v723_v3 = vld [vmem:[%s1014_s22 + $0x8] sm:$0xff]   ;;  %v724_v4 = vld [vmem:[%s1014_s22 + $0x10] sm:$0xff]   ;;  %vm407_vm1 = vcmask 523264   ;;  %vm452_vm2 = vcmask 519168  }
  0x63   : > { %411 = vmatprep.subr.bf16.mxu0 %v857_v2  ;;  %v725_v5 = vld [vmem:[%s1014_s22 + $0x18] sm:$0xff]   ;;  %v622_v6 = vld.sshfl [vmem:[%s277_s9] sm:$0x33 pattern:$0x76325410]  ;;  %v727_v9 = vld [vmem:[%s1014_s22 + $0x28] sm:$0xff]  }
  0x64   : > { %412 = vmatpush1.bf16.msra.mxu0 %v722_v1  ;;  %v333_v7 = vcombine.high %v622_v6, %v622_v6  ;;  %v726_v8 = vld [vmem:[%s1014_s22 + $0x20] sm:$0xff]   ;;  %v728_v10 = vld [vmem:[%s1014_s22 + $0x30] sm:$0xff]   ;;  %v729_v11 = vld [vmem:[%s1014_s22 + $0x38] sm:$0xff]   ;;  %p636_p13 = scmp.ne.s32.totalorder %s828_s15, 2 }
  0x65   : > { %413 = vmatprep.subr.bf16.mxu0 %v857_v2  ;;  %v730_v12 = vld [vmem:[%s1014_s22 + $0x40] sm:$0xff]   ;;  %v731_v13 = vld [vmem:[%s1014_s22 + $0x48] sm:$0xff]   ;;  %v732_v14 = vld [vmem:[%s1014_s22 + $0x50] sm:$0xff]  }
  0x66   : > { %635 = vmatprep.mubr.msk.bf16.mxu0 %vm407_vm1, %v333_v7  ;;  %v733_v15 = vld [vmem:[%s1014_s22 + $0x58] sm:$0xff]   ;;  %v324_v16 = vld [vmem:[#allocation2] sm:$0xf]  ;;  %v637_v23 = vld [vmem:[#allocation3] ss:$0 sm:$0xff] (!%p636_p13) }
  0x67   : > { %v638_v24 = vld [vmem:[#allocation5] ss:$0 sm:$0xff] (!%p636_p13) }
  0x68   : > { %414 = vmatpush1.bf16.msra.mxu0 %v723_v3 }
  0x69   : > { %415 = vmatprep.subr.bf16.mxu0 %v857_v2 }
  0x6c   : > { %416 = vmatpush1.bf16.msra.mxu0 %v724_v4 }
  0x6d   : > { %417 = vmatprep.subr.bf16.mxu0 %v857_v2 }
  0x70   : > { %418 = vmatpush1.bf16.msra.mxu0 %v725_v5 }
  0x71   : > { %419 = vmatprep.subr.bf16.mxu0 %v857_v2 }
  0x74   : > { %420 = vmatpush1.bf16.msra.mxu0 %v726_v8 }
  0x75   : > { %421 = vmatprep.subr.bf16.mxu0 %v857_v2 }
  0x78   : > { %422 = vmatpush1.bf16.msra.mxu0 %v727_v9 }
  0x79   : > { %423 = vmatprep.subr.bf16.mxu0 %v857_v2 }
  0x7c   : > { %424 = vmatpush1.bf16.msra.mxu0 %v728_v10 }
  0x7d   : > { %425 = vmatprep.subr.bf16.mxu0 %v857_v2 }
  0x80   : > { %426 = vmatpush1.bf16.msra.mxu0 %v729_v11 }
  0x81   : > { %427 = vmatprep.subr.bf16.mxu0 %v857_v2 }
  0x84   : > { %428 = vmatpush1.bf16.msra.mxu0 %v730_v12 }
  0x85   : > { %429 = vmatprep.subr.bf16.mxu0 %v857_v2 }
  0x88   : > { %430 = vmatpush1.bf16.msra.mxu0 %v731_v13 }
  0x89   : > { %431 = vmatprep.subr.bf16.mxu0 %v857_v2 }
  0x8c   : > { %432 = vmatpush1.bf16.msra.mxu0 %v732_v14 }
  0x8d   : > { %433 = vmatprep.subr.bf16.mxu0 %v857_v2 }
  0x90   : > { %434 = vmatpush1.bf16.msra.mxu0 %v733_v15 }
  0x93   : > { %444 = vmatmul.mubr.bf16.vlgmr.msra.gmra.mrb[0].mxu0 %v622_v6 }
 0x163   : > { %457 = sbr.rel (%p636_p13) target bundleno = 376 (0x178), region = 52 }
 0x166   : > { %v445_v17 = vpop.f32.mrb[0].mxu0 }
 0x167   : > { %v451_v18 = vadd.f32 %v445_v17, %v324_v16  ;;  %v447_v19 = vpop.f32.mrb[1].mxu0 }
 0x168   : > { %v448_v20 = vpop.f32.mrb[2].mxu0 }
 0x169   : > { %453 = vst.msk [vmem:[#allocation2] sm:$0xf] %vm452_vm2, %v451_v18  ;;  %v449_v21 = vpop.f32.mrb[3].mxu0 }
 0x170   : > { %v458_v22 = vld [vmem:[#allocation2] sm:$0xf] }
 0x171   : > { %v466_v25 = vmul.f32 %v637_v23, %v458_v22 }
 0x173   : > { %v474_v26 = vadd.f32 %v638_v24, %v466_v25 }
 0x175   : > { %v475_v27 = vmax.f32 %v474_v26, 0.0 }
 0x177   : > { %476 = vst.msk [vmem:[%s1019_s30] sm:$0xf] %vm452_vm2, %v475_v27 }
 0x178 PF: > { %s16_s21 = sadd.s32 1, %s852_s21   ;;  %s1072_s15 = smov %s840_s18 }
 0x179   : > { %p13_p0 = scmp.ge.s32.totalorder %s16_s21, 26   ;;  %s1073_s16 = smov %s844_s19 }
 0x17a   : > { %s1074_s17 = smov %s848_s20  ;;  %s1075_s18 = smov %s1079_s23 }
 0x17b   : > { %s1076_s19 = smov %s1083_s24  ;;  %s1077_s20 = smov %s1087_s25 }
 0x17c   :  { %15 = sbr.rel (!%p13_p0) target bundleno = 7 (0x7), region = 86 }
 0x183   :  { %504 = vsyncpa [#allocation4], 1 }
 0x184   :  { %506 = vsyncpa [#allocation4 + $0x1], 1 }
 0x185   :  { %507 = vsyncpa [#allocation6], 1 }

// kernel: resnet_simclr_forward.27
= control target key start
LH: loop header
LB: loop body
LE: loop exit
PB: predicated region body
PF: predicated region fallthrough
CT: control target
= control target key end

     0   :  { %s828_s18 = smov 0   ;;  %s830_s19 = smov 0   ;;  %s943_s0 = inlined_call_operand.vmem [shape: bf16[2,6,4,192], index: 0, kind: input, shape index: {}]   ;;  %s944_s1 = inlined_call_operand.vmem [shape: bf16[3,192,64], index: 1, kind: input, shape index: {}]   ;;  %s945_s2 = inlined_call_operand.vmem [shape: f32[1,64], index: 2, kind: input, shape index: {}]   ;;  %s946_s3 = inlined_call_operand.vmem [shape: f32[1,64], index: 3, kind: input, shape index: {}]   ;;  %s947_s4 = inlined_call_operand.vmem [shape: f32[2,4,4,64], index: 4, kind: input, shape index: {}]   ;;  %s948_s5 = inlined_call_operand.vmem [shape: f32[2,4,4,64], index: 5, kind: output, shape index: {}]  }
   0x1   :  { %s832_s20 = smov 0   ;;  %s834_s21 = smov 0  }
   0x2   :  { %s836_s22 = smov 0   ;;  %s838_s23 = smov 0  }
   0x3   :  { %s840_s24 = smov 0  }
   0x4 LB: > { %s27_s25 = sadd.s32 1, %s782_s21  ;;  %s30_s26 = sadd.s32 1, %s786_s22  ;;  %s794_s24 = sphi %s840_s24, %s15_s24   ;;  %s790_s23 = sphi %s838_s23, %s958_s23   ;;  %s786_s22 = sphi %s836_s22, %s957_s22   ;;  %s782_s21 = sphi %s834_s21, %s956_s21   ;;  %s778_s20 = sphi %s832_s20, %s955_s20   ;;  %s774_s19 = sphi %s830_s19, %s954_s19   ;;  %s770_s18 = sphi %s828_s18, %s953_s18  }
   0x5   : > { %p28_p0 = scmp.ge.s32.totalorder %s27_s25, 3  ;;  %p640_p1 = scmp.ge.s32.totalorder %s794_s24, 1 }
   0x6   : > { %p243_p2 = scmp.lt.s32.totalorder %s794_s24, 25  ;;  %s34_s27 = sadd.s32 1, %s790_s23 }
   0x7   : > { %s960_s25 = smov (%p28_p0, %s27_s25), 0  ;;  %s962_s26 = smov (!%p28_p0, %s30_s26), %s786_s22 }
   0x8   : > { %p244_p3 = pnand %p640_p1, %p243_p2  ;;  %p32_p4 = scmp.ge.s32.totalorder %s962_s26, 4 }
   0x9   : > { %s292_s28 = sadd.s32 (!%p244_p3), %s770_s18, %s774_s19  ;;  %p293_p6 = scmp.lt.s32.totalorder (!%p244_p3), %s778_s20, 1 }
   0xa   : > { %s964_s26 = smov (%p32_p4, %s962_s26), 0  ;;  %s966_s27 = smov (!%p32_p4, %s34_s27), %s790_s23 }
   0xb   : > { %949 = sst [smem:[#allocation3_spill]] %s964_s26  ;;  %p36_p5 = scmp.ge.s32.totalorder %s966_s27, 2 }
   0xc   : > { %247 = sbr.rel (%p244_p3) target bundleno = 313 (0x139), region = 40  ;;  %p295_p7 = scmp.lt.s32.totalorder (!%p244_p3), %s292_s28, 5 }
   0xd   : > { %s968_s27 = smov (%p36_p5, %s966_s27), 0  ;;  %p303_p8 = scmp.lt.s32.totalorder (!%p244_p3), %s770_s18, 2 }
   0xe   : > { %950 = sst [smem:[#allocation4_spill]] %s968_s27  ;;  %p310_p9 = scmp.lt.s32.totalorder (!%p244_p3), %s774_s19, 3 }
   0xf   : > { %p648_p10 = scmp.ne.s32.totalorder (!%p244_p3), %s770_s18, 0 }
  0x13   : > { %s970_s20 = smov (!%p293_p6, %s778_s20), 1  ;;  %s972_s28 = smov (!%p295_p7, %s292_s28), 5 }
  0x14   : > { %s668_s29 = smul.u32 12, %s970_s20  ;;  %s641_s30 = sshll.u32 %s972_s28, 1  ;;  %vm329_vm0 = vcmask (!%p648_p10), 519168   ;;  %v796_v0 = vmov (!%p648_p10), 0.0  }
  0x15   : > { %s644_s11 = sshll.u32 %s970_s20, 2  ;;  %s974_s19 = smov (!%p310_p9, %s774_s19), 3  ;;  %330 = vst.msk [vmem:[#allocation2] sm:$0xf] (!%p648_p10), %vm329_vm0, %v796_v0 }
  0x16   : > { %s299_s6 = sadd.s32 %s668_s29, %s641_s30  ;;  %s313_s14 = sadd.s32 %s644_s11, %s974_s19 }
  0x17   : > { %s642_s7 = sshll.u32 %s299_s6, 1  ;;  %s645_s27 = sshll.u32 %s313_s14, 2 }
  0x18   : > { %s301_s10 = scalar_lea.vmem %s943_s0, %s642_s7  ;;  %s891_s29 = scalar_lea.vmem %s947_s4, %s645_s27 }
  0x19   : > { %s304_s12 = scalar_select %p303_p8, %s770_s18, 2 }
  0x1a   : > { %s896_s7 = scalar_lea.vmem %s948_s5, %s645_s27  ;;  %328 = sbr.rel (%p648_p10) target bundleno = 33 (0x21), region = 44 }
  0x1b   : > { %s669_s13 = smul.u32 96, %s304_s12 }
  0x1d   : > { %s886_s17 = scalar_lea.vmem %s944_s1, %s669_s13 }
  0x21 PF: > { %v728_v1 = vld [vmem:[%s886_s17] sm:$0xff]   ;;  %v797_v2 = vmov 0   ;;  %v729_v3 = vld [vmem:[%s886_s17 + $0x8] sm:$0xff]   ;;  %v730_v4 = vld [vmem:[%s886_s17 + $0x10] sm:$0xff]   ;;  %vm439_vm1 = vcmask 523264   ;;  %vm484_vm2 = vcmask 519168  }
  0x22   : > { %443 = vmatprep.subr.bf16.mxu0 %v797_v2  ;;  %v731_v5 = vld [vmem:[%s886_s17 + $0x18] sm:$0xff]   ;;  %v649_v6 = vld.sshfl [vmem:[%s301_s10] sm:$0x33 pattern:$0x76325410]  ;;  %v733_v9 = vld [vmem:[%s886_s17 + $0x28] sm:$0xff]  }
  0x23   : > { %444 = vmatpush1.bf16.msra.mxu0 %v728_v1  ;;  %v365_v7 = vcombine.high %v649_v6, %v649_v6  ;;  %v732_v8 = vld [vmem:[%s886_s17 + $0x20] sm:$0xff]   ;;  %v734_v10 = vld [vmem:[%s886_s17 + $0x30] sm:$0xff]   ;;  %v735_v11 = vld [vmem:[%s886_s17 + $0x38] sm:$0xff]   ;;  %p663_p11 = scmp.ne.s32.totalorder %s770_s18, 2 }
  0x24   : > { %445 = vmatprep.subr.bf16.mxu0 %v797_v2  ;;  %v736_v12 = vld [vmem:[%s886_s17 + $0x40] sm:$0xff]   ;;  %v737_v13 = vld [vmem:[%s886_s17 + $0x48] sm:$0xff]   ;;  %v738_v14 = vld [vmem:[%s886_s17 + $0x50] sm:$0xff]  }
  0x25   : > { %662 = vmatprep.mubr.msk.bf16.mxu0 %vm439_vm1, %v365_v7  ;;  %v739_v15 = vld [vmem:[%s886_s17 + $0x58] sm:$0xff]   ;;  %v356_v16 = vld [vmem:[#allocation2] sm:$0xf] }
  0x26   : > { %v664_v23 = vld [vmem:[%s945_s2] ss:$0 sm:$0xff] (!%p663_p11) }
  0x27   : > { %446 = vmatpush1.bf16.msra.mxu0 %v729_v3  ;;  %v665_v24 = vld [vmem:[%s946_s3] ss:$0 sm:$0xff] (!%p663_p11) }
  0x28   : > { %447 = vmatprep.subr.bf16.mxu0 %v797_v2  ;;  %v507_v26 = vld [vmem:[%s891_s29] sm:$0xf] (!%p663_p11) }
  0x2b   : > { %448 = vmatpush1.bf16.msra.mxu0 %v730_v4 }
  0x2c   : > { %449 = vmatprep.subr.bf16.mxu0 %v797_v2 }
  0x2f   : > { %450 = vmatpush1.bf16.msra.mxu0 %v731_v5 }
  0x30   : > { %451 = vmatprep.subr.bf16.mxu0 %v797_v2 }
  0x33   : > { %452 = vmatpush1.bf16.msra.mxu0 %v732_v8 }
  0x34   : > { %453 = vmatprep.subr.bf16.mxu0 %v797_v2 }
  0x37   : > { %454 = vmatpush1.bf16.msra.mxu0 %v733_v9 }
  0x38   : > { %455 = vmatprep.subr.bf16.mxu0 %v797_v2 }
  0x3b   : > { %456 = vmatpush1.bf16.msra.mxu0 %v734_v10 }
  0x3c   : > { %457 = vmatprep.subr.bf16.mxu0 %v797_v2 }
  0x3f   : > { %458 = vmatpush1.bf16.msra.mxu0 %v735_v11 }
  0x40   : > { %459 = vmatprep.subr.bf16.mxu0 %v797_v2 }
  0x43   : > { %460 = vmatpush1.bf16.msra.mxu0 %v736_v12 }
  0x44   : > { %461 = vmatprep.subr.bf16.mxu0 %v797_v2 }
  0x47   : > { %462 = vmatpush1.bf16.msra.mxu0 %v737_v13 }
  0x48   : > { %463 = vmatprep.subr.bf16.mxu0 %v797_v2 }
  0x4b   : > { %464 = vmatpush1.bf16.msra.mxu0 %v738_v14 }
  0x4c   : > { %465 = vmatprep.subr.bf16.mxu0 %v797_v2 }
  0x4f   : > { %466 = vmatpush1.bf16.msra.mxu0 %v739_v15 }
  0x52   : > { %476 = vmatmul.mubr.bf16.vlgmr.msra.gmra.mrb[0].mxu0 %v649_v6 }
 0x122   : > { %489 = sbr.rel (%p663_p11) target bundleno = 313 (0x139), region = 48 }
 0x125   : > { %v477_v17 = vpop.f32.mrb[0].mxu0 }
 0x126   : > { %v483_v18 = vadd.f32 %v477_v17, %v356_v16  ;;  %v479_v19 = vpop.f32.mrb[1].mxu0 }
 0x127   : > { %v480_v20 = vpop.f32.mrb[2].mxu0 }
 0x128   : > { %485 = vst.msk [vmem:[#allocation2] sm:$0xf] %vm484_vm2, %v483_v18  ;;  %v481_v21 = vpop.f32.mrb[3].mxu0 }
 0x12f   : > { %v490_v22 = vld [vmem:[#allocation2] sm:$0xf] }
 0x130   : > { %v498_v25 = vmul.f32 %v664_v23, %v490_v22 }
 0x132   : > { %v506_v27 = vadd.f32 %v665_v24, %v498_v25 }
 0x134   : > { %v508_v28 = vadd.f32 %v507_v26, %v506_v27 }
 0x136   : > { %v509_v29 = vmax.f32 %v508_v28, 0.0 }
 0x138   : > { %510 = vst.msk [vmem:[%s896_s7] sm:$0xf] %vm484_vm2, %v509_v29 }
 0x139 PF: > { %s15_s24 = sadd.s32 1, %s794_s24   ;;  %s951_s8 = sld [smem:[#allocation3_spill]] }
 0x13a   : > { %p12_p12 = scmp.ge.s32.totalorder %s15_s24, 26   ;;  %s952_s9 = sld [smem:[#allocation4_spill]] }
 0x13b   : > { %s953_s18 = smov %s782_s21  ;;  %s954_s19 = smov %s786_s22 }
 0x13c   : > { %s955_s20 = smov %s790_s23  ;;  %s956_s21 = smov %s960_s25 }
 0x13d   :  { %14 = sbr.rel (!%p12_p12) target bundleno = 4 (0x4), region = 84 }
 0x13f   : > { %s957_s22 = smov %s951_s8 }
 0x140   : > { %s958_s23 = smov %s952_s9 }

// kernel: resnet_simclr_forward.28
= control target key start
LH: loop header
LB: loop body
LE: loop exit
PB: predicated region body
PF: predicated region fallthrough
CT: control target
= control target key end

     0   :  { %s743_s15 = smov 0   ;;  %s745_s16 = smov 0   ;;  %s850_s0 = inlined_call_operand.vmem [shape: bf16[2,6,4,192], index: 0, kind: input, shape index: {}]   ;;  %s851_s1 = inlined_call_operand.vmem [shape: bf16[3,192,64], index: 1, kind: input, shape index: {}]   ;;  %s852_s2 = inlined_call_operand.vmem [shape: f32[1,64], index: 2, kind: input, shape index: {}]   ;;  %s853_s3 = inlined_call_operand.vmem [shape: f32[1,64], index: 3, kind: input, shape index: {}]   ;;  %s854_s4 = inlined_call_operand.vmem [shape: f32[2,4,4,64], index: 4, kind: output, shape index: {}]  }
   0x1   :  { %s747_s17 = smov 0   ;;  %s749_s18 = smov 0  }
   0x2   :  { %s751_s19 = smov 0   ;;  %s753_s20 = smov 0  }
   0x3   :  { %s755_s21 = smov 0  }
   0x4 LB: > { %s26_s22 = sadd.s32 1, %s702_s18  ;;  %s29_s23 = sadd.s32 1, %s706_s19  ;;  %s714_s21 = sphi %s755_s21, %s14_s21   ;;  %s710_s20 = sphi %s753_s20, %s862_s20   ;;  %s706_s19 = sphi %s751_s19, %s861_s19   ;;  %s702_s18 = sphi %s749_s18, %s860_s18   ;;  %s698_s17 = sphi %s747_s17, %s859_s17   ;;  %s694_s16 = sphi %s745_s16, %s858_s16   ;;  %s690_s15 = sphi %s743_s15, %s857_s15  }
   0x5   : > { %p27_p0 = scmp.ge.s32.totalorder %s26_s22, 3  ;;  %p562_p1 = scmp.ge.s32.totalorder %s714_s21, 1 }
   0x6   : > { %p203_p2 = scmp.lt.s32.totalorder %s714_s21, 25  ;;  %s33_s24 = sadd.s32 1, %s710_s20 }
   0x7   : > { %s864_s22 = smov (%p27_p0, %s26_s22), 0  ;;  %s866_s23 = smov (!%p27_p0, %s29_s23), %s706_s19 }
   0x8   : > { %p204_p3 = pnand %p562_p1, %p203_p2  ;;  %p31_p4 = scmp.ge.s32.totalorder %s866_s23, 4 }
   0x9   : > { %s242_s25 = sadd.s32 (!%p204_p3), %s690_s15, %s694_s16  ;;  %p243_p6 = scmp.lt.s32.totalorder (!%p204_p3), %s698_s17, 1 }
   0xa   : > { %s868_s23 = smov (%p31_p4, %s866_s23), 0  ;;  %s870_s24 = smov (!%p31_p4, %s33_s24), %s710_s20 }
   0xb   : > { %p35_p5 = scmp.ge.s32.totalorder %s870_s24, 2  ;;  %207 = sbr.rel (%p204_p3) target bundleno = 310 (0x136), region = 36 }
   0xc   : > { %p245_p7 = scmp.lt.s32.totalorder (!%p204_p3), %s242_s25, 5  ;;  %p253_p8 = scmp.lt.s32.totalorder (!%p204_p3), %s690_s15, 2 }
   0xd   : > { %s872_s24 = smov (%p35_p5, %s870_s24), 0  ;;  %p260_p9 = scmp.lt.s32.totalorder (!%p204_p3), %s694_s16, 3 }
   0xe   : > { %855 = sst [smem:[#allocation3_spill]] %s872_s24  ;;  %p568_p10 = scmp.ne.s32.totalorder (!%p204_p3), %s690_s15, 0 }
  0x12   : > { %s874_s17 = smov (!%p243_p6, %s698_s17), 1  ;;  %s876_s25 = smov (!%p245_p7, %s242_s25), 5 }
  0x13   : > { %s588_s26 = smul.u32 12, %s874_s17  ;;  %s563_s27 = sshll.u32 %s876_s25, 1  ;;  %vm271_vm0 = vcmask (!%p568_p10), 519168   ;;  %v716_v0 = vmov (!%p568_p10), 0.0  }
  0x14   : > { %s566_s7 = sshll.u32 %s874_s17, 2  ;;  %s878_s16 = smov (!%p260_p9, %s694_s16), 3  ;;  %272 = vst.msk [vmem:[#allocation2] sm:$0xf] (!%p568_p10), %vm271_vm0, %v716_v0 }
  0x15   : > { %s249_s28 = sadd.s32 %s588_s26, %s563_s27  ;;  %s263_s10 = sadd.s32 %s566_s7, %s878_s16 }
  0x16   : > { %s564_s29 = sshll.u32 %s249_s28, 1  ;;  %s567_s14 = sshll.u32 %s263_s10, 2 }
  0x17   : > { %s251_s6 = scalar_lea.vmem %s850_s0, %s564_s29  ;;  %s806_s26 = scalar_lea.vmem %s854_s4, %s567_s14 }
  0x18   : > { %s254_s8 = scalar_select %p253_p8, %s690_s15, 2 }
  0x19   : > { %270 = sbr.rel (%p568_p10) target bundleno = 32 (0x20), region = 40 }
  0x1a   : > { %s589_s9 = smul.u32 96, %s254_s8 }
  0x1c   : > { %s801_s13 = scalar_lea.vmem %s851_s1, %s589_s9 }
  0x20 PF: > { %v648_v1 = vld [vmem:[%s801_s13] sm:$0xff]   ;;  %v717_v2 = vmov 0   ;;  %v649_v3 = vld [vmem:[%s801_s13 + $0x8] sm:$0xff]   ;;  %v650_v4 = vld [vmem:[%s801_s13 + $0x10] sm:$0xff]   ;;  %vm381_vm1 = vcmask 523264   ;;  %vm426_vm2 = vcmask 519168  }
  0x21   : > { %385 = vmatprep.subr.bf16.mxu0 %v717_v2  ;;  %v651_v5 = vld [vmem:[%s801_s13 + $0x18] sm:$0xff]   ;;  %v569_v6 = vld.sshfl [vmem:[%s251_s6] sm:$0x33 pattern:$0x76325410]  ;;  %v653_v9 = vld [vmem:[%s801_s13 + $0x28] sm:$0xff]  }
  0x22   : > { %386 = vmatpush1.bf16.msra.mxu0 %v648_v1  ;;  %v307_v7 = vcombine.high %v569_v6, %v569_v6  ;;  %v652_v8 = vld [vmem:[%s801_s13 + $0x20] sm:$0xff]   ;;  %v654_v10 = vld [vmem:[%s801_s13 + $0x30] sm:$0xff]   ;;  %v655_v11 = vld [vmem:[%s801_s13 + $0x38] sm:$0xff]   ;;  %p583_p11 = scmp.ne.s32.totalorder %s690_s15, 2 }
  0x23   : > { %387 = vmatprep.subr.bf16.mxu0 %v717_v2  ;;  %v656_v12 = vld [vmem:[%s801_s13 + $0x40] sm:$0xff]   ;;  %v657_v13 = vld [vmem:[%s801_s13 + $0x48] sm:$0xff]   ;;  %v658_v14 = vld [vmem:[%s801_s13 + $0x50] sm:$0xff]  }
  0x24   : > { %582 = vmatprep.mubr.msk.bf16.mxu0 %vm381_vm1, %v307_v7  ;;  %v659_v15 = vld [vmem:[%s801_s13 + $0x58] sm:$0xff]   ;;  %v298_v16 = vld [vmem:[#allocation2] sm:$0xf] }
  0x25   : > { %v584_v23 = vld [vmem:[%s852_s2] ss:$0 sm:$0xff] (!%p583_p11) }
  0x26   : > { %388 = vmatpush1.bf16.msra.mxu0 %v649_v3  ;;  %v585_v24 = vld [vmem:[%s853_s3] ss:$0 sm:$0xff] (!%p583_p11) }
  0x27   : > { %389 = vmatprep.subr.bf16.mxu0 %v717_v2 }
  0x2a   : > { %390 = vmatpush1.bf16.msra.mxu0 %v650_v4 }
  0x2b   : > { %391 = vmatprep.subr.bf16.mxu0 %v717_v2 }
  0x2e   : > { %392 = vmatpush1.bf16.msra.mxu0 %v651_v5 }
  0x2f   : > { %393 = vmatprep.subr.bf16.mxu0 %v717_v2 }
  0x32   : > { %394 = vmatpush1.bf16.msra.mxu0 %v652_v8 }
  0x33   : > { %395 = vmatprep.subr.bf16.mxu0 %v717_v2 }
  0x36   : > { %396 = vmatpush1.bf16.msra.mxu0 %v653_v9 }
  0x37   : > { %397 = vmatprep.subr.bf16.mxu0 %v717_v2 }
  0x3a   : > { %398 = vmatpush1.bf16.msra.mxu0 %v654_v10 }
  0x3b   : > { %399 = vmatprep.subr.bf16.mxu0 %v717_v2 }
  0x3e   : > { %400 = vmatpush1.bf16.msra.mxu0 %v655_v11 }
  0x3f   : > { %401 = vmatprep.subr.bf16.mxu0 %v717_v2 }
  0x42   : > { %402 = vmatpush1.bf16.msra.mxu0 %v656_v12 }
  0x43   : > { %403 = vmatprep.subr.bf16.mxu0 %v717_v2 }
  0x46   : > { %404 = vmatpush1.bf16.msra.mxu0 %v657_v13 }
  0x47   : > { %405 = vmatprep.subr.bf16.mxu0 %v717_v2 }
  0x4a   : > { %406 = vmatpush1.bf16.msra.mxu0 %v658_v14 }
  0x4b   : > { %407 = vmatprep.subr.bf16.mxu0 %v717_v2 }
  0x4e   : > { %408 = vmatpush1.bf16.msra.mxu0 %v659_v15 }
  0x51   : > { %418 = vmatmul.mubr.bf16.vlgmr.msra.gmra.mrb[0].mxu0 %v569_v6 }
 0x121   : > { %431 = sbr.rel (%p583_p11) target bundleno = 310 (0x136), region = 44 }
 0x124   : > { %v419_v17 = vpop.f32.mrb[0].mxu0 }
 0x125   : > { %v425_v18 = vadd.f32 %v419_v17, %v298_v16  ;;  %v421_v19 = vpop.f32.mrb[1].mxu0 }
 0x126   : > { %v422_v20 = vpop.f32.mrb[2].mxu0 }
 0x127   : > { %427 = vst.msk [vmem:[#allocation2] sm:$0xf] %vm426_vm2, %v425_v18  ;;  %v423_v21 = vpop.f32.mrb[3].mxu0 }
 0x12e   : > { %v432_v22 = vld [vmem:[#allocation2] sm:$0xf] }
 0x12f   : > { %v440_v25 = vmul.f32 %v584_v23, %v432_v22 }
 0x131   : > { %v448_v26 = vadd.f32 %v585_v24, %v440_v25 }
 0x133   : > { %v449_v27 = vmax.f32 %v448_v26, 0.0 }
 0x135   : > { %450 = vst.msk [vmem:[%s806_s26] sm:$0xf] %vm426_vm2, %v449_v27 }
 0x136 PF: > { %s14_s21 = sadd.s32 1, %s714_s21   ;;  %s856_s28 = sld [smem:[#allocation3_spill]] }
 0x137   : > { %p11_p12 = scmp.ge.s32.totalorder %s14_s21, 26   ;;  %s857_s15 = smov %s702_s18 }
 0x138   : > { %s858_s16 = smov %s706_s19  ;;  %s859_s17 = smov %s710_s20 }
 0x139   : > { %s860_s18 = smov %s864_s22  ;;  %s861_s19 = smov %s868_s23 }
 0x13a   :  { %13 = sbr.rel (!%p11_p12) target bundleno = 4 (0x4), region = 77 }
 0x13c   : > { %s862_s20 = smov %s856_s28 }

// kernel: resnet_simclr_forward.30
= control target key start
LH: loop header
LB: loop body
LE: loop exit
PB: predicated region body
PF: predicated region fallthrough
CT: control target
= control target key end

     0   :  { %s760_s15 = smov 0   ;;  %s762_s16 = smov 0   ;;  %s867_s0 = inlined_call_operand.vmem [shape: bf16[2,6,2,192], index: 0, kind: input, shape index: {}]   ;;  %s868_s1 = inlined_call_operand.vmem [shape: bf16[3,192,128], index: 1, kind: input, shape index: {}]   ;;  %s869_s2 = inlined_call_operand.vmem [shape: f32[1,128], index: 2, kind: input, shape index: {}]   ;;  %s870_s3 = inlined_call_operand.vmem [shape: f32[1,128], index: 3, kind: input, shape index: {}]   ;;  %s871_s4 = inlined_call_operand.vmem [shape: f32[2,2,2,128], index: 4, kind: output, shape index: {}]  }
   0x1   :  { %s764_s17 = smov 0   ;;  %s766_s18 = smov 0  }
   0x2   :  { %s768_s19 = smov 0   ;;  %s770_s20 = smov 0  }
   0x3   :  { %s772_s21 = smov 0  }
   0x4 LB: > { %s26_s22 = sadd.s32 1, %s718_s18  ;;  %s29_s23 = sadd.s32 1, %s722_s19  ;;  %s730_s21 = sphi %s772_s21, %s14_s21   ;;  %s726_s20 = sphi %s770_s20, %s879_s20   ;;  %s722_s19 = sphi %s768_s19, %s878_s19   ;;  %s718_s18 = sphi %s766_s18, %s877_s18   ;;  %s714_s17 = sphi %s764_s17, %s876_s17   ;;  %s710_s16 = sphi %s762_s16, %s875_s16   ;;  %s706_s15 = sphi %s760_s15, %s874_s15  }
   0x5   : > { %p27_p0 = scmp.ge.s32.totalorder %s26_s22, 3  ;;  %p577_p1 = scmp.ge.s32.totalorder %s730_s21, 1 }
   0x6   : > { %p206_p2 = scmp.lt.s32.totalorder %s730_s21, 13  ;;  %s33_s24 = sadd.s32 1, %s726_s20 }
   0x7   : > { %s881_s22 = smov (%p27_p0, %s26_s22), 0  ;;  %s883_s23 = smov (!%p27_p0, %s29_s23), %s722_s19 }
   0x8   : > { %p207_p3 = pnand %p577_p1, %p206_p2  ;;  %p31_p4 = scmp.ge.s32.totalorder %s883_s23, 2 }
   0x9   : > { %s578_s25 = sshll.u32 (!%p207_p3), %s710_s16, 1  ;;  %p247_p6 = scmp.lt.s32.totalorder (!%p207_p3), %s714_s17, 1 }
   0xa   : > { %s885_s23 = smov (%p31_p4, %s883_s23), 0  ;;  %s887_s24 = smov (!%p31_p4, %s33_s24), %s726_s20 }
   0xb   : > { %p35_p5 = scmp.ge.s32.totalorder %s887_s24, 2  ;;  %210 = sbr.rel (%p207_p3) target bundleno = 308 (0x134), region = 36 }
   0xc   : > { %s246_s26 = sadd.s32 (!%p207_p3), %s706_s15, %s578_s25  ;;  %p257_p7 = scmp.lt.s32.totalorder (!%p207_p3), %s706_s15, 2 }
   0xd   : > { %s889_s24 = smov (%p35_p5, %s887_s24), 0  ;;  %p249_p8 = scmp.lt.s32.totalorder (!%p207_p3), %s246_s26, 5 }
   0xe   : > { %872 = sst [smem:[#allocation3_spill]] %s889_s24  ;;  %p264_p9 = scmp.lt.s32.totalorder (!%p207_p3), %s710_s16, 1 }
   0xf   : > { %p583_p10 = scmp.ne.s32.totalorder (!%p207_p3), %s706_s15, 0 }
  0x12   : > { %s891_s17 = smov (!%p247_p6, %s714_s17), 1  ;;  %s893_s26 = smov (!%p249_p8, %s246_s26), 5 }
  0x13   : > { %s603_s27 = smul.u32 12, %s891_s17  ;;  %s579_s29 = sshll.u32 %s893_s26, 1  ;;  %v732_v0 = vmov (!%p583_p10), 0.0  }
  0x14   : > { %s258_s28 = scalar_select %p257_p7, %s706_s15, 2 }
  0x15   : > { %s253_s30 = sadd.s32 %s603_s27, %s579_s29  ;;  %s581_s12 = sshll.u32 %s891_s17, 1  ;;  %275 = vst [vmem:[#allocation2] sm:$0x3] (!%p583_p10), %v732_v0 }
  0x16   : > { %s604_s5 = smul.u32 96, %s258_s28  ;;  %s254_s8 = scalar_lea.vmem %s867_s0, %s253_s30 }
  0x17   : > { %s895_s16 = smov (!%p264_p9, %s710_s16), 1  ;;  %274 = sbr.rel (%p583_p10) target bundleno = 30 (0x1e), region = 40 }
  0x18   : > { %s817_s11 = scalar_lea.vmem %s868_s1, %s604_s5  ;;  %s267_s13 = sadd.s32 %s581_s12, %s895_s16 }
  0x19   : > { %s582_s14 = sshll.u32 %s267_s13, 1 }
  0x1a   : > { %s823_s26 = scalar_lea.vmem %s871_s4, %s582_s14 }
  0x1e PF: > { %v664_v1 = vld [vmem:[%s817_s11] sm:$0xff]   ;;  %v733_v2 = vmov 0   ;;  %v665_v3 = vld [vmem:[%s817_s11 + $0x8] sm:$0xff]   ;;  %v666_v4 = vld [vmem:[%s817_s11 + $0x10] sm:$0xff]   ;;  %v314_v5 = vlaneseq  ;;  %v734_v8 = vmov 1966171168  }
  0x1f   : > { %402 = vmatprep.subr.bf16.mxu0 %v733_v2  ;;  %v667_v6 = vld [vmem:[%s817_s11 + $0x18] sm:$0xff]   ;;  %v584_v7 = vld.sshfl [vmem:[%s254_s8] sm:$0x11 pattern:$0x75316420]  ;;  %v312_v9 = vunpack.c.l.s4 %v734_v8  ;;  %v669_v15 = vld [vmem:[%s817_s11 + $0x28] sm:$0xff]  }
  0x20   : > { %403 = vmatpush1.bf16.msra.mxu0 %v664_v1  ;;  %v315_v10 = vshrl.u32 %v314_v5, 7  ;;  %v668_v11 = vld [vmem:[%s817_s11 + $0x20] sm:$0xff]   ;;  %v310_v12 = vcombine.high %v584_v7, %v584_v7  ;;  %vm398_vm0 = vcmask 523264   ;;  %v670_v17 = vld [vmem:[%s817_s11 + $0x30] sm:$0xff]   ;;  %v671_v18 = vld [vmem:[%s817_s11 + $0x38] sm:$0xff]   ;;  %p598_p11 = scmp.ne.s32.totalorder %s706_s15, 2 }
  0x21   : > { %404 = vmatprep.subr.bf16.mxu0 %v733_v2  ;;  %v313_v13 = vunpack.c.0.s8 %v312_v9  ;;  %v672_v19 = vld [vmem:[%s817_s11 + $0x40] sm:$0xff]   ;;  %v673_v20 = vld [vmem:[%s817_s11 + $0x48] sm:$0xff]   ;;  %v674_v21 = vld [vmem:[%s817_s11 + $0x50] sm:$0xff]  }
  0x22   : > { %v675_v22 = vld [vmem:[%s817_s11 + $0x58] sm:$0xff]   ;;  %v301_v24 = vld [vmem:[#allocation2] sm:$0x3] }
  0x23   : > { %v316_v14 = vsub.s32 %v313_v13, %v315_v10  ;;  %v599_v31 = vld [vmem:[%s869_s2] ss:$0 sm:$0xff] (!%p598_p11) }
  0x24   : > { %405 = vmatpush1.bf16.msra.mxu0 %v665_v3  ;;  %v600_v32 = vld [vmem:[%s870_s3] ss:$0 sm:$0xff] (!%p598_p11) }
  0x25   : > { %406 = vmatprep.subr.bf16.mxu0 %v733_v2  ;;  %v324_v16 = vrot.slane %v310_v12, %v316_v14  ;;  %v317_v23 = vrot.slane %v584_v7, %v316_v14 }
  0x27   : > { %597 = vmatprep.mubr.msk.bf16.mxu0 %vm398_vm0, %v324_v16 }
  0x28   : > { %407 = vmatpush1.bf16.msra.mxu0 %v666_v4 }
  0x29   : > { %408 = vmatprep.subr.bf16.mxu0 %v733_v2 }
  0x2c   : > { %409 = vmatpush1.bf16.msra.mxu0 %v667_v6 }
  0x2d   : > { %410 = vmatprep.subr.bf16.mxu0 %v733_v2 }
  0x30   : > { %411 = vmatpush1.bf16.msra.mxu0 %v668_v11 }
  0x31   : > { %412 = vmatprep.subr.bf16.mxu0 %v733_v2 }
  0x34   : > { %413 = vmatpush1.bf16.msra.mxu0 %v669_v15 }
  0x35   : > { %414 = vmatprep.subr.bf16.mxu0 %v733_v2 }
  0x38   : > { %415 = vmatpush1.bf16.msra.mxu0 %v670_v17 }
  0x39   : > { %416 = vmatprep.subr.bf16.mxu0 %v733_v2 }
  0x3c   : > { %417 = vmatpush1.bf16.msra.mxu0 %v671_v18 }
  0x3d   : > { %418 = vmatprep.subr.bf16.mxu0 %v733_v2 }
  0x40   : > { %419 = vmatpush1.bf16.msra.mxu0 %v672_v19 }
  0x41   : > { %420 = vmatprep.subr.bf16.mxu0 %v733_v2 }
  0x44   : > { %421 = vmatpush1.bf16.msra.mxu0 %v673_v20 }
  0x45   : > { %422 = vmatprep.subr.bf16.mxu0 %v733_v2 }
  0x48   : > { %423 = vmatpush1.bf16.msra.mxu0 %v674_v21 }
  0x49   : > { %424 = vmatprep.subr.bf16.mxu0 %v733_v2 }
  0x4c   : > { %425 = vmatpush1.bf16.msra.mxu0 %v675_v22 }
  0x4f   : > { %435 = vmatmul.mubr.bf16.vlgmr.msra.gmra.mrb[0].mxu0 %v317_v23 }
 0x11f   : > { %447 = sbr.rel (%p598_p11) target bundleno = 308 (0x134), region = 44 }
 0x122   : > { %v436_v25 = vpop.f32.mrb[0].mxu0 }
 0x123   : > { %v442_v26 = vadd.f32 %v436_v25, %v301_v24  ;;  %v438_v27 = vpop.f32.mrb[1].mxu0 }
 0x124   : > { %v439_v28 = vpop.f32.mrb[2].mxu0 }
 0x125   : > { %443 = vst [vmem:[#allocation2] sm:$0x3] %v442_v26  ;;  %v440_v29 = vpop.f32.mrb[3].mxu0 }
 0x12c   : > { %v448_v30 = vld [vmem:[#allocation2] sm:$0x3] }
 0x12d   : > { %v456_v33 = vmul.f32 %v599_v31, %v448_v30 }
 0x12f   : > { %v464_v34 = vadd.f32 %v600_v32, %v456_v33 }
 0x131   : > { %v465_v35 = vmax.f32 %v464_v34, 0.0 }
 0x133   : > { %466 = vst [vmem:[%s823_s26] sm:$0x3] %v465_v35 }
 0x134 PF: > { %s14_s21 = sadd.s32 1, %s730_s21   ;;  %s873_s28 = sld [smem:[#allocation3_spill]] }
 0x135   : > { %p11_p12 = scmp.ge.s32.totalorder %s14_s21, 14   ;;  %s874_s15 = smov %s718_s18 }
 0x136   : > { %s875_s16 = smov %s722_s19  ;;  %s876_s17 = smov %s726_s20 }
 0x137   : > { %s877_s18 = smov %s881_s22  ;;  %s878_s19 = smov %s885_s23 }
 0x138   :  { %13 = sbr.rel (!%p11_p12) target bundleno = 4 (0x4), region = 77 }
 0x13a   : > { %s879_s20 = smov %s873_s28 }

// kernel: resnet_simclr_forward.31
= control target key start
LH: loop header
LB: loop body
LE: loop exit
PB: predicated region body
PF: predicated region fallthrough
CT: control target
= control target key end

     0   :  { %s627_s15 = smov 0   ;;  %s629_s16 = smov 0   ;;  %s701_s0 = inlined_call_operand.vmem [shape: bf16[2,4,2,64], index: 0, kind: input, shape index: {}]   ;;  %s702_s1 = inlined_call_operand.vmem [shape: bf16[1,64,128], index: 1, kind: input, shape index: {}]   ;;  %s703_s2 = inlined_call_operand.vmem [shape: f32[1,128], index: 2, kind: input, shape index: {}]   ;;  %s704_s3 = inlined_call_operand.vmem [shape: f32[1,128], index: 3, kind: input, shape index: {}]   ;;  %s705_s4 = inlined_call_operand.vmem [shape: f32[2,2,2,128], index: 4, kind: output, shape index: {}]  }
   0x1   :  { %s631_s17 = smov 0   ;;  %s633_s18 = smov 0  }
   0x2   :  { %s635_s19 = smov 0  }
   0x3 LB: > { %s29_s20 = sadd.s32 1, %s590_s17  ;;  %s33_s21 = sadd.s32 1, %s594_s18  ;;  %s598_s19 = sphi %s635_s19, %s14_s19   ;;  %s594_s18 = sphi %s633_s18, %s709_s18   ;;  %s590_s17 = sphi %s631_s17, %s708_s17   ;;  %s586_s16 = sphi %s629_s16, %s707_s16   ;;  %s582_s15 = sphi %s627_s15, %s706_s15  }
   0x4   : > { %p31_p0 = scmp.ge.s32.totalorder %s29_s20, 2  ;;  %p483_p1 = scmp.ge.s32.totalorder %s598_s19, 1 }
   0x5   : > { %p205_p2 = scmp.lt.s32.totalorder %s598_s19, 5 }
   0x6   : > { %s711_s20 = smov (%p31_p0, %s29_s20), 0  ;;  %s713_s21 = smov (!%p31_p0, %s33_s21), %s594_s18 }
   0x7   : > { %p206_p3 = pnand %p483_p1, %p205_p2  ;;  %p35_p4 = scmp.ge.s32.totalorder %s713_s21, 2 }
   0x8   : > { %v556_v0 = vld [vmem:[%s702_s1] sm:$0xff] (!%p206_p3)   ;;  %v600_v1 = vmov (!%p206_p3), 0.0   ;;  %v557_v2 = vld [vmem:[%s702_s1 + $0x8] sm:$0xff] (!%p206_p3)   ;;  %vm601_vm0 = vmmov (!%p206_p3), 0   ;;  %s484_s26 = sshll.u32 (!%p206_p3), %s582_s15, 1  ;;  %p245_p5 = scmp.lt.s32.totalorder (!%p206_p3), %s586_s16, 1 }
   0x9   : > { %s715_s21 = smov (%p35_p4, %s713_s21), 0  ;;  %209 = sbr.rel (%p206_p3) target bundleno = 253 (0xfd), region = 36 }
   0xa   : > { %502 = vmatprep.subr.bf16.mxu0 (!%p206_p3), %v600_v1  ;;  %272 = vst [vmem:[#allocation2] sm:$0x3] (!%p206_p3), %v600_v1  ;;  %510 = vmatprep.mubr.msk.bf16.mxu0 (!%p206_p3), %vm601_vm0, %v600_v1  ;;  %p247_p6 = scmp.lt.s32.totalorder (!%p206_p3), %s484_s26, 3  ;;  %v558_v3 = vld [vmem:[%s702_s1 + $0x10] sm:$0xff] (!%p206_p3)   ;;  %v559_v4 = vld [vmem:[%s702_s1 + $0x18] sm:$0xff] (!%p206_p3)   ;;  %vm307_vm1 = vcmask (!%p206_p3), 523264  }
   0xb   : > { %503 = vmatpush3.bf16.msra.mxu0 (!%p206_p3), %v556_v0  ;;  %p261_p7 = scmp.lt.s32.totalorder (!%p206_p3), %s582_s15, 1  ;;  %v493_v12 = vld [vmem:[%s703_s2] ss:$0 sm:$0xff] (!%p206_p3) }
   0xc   : > { %504 = vmatprep.subr.bf16.mxu0 (!%p206_p3), %v600_v1  ;;  %v494_v14 = vld [vmem:[%s704_s3] ss:$0 sm:$0xff] (!%p206_p3) }
   0xf   : > { %505 = vmatpush3.bf16.msra.mxu0 (!%p206_p3), %v557_v2 }
  0x10   : > { %s717_s16 = smov (!%p245_p5, %s586_s16), 1  ;;  %s719_s26 = smov (!%p247_p6, %s484_s26), 3  ;;  %506 = vmatprep.subr.bf16.mxu0 %v600_v1 }
  0x11   : > { %s485_s29 = sshll.u32 %s717_s16, 2  ;;  %v282_v6 = vld [vmem:[#allocation2] sm:$0x3]  ;;  %s721_s15 = smov (!%p261_p7, %s582_s15), 1 }
  0x12   : > { %s250_s30 = sadd.s32 %s485_s29, %s719_s26  ;;  %s486_s10 = sshll.u32 %s717_s16, 1 }
  0x13   : > { %507 = vmatpush3.bf16.msra.mxu0 %v558_v3  ;;  %s251_s9 = scalar_lea.vmem %s701_s0, %s250_s30  ;;  %s264_s11 = sadd.s32 %s486_s10, %s721_s15 }
  0x14   : > { %508 = vmatprep.subr.bf16.mxu0 %v600_v1  ;;  %v273_v5 = vld [vmem:[%s251_s9] sm:$0x1]  ;;  %s487_s14 = sshll.u32 %s264_s11, 1 }
  0x15   : > { %s266_s26 = scalar_lea.vmem %s705_s4, %s487_s14 }
  0x17   : > { %509 = vmatpush3.bf16.msra.mxu0 %v559_v4 }
  0x1a   : > { %511 = vmatmul.mubr.msk.bf16.vlgmr.msra.gmra.mrb[0].mxu0 %vm307_vm1, %v273_v5 }
  0xed   : > { %v345_v7 = vpop.f32.mrb[0].mxu0 }
  0xee   : > { %v351_v8 = vadd.f32 %v345_v7, %v282_v6  ;;  %v512_v9 = vpop.f32.mrb[1].mxu0 }
  0xef   : > { %v348_v10 = vpop.f32.mrb[2].mxu0 }
  0xf0   : > { %352 = vst [vmem:[#allocation2] sm:$0x3] %v351_v8  ;;  %v513_v11 = vpop.f32.mrb[3].mxu0 }
  0xf7   : > { %v356_v13 = vld [vmem:[#allocation2] sm:$0x3] }
  0xf8   : > { %v364_v15 = vmul.f32 %v493_v12, %v356_v13 }
  0xfa   : > { %v372_v16 = vadd.f32 %v494_v14, %v364_v15 }
  0xfc   : > { %373 = vst [vmem:[%s266_s26] sm:$0x3] %v372_v16 }
  0xfd PF: > { %s14_s19 = sadd.s32 1, %s598_s19   ;;  %s706_s15 = smov %s590_s17 }
  0xfe   : > { %p11_p8 = scmp.ge.s32.totalorder %s14_s19, 6   ;;  %s707_s16 = smov %s594_s18 }
  0xff   : > { %s708_s17 = smov %s711_s20  ;;  %s709_s18 = smov %s715_s21 }
 0x100   :  { %13 = sbr.rel (!%p11_p8) target bundleno = 3 (0x3), region = 77 }

// kernel: resnet_simclr_forward.32
= control target key start
LH: loop header
LB: loop body
LE: loop exit
PB: predicated region body
PF: predicated region fallthrough
CT: control target
= control target key end

     0   :  { %s1046_s18 = smov 0   ;;  %s1048_s19 = smov 0   ;;  %s1179_s0 = inlined_call_operand.vmem [shape: bf16[2,4,2,384], index: 0, kind: input, shape index: {}]   ;;  %s1180_s1 = inlined_call_operand.vmem [shape: bf16[3,384,128], index: 1, kind: input, shape index: {}]   ;;  %s1181_s2 = inlined_call_operand.vmem [shape: f32[1,128], index: 2, kind: input, shape index: {}]   ;;  %s1182_s3 = inlined_call_operand.vmem [shape: f32[1,128], index: 3, kind: input, shape index: {}]   ;;  %s1183_s4 = inlined_call_operand.vmem [shape: f32[2,2,2,128], index: 4, kind: input, shape index: {}]   ;;  %s1184_s5 = inlined_call_operand.vmem [shape: f32[2,2,2,128], index: 5, kind: output, shape index: {}]  }
   0x1   :  { %s1050_s20 = smov 0   ;;  %s1052_s21 = smov 0  }
   0x2   :  { %s1054_s22 = smov 0   ;;  %s1056_s23 = smov 0  }
   0x3   :  { %s1058_s24 = smov 0  }
   0x4 LB: > { %s27_s25 = sadd.s32 1, %s998_s21  ;;  %s30_s26 = sadd.s32 1, %s1002_s22  ;;  %s1010_s24 = sphi %s1058_s24, %s15_s24   ;;  %s1006_s23 = sphi %s1056_s23, %s1194_s23   ;;  %s1002_s22 = sphi %s1054_s22, %s1193_s22   ;;  %s998_s21 = sphi %s1052_s21, %s1192_s21   ;;  %s994_s20 = sphi %s1050_s20, %s1191_s20   ;;  %s990_s19 = sphi %s1048_s19, %s1190_s19   ;;  %s986_s18 = sphi %s1046_s18, %s1189_s18  }
   0x5   : > { %p28_p0 = scmp.ge.s32.totalorder %s27_s25, 3  ;;  %p781_p1 = scmp.ge.s32.totalorder %s1010_s24, 1 }
   0x6   : > { %p242_p2 = scmp.lt.s32.totalorder %s1010_s24, 13  ;;  %s34_s27 = sadd.s32 1, %s1006_s23 }
   0x7   : > { %s1196_s25 = smov (%p28_p0, %s27_s25), 0  ;;  %s1198_s26 = smov (!%p28_p0, %s30_s26), %s1002_s22 }
   0x8   : > { %p243_p3 = pnand %p781_p1, %p242_p2  ;;  %p32_p4 = scmp.ge.s32.totalorder %s1198_s26, 2 }
   0x9   : > { %s290_s28 = sadd.s32 (!%p243_p3), %s986_s18, %s990_s19  ;;  %p291_p6 = scmp.lt.s32.totalorder (!%p243_p3), %s994_s20, 1 }
   0xa   : > { %s1200_s26 = smov (%p32_p4, %s1198_s26), 0  ;;  %s1202_s27 = smov (!%p32_p4, %s34_s27), %s1006_s23 }
   0xb   : > { %1185 = sst [smem:[#allocation3_spill]] %s1200_s26  ;;  %p36_p5 = scmp.ge.s32.totalorder %s1202_s27, 2 }
   0xc   : > { %246 = sbr.rel (%p243_p3) target bundleno = 301 (0x12d), region = 40  ;;  %p293_p7 = scmp.lt.s32.totalorder (!%p243_p3), %s290_s28, 3 }
   0xd   : > { %s1204_s27 = smov (%p36_p5, %s1202_s27), 0  ;;  %p300_p8 = scmp.lt.s32.totalorder (!%p243_p3), %s986_s18, 2 }
   0xe   : > { %1186 = sst [smem:[#allocation4_spill]] %s1204_s27  ;;  %p307_p9 = scmp.lt.s32.totalorder (!%p243_p3), %s990_s19, 1 }
   0xf   : > { %p787_p10 = scmp.ne.s32.totalorder (!%p243_p3), %s986_s18, 0 }
  0x13   : > { %s1206_s20 = smov (!%p291_p6, %s994_s20), 1  ;;  %s1208_s28 = smov (!%p293_p7, %s290_s28), 3 }
  0x14   : > { %s870_s29 = smul.u32 12, %s1206_s20  ;;  %s783_s8 = sshll.u32 %s1206_s20, 1  ;;  %v1012_v0 = vmov (!%p787_p10), 0.0  }
  0x15   : > { %s869_s30 = smul.u32 3, %s1208_s28  ;;  %s1210_s19 = smov (!%p307_p9, %s990_s19), 1  ;;  %326 = vst [vmem:[#allocation2] sm:$0x3] (!%p787_p10), %v1012_v0 }
  0x16   : > { %s301_s6 = scalar_select %p300_p8, %s986_s18, 2 }
  0x17   : > { %s1097_s7 = sadd.s32 %s870_s29, %s869_s30  ;;  %s310_s16 = sadd.s32 %s783_s8, %s1210_s19 }
  0x18   : > { %s298_s11 = scalar_lea.vmem %s1179_s0, %s1097_s7  ;;  %s871_s12 = smul.u32 192, %s301_s6 }
  0x19   : > { %s784_s17 = sshll.u32 %s310_s16, 1  ;;  %325 = sbr.rel (%p787_p10) target bundleno = 32 (0x20), region = 44 }
  0x1a   : > { %s1107_s15 = scalar_lea.vmem %s1180_s1, %s871_s12  ;;  %s1112_s29 = scalar_lea.vmem %s1183_s4, %s784_s17 }
  0x1b   : > { %s1117_s26 = scalar_lea.vmem %s1184_s5, %s784_s17 }
  0x20 PF: > { %v932_v1 = vld [vmem:[%s1107_s15 + $0x40] sm:$0xff]   ;;  %v1013_v2 = vmov 0.0   ;;  %vm1014_vm0 = vmmov 0   ;;  %v935_v5 = vld [vmem:[%s1107_s15 + $0x48] sm:$0xff]   ;;  %v938_v8 = vld [vmem:[%s1107_s15 + $0x50] sm:$0xff]   ;;  %v389_v22 = vlaneseq  ;;  %p813_p11 = scmp.ne.s32.totalorder %s986_s18, 2 }
  0x21   : > { %849 = vmatprep.subr.bf16.mxu1 %v1013_v2  ;;  %v933_v3 = vld [vmem:[%s1107_s15] sm:$0xff]   ;;  %818 = vmatprep.subr.bf16.mxu0 %v932_v1  ;;  %v936_v6 = vld [vmem:[%s1107_s15 + $0x8] sm:$0xff]   ;;  %v939_v9 = vld [vmem:[%s1107_s15 + $0x10] sm:$0xff]   ;;  %v1015_v26 = vmov 1966171168  }
  0x22   : > { %v934_v4 = vld [vmem:[%s1107_s15 + $0x80] sm:$0xff]   ;;  %865 = vmatprep.mubr.msk.bf16.mxu1 %vm1014_vm0, %v1013_v2  ;;  %819 = vmatpush3.bf16.msra.mxu0 %v933_v3  ;;  %v937_v7 = vld [vmem:[%s1107_s15 + $0x88] sm:$0xff]   ;;  %v940_v10 = vld [vmem:[%s1107_s15 + $0x90] sm:$0xff]   ;;  %v387_v27 = vunpack.c.l.s4 %v1015_v26  ;;  %v390_v28 = vshrl.u32 %v389_v22, 7 }
  0x23   : > { %850 = vmatpush3.bf16.msra.mxu1 %v934_v4  ;;  %820 = vmatprep.subr.bf16.mxu0 %v935_v5  ;;  %v941_v11 = vld [vmem:[%s1107_s15 + $0x58] sm:$0xff]   ;;  %v944_v14 = vld [vmem:[%s1107_s15 + $0x60] sm:$0xff]   ;;  %v947_v17 = vld [vmem:[%s1107_s15 + $0x68] sm:$0xff]  }
  0x24   : > { %851 = vmatprep.subr.bf16.mxu1 %v1013_v2  ;;  %v942_v12 = vld [vmem:[%s1107_s15 + $0x18] sm:$0xff]   ;;  %v945_v15 = vld [vmem:[%s1107_s15 + $0x20] sm:$0xff]   ;;  %v948_v18 = vld [vmem:[%s1107_s15 + $0x28] sm:$0xff]   ;;  %v388_v31 = vunpack.c.0.s8 %v387_v27 }
  0x25   : > { %v943_v13 = vld [vmem:[%s1107_s15 + $0x98] sm:$0xff]   ;;  %v946_v16 = vld [vmem:[%s1107_s15 + $0xa0] sm:$0xff]   ;;  %v949_v19 = vld [vmem:[%s1107_s15 + $0xa8] sm:$0xff]  }
  0x26   : > { %821 = vmatpush3.bf16.msra.mxu0 %v936_v6  ;;  %v950_v20 = vld [vmem:[%s1107_s15 + $0x70] sm:$0xff]   ;;  %v953_v24 = vld [vmem:[%s1107_s15 + $0x78] sm:$0xff]   ;;  %v788_v25 = vld.sshfl [vmem:[%s298_s11] sm:$0x13 pattern:$0x75316420]  ;;  %v391_v33 = vsub.s32 %v388_v31, %v390_v28 }
  0x27   : > { %852 = vmatpush3.bf16.msra.mxu1 %v937_v7  ;;  %822 = vmatprep.subr.bf16.mxu0 %v938_v8  ;;  %v951_v21 = vld [vmem:[%s1107_s15 + $0x30] sm:$0xff]   ;;  %v954_v29 = vld [vmem:[%s1107_s15 + $0x38] sm:$0xff]   ;;  %v385_v30 = vcombine.high %v788_v25, %v788_v25  ;;  %v376_v43 = vld [vmem:[#allocation2] sm:$0x3] }
  0x28   : > { %853 = vmatprep.subr.bf16.mxu1 %v1013_v2  ;;  %v952_v23 = vld [vmem:[%s1107_s15 + $0xb0] sm:$0xff]   ;;  %v955_v32 = vld [vmem:[%s1107_s15 + $0xb8] sm:$0xff]   ;;  %v392_v35 = vrot.slane %v788_v25, %v391_v33  ;;  %v814_v50 = vld [vmem:[%s1181_s2] ss:$0 sm:$0xff] (!%p813_p11) }
  0x29   : > { %v399_v34 = vrot.slane %v385_v30, %v391_v33  ;;  %v815_v51 = vld [vmem:[%s1182_s3] ss:$0 sm:$0xff] (!%p813_p11) }
  0x2a   : > { %823 = vmatpush3.bf16.msra.mxu0 %v939_v9  ;;  %v400_v36 = vcombine.high %v392_v35, %v392_v35  ;;  %v651_v53 = vld [vmem:[%s1112_s29] sm:$0x3] (!%p813_p11) }
  0x2b   : > { %854 = vmatpush3.bf16.msra.mxu1 %v940_v10  ;;  %824 = vmatprep.subr.bf16.mxu0 %v941_v11 }
  0x2c   : > { %855 = vmatprep.subr.bf16.mxu1 %v1013_v2  ;;  %580 = vmatprep.mubr.bf16.mxu0 %v399_v34 }
  0x2e   : > { %825 = vmatpush3.bf16.msra.mxu0 %v942_v12 }
  0x2f   : > { %856 = vmatpush3.bf16.msra.mxu1 %v943_v13  ;;  %826 = vmatprep.subr.bf16.mxu0 %v944_v14 }
  0x30   : > { %857 = vmatprep.subr.bf16.mxu1 %v1013_v2 }
  0x32   : > { %827 = vmatpush3.bf16.msra.mxu0 %v945_v15 }
  0x33   : > { %858 = vmatpush3.bf16.msra.mxu1 %v946_v16  ;;  %828 = vmatprep.subr.bf16.mxu0 %v947_v17 }
  0x34   : > { %859 = vmatprep.subr.bf16.mxu1 %v1013_v2 }
  0x36   : > { %829 = vmatpush3.bf16.msra.mxu0 %v948_v18 }
  0x37   : > { %860 = vmatpush3.bf16.msra.mxu1 %v949_v19  ;;  %830 = vmatprep.subr.bf16.mxu0 %v950_v20 }
  0x38   : > { %861 = vmatprep.subr.bf16.mxu1 %v1013_v2 }
  0x3a   : > { %831 = vmatpush3.bf16.msra.mxu0 %v951_v21 }
  0x3b   : > { %862 = vmatpush3.bf16.msra.mxu1 %v952_v23  ;;  %832 = vmatprep.subr.bf16.mxu0 %v953_v24 }
  0x3c   : > { %863 = vmatprep.subr.bf16.mxu1 %v1013_v2 }
  0x3e   : > { %833 = vmatpush3.bf16.msra.mxu0 %v954_v29 }
  0x3f   : > { %864 = vmatpush3.bf16.msra.mxu1 %v955_v32 }
  0x41   : > { %581 = vmatmul.mubr.bf16.vlgmr.msra.gmra.mrb[0].mxu0 %v392_v35 }
  0x42   : > { %866 = vmatmul.mubr.bf16.vlgmr.msra.gmra.mrb[0].mxu1 %v400_v36 }
 0x114   : > { %v834_v37 = vpop.f32.mrb[0].mxu0 }
 0x115   : > { %v622_v38 = vpop.f32.mrb[0].mxu1  ;;  %v835_v39 = vpop.f32.mrb[1].mxu0 }
 0x116   : > { %v836_v40 = vadd.f32 %v835_v39, %v834_v37  ;;  %v867_v41 = vpop.f32.mrb[1].mxu1  ;;  %v837_v42 = vpop.f32.mrb[2].mxu0  ;;  %633 = sbr.rel (%p813_p11) target bundleno = 301 (0x12d), region = 48 }
 0x117   : > { %v625_v44 = vpop.f32.mrb[2].mxu1  ;;  %v838_v45 = vpop.f32.mrb[3].mxu0 }
 0x118   : > { %v623_v46 = vadd.f32 %v836_v40, %v622_v38  ;;  %v868_v47 = vpop.f32.mrb[3].mxu1 }
 0x11a   : > { %v628_v48 = vadd.f32 %v623_v46, %v376_v43 }
 0x11c   : > { %629 = vst [vmem:[#allocation2] sm:$0x3] %v628_v48 }
 0x123   : > { %v634_v49 = vld [vmem:[#allocation2] sm:$0x3] }
 0x124   : > { %v642_v52 = vmul.f32 %v814_v50, %v634_v49 }
 0x126   : > { %v650_v54 = vadd.f32 %v815_v51, %v642_v52 }
 0x128   : > { %v652_v55 = vadd.f32 %v651_v53, %v650_v54 }
 0x12a   : > { %v653_v56 = vmax.f32 %v652_v55, 0.0 }
 0x12c   : > { %654 = vst [vmem:[%s1117_s26] sm:$0x3] %v653_v56 }
 0x12d PF: > { %s15_s24 = sadd.s32 1, %s1010_s24   ;;  %s1187_s10 = sld [smem:[#allocation3_spill]] }
 0x12e   : > { %p12_p12 = scmp.ge.s32.totalorder %s15_s24, 14   ;;  %s1188_s11 = sld [smem:[#allocation4_spill]] }
 0x12f   : > { %s1189_s18 = smov %s998_s21  ;;  %s1190_s19 = smov %s1002_s22 }
 0x130   : > { %s1191_s20 = smov %s1006_s23  ;;  %s1192_s21 = smov %s1196_s25 }
 0x131   :  { %14 = sbr.rel (!%p12_p12) target bundleno = 4 (0x4), region = 84 }
 0x133   : > { %s1193_s22 = smov %s1187_s10 }
 0x134   : > { %s1194_s23 = smov %s1188_s11 }

// kernel: resnet_simclr_forward.33
= control target key start
LH: loop header
LB: loop body
LE: loop exit
PB: predicated region body
PF: predicated region fallthrough
CT: control target
= control target key end

     0   :  { %s961_s15 = smov 0   ;;  %s963_s16 = smov 0   ;;  %s1088_s0 = inlined_call_operand.vmem [shape: bf16[2,4,2,384], index: 0, kind: input, shape index: {}]   ;;  %s1089_s1 = inlined_call_operand.vmem [shape: bf16[3,384,128], index: 1, kind: input, shape index: {}]   ;;  %s1090_s2 = inlined_call_operand.vmem [shape: f32[1,128], index: 2, kind: input, shape index: {}]   ;;  %s1091_s3 = inlined_call_operand.vmem [shape: f32[1,128], index: 3, kind: input, shape index: {}]   ;;  %s1092_s4 = inlined_call_operand.vmem [shape: f32[2,2,2,128], index: 4, kind: output, shape index: {}]  }
   0x1   :  { %s965_s17 = smov 0   ;;  %s967_s18 = smov 0  }
   0x2   :  { %s969_s19 = smov 0   ;;  %s971_s20 = smov 0  }
   0x3   :  { %s973_s21 = smov 0  }
   0x4 LB: > { %s26_s22 = sadd.s32 1, %s918_s18  ;;  %s29_s23 = sadd.s32 1, %s922_s19  ;;  %s930_s21 = sphi %s973_s21, %s14_s21   ;;  %s926_s20 = sphi %s971_s20, %s1098_s20   ;;  %s922_s19 = sphi %s969_s19, %s1097_s19   ;;  %s918_s18 = sphi %s967_s18, %s1096_s18   ;;  %s914_s17 = sphi %s965_s17, %s1095_s17   ;;  %s910_s16 = sphi %s963_s16, %s1094_s16   ;;  %s906_s15 = sphi %s961_s15, %s1093_s15  }
   0x5   : > { %p27_p0 = scmp.ge.s32.totalorder %s26_s22, 3  ;;  %p703_p1 = scmp.ge.s32.totalorder %s930_s21, 1 }
   0x6   : > { %p202_p2 = scmp.lt.s32.totalorder %s930_s21, 13  ;;  %s33_s24 = sadd.s32 1, %s926_s20 }
   0x7   : > { %s1100_s22 = smov (%p27_p0, %s26_s22), 0  ;;  %s1102_s23 = smov (!%p27_p0, %s29_s23), %s922_s19 }
   0x8   : > { %p203_p3 = pnand %p703_p1, %p202_p2  ;;  %p31_p4 = scmp.ge.s32.totalorder %s1102_s23, 2 }
   0x9   : > { %s240_s25 = sadd.s32 (!%p203_p3), %s906_s15, %s910_s16  ;;  %p241_p6 = scmp.lt.s32.totalorder (!%p203_p3), %s914_s17, 1 }
   0xa   : > { %s1104_s23 = smov (%p31_p4, %s1102_s23), 0  ;;  %s1106_s24 = smov (!%p31_p4, %s33_s24), %s926_s20 }
   0xb   : > { %p35_p5 = scmp.ge.s32.totalorder %s1106_s24, 2  ;;  %206 = sbr.rel (%p203_p3) target bundleno = 298 (0x12a), region = 36 }
   0xc   : > { %p243_p7 = scmp.lt.s32.totalorder (!%p203_p3), %s240_s25, 3  ;;  %p250_p8 = scmp.lt.s32.totalorder (!%p203_p3), %s906_s15, 2 }
   0xd   : > { %s1108_s24 = smov (%p35_p5, %s1106_s24), 0  ;;  %p257_p9 = scmp.lt.s32.totalorder (!%p203_p3), %s910_s16, 1 }
   0xe   : > { %p707_p10 = scmp.ne.s32.totalorder (!%p203_p3), %s906_s15, 0 }
  0x12   : > { %s1110_s17 = smov (!%p241_p6, %s914_s17), 1  ;;  %s1112_s25 = smov (!%p243_p7, %s240_s25), 3 }
  0x13   : > { %s790_s26 = smul.u32 12, %s1110_s17  ;;  %s705_s30 = sshll.u32 %s1110_s17, 1  ;;  %v932_v0 = vmov (!%p707_p10), 0.0  }
  0x14   : > { %s789_s27 = smul.u32 3, %s1112_s25  ;;  %s1114_s16 = smov (!%p257_p9, %s910_s16), 1  ;;  %268 = vst [vmem:[#allocation2] sm:$0x3] (!%p707_p10), %v932_v0 }
  0x15   : > { %s251_s28 = scalar_select %p250_p8, %s906_s15, 2 }
  0x16   : > { %s1012_s29 = sadd.s32 %s790_s26, %s789_s27  ;;  %s260_s12 = sadd.s32 %s705_s30, %s1114_s16 }
  0x17   : > { %s248_s7 = scalar_lea.vmem %s1088_s0, %s1012_s29  ;;  %s791_s8 = smul.u32 192, %s251_s28 }
  0x18   : > { %s706_s13 = sshll.u32 %s260_s12, 1  ;;  %267 = sbr.rel (%p707_p10) target bundleno = 31 (0x1f), region = 40 }
  0x19   : > { %s1022_s11 = scalar_lea.vmem %s1089_s1, %s791_s8  ;;  %s1027_s26 = scalar_lea.vmem %s1092_s4, %s706_s13 }
  0x1f PF: > { %v852_v1 = vld [vmem:[%s1022_s11 + $0x40] sm:$0xff]   ;;  %v933_v2 = vmov 0.0   ;;  %vm934_vm0 = vmmov 0   ;;  %v855_v5 = vld [vmem:[%s1022_s11 + $0x48] sm:$0xff]   ;;  %v858_v8 = vld [vmem:[%s1022_s11 + $0x50] sm:$0xff]   ;;  %v331_v22 = vlaneseq  ;;  %p733_p11 = scmp.ne.s32.totalorder %s906_s15, 2 }
  0x20   : > { %769 = vmatprep.subr.bf16.mxu1 %v933_v2  ;;  %v853_v3 = vld [vmem:[%s1022_s11] sm:$0xff]   ;;  %738 = vmatprep.subr.bf16.mxu0 %v852_v1  ;;  %v856_v6 = vld [vmem:[%s1022_s11 + $0x8] sm:$0xff]   ;;  %v859_v9 = vld [vmem:[%s1022_s11 + $0x10] sm:$0xff]   ;;  %v935_v26 = vmov 1966171168  }
  0x21   : > { %v854_v4 = vld [vmem:[%s1022_s11 + $0x80] sm:$0xff]   ;;  %785 = vmatprep.mubr.msk.bf16.mxu1 %vm934_vm0, %v933_v2  ;;  %739 = vmatpush3.bf16.msra.mxu0 %v853_v3  ;;  %v857_v7 = vld [vmem:[%s1022_s11 + $0x88] sm:$0xff]   ;;  %v860_v10 = vld [vmem:[%s1022_s11 + $0x90] sm:$0xff]   ;;  %v329_v27 = vunpack.c.l.s4 %v935_v26  ;;  %v332_v28 = vshrl.u32 %v331_v22, 7 }
  0x22   : > { %770 = vmatpush3.bf16.msra.mxu1 %v854_v4  ;;  %740 = vmatprep.subr.bf16.mxu0 %v855_v5  ;;  %v861_v11 = vld [vmem:[%s1022_s11 + $0x58] sm:$0xff]   ;;  %v864_v14 = vld [vmem:[%s1022_s11 + $0x60] sm:$0xff]   ;;  %v867_v17 = vld [vmem:[%s1022_s11 + $0x68] sm:$0xff]  }
  0x23   : > { %771 = vmatprep.subr.bf16.mxu1 %v933_v2  ;;  %v862_v12 = vld [vmem:[%s1022_s11 + $0x18] sm:$0xff]   ;;  %v865_v15 = vld [vmem:[%s1022_s11 + $0x20] sm:$0xff]   ;;  %v868_v18 = vld [vmem:[%s1022_s11 + $0x28] sm:$0xff]   ;;  %v330_v31 = vunpack.c.0.s8 %v329_v27 }
  0x24   : > { %v863_v13 = vld [vmem:[%s1022_s11 + $0x98] sm:$0xff]   ;;  %v866_v16 = vld [vmem:[%s1022_s11 + $0xa0] sm:$0xff]   ;;  %v869_v19 = vld [vmem:[%s1022_s11 + $0xa8] sm:$0xff]  }
  0x25   : > { %741 = vmatpush3.bf16.msra.mxu0 %v856_v6  ;;  %v870_v20 = vld [vmem:[%s1022_s11 + $0x70] sm:$0xff]   ;;  %v873_v24 = vld [vmem:[%s1022_s11 + $0x78] sm:$0xff]   ;;  %v708_v25 = vld.sshfl [vmem:[%s248_s7] sm:$0x13 pattern:$0x75316420]  ;;  %v333_v33 = vsub.s32 %v330_v31, %v332_v28 }
  0x26   : > { %772 = vmatpush3.bf16.msra.mxu1 %v857_v7  ;;  %742 = vmatprep.subr.bf16.mxu0 %v858_v8  ;;  %v871_v21 = vld [vmem:[%s1022_s11 + $0x30] sm:$0xff]   ;;  %v874_v29 = vld [vmem:[%s1022_s11 + $0x38] sm:$0xff]   ;;  %v327_v30 = vcombine.high %v708_v25, %v708_v25  ;;  %v318_v43 = vld [vmem:[#allocation2] sm:$0x3] }
  0x27   : > { %773 = vmatprep.subr.bf16.mxu1 %v933_v2  ;;  %v872_v23 = vld [vmem:[%s1022_s11 + $0xb0] sm:$0xff]   ;;  %v875_v32 = vld [vmem:[%s1022_s11 + $0xb8] sm:$0xff]   ;;  %v334_v35 = vrot.slane %v708_v25, %v333_v33  ;;  %v734_v50 = vld [vmem:[%s1090_s2] ss:$0 sm:$0xff] (!%p733_p11) }
  0x28   : > { %v341_v34 = vrot.slane %v327_v30, %v333_v33  ;;  %v735_v51 = vld [vmem:[%s1091_s3] ss:$0 sm:$0xff] (!%p733_p11) }
  0x29   : > { %743 = vmatpush3.bf16.msra.mxu0 %v859_v9  ;;  %v342_v36 = vcombine.high %v334_v35, %v334_v35 }
  0x2a   : > { %774 = vmatpush3.bf16.msra.mxu1 %v860_v10  ;;  %744 = vmatprep.subr.bf16.mxu0 %v861_v11 }
  0x2b   : > { %775 = vmatprep.subr.bf16.mxu1 %v933_v2  ;;  %522 = vmatprep.mubr.bf16.mxu0 %v341_v34 }
  0x2d   : > { %745 = vmatpush3.bf16.msra.mxu0 %v862_v12 }
  0x2e   : > { %776 = vmatpush3.bf16.msra.mxu1 %v863_v13  ;;  %746 = vmatprep.subr.bf16.mxu0 %v864_v14 }
  0x2f   : > { %777 = vmatprep.subr.bf16.mxu1 %v933_v2 }
  0x31   : > { %747 = vmatpush3.bf16.msra.mxu0 %v865_v15 }
  0x32   : > { %778 = vmatpush3.bf16.msra.mxu1 %v866_v16  ;;  %748 = vmatprep.subr.bf16.mxu0 %v867_v17 }
  0x33   : > { %779 = vmatprep.subr.bf16.mxu1 %v933_v2 }
  0x35   : > { %749 = vmatpush3.bf16.msra.mxu0 %v868_v18 }
  0x36   : > { %780 = vmatpush3.bf16.msra.mxu1 %v869_v19  ;;  %750 = vmatprep.subr.bf16.mxu0 %v870_v20 }
  0x37   : > { %781 = vmatprep.subr.bf16.mxu1 %v933_v2 }
  0x39   : > { %751 = vmatpush3.bf16.msra.mxu0 %v871_v21 }
  0x3a   : > { %782 = vmatpush3.bf16.msra.mxu1 %v872_v23  ;;  %752 = vmatprep.subr.bf16.mxu0 %v873_v24 }
  0x3b   : > { %783 = vmatprep.subr.bf16.mxu1 %v933_v2 }
  0x3d   : > { %753 = vmatpush3.bf16.msra.mxu0 %v874_v29 }
  0x3e   : > { %784 = vmatpush3.bf16.msra.mxu1 %v875_v32 }
  0x40   : > { %523 = vmatmul.mubr.bf16.vlgmr.msra.gmra.mrb[0].mxu0 %v334_v35 }
  0x41   : > { %786 = vmatmul.mubr.bf16.vlgmr.msra.gmra.mrb[0].mxu1 %v342_v36 }
 0x113   : > { %v754_v37 = vpop.f32.mrb[0].mxu0 }
 0x114   : > { %v564_v38 = vpop.f32.mrb[0].mxu1  ;;  %v755_v39 = vpop.f32.mrb[1].mxu0 }
 0x115   : > { %v756_v40 = vadd.f32 %v755_v39, %v754_v37  ;;  %v787_v41 = vpop.f32.mrb[1].mxu1  ;;  %v757_v42 = vpop.f32.mrb[2].mxu0  ;;  %575 = sbr.rel (%p733_p11) target bundleno = 298 (0x12a), region = 44 }
 0x116   : > { %v567_v44 = vpop.f32.mrb[2].mxu1  ;;  %v758_v45 = vpop.f32.mrb[3].mxu0 }
 0x117   : > { %v565_v46 = vadd.f32 %v756_v40, %v564_v38  ;;  %v788_v47 = vpop.f32.mrb[3].mxu1 }
 0x119   : > { %v570_v48 = vadd.f32 %v565_v46, %v318_v43 }
 0x11b   : > { %571 = vst [vmem:[#allocation2] sm:$0x3] %v570_v48 }
 0x122   : > { %v576_v49 = vld [vmem:[#allocation2] sm:$0x3] }
 0x123   : > { %v584_v52 = vmul.f32 %v734_v50, %v576_v49 }
 0x125   : > { %v592_v53 = vadd.f32 %v735_v51, %v584_v52 }
 0x127   : > { %v593_v54 = vmax.f32 %v592_v53, 0.0 }
 0x129   : > { %594 = vst [vmem:[%s1027_s26] sm:$0x3] %v593_v54 }
 0x12a PF: > { %s14_s21 = sadd.s32 1, %s930_s21   ;;  %s1093_s15 = smov %s918_s18 }
 0x12b   : > { %p11_p12 = scmp.ge.s32.totalorder %s14_s21, 14   ;;  %s1094_s16 = smov %s922_s19 }
 0x12c   : > { %s1095_s17 = smov %s926_s20  ;;  %s1096_s18 = smov %s1100_s22 }
 0x12d   : > { %s1097_s19 = smov %s1104_s23  ;;  %s1098_s20 = smov %s1108_s24 }
 0x12e   :  { %13 = sbr.rel (!%p11_p12) target bundleno = 4 (0x4), region = 77 }

// kernel: resnet_simclr_forward.35
= control target key start
LH: loop header
LB: loop body
LE: loop exit
PB: predicated region body
PF: predicated region fallthrough
CT: control target
= control target key end

     0   :  { %s1063_s15 = smov 0   ;;  %s1065_s16 = smov 0   ;;  %s1194_s0 = inlined_call_operand.vmem [shape: bf16[2,4,1,384], index: 0, kind: input, shape index: {}]   ;;  %s1195_s1 = inlined_call_operand.vmem [shape: bf16[3,384,256], index: 1, kind: input, shape index: {}]   ;;  %s1196_s2 = inlined_call_operand.vmem [shape: f32[1,256], index: 2, kind: input, shape index: {}]   ;;  %s1197_s3 = inlined_call_operand.vmem [shape: f32[1,256], index: 3, kind: input, shape index: {}]   ;;  %s1198_s4 = inlined_call_operand.vmem [shape: f32[2,1,1,256], index: 4, kind: output, shape index: {}]  }
   0x1   :  { %s1067_s17 = smov 0   ;;  %s1069_s18 = smov 0  }
   0x2   :  { %s1071_s19 = smov 0  }
   0x3 LB: > { %s26_s20 = sadd.s32 1, %s1025_s17  ;;  %s33_s21 = sadd.s32 1, %s1029_s18  ;;  %s1033_s19 = sphi %s1071_s19, %s14_s19   ;;  %s1029_s18 = sphi %s1069_s18, %s1202_s18   ;;  %s1025_s17 = sphi %s1067_s17, %s1201_s17   ;;  %s1021_s16 = sphi %s1065_s16, %s1200_s16   ;;  %s1017_s15 = sphi %s1063_s15, %s1199_s15  }
   0x4   : > { %p27_p0 = scmp.ge.s32.totalorder %s26_s20, 3  ;;  %p819_p1 = scmp.ge.s32.totalorder %s1033_s19, 1 }
   0x5   : > { %p206_p2 = scmp.lt.s32.totalorder %s1033_s19, 7 }
   0x6   : > { %s1204_s20 = smov (%p27_p0, %s26_s20), 0  ;;  %s1206_s21 = smov (!%p27_p0, %s33_s21), %s1029_s18 }
   0x7   : > { %p207_p3 = pnand %p819_p1, %p206_p2  ;;  %p35_p4 = scmp.ge.s32.totalorder %s1206_s21, 2 }
   0x8   : > { %p247_p5 = scmp.lt.s32.totalorder (!%p207_p3), %s1021_s16, 1  ;;  %p249_p6 = scmp.lt.s32.totalorder (!%p207_p3), %s1017_s15, 3 }
   0x9   : > { %s1208_s21 = smov (%p35_p4, %s1206_s21), 0  ;;  %210 = sbr.rel (%p207_p3) target bundleno = 331 (0x14b), region = 36 }
   0xa   : > { %p257_p7 = scmp.lt.s32.totalorder (!%p207_p3), %s1017_s15, 2  ;;  %p822_p8 = scmp.ne.s32.totalorder (!%p207_p3), %s1017_s15, 0 }
  0x10   : > { %s1210_s16 = smov (!%p247_p5, %s1021_s16), 1  ;;  %v275_v0 = vlaneseq (!%p822_p8)  ;;  %v1035_v1 = vmov (!%p822_p8), 0.0  }
  0x11   : > { %s250_s22 = scalar_select %p249_p6, %s1017_s15, 3 }
  0x12   : > { %s878_s23 = smul.u32 12, %s1210_s16  ;;  %s821_s24 = sshll.u32 %s1210_s16, 1  ;;  %vm277_vm0 = vcmp.lt.s32.totalorder (!%p822_p8), %v275_v0, 256 }
  0x13   : > { %s877_s25 = smul.u32 3, %s250_s22  ;;  %s1101_s28 = scalar_lea.vmem %s1198_s4, %s821_s24  ;;  %279 = vst.msk [vmem:[#allocation2] sm:$0x3] (!%p822_p8), %vm277_vm0, %v1035_v1 }
  0x14   : > { %s258_s29 = scalar_select %p257_p7, %s1017_s15, 2 }
  0x15   : > { %s1104_s30 = sadd.s32 %s878_s23, %s877_s25  ;;  %274 = sbr.rel (%p822_p8) target bundleno = 28 (0x1c), region = 40 }
  0x16   : > { %s254_s7 = scalar_lea.vmem %s1194_s0, %s1104_s30  ;;  %s879_s8 = smul.u32 384, %s258_s29 }
  0x18   : > { %s1113_s11 = scalar_lea.vmem %s1195_s1, %s879_s8 }
  0x1c PF: > { %v923_v2 = vld [vmem:[%s1113_s11 + $0x4] ss:$8 sps:$4 sm:$0xff]   ;;  %v925_v3 = vld [vmem:[%s1113_s11] ss:$8 sps:$4 sm:$0xff]   ;;  %v1036_v4 = vmov 0   ;;  %v342_v29 = vlaneseq  ;;  %p872_p9 = scmp.ne.s32.totalorder %s1017_s15, 2 }
  0x1d   : > { %670 = vmatprep.mubr.bf16.mxu0 %v1036_v4  ;;  %597 = vmatprep.subr.bf16.mxu1 %v923_v2  ;;  %v926_v5 = vld [vmem:[%s1113_s11 + $0x14] ss:$8 sps:$4 sm:$0xff]   ;;  %v928_v6 = vld [vmem:[%s1113_s11 + $0x10] ss:$8 sps:$4 sm:$0xff]   ;;  %v929_v7 = vld [vmem:[%s1113_s11 + $0x24] ss:$8 sps:$4 sm:$0xff]  }
  0x1e   : > { %598 = vmatpush1.bf16.msra.mxu1 %v925_v3  ;;  %v931_v8 = vld [vmem:[%s1113_s11 + $0x20] ss:$8 sps:$4 sm:$0xff]   ;;  %v932_v9 = vld [vmem:[%s1113_s11 + $0x34] ss:$8 sps:$4 sm:$0xff]   ;;  %v934_v10 = vld [vmem:[%s1113_s11 + $0x30] ss:$8 sps:$4 sm:$0xff]  }
  0x1f   : > { %599 = vmatprep.subr.bf16.mxu1 %v926_v5  ;;  %v947_v11 = vld [vmem:[%s1113_s11 + $0x104] ss:$8 sps:$4 sm:$0xff]   ;;  %v949_v12 = vld [vmem:[%s1113_s11 + $0x100] ss:$8 sps:$4 sm:$0xff]   ;;  %v953_v14 = vld [vmem:[%s1113_s11 + $0x114] ss:$8 sps:$4 sm:$0xff]  }
  0x20   : > { %v935_v13 = vld [vmem:[%s1113_s11 + $0x44] ss:$8 sps:$4 sm:$0xff]   ;;  %638 = vmatprep.subr.bf16.mxu0 %v947_v11  ;;  %v955_v15 = vld [vmem:[%s1113_s11 + $0x110] ss:$8 sps:$4 sm:$0xff]   ;;  %v937_v16 = vld [vmem:[%s1113_s11 + $0x40] ss:$8 sps:$4 sm:$0xff]  }
  0x21   : > { %639 = vmatpush1.bf16.msra.mxu0 %v949_v12  ;;  %v938_v17 = vld [vmem:[%s1113_s11 + $0x54] ss:$8 sps:$4 sm:$0xff]   ;;  %v959_v18 = vld [vmem:[%s1113_s11 + $0x124] ss:$8 sps:$4 sm:$0xff]   ;;  %v961_v19 = vld [vmem:[%s1113_s11 + $0x120] ss:$8 sps:$4 sm:$0xff]  }
  0x22   : > { %600 = vmatpush1.bf16.msra.mxu1 %v928_v6  ;;  %640 = vmatprep.subr.bf16.mxu0 %v953_v14  ;;  %v940_v20 = vld [vmem:[%s1113_s11 + $0x50] ss:$8 sps:$4 sm:$0xff]   ;;  %v965_v21 = vld [vmem:[%s1113_s11 + $0x134] ss:$8 sps:$4 sm:$0xff]   ;;  %v941_v22 = vld [vmem:[%s1113_s11 + $0x64] ss:$8 sps:$4 sm:$0xff]  }
  0x23   : > { %601 = vmatprep.subr.bf16.mxu1 %v929_v7  ;;  %v967_v23 = vld [vmem:[%s1113_s11 + $0x130] ss:$8 sps:$4 sm:$0xff]   ;;  %v943_v24 = vld [vmem:[%s1113_s11 + $0x60] ss:$8 sps:$4 sm:$0xff]   ;;  %v971_v25 = vld [vmem:[%s1113_s11 + $0x144] ss:$8 sps:$4 sm:$0xff]  }
  0x24   : > { %v944_v26 = vld [vmem:[%s1113_s11 + $0x74] ss:$8 sps:$4 sm:$0xff]   ;;  %v1037_v27 = vmov 1966171168   ;;  %v973_v30 = vld [vmem:[%s1113_s11 + $0x140] ss:$8 sps:$4 sm:$0xff]  }
  0x25   : > { %641 = vmatpush1.bf16.msra.mxu0 %v955_v15  ;;  %v340_v28 = vunpack.c.l.s4 %v1037_v27  ;;  %v946_v31 = vld [vmem:[%s1113_s11 + $0x70] ss:$8 sps:$4 sm:$0xff]   ;;  %v977_v32 = vld [vmem:[%s1113_s11 + $0x154] ss:$8 sps:$4 sm:$0xff]   ;;  %v950_v33 = vld [vmem:[%s1113_s11 + $0x84] ss:$8 sps:$4 sm:$0xff]  }
  0x26   : > { %602 = vmatpush1.bf16.msra.mxu1 %v931_v8  ;;  %642 = vmatprep.subr.bf16.mxu0 %v959_v18  ;;  %v343_v35 = vshrl.u32 %v342_v29, 7  ;;  %v979_v36 = vld [vmem:[%s1113_s11 + $0x150] ss:$8 sps:$4 sm:$0xff]   ;;  %v952_v37 = vld [vmem:[%s1113_s11 + $0x80] ss:$8 sps:$4 sm:$0xff]   ;;  %vm700_vm1 = vcmp.lt.s32.totalorder %v342_v29, 256 }
  0x27   : > { %603 = vmatprep.subr.bf16.mxu1 %v932_v9  ;;  %v341_v34 = vunpack.c.0.s8 %v340_v28  ;;  %v983_v38 = vld [vmem:[%s1113_s11 + $0x164] ss:$8 sps:$4 sm:$0xff]   ;;  %v956_v39 = vld [vmem:[%s1113_s11 + $0x94] ss:$8 sps:$4 sm:$0xff]   ;;  %v985_v43 = vld [vmem:[%s1113_s11 + $0x160] ss:$8 sps:$4 sm:$0xff]  }
  0x28   : > { %v823_v40 = vld.sshfl [vmem:[%s254_s7] sm:$0x13 pattern:$0x75316420]  ;;  %v958_v44 = vld [vmem:[%s1113_s11 + $0x90] ss:$8 sps:$4 sm:$0xff]  }
  0x29   : > { %643 = vmatpush1.bf16.msra.mxu0 %v961_v19  ;;  %v344_v41 = vsub.s32 %v341_v34, %v343_v35  ;;  %v338_v42 = vcombine.high %v823_v40, %v823_v40  ;;  %v989_v45 = vld [vmem:[%s1113_s11 + $0x174] ss:$8 sps:$4 sm:$0xff]   ;;  %v962_v47 = vld [vmem:[%s1113_s11 + $0xa4] ss:$8 sps:$4 sm:$0xff]   ;;  %v991_v49 = vld [vmem:[%s1113_s11 + $0x170] ss:$8 sps:$4 sm:$0xff]  }
  0x2a   : > { %604 = vmatpush1.bf16.msra.mxu1 %v934_v10  ;;  %644 = vmatprep.subr.bf16.mxu0 %v965_v21  ;;  %v964_v50 = vld [vmem:[%s1113_s11 + $0xa0] ss:$8 sps:$4 sm:$0xff]   ;;  %v968_v51 = vld [vmem:[%s1113_s11 + $0xb4] ss:$8 sps:$4 sm:$0xff]   ;;  %v970_v53 = vld [vmem:[%s1113_s11 + $0xb0] ss:$8 sps:$4 sm:$0xff]  }
  0x2b   : > { %605 = vmatprep.subr.bf16.mxu1 %v935_v13  ;;  %v352_v46 = vrot.slane %v338_v42, %v344_v41  ;;  %v345_v48 = vrot.slane %v823_v40, %v344_v41  ;;  %v974_v54 = vld [vmem:[%s1113_s11 + $0xc4] ss:$8 sps:$4 sm:$0xff]   ;;  %v976_v55 = vld [vmem:[%s1113_s11 + $0xc0] ss:$8 sps:$4 sm:$0xff]   ;;  %v980_v56 = vld [vmem:[%s1113_s11 + $0xd4] ss:$8 sps:$4 sm:$0xff]  }
  0x2c   : > { %v982_v57 = vld [vmem:[%s1113_s11 + $0xd0] ss:$8 sps:$4 sm:$0xff]   ;;  %v986_v58 = vld [vmem:[%s1113_s11 + $0xe4] ss:$8 sps:$4 sm:$0xff]   ;;  %v988_v59 = vld [vmem:[%s1113_s11 + $0xe0] ss:$8 sps:$4 sm:$0xff]  }
  0x2d   : > { %645 = vmatpush1.bf16.msra.mxu0 %v967_v23  ;;  %629 = vmatprep.mubr.bf16.mxu1 %v352_v46  ;;  %v353_v52 = vcombine.high %v345_v48, %v345_v48  ;;  %v992_v60 = vld [vmem:[%s1113_s11 + $0xf4] ss:$8 sps:$4 sm:$0xff]   ;;  %v994_v61 = vld [vmem:[%s1113_s11 + $0xf0] ss:$8 sps:$4 sm:$0xff]   ;;  %v329_v10 = vld [vmem:[#allocation2] sm:$0x3] }
  0x2e   : > { %606 = vmatpush1.bf16.msra.mxu1 %v937_v16  ;;  %646 = vmatprep.subr.bf16.mxu0 %v971_v25  ;;  %v708_v14 = vld [vmem:[%s1196_s2] sm:$0x3] (!%p872_p9) }
  0x2f   : > { %607 = vmatprep.subr.bf16.mxu1 %v938_v17  ;;  %v710_v15 = vld [vmem:[%s1197_s3] sm:$0x3] (!%p872_p9) }
  0x31   : > { %647 = vmatpush1.bf16.msra.mxu0 %v973_v30 }
  0x32   : > { %608 = vmatpush1.bf16.msra.mxu1 %v940_v20  ;;  %648 = vmatprep.subr.bf16.mxu0 %v977_v32 }
  0x33   : > { %609 = vmatprep.subr.bf16.mxu1 %v941_v22 }
  0x35   : > { %649 = vmatpush1.bf16.msra.mxu0 %v979_v36 }
  0x36   : > { %610 = vmatpush1.bf16.msra.mxu1 %v943_v24  ;;  %650 = vmatprep.subr.bf16.mxu0 %v983_v38 }
  0x37   : > { %611 = vmatprep.subr.bf16.mxu1 %v944_v26 }
  0x39   : > { %651 = vmatpush1.bf16.msra.mxu0 %v985_v43 }
  0x3a   : > { %612 = vmatpush1.bf16.msra.mxu1 %v946_v31  ;;  %652 = vmatprep.subr.bf16.mxu0 %v989_v45 }
  0x3b   : > { %613 = vmatprep.subr.bf16.mxu1 %v950_v33 }
  0x3d   : > { %653 = vmatpush1.bf16.msra.mxu0 %v991_v49 }
  0x3e   : > { %614 = vmatpush1.bf16.msra.mxu1 %v952_v37 }
  0x3f   : > { %615 = vmatprep.subr.bf16.mxu1 %v956_v39 }
  0x40   : > { %671 = vmatmul.mubr.bf16.vlgmr.msra.gmra.mrb[0].mxu0 %v353_v52 }
  0x42   : > { %616 = vmatpush1.bf16.msra.mxu1 %v958_v44 }
  0x43   : > { %617 = vmatprep.subr.bf16.mxu1 %v962_v47 }
  0x46   : > { %618 = vmatpush1.bf16.msra.mxu1 %v964_v50 }
  0x47   : > { %619 = vmatprep.subr.bf16.mxu1 %v968_v51 }
  0x4a   : > { %620 = vmatpush1.bf16.msra.mxu1 %v970_v53 }
  0x4b   : > { %621 = vmatprep.subr.bf16.mxu1 %v974_v54 }
  0x4e   : > { %622 = vmatpush1.bf16.msra.mxu1 %v976_v55 }
  0x4f   : > { %623 = vmatprep.subr.bf16.mxu1 %v980_v56 }
  0x52   : > { %624 = vmatpush1.bf16.msra.mxu1 %v982_v57 }
  0x53   : > { %625 = vmatprep.subr.bf16.mxu1 %v986_v58 }
  0x56   : > { %626 = vmatpush1.bf16.msra.mxu1 %v988_v59 }
  0x57   : > { %627 = vmatprep.subr.bf16.mxu1 %v992_v60 }
  0x5a   : > { %628 = vmatpush1.bf16.msra.mxu1 %v994_v61 }
  0x5d   : > { %630 = vmatmul.mubr.bf16.vlgmr.msra.gmra.mrb[0].mxu1 %v345_v48 }
 0x113   : > { %v672_v62 = vpop.f32.mrb[0].mxu0 }
 0x114   : > { %v674_v63 = vpop.f32.mrb[1].mxu0 }
 0x115   : > { %v676_v0 = vpop.f32.mrb[2].mxu0 }
 0x116   : > { %v677_v1 = vpop.f32.mrb[3].mxu0 }
 0x130   : > { %v631_v2 = vpop.f32.mrb[0].mxu1 }
 0x131   : > { %v673_v3 = vadd.f32 %v672_v62, %v631_v2  ;;  %v633_v4 = vpop.f32.mrb[1].mxu1 }
 0x132   : > { %v675_v5 = vadd.f32 %v674_v63, %v633_v4  ;;  %v635_v6 = vpop.f32.mrb[2].mxu1 }
 0x133   : > { %v636_v7 = vpop.f32.mrb[3].mxu1 }
 0x134   : > { %v681_v8 = vcombine.low %v673_v3, %v675_v5 }
 0x136   : > { %v688_v9 = vrot.slane %v681_v8, %v344_v41  ;;  %706 = sbr.rel (%p872_p9) target bundleno = 331 (0x14b), region = 44 }
 0x138   : > { %v695_v11 = vrot.slane %v688_v9, %v344_v41 }
 0x13a   : > { %v697_v12 = vadd.f32 %v695_v11, %v329_v10 }
 0x13c   : > { %702 = vst.msk [vmem:[#allocation2] sm:$0x3] %vm700_vm1, %v697_v12 }
 0x143   : > { %v707_v13 = vld [vmem:[#allocation2] sm:$0x3] }
 0x144   : > { %v709_v16 = vmul.f32 %v708_v14, %v707_v13 }
 0x146   : > { %v711_v17 = vadd.f32 %v710_v15, %v709_v16 }
 0x148   : > { %v712_v18 = vmax.f32 %v711_v17, 0.0 }
 0x14a   : > { %713 = vst.msk [vmem:[%s1101_s28] sm:$0x3] %vm700_vm1, %v712_v18 }
 0x14b PF: > { %s14_s19 = sadd.s32 1, %s1033_s19   ;;  %s1199_s15 = smov %s1025_s17 }
 0x14c   : > { %p11_p10 = scmp.ge.s32.totalorder %s14_s19, 8   ;;  %s1200_s16 = smov %s1029_s18 }
 0x14d   : > { %s1201_s17 = smov %s1204_s20  ;;  %s1202_s18 = smov %s1208_s21 }
 0x14e   :  { %13 = sbr.rel (!%p11_p10) target bundleno = 3 (0x3), region = 77 }

// kernel: resnet_simclr_forward.36
= control target key start
LH: loop header
LB: loop body
LE: loop exit
PB: predicated region body
PF: predicated region fallthrough
CT: control target
= control target key end

     0   :  { %s677_s15 = smov 0   ;;  %s679_s16 = smov 0   ;;  %s785_s0 = inlined_call_operand.vmem [shape: bf16[2,2,1,128], index: 0, kind: input, shape index: {}]   ;;  %s786_s1 = inlined_call_operand.vmem [shape: bf16[1,128,256], index: 1, kind: input, shape index: {}]   ;;  %s787_s2 = inlined_call_operand.vmem [shape: f32[1,256], index: 2, kind: input, shape index: {}]   ;;  %s788_s3 = inlined_call_operand.vmem [shape: f32[1,256], index: 3, kind: input, shape index: {}]   ;;  %s789_s4 = inlined_call_operand.vmem [shape: f32[2,1,1,256], index: 4, kind: output, shape index: {}]  }
   0x1   :  { %s681_s17 = smov 0  }
   0x2 LB: > { %s33_s18 = sadd.s32 1, %s643_s16  ;;  %p553_p0 = scmp.ge.s32.totalorder %s647_s17, 1  ;;  %s647_s17 = sphi %s681_s17, %s14_s17   ;;  %s643_s16 = sphi %s679_s16, %s793_s16   ;;  %s639_s15 = sphi %s677_s15, %s792_s15  }
   0x3   : > { %p35_p1 = scmp.ge.s32.totalorder %s33_s18, 2  ;;  %p205_p2 = scmp.lt.s32.totalorder %s647_s17, 3 }
   0x5   : > { %s795_s18 = smov (%p35_p1, %s33_s18), 0  ;;  %p206_p3 = pnand %p553_p0, %p205_p2 }
   0x6   : > { %v601_v0 = vld [vmem:[%s786_s1 + $0x4] ss:$8 sps:$4 sm:$0xff] (!%p206_p3)   ;;  %v603_v1 = vld [vmem:[%s786_s1] ss:$8 sps:$4 sm:$0xff] (!%p206_p3)   ;;  %v649_v2 = vmov (!%p206_p3), 0   ;;  %p245_p4 = scmp.lt.s32.totalorder (!%p206_p3), %s639_s15, 1  ;;  %v272_v18 = vlaneseq (!%p206_p3) }
   0x7   : > { %209 = sbr.rel (%p206_p3) target bundleno = 273 (0x111), region = 36  ;;  %407 = vmatprep.mubr.bf16.mxu0 (!%p206_p3), %v649_v2  ;;  %375 = vmatprep.subr.bf16.mxu0 (!%p206_p3), %v601_v0  ;;  %v604_v3 = vld [vmem:[%s786_s1 + $0x14] ss:$8 sps:$4 sm:$0xff] (!%p206_p3)   ;;  %v606_v4 = vld [vmem:[%s786_s1 + $0x10] ss:$8 sps:$4 sm:$0xff] (!%p206_p3)   ;;  %v650_v20 = vmov (!%p206_p3), 0.0  }
   0x8   : > { %376 = vmatpush1.bf16.msra.mxu0 (!%p206_p3), %v603_v1  ;;  %v607_v5 = vld [vmem:[%s786_s1 + $0x24] ss:$8 sps:$4 sm:$0xff] (!%p206_p3)   ;;  %v609_v6 = vld [vmem:[%s786_s1 + $0x20] ss:$8 sps:$4 sm:$0xff] (!%p206_p3)   ;;  %v610_v7 = vld [vmem:[%s786_s1 + $0x34] ss:$8 sps:$4 sm:$0xff] (!%p206_p3)  }
   0x9   : > { %377 = vmatprep.subr.bf16.mxu0 (!%p206_p3), %v604_v3  ;;  %v612_v8 = vld [vmem:[%s786_s1 + $0x30] ss:$8 sps:$4 sm:$0xff] (!%p206_p3)   ;;  %v613_v9 = vld [vmem:[%s786_s1 + $0x44] ss:$8 sps:$4 sm:$0xff] (!%p206_p3)   ;;  %v615_v10 = vld [vmem:[%s786_s1 + $0x40] ss:$8 sps:$4 sm:$0xff] (!%p206_p3)  }
   0xa   : > { %v616_v11 = vld [vmem:[%s786_s1 + $0x54] ss:$8 sps:$4 sm:$0xff] (!%p206_p3)   ;;  %v618_v12 = vld [vmem:[%s786_s1 + $0x50] ss:$8 sps:$4 sm:$0xff] (!%p206_p3)   ;;  %v619_v13 = vld [vmem:[%s786_s1 + $0x64] ss:$8 sps:$4 sm:$0xff] (!%p206_p3)  }
   0xb   : > { %v621_v14 = vld [vmem:[%s786_s1 + $0x60] ss:$8 sps:$4 sm:$0xff] (!%p206_p3)   ;;  %v622_v15 = vld [vmem:[%s786_s1 + $0x74] ss:$8 sps:$4 sm:$0xff] (!%p206_p3)   ;;  %v624_v16 = vld [vmem:[%s786_s1 + $0x70] ss:$8 sps:$4 sm:$0xff] (!%p206_p3)  }
   0xc   : > { %378 = vmatpush1.bf16.msra.mxu0 (!%p206_p3), %v606_v4  ;;  %vm755_vm0 = vcmp.lt.s32.totalorder (!%p206_p3), %v272_v18, 256  ;;  %v651_v21 = vmov (!%p206_p3), 1966171168   ;;  %v423_v24 = vshrl.u32 (!%p206_p3), %v272_v18, 7  ;;  %v444_v35 = vld [vmem:[%s787_s2] sm:$0x3] (!%p206_p3) }
   0xd   : > { %379 = vmatprep.subr.bf16.mxu0 (!%p206_p3), %v607_v5  ;;  %276 = vst.msk [vmem:[#allocation2] sm:$0x3] (!%p206_p3), %vm755_vm0, %v650_v20  ;;  %v420_v22 = vunpack.c.l.s4 (!%p206_p3), %v651_v21  ;;  %v446_v37 = vld [vmem:[%s788_s3] sm:$0x3] (!%p206_p3) }
   0xe   : > { %s797_s15 = smov (!%p245_p4, %s639_s15), 1 }
   0xf   : > { %s554_s27 = sshll.u32 %s797_s15, 1  ;;  %v421_v23 = vunpack.c.0.s8 %v420_v22 }
  0x10   : > { %380 = vmatpush1.bf16.msra.mxu0 %v609_v6  ;;  %s251_s6 = scalar_lea.vmem %s785_s0, %s554_s27  ;;  %s266_s13 = scalar_lea.vmem %s789_s4, %s554_s27 }
  0x11   : > { %381 = vmatprep.subr.bf16.mxu0 %v610_v7  ;;  %v277_v17 = vld [vmem:[%s251_s6] sm:$0x1]  ;;  %v424_v26 = vsub.s32 %v421_v23, %v423_v24 }
  0x14   : > { %382 = vmatpush1.bf16.msra.mxu0 %v612_v8  ;;  %v294_v32 = vld [vmem:[#allocation2] sm:$0x3] }
  0x15   : > { %383 = vmatprep.subr.bf16.mxu0 %v613_v9 }
  0x18   : > { %384 = vmatpush1.bf16.msra.mxu0 %v615_v10 }
  0x19   : > { %385 = vmatprep.subr.bf16.mxu0 %v616_v11 }
  0x1c   : > { %386 = vmatpush1.bf16.msra.mxu0 %v618_v12 }
  0x1d   : > { %387 = vmatprep.subr.bf16.mxu0 %v619_v13 }
  0x20   : > { %388 = vmatpush1.bf16.msra.mxu0 %v621_v14 }
  0x21   : > { %389 = vmatprep.subr.bf16.mxu0 %v622_v15 }
  0x24   : > { %390 = vmatpush1.bf16.msra.mxu0 %v624_v16 }
  0x27   : > { %408 = vmatmul.mubr.bf16.vlgmr.msra.gmra.mrb[0].mxu0 %v277_v17 }
  0xfa   : > { %v409_v25 = vpop.f32.mrb[0].mxu0 }
  0xfb   : > { %v411_v27 = vpop.f32.mrb[1].mxu0 }
  0xfc   : > { %v418_v28 = vcombine.low %v409_v25, %v411_v27  ;;  %v413_v29 = vpop.f32.mrb[2].mxu0 }
  0xfd   : > { %v414_v30 = vpop.f32.mrb[3].mxu0 }
  0xfe   : > { %v425_v31 = vrot.slane %v418_v28, %v424_v26 }
 0x100   : > { %v432_v33 = vrot.slane %v425_v31, %v424_v26 }
 0x102   : > { %v434_v34 = vadd.f32 %v432_v33, %v294_v32 }
 0x104   : > { %439 = vst.msk [vmem:[#allocation2] sm:$0x3] %vm755_vm0, %v434_v34 }
 0x10b   : > { %v443_v36 = vld [vmem:[#allocation2] sm:$0x3] }
 0x10c   : > { %v445_v38 = vmul.f32 %v444_v35, %v443_v36 }
 0x10e   : > { %v447_v39 = vadd.f32 %v446_v37, %v445_v38 }
 0x110   : > { %448 = vst.msk [vmem:[%s266_s13] sm:$0x3] %vm755_vm0, %v447_v39 }
 0x111 PF: > { %s14_s17 = sadd.s32 1, %s647_s17   ;;  %s792_s15 = smov %s643_s16 }
 0x112   : > { %p11_p5 = scmp.ge.s32.totalorder %s14_s17, 4   ;;  %s793_s16 = smov %s795_s18 }
 0x114   :  { %13 = sbr.rel (!%p11_p5) target bundleno = 2 (0x2), region = 77 }

// kernel: resnet_simclr_forward.37
= control target key start
LH: loop header
LB: loop body
LE: loop exit
PB: predicated region body
PF: predicated region fallthrough
CT: control target
= control target key end

     0   :  { %s1617_s18 = smov 0   ;;  %s1619_s19 = smov 0   ;;  %s1825_s0 = inlined_call_operand.vmem [shape: bf16[2,3,1,768], index: 0, kind: input, shape index: {}]   ;;  %s1826_s1 = inlined_call_operand.vmem [shape: bf16[3,768,256], index: 1, kind: input, shape index: {}]   ;;  %s1827_s2 = inlined_call_operand.vmem [shape: f32[1,256], index: 2, kind: input, shape index: {}]   ;;  %s1828_s3 = inlined_call_operand.vmem [shape: f32[1,256], index: 3, kind: input, shape index: {}]   ;;  %s1829_s4 = inlined_call_operand.vmem [shape: f32[2,1,1,256], index: 4, kind: input, shape index: {}]   ;;  %s1830_s5 = inlined_call_operand.vmem [shape: f32[2,1,1,256], index: 5, kind: output, shape index: {}]  }
   0x1   :  { %s1621_s20 = smov 0   ;;  %s1623_s21 = smov 0  }
   0x2   :  { %s1625_s22 = smov 0  }
   0x3 LB: > { %s27_s23 = sadd.s32 1, %s1575_s20  ;;  %s34_s24 = sadd.s32 1, %s1579_s21  ;;  %s1583_s22 = sphi %s1625_s22, %s15_s22   ;;  %s1579_s21 = sphi %s1623_s21, %s1834_s21   ;;  %s1575_s20 = sphi %s1621_s20, %s1833_s20   ;;  %s1571_s19 = sphi %s1619_s19, %s1832_s19   ;;  %s1567_s18 = sphi %s1617_s18, %s1831_s18  }
   0x4   : > { %p28_p0 = scmp.ge.s32.totalorder %s27_s23, 3  ;;  %p1245_p1 = scmp.ge.s32.totalorder %s1583_s22, 1 }
   0x5   : > { %p242_p2 = scmp.lt.s32.totalorder %s1583_s22, 7 }
   0x6   : > { %s1836_s23 = smov (%p28_p0, %s27_s23), 0  ;;  %s1838_s24 = smov (!%p28_p0, %s34_s24), %s1579_s21 }
   0x7   : > { %p243_p3 = pnand %p1245_p1, %p242_p2  ;;  %p36_p4 = scmp.ge.s32.totalorder %s1838_s24, 2 }
   0x8   : > { %p291_p5 = scmp.lt.s32.totalorder (!%p243_p3), %s1571_s19, 1  ;;  %p293_p6 = scmp.lt.s32.totalorder (!%p243_p3), %s1567_s18, 2 }
   0x9   : > { %s1840_s24 = smov (%p36_p4, %s1838_s24), 0  ;;  %246 = sbr.rel (%p243_p3) target bundleno = 392 (0x188), region = 40 }
   0xa   : > { %p1249_p7 = scmp.ne.s32.totalorder (!%p243_p3), %s1567_s18, 0 }
  0x10   : > { %s1842_s19 = smov (!%p291_p5, %s1571_s19), 1  ;;  %324 = sbr.rel (%p1249_p7) target bundleno = 23 (0x17), region = 44 }
  0x11   : > { %s294_s25 = scalar_select %p293_p6, %s1567_s18, 2 }
  0x12   : > { %s1356_s26 = smul.u32 18, %s1842_s19  ;;  %s1247_s27 = sshll.u32 %s1842_s19, 1  ;;  %v325_v0 = vlaneseq (!%p1249_p7)  ;;  %v1585_v1 = vmov (!%p1249_p7), 0.0  }
  0x13   : > { %s1355_s28 = smul.u32 6, %s294_s25  ;;  %s1654_s6 = scalar_lea.vmem %s1829_s4, %s1247_s27 }
  0x14   : > { %s1357_s7 = smul.u32 768, %s294_s25  ;;  %s1659_s10 = scalar_lea.vmem %s1830_s5, %s1247_s27  ;;  %vm327_vm0 = vcmp.lt.s32.totalorder (!%p1249_p7), %v325_v0, 256 }
  0x15   : > { %s1661_s11 = sadd.s32 %s1356_s26, %s1355_s28  ;;  %329 = vst.msk [vmem:[#allocation2] sm:$0x3] (!%p1249_p7), %vm327_vm0, %v1585_v1 }
  0x16   : > { %s298_s14 = scalar_lea.vmem %s1825_s0, %s1661_s11  ;;  %s1670_s17 = scalar_lea.vmem %s1826_s1, %s1357_s7 }
  0x17 PF: > { %v1400_v2 = vld [vmem:[%s1670_s17 + $0x104] ss:$8 sps:$4 sm:$0xff]   ;;  %v1402_v3 = vld [vmem:[%s1670_s17 + $0x100] ss:$8 sps:$4 sm:$0xff]   ;;  %v1403_v4 = vld [vmem:[%s1670_s17 + $0x114] ss:$8 sps:$4 sm:$0xff]   ;;  %v433_v12 = vlaneseq }
  0x18   : > { %1003 = vmatprep.subr.bf16.mxu0 %v1400_v2  ;;  %v1405_v5 = vld [vmem:[%s1670_s17 + $0x110] ss:$8 sps:$4 sm:$0xff]   ;;  %v1406_v6 = vld [vmem:[%s1670_s17 + $0x124] ss:$8 sps:$4 sm:$0xff]   ;;  %v1408_v7 = vld [vmem:[%s1670_s17 + $0x120] ss:$8 sps:$4 sm:$0xff]  }
  0x19   : > { %1004 = vmatpush1.bf16.msra.mxu0 %v1402_v3  ;;  %v1409_v8 = vld [vmem:[%s1670_s17 + $0x134] ss:$8 sps:$4 sm:$0xff]   ;;  %v1411_v9 = vld [vmem:[%s1670_s17 + $0x130] ss:$8 sps:$4 sm:$0xff]   ;;  %v1586_v10 = vmov 1966171168  }
  0x1a   : > { %1005 = vmatprep.subr.bf16.mxu0 %v1403_v4  ;;  %v431_v11 = vunpack.c.l.s4 %v1586_v10  ;;  %v1412_v13 = vld [vmem:[%s1670_s17 + $0x144] ss:$8 sps:$4 sm:$0xff]   ;;  %v1414_v14 = vld [vmem:[%s1670_s17 + $0x140] ss:$8 sps:$4 sm:$0xff]   ;;  %v434_v16 = vshrl.u32 %v433_v12, 7  ;;  %vm1106_vm1 = vcmp.lt.s32.totalorder %v433_v12, 256 }
  0x1b   : > { %v1415_v17 = vld [vmem:[%s1670_s17 + $0x154] ss:$8 sps:$4 sm:$0xff]   ;;  %v1417_v18 = vld [vmem:[%s1670_s17 + $0x150] ss:$8 sps:$4 sm:$0xff]   ;;  %v1418_v20 = vld [vmem:[%s1670_s17 + $0x164] ss:$8 sps:$4 sm:$0xff]  }
  0x1c   : > { %v432_v15 = vunpack.c.0.s8 %v431_v11  ;;  %v1447_v21 = vld [vmem:[%s1670_s17 + $0x4] ss:$8 sps:$4 sm:$0xff]   ;;  %v1450_v22 = vld [vmem:[%s1670_s17] ss:$8 sps:$4 sm:$0xff]   ;;  %v1421_v26 = vld [vmem:[%s1670_s17 + $0x174] ss:$8 sps:$4 sm:$0xff]  }
  0x1d   : > { %1006 = vmatpush1.bf16.msra.mxu0 %v1405_v5  ;;  %v1696_v23 = vld [vmem:[%s298_s14] sm:$0x3f]  ;;  %962 = vmatprep.subr.bf16.mxu1 %v1447_v21  ;;  %v1455_v28 = vld [vmem:[%s1670_s17 + $0x14] ss:$8 sps:$4 sm:$0xff]   ;;  %v1457_v29 = vld [vmem:[%s1670_s17 + $0x10] ss:$8 sps:$4 sm:$0xff]  }
  0x1e   : > { %1007 = vmatprep.subr.bf16.mxu0 %v1406_v6  ;;  %v1686_v19 = vsub.s32 %v432_v15, %v434_v16  ;;  %v1420_v24 = vld [vmem:[%s1670_s17 + $0x160] ss:$8 sps:$4 sm:$0xff]   ;;  %963 = vmatpush1.bf16.msra.mxu1 %v1450_v22  ;;  %v1423_v30 = vld [vmem:[%s1670_s17 + $0x170] ss:$8 sps:$4 sm:$0xff]   ;;  %v1424_v31 = vld [vmem:[%s1670_s17 + $0x184] ss:$8 sps:$4 sm:$0xff]   ;;  %v429_v59 = vcombine.high %v1696_v23, %v1696_v23 }
  0x1f   : > { %964 = vmatprep.subr.bf16.mxu1 %v1455_v28  ;;  %v1461_v33 = vld [vmem:[%s1670_s17 + $0x24] ss:$8 sps:$4 sm:$0xff]   ;;  %v1463_v34 = vld [vmem:[%s1670_s17 + $0x20] ss:$8 sps:$4 sm:$0xff]   ;;  %v1467_v37 = vld [vmem:[%s1670_s17 + $0x34] ss:$8 sps:$4 sm:$0xff]  }
  0x20   : > { %v1701_v25 = vrot.slane %v1696_v23, %v1686_v19  ;;  %v1426_v36 = vld [vmem:[%s1670_s17 + $0x180] ss:$8 sps:$4 sm:$0xff]   ;;  %v1427_v38 = vld [vmem:[%s1670_s17 + $0x194] ss:$8 sps:$4 sm:$0xff]   ;;  %v1469_v39 = vld [vmem:[%s1670_s17 + $0x30] ss:$8 sps:$4 sm:$0xff]   ;;  %v1743_v0 = vrot.slane %v429_v59, %v1686_v19 }
  0x21   : > { %1008 = vmatpush1.bf16.msra.mxu0 %v1408_v7  ;;  %v1473_v40 = vld [vmem:[%s1670_s17 + $0x44] ss:$8 sps:$4 sm:$0xff]   ;;  %v1429_v41 = vld [vmem:[%s1670_s17 + $0x190] ss:$8 sps:$4 sm:$0xff]   ;;  %v1475_v43 = vld [vmem:[%s1670_s17 + $0x40] ss:$8 sps:$4 sm:$0xff]  }
  0x22   : > { %1009 = vmatprep.subr.bf16.mxu0 %v1409_v8  ;;  %v444_v27 = vcombine.high %v1701_v25, %v1701_v25  ;;  %965 = vmatpush1.bf16.msra.mxu1 %v1457_v29  ;;  %v1430_v42 = vld [vmem:[%s1670_s17 + $0x1a4] ss:$8 sps:$4 sm:$0xff]   ;;  %v1479_v44 = vld [vmem:[%s1670_s17 + $0x54] ss:$8 sps:$4 sm:$0xff]   ;;  %v1432_v45 = vld [vmem:[%s1670_s17 + $0x1a0] ss:$8 sps:$4 sm:$0xff]   ;;  %v452_v4 = vrot.slane %v1701_v25, %v1686_v19  ;;  %v445_v6 = vcombine.high %v1743_v0, %v1743_v0 }
  0x23   : > { %966 = vmatprep.subr.bf16.mxu1 %v1461_v33  ;;  %v1433_v46 = vld [vmem:[%s1670_s17 + $0x1b4] ss:$8 sps:$4 sm:$0xff]   ;;  %v1481_v47 = vld [vmem:[%s1670_s17 + $0x50] ss:$8 sps:$4 sm:$0xff]   ;;  %v1485_v48 = vld [vmem:[%s1670_s17 + $0x64] ss:$8 sps:$4 sm:$0xff]  }
  0x24   : > { %v466_v32 = vrot.slane %v444_v27, %v1686_v19  ;;  %v1435_v49 = vld [vmem:[%s1670_s17 + $0x1b0] ss:$8 sps:$4 sm:$0xff]   ;;  %v1436_v50 = vld [vmem:[%s1670_s17 + $0x1c4] ss:$8 sps:$4 sm:$0xff]   ;;  %v1487_v51 = vld [vmem:[%s1670_s17 + $0x60] ss:$8 sps:$4 sm:$0xff]   ;;  %v473_v11 = vrot.slane %v445_v6, %v1686_v19 }
  0x25   : > { %1010 = vmatpush1.bf16.msra.mxu0 %v1411_v9  ;;  %v1491_v52 = vld [vmem:[%s1670_s17 + $0x74] ss:$8 sps:$4 sm:$0xff]   ;;  %v1438_v53 = vld [vmem:[%s1670_s17 + $0x1c0] ss:$8 sps:$4 sm:$0xff]   ;;  %v1493_v55 = vld [vmem:[%s1670_s17 + $0x70] ss:$8 sps:$4 sm:$0xff]   ;;  %v474_v9 = vcombine.high %v452_v4, %v452_v4 }
  0x26   : > { %1011 = vmatprep.subr.bf16.mxu0 %v1412_v13  ;;  %v475_v35 = vcombine.high %v466_v32, %v466_v32  ;;  %994 = vmatprep.mubr.bf16.mxu1 %v466_v32  ;;  %v1439_v54 = vld [vmem:[%s1670_s17 + $0x1d4] ss:$8 sps:$4 sm:$0xff]   ;;  %v1497_v56 = vld [vmem:[%s1670_s17 + $0x84] ss:$8 sps:$4 sm:$0xff]   ;;  %v1441_v57 = vld [vmem:[%s1670_s17 + $0x1d0] ss:$8 sps:$4 sm:$0xff]  }
  0x27   : > { %967 = vmatpush1.bf16.msra.mxu1 %v1463_v34  ;;  %v1442_v58 = vld [vmem:[%s1670_s17 + $0x1e4] ss:$8 sps:$4 sm:$0xff]   ;;  %v1499_v60 = vld [vmem:[%s1670_s17 + $0x80] ss:$8 sps:$4 sm:$0xff]   ;;  %v1503_v61 = vld [vmem:[%s1670_s17 + $0x94] ss:$8 sps:$4 sm:$0xff]  }
  0x28   : > { %1035 = vmatprep.mubr.bf16.mxu0 %v475_v35  ;;  %968 = vmatprep.subr.bf16.mxu1 %v1467_v37  ;;  %v1444_v62 = vld [vmem:[%s1670_s17 + $0x1e0] ss:$8 sps:$4 sm:$0xff]   ;;  %v1445_v63 = vld [vmem:[%s1670_s17 + $0x1f4] ss:$8 sps:$4 sm:$0xff]   ;;  %v1505_v1 = vld [vmem:[%s1670_s17 + $0x90] ss:$8 sps:$4 sm:$0xff]  }
  0x29   : > { %1012 = vmatpush1.bf16.msra.mxu0 %v1414_v14  ;;  %v1509_v2 = vld [vmem:[%s1670_s17 + $0xa4] ss:$8 sps:$4 sm:$0xff]   ;;  %v1449_v3 = vld [vmem:[%s1670_s17 + $0x1f0] ss:$8 sps:$4 sm:$0xff]   ;;  %v1511_v7 = vld [vmem:[%s1670_s17 + $0xa0] ss:$8 sps:$4 sm:$0xff]  }
  0x2a   : > { %1013 = vmatprep.subr.bf16.mxu0 %v1415_v17  ;;  %v1454_v5 = vld [vmem:[%s1670_s17 + $0x204] ss:$8 sps:$4 sm:$0xff]   ;;  %v1515_v8 = vld [vmem:[%s1670_s17 + $0xb4] ss:$8 sps:$4 sm:$0xff]   ;;  %v1452_v10 = vld [vmem:[%s1670_s17 + $0x200] ss:$8 sps:$4 sm:$0xff]  }
  0x2b   : > { %969 = vmatpush1.bf16.msra.mxu1 %v1469_v39  ;;  %v1460_v13 = vld [vmem:[%s1670_s17 + $0x214] ss:$8 sps:$4 sm:$0xff]   ;;  %v1517_v14 = vld [vmem:[%s1670_s17 + $0xb0] ss:$8 sps:$4 sm:$0xff]   ;;  %v1521_v15 = vld [vmem:[%s1670_s17 + $0xc4] ss:$8 sps:$4 sm:$0xff]  }
  0x2c   : > { %970 = vmatprep.subr.bf16.mxu1 %v1473_v40  ;;  %v1458_v16 = vld [vmem:[%s1670_s17 + $0x210] ss:$8 sps:$4 sm:$0xff]   ;;  %v1466_v17 = vld [vmem:[%s1670_s17 + $0x224] ss:$8 sps:$4 sm:$0xff]   ;;  %v1464_v21 = vld [vmem:[%s1670_s17 + $0x220] ss:$8 sps:$4 sm:$0xff]  }
  0x2d   : > { %1014 = vmatpush1.bf16.msra.mxu0 %v1417_v18  ;;  %v1523_v18 = vld [vmem:[%s1670_s17 + $0xc0] ss:$8 sps:$4 sm:$0xff]   ;;  %v1472_v22 = vld [vmem:[%s1670_s17 + $0x234] ss:$8 sps:$4 sm:$0xff]   ;;  %v1529_v23 = vld [vmem:[%s1670_s17 + $0xd0] ss:$8 sps:$4 sm:$0xff]  }
  0x2e   : > { %1015 = vmatprep.subr.bf16.mxu0 %v1418_v20  ;;  %v1527_v20 = vld [vmem:[%s1670_s17 + $0xd4] ss:$8 sps:$4 sm:$0xff]   ;;  %v1470_v25 = vld [vmem:[%s1670_s17 + $0x230] ss:$8 sps:$4 sm:$0xff]   ;;  %v1535_v27 = vld [vmem:[%s1670_s17 + $0xe0] ss:$8 sps:$4 sm:$0xff]  }
  0x2f   : > { %971 = vmatpush1.bf16.msra.mxu1 %v1475_v43  ;;  %v1539_v28 = vld [vmem:[%s1670_s17 + $0xf4] ss:$8 sps:$4 sm:$0xff]   ;;  %v1476_v29 = vld [vmem:[%s1670_s17 + $0x240] ss:$8 sps:$4 sm:$0xff]   ;;  %v1482_v32 = vld [vmem:[%s1670_s17 + $0x250] ss:$8 sps:$4 sm:$0xff]  }
  0x30   : > { %972 = vmatprep.subr.bf16.mxu1 %v1479_v44  ;;  %v1490_v33 = vld [vmem:[%s1670_s17 + $0x264] ss:$8 sps:$4 sm:$0xff]   ;;  %v1488_v34 = vld [vmem:[%s1670_s17 + $0x260] ss:$8 sps:$4 sm:$0xff]   ;;  %v1496_v35 = vld [vmem:[%s1670_s17 + $0x274] ss:$8 sps:$4 sm:$0xff]  }
  0x31   : > { %1016 = vmatpush1.bf16.msra.mxu0 %v1420_v24  ;;  %v1533_v24 = vld [vmem:[%s1670_s17 + $0xe4] ss:$8 sps:$4 sm:$0xff]   ;;  %v1508_v39 = vld [vmem:[%s1670_s17 + $0x294] ss:$8 sps:$4 sm:$0xff]   ;;  %v1506_v40 = vld [vmem:[%s1670_s17 + $0x290] ss:$8 sps:$4 sm:$0xff]  }
  0x32   : > { %1017 = vmatprep.subr.bf16.mxu0 %v1421_v26  ;;  %v1478_v26 = vld [vmem:[%s1670_s17 + $0x244] ss:$8 sps:$4 sm:$0xff]   ;;  %v1520_v43 = vld [vmem:[%s1670_s17 + $0x2b4] ss:$8 sps:$4 sm:$0xff]   ;;  %v1518_v44 = vld [vmem:[%s1670_s17 + $0x2b0] ss:$8 sps:$4 sm:$0xff]  }
  0x33   : > { %973 = vmatpush1.bf16.msra.mxu1 %v1481_v47  ;;  %v1502_v37 = vld [vmem:[%s1670_s17 + $0x284] ss:$8 sps:$4 sm:$0xff]   ;;  %v1532_v47 = vld [vmem:[%s1670_s17 + $0x2d4] ss:$8 sps:$4 sm:$0xff]   ;;  %p1346_p8 = scmp.ne.s32.totalorder %s1567_s18, 2 }
  0x34   : > { %974 = vmatprep.subr.bf16.mxu1 %v1485_v48  ;;  %v1530_v48 = vld [vmem:[%s1670_s17 + $0x2d0] ss:$8 sps:$4 sm:$0xff]   ;;  %v1114_v6 = vld [vmem:[%s1827_s2] sm:$0x3] (!%p1346_p8) }
  0x35   : > { %1018 = vmatpush1.bf16.msra.mxu0 %v1423_v30  ;;  %v1484_v30 = vld [vmem:[%s1670_s17 + $0x254] ss:$8 sps:$4 sm:$0xff]  }
  0x36   : > { %1019 = vmatprep.subr.bf16.mxu0 %v1424_v31  ;;  %v1541_v31 = vld [vmem:[%s1670_s17 + $0xf0] ss:$8 sps:$4 sm:$0xff]  }
  0x37   : > { %975 = vmatpush1.bf16.msra.mxu1 %v1487_v51  ;;  %v1544_v51 = vld [vmem:[%s1670_s17 + $0x2f4] ss:$8 sps:$4 sm:$0xff]  }
  0x38   : > { %976 = vmatprep.subr.bf16.mxu1 %v1491_v52  ;;  %v1542_v52 = vld [vmem:[%s1670_s17 + $0x2f0] ss:$8 sps:$4 sm:$0xff]  }
  0x39   : > { %1020 = vmatpush1.bf16.msra.mxu0 %v1426_v36  ;;  %v1494_v36 = vld [vmem:[%s1670_s17 + $0x270] ss:$8 sps:$4 sm:$0xff]  }
  0x3a   : > { %1021 = vmatprep.subr.bf16.mxu0 %v1427_v38  ;;  %v1500_v38 = vld [vmem:[%s1670_s17 + $0x280] ss:$8 sps:$4 sm:$0xff]  }
  0x3b   : > { %977 = vmatpush1.bf16.msra.mxu1 %v1493_v55 }
  0x3c   : > { %978 = vmatprep.subr.bf16.mxu1 %v1497_v56 }
  0x3d   : > { %1022 = vmatpush1.bf16.msra.mxu0 %v1429_v41  ;;  %v1514_v41 = vld [vmem:[%s1670_s17 + $0x2a4] ss:$8 sps:$4 sm:$0xff]  }
  0x3e   : > { %1023 = vmatprep.subr.bf16.mxu0 %v1430_v42  ;;  %v1512_v42 = vld [vmem:[%s1670_s17 + $0x2a0] ss:$8 sps:$4 sm:$0xff]  }
  0x3f   : > { %979 = vmatpush1.bf16.msra.mxu1 %v1499_v60 }
  0x40   : > { %980 = vmatprep.subr.bf16.mxu1 %v1503_v61 }
  0x41   : > { %1024 = vmatpush1.bf16.msra.mxu0 %v1432_v45  ;;  %v1526_v45 = vld [vmem:[%s1670_s17 + $0x2c4] ss:$8 sps:$4 sm:$0xff]  }
  0x42   : > { %1025 = vmatprep.subr.bf16.mxu0 %v1433_v46  ;;  %v1524_v46 = vld [vmem:[%s1670_s17 + $0x2c0] ss:$8 sps:$4 sm:$0xff]  }
  0x43   : > { %981 = vmatpush1.bf16.msra.mxu1 %v1505_v1 }
  0x44   : > { %982 = vmatprep.subr.bf16.mxu1 %v1509_v2 }
  0x45   : > { %1026 = vmatpush1.bf16.msra.mxu0 %v1435_v49  ;;  %v1538_v49 = vld [vmem:[%s1670_s17 + $0x2e4] ss:$8 sps:$4 sm:$0xff]  }
  0x46   : > { %1027 = vmatprep.subr.bf16.mxu0 %v1436_v50  ;;  %v1536_v50 = vld [vmem:[%s1670_s17 + $0x2e0] ss:$8 sps:$4 sm:$0xff]  }
  0x47   : > { %983 = vmatpush1.bf16.msra.mxu1 %v1511_v7  ;;  %v1116_v7 = vld [vmem:[%s1828_s3] sm:$0x3] (!%p1346_p8) }
  0x48   : > { %984 = vmatprep.subr.bf16.mxu1 %v1515_v8 }
  0x49   : > { %1028 = vmatpush1.bf16.msra.mxu0 %v1438_v53  ;;  %v459_v53 = vrot.slane %v1743_v0, %v1686_v19 }
  0x4a   : > { %1029 = vmatprep.subr.bf16.mxu0 %v1439_v54 }
  0x4b   : > { %985 = vmatpush1.bf16.msra.mxu1 %v1517_v14 }
  0x4c   : > { %986 = vmatprep.subr.bf16.mxu1 %v1521_v15 }
  0x4d   : > { %1030 = vmatpush1.bf16.msra.mxu0 %v1441_v57 }
  0x4e   : > { %1031 = vmatprep.subr.bf16.mxu0 %v1442_v58 }
  0x4f   : > { %987 = vmatpush1.bf16.msra.mxu1 %v1523_v18 }
  0x50   : > { %988 = vmatprep.subr.bf16.mxu1 %v1527_v20 }
  0x51   : > { %1032 = vmatpush1.bf16.msra.mxu0 %v1444_v62 }
  0x52   : > { %1033 = vmatprep.subr.bf16.mxu0 %v1445_v63 }
  0x53   : > { %989 = vmatpush1.bf16.msra.mxu1 %v1529_v23 }
  0x54   : > { %990 = vmatprep.subr.bf16.mxu1 %v1533_v24 }
  0x55   : > { %1034 = vmatpush1.bf16.msra.mxu0 %v1449_v3  ;;  %v427_v3 = vld [vmem:[#allocation2] sm:$0x3] }
  0x56   : > { %1044 = vmatprep.subr.bf16.mxu0 %v1454_v5 }
  0x57   : > { %991 = vmatpush1.bf16.msra.mxu1 %v1535_v27 }
  0x58   : > { %1036 = vmatmul.mubr.bf16.vlgmr.msra.gmra.mrb[0].mxu0 %v474_v9  ;;  %992 = vmatprep.subr.bf16.mxu1 %v1539_v28 }
  0x59   : > { %1045 = vmatpush1.bf16.msra.mxu0 %v1452_v10  ;;  %1076 = vmatprep.mubr.bf16.mxu0 %v473_v11 }
  0x5a   : > { %1046 = vmatprep.subr.bf16.mxu0 %v1460_v13 }
  0x5b   : > { %993 = vmatpush1.bf16.msra.mxu1 %v1541_v31 }
  0x5d   : > { %1047 = vmatpush1.bf16.msra.mxu0 %v1458_v16 }
  0x5e   : > { %1048 = vmatprep.subr.bf16.mxu0 %v1466_v17  ;;  %995 = vmatmul.mubr.bf16.vlgmr.msra.gmra.mrb[0].mxu1 %v452_v4 }
  0x61   : > { %1049 = vmatpush1.bf16.msra.mxu0 %v1464_v21 }
  0x62   : > { %1050 = vmatprep.subr.bf16.mxu0 %v1472_v22 }
  0x65   : > { %1051 = vmatpush1.bf16.msra.mxu0 %v1470_v25 }
  0x66   : > { %1052 = vmatprep.subr.bf16.mxu0 %v1478_v26 }
  0x69   : > { %1053 = vmatpush1.bf16.msra.mxu0 %v1476_v29 }
  0x6a   : > { %1054 = vmatprep.subr.bf16.mxu0 %v1484_v30 }
  0x6d   : > { %1055 = vmatpush1.bf16.msra.mxu0 %v1482_v32 }
  0x6e   : > { %1056 = vmatprep.subr.bf16.mxu0 %v1490_v33 }
  0x71   : > { %1057 = vmatpush1.bf16.msra.mxu0 %v1488_v34 }
  0x72   : > { %1058 = vmatprep.subr.bf16.mxu0 %v1496_v35 }
  0x75   : > { %1059 = vmatpush1.bf16.msra.mxu0 %v1494_v36 }
  0x76   : > { %1060 = vmatprep.subr.bf16.mxu0 %v1502_v37 }
  0x79   : > { %1061 = vmatpush1.bf16.msra.mxu0 %v1500_v38 }
  0x7a   : > { %1062 = vmatprep.subr.bf16.mxu0 %v1508_v39 }
  0x7d   : > { %1063 = vmatpush1.bf16.msra.mxu0 %v1506_v40 }
  0x7e   : > { %1064 = vmatprep.subr.bf16.mxu0 %v1514_v41 }
  0x81   : > { %1065 = vmatpush1.bf16.msra.mxu0 %v1512_v42 }
  0x82   : > { %1066 = vmatprep.subr.bf16.mxu0 %v1520_v43 }
  0x85   : > { %1067 = vmatpush1.bf16.msra.mxu0 %v1518_v44 }
  0x86   : > { %1068 = vmatprep.subr.bf16.mxu0 %v1526_v45 }
  0x89   : > { %1069 = vmatpush1.bf16.msra.mxu0 %v1524_v46 }
  0x8a   : > { %1070 = vmatprep.subr.bf16.mxu0 %v1532_v47 }
  0x8d   : > { %1071 = vmatpush1.bf16.msra.mxu0 %v1530_v48 }
  0x8e   : > { %1072 = vmatprep.subr.bf16.mxu0 %v1538_v49 }
  0x91   : > { %1073 = vmatpush1.bf16.msra.mxu0 %v1536_v50 }
  0x92   : > { %1074 = vmatprep.subr.bf16.mxu0 %v1544_v51 }
  0x95   : > { %1075 = vmatpush1.bf16.msra.mxu0 %v1542_v52 }
  0x98   : > { %1077 = vmatmul.mubr.bf16.vlgmr.msra.gmra.mrb[0].mxu0 %v459_v53 }
 0x131   : > { %v996_v54 = vpop.f32.mrb[0].mxu1 }
 0x132   : > { %v998_v55 = vpop.f32.mrb[1].mxu1 }
 0x133   : > { %v1000_v56 = vpop.f32.mrb[2].mxu1 }
 0x134   : > { %v1001_v57 = vpop.f32.mrb[3].mxu1 }
 0x16b   : > { %v1078_v58 = vpop.f32.mrb[0].mxu0 }
 0x16c   : > { %v1349_v59 = vadd.f32 %v1078_v58, %v996_v54  ;;  %v1080_v60 = vpop.f32.mrb[1].mxu0 }
 0x16d   : > { %v1350_v61 = vadd.f32 %v1080_v60, %v998_v55  ;;  %v1082_v62 = vpop.f32.mrb[2].mxu0 }
 0x16e   : > { %v1083_v63 = vpop.f32.mrb[3].mxu0 }
 0x16f   : > { %v1087_v1 = vcombine.low %v1349_v59, %v1350_v61 }
 0x171   : > { %v1094_v2 = vrot.slane %v1087_v1, %v1686_v19  ;;  %1112 = sbr.rel (%p1346_p8) target bundleno = 392 (0x188), region = 48 }
 0x173   : > { %v1101_v4 = vrot.slane %v1094_v2, %v1686_v19  ;;  %v1118_v19 = vld [vmem:[%s1654_s6] sm:$0x3] (!%p1346_p8) }
 0x175   : > { %v1103_v0 = vadd.f32 %v1101_v4, %v427_v3 }
 0x177   : > { %1108 = vst.msk [vmem:[#allocation2] sm:$0x3] %vm1106_vm1, %v1103_v0 }
 0x17e   : > { %v1113_v5 = vld [vmem:[#allocation2] sm:$0x3] }
 0x17f   : > { %v1115_v8 = vmul.f32 %v1114_v6, %v1113_v5 }
 0x181   : > { %v1117_v9 = vadd.f32 %v1116_v7, %v1115_v8 }
 0x183   : > { %v1119_v12 = vadd.f32 %v1118_v19, %v1117_v9 }
 0x185   : > { %v1120_v10 = vmax.f32 %v1119_v12, 0.0 }
 0x187   : > { %1121 = vst.msk [vmem:[%s1659_s10] sm:$0x3] %vm1106_vm1, %v1120_v10 }
 0x188 PF: > { %s15_s22 = sadd.s32 1, %s1583_s22   ;;  %s1831_s18 = smov %s1575_s20 }
 0x189   : > { %p12_p9 = scmp.ge.s32.totalorder %s15_s22, 8   ;;  %s1832_s19 = smov %s1579_s21 }
 0x18a   : > { %s1833_s20 = smov %s1836_s23  ;;  %s1834_s21 = smov %s1840_s24 }
 0x18b   :  { %14 = sbr.rel (!%p12_p9) target bundleno = 3 (0x3), region = 84 }

// kernel: resnet_simclr_forward.38
= control target key start
LH: loop header
LB: loop body
LE: loop exit
PB: predicated region body
PF: predicated region fallthrough
CT: control target
= control target key end

     0   :  { %s1533_s15 = smov 0   ;;  %s1535_s16 = smov 0   ;;  %s1735_s0 = inlined_call_operand.vmem [shape: bf16[2,3,1,768], index: 0, kind: input, shape index: {}]   ;;  %s1736_s1 = inlined_call_operand.vmem [shape: bf16[3,768,256], index: 1, kind: input, shape index: {}]   ;;  %s1737_s2 = inlined_call_operand.vmem [shape: f32[1,256], index: 2, kind: input, shape index: {}]   ;;  %s1738_s3 = inlined_call_operand.vmem [shape: f32[1,256], index: 3, kind: input, shape index: {}]   ;;  %s1739_s4 = inlined_call_operand.vmem [shape: f32[2,1,1,256], index: 4, kind: output, shape index: {}]  }
   0x1   :  { %s1537_s17 = smov 0   ;;  %s1539_s18 = smov 0  }
   0x2   :  { %s1541_s19 = smov 0  }
   0x3 LB: > { %s26_s20 = sadd.s32 1, %s1496_s17  ;;  %s33_s21 = sadd.s32 1, %s1500_s18  ;;  %s1504_s19 = sphi %s1541_s19, %s14_s19   ;;  %s1500_s18 = sphi %s1539_s18, %s1743_s18   ;;  %s1496_s17 = sphi %s1537_s17, %s1742_s17   ;;  %s1492_s16 = sphi %s1535_s16, %s1741_s16   ;;  %s1488_s15 = sphi %s1533_s15, %s1740_s15  }
   0x4   : > { %p27_p0 = scmp.ge.s32.totalorder %s26_s20, 3  ;;  %p1167_p1 = scmp.ge.s32.totalorder %s1504_s19, 1 }
   0x5   : > { %p202_p2 = scmp.lt.s32.totalorder %s1504_s19, 7 }
   0x6   : > { %s1745_s20 = smov (%p27_p0, %s26_s20), 0  ;;  %s1747_s21 = smov (!%p27_p0, %s33_s21), %s1500_s18 }
   0x7   : > { %p203_p3 = pnand %p1167_p1, %p202_p2  ;;  %p35_p4 = scmp.ge.s32.totalorder %s1747_s21, 2 }
   0x8   : > { %p241_p5 = scmp.lt.s32.totalorder (!%p203_p3), %s1492_s16, 1  ;;  %p243_p6 = scmp.lt.s32.totalorder (!%p203_p3), %s1488_s15, 2 }
   0x9   : > { %s1749_s21 = smov (%p35_p4, %s1747_s21), 0  ;;  %206 = sbr.rel (%p203_p3) target bundleno = 390 (0x186), region = 36 }
   0xa   : > { %p1170_p7 = scmp.ne.s32.totalorder (!%p203_p3), %s1488_s15, 0 }
  0x10   : > { %s1751_s16 = smov (!%p241_p5, %s1492_s16), 1  ;;  %266 = sbr.rel (%p1170_p7) target bundleno = 23 (0x17), region = 40 }
  0x11   : > { %s244_s22 = scalar_select %p243_p6, %s1488_s15, 2 }
  0x12   : > { %s1277_s23 = smul.u32 18, %s1751_s16  ;;  %s1169_s24 = sshll.u32 %s1751_s16, 1  ;;  %v267_v0 = vlaneseq (!%p1170_p7)  ;;  %v1506_v1 = vmov (!%p1170_p7), 0.0  }
  0x13   : > { %s1276_s25 = smul.u32 6, %s244_s22  ;;  %s1570_s28 = scalar_lea.vmem %s1739_s4, %s1169_s24 }
  0x14   : > { %s1278_s29 = smul.u32 768, %s244_s22  ;;  %vm269_vm0 = vcmp.lt.s32.totalorder (!%p1170_p7), %v267_v0, 256 }
  0x15   : > { %s1572_s30 = sadd.s32 %s1277_s23, %s1276_s25  ;;  %271 = vst.msk [vmem:[#allocation2] sm:$0x3] (!%p1170_p7), %vm269_vm0, %v1506_v1 }
  0x16   : > { %s248_s7 = scalar_lea.vmem %s1735_s0, %s1572_s30  ;;  %s1581_s10 = scalar_lea.vmem %s1736_s1, %s1278_s29 }
  0x17 PF: > { %v1321_v2 = vld [vmem:[%s1581_s10 + $0x104] ss:$8 sps:$4 sm:$0xff]   ;;  %v1323_v3 = vld [vmem:[%s1581_s10 + $0x100] ss:$8 sps:$4 sm:$0xff]   ;;  %v1324_v4 = vld [vmem:[%s1581_s10 + $0x114] ss:$8 sps:$4 sm:$0xff]   ;;  %v375_v12 = vlaneseq }
  0x18   : > { %945 = vmatprep.subr.bf16.mxu0 %v1321_v2  ;;  %v1326_v5 = vld [vmem:[%s1581_s10 + $0x110] ss:$8 sps:$4 sm:$0xff]   ;;  %v1327_v6 = vld [vmem:[%s1581_s10 + $0x124] ss:$8 sps:$4 sm:$0xff]   ;;  %v1329_v7 = vld [vmem:[%s1581_s10 + $0x120] ss:$8 sps:$4 sm:$0xff]  }
  0x19   : > { %946 = vmatpush1.bf16.msra.mxu0 %v1323_v3  ;;  %v1330_v8 = vld [vmem:[%s1581_s10 + $0x134] ss:$8 sps:$4 sm:$0xff]   ;;  %v1332_v9 = vld [vmem:[%s1581_s10 + $0x130] ss:$8 sps:$4 sm:$0xff]   ;;  %v1507_v10 = vmov 1966171168  }
  0x1a   : > { %947 = vmatprep.subr.bf16.mxu0 %v1324_v4  ;;  %v373_v11 = vunpack.c.l.s4 %v1507_v10  ;;  %v1333_v13 = vld [vmem:[%s1581_s10 + $0x144] ss:$8 sps:$4 sm:$0xff]   ;;  %v1335_v14 = vld [vmem:[%s1581_s10 + $0x140] ss:$8 sps:$4 sm:$0xff]   ;;  %v376_v16 = vshrl.u32 %v375_v12, 7  ;;  %vm1048_vm1 = vcmp.lt.s32.totalorder %v375_v12, 256 }
  0x1b   : > { %v1336_v17 = vld [vmem:[%s1581_s10 + $0x154] ss:$8 sps:$4 sm:$0xff]   ;;  %v1338_v18 = vld [vmem:[%s1581_s10 + $0x150] ss:$8 sps:$4 sm:$0xff]   ;;  %v1339_v20 = vld [vmem:[%s1581_s10 + $0x164] ss:$8 sps:$4 sm:$0xff]  }
  0x1c   : > { %v374_v15 = vunpack.c.0.s8 %v373_v11  ;;  %v1368_v21 = vld [vmem:[%s1581_s10 + $0x4] ss:$8 sps:$4 sm:$0xff]   ;;  %v1371_v22 = vld [vmem:[%s1581_s10] ss:$8 sps:$4 sm:$0xff]   ;;  %v1342_v26 = vld [vmem:[%s1581_s10 + $0x174] ss:$8 sps:$4 sm:$0xff]  }
  0x1d   : > { %948 = vmatpush1.bf16.msra.mxu0 %v1326_v5  ;;  %v1607_v23 = vld [vmem:[%s248_s7] sm:$0x3f]  ;;  %904 = vmatprep.subr.bf16.mxu1 %v1368_v21  ;;  %v1376_v28 = vld [vmem:[%s1581_s10 + $0x14] ss:$8 sps:$4 sm:$0xff]   ;;  %v1378_v29 = vld [vmem:[%s1581_s10 + $0x10] ss:$8 sps:$4 sm:$0xff]  }
  0x1e   : > { %949 = vmatprep.subr.bf16.mxu0 %v1327_v6  ;;  %v1597_v19 = vsub.s32 %v374_v15, %v376_v16  ;;  %v1341_v24 = vld [vmem:[%s1581_s10 + $0x160] ss:$8 sps:$4 sm:$0xff]   ;;  %905 = vmatpush1.bf16.msra.mxu1 %v1371_v22  ;;  %v1344_v30 = vld [vmem:[%s1581_s10 + $0x170] ss:$8 sps:$4 sm:$0xff]   ;;  %v1345_v31 = vld [vmem:[%s1581_s10 + $0x184] ss:$8 sps:$4 sm:$0xff]   ;;  %v371_v59 = vcombine.high %v1607_v23, %v1607_v23 }
  0x1f   : > { %906 = vmatprep.subr.bf16.mxu1 %v1376_v28  ;;  %v1382_v33 = vld [vmem:[%s1581_s10 + $0x24] ss:$8 sps:$4 sm:$0xff]   ;;  %v1384_v34 = vld [vmem:[%s1581_s10 + $0x20] ss:$8 sps:$4 sm:$0xff]   ;;  %v1388_v37 = vld [vmem:[%s1581_s10 + $0x34] ss:$8 sps:$4 sm:$0xff]  }
  0x20   : > { %v1612_v25 = vrot.slane %v1607_v23, %v1597_v19  ;;  %v1347_v36 = vld [vmem:[%s1581_s10 + $0x180] ss:$8 sps:$4 sm:$0xff]   ;;  %v1348_v38 = vld [vmem:[%s1581_s10 + $0x194] ss:$8 sps:$4 sm:$0xff]   ;;  %v1390_v39 = vld [vmem:[%s1581_s10 + $0x30] ss:$8 sps:$4 sm:$0xff]   ;;  %v1654_v0 = vrot.slane %v371_v59, %v1597_v19 }
  0x21   : > { %950 = vmatpush1.bf16.msra.mxu0 %v1329_v7  ;;  %v1394_v40 = vld [vmem:[%s1581_s10 + $0x44] ss:$8 sps:$4 sm:$0xff]   ;;  %v1350_v41 = vld [vmem:[%s1581_s10 + $0x190] ss:$8 sps:$4 sm:$0xff]   ;;  %v1396_v43 = vld [vmem:[%s1581_s10 + $0x40] ss:$8 sps:$4 sm:$0xff]  }
  0x22   : > { %951 = vmatprep.subr.bf16.mxu0 %v1330_v8  ;;  %v386_v27 = vcombine.high %v1612_v25, %v1612_v25  ;;  %907 = vmatpush1.bf16.msra.mxu1 %v1378_v29  ;;  %v1351_v42 = vld [vmem:[%s1581_s10 + $0x1a4] ss:$8 sps:$4 sm:$0xff]   ;;  %v1400_v44 = vld [vmem:[%s1581_s10 + $0x54] ss:$8 sps:$4 sm:$0xff]   ;;  %v1353_v45 = vld [vmem:[%s1581_s10 + $0x1a0] ss:$8 sps:$4 sm:$0xff]   ;;  %v394_v4 = vrot.slane %v1612_v25, %v1597_v19  ;;  %v387_v6 = vcombine.high %v1654_v0, %v1654_v0 }
  0x23   : > { %908 = vmatprep.subr.bf16.mxu1 %v1382_v33  ;;  %v1354_v46 = vld [vmem:[%s1581_s10 + $0x1b4] ss:$8 sps:$4 sm:$0xff]   ;;  %v1402_v47 = vld [vmem:[%s1581_s10 + $0x50] ss:$8 sps:$4 sm:$0xff]   ;;  %v1406_v48 = vld [vmem:[%s1581_s10 + $0x64] ss:$8 sps:$4 sm:$0xff]  }
  0x24   : > { %v408_v32 = vrot.slane %v386_v27, %v1597_v19  ;;  %v1356_v49 = vld [vmem:[%s1581_s10 + $0x1b0] ss:$8 sps:$4 sm:$0xff]   ;;  %v1357_v50 = vld [vmem:[%s1581_s10 + $0x1c4] ss:$8 sps:$4 sm:$0xff]   ;;  %v1408_v51 = vld [vmem:[%s1581_s10 + $0x60] ss:$8 sps:$4 sm:$0xff]   ;;  %v415_v11 = vrot.slane %v387_v6, %v1597_v19 }
  0x25   : > { %952 = vmatpush1.bf16.msra.mxu0 %v1332_v9  ;;  %v1412_v52 = vld [vmem:[%s1581_s10 + $0x74] ss:$8 sps:$4 sm:$0xff]   ;;  %v1359_v53 = vld [vmem:[%s1581_s10 + $0x1c0] ss:$8 sps:$4 sm:$0xff]   ;;  %v1414_v55 = vld [vmem:[%s1581_s10 + $0x70] ss:$8 sps:$4 sm:$0xff]   ;;  %v416_v9 = vcombine.high %v394_v4, %v394_v4 }
  0x26   : > { %953 = vmatprep.subr.bf16.mxu0 %v1333_v13  ;;  %v417_v35 = vcombine.high %v408_v32, %v408_v32  ;;  %936 = vmatprep.mubr.bf16.mxu1 %v408_v32  ;;  %v1360_v54 = vld [vmem:[%s1581_s10 + $0x1d4] ss:$8 sps:$4 sm:$0xff]   ;;  %v1418_v56 = vld [vmem:[%s1581_s10 + $0x84] ss:$8 sps:$4 sm:$0xff]   ;;  %v1362_v57 = vld [vmem:[%s1581_s10 + $0x1d0] ss:$8 sps:$4 sm:$0xff]  }
  0x27   : > { %909 = vmatpush1.bf16.msra.mxu1 %v1384_v34  ;;  %v1363_v58 = vld [vmem:[%s1581_s10 + $0x1e4] ss:$8 sps:$4 sm:$0xff]   ;;  %v1420_v60 = vld [vmem:[%s1581_s10 + $0x80] ss:$8 sps:$4 sm:$0xff]   ;;  %v1424_v61 = vld [vmem:[%s1581_s10 + $0x94] ss:$8 sps:$4 sm:$0xff]  }
  0x28   : > { %977 = vmatprep.mubr.bf16.mxu0 %v417_v35  ;;  %910 = vmatprep.subr.bf16.mxu1 %v1388_v37  ;;  %v1365_v62 = vld [vmem:[%s1581_s10 + $0x1e0] ss:$8 sps:$4 sm:$0xff]   ;;  %v1366_v63 = vld [vmem:[%s1581_s10 + $0x1f4] ss:$8 sps:$4 sm:$0xff]   ;;  %v1426_v1 = vld [vmem:[%s1581_s10 + $0x90] ss:$8 sps:$4 sm:$0xff]  }
  0x29   : > { %954 = vmatpush1.bf16.msra.mxu0 %v1335_v14  ;;  %v1430_v2 = vld [vmem:[%s1581_s10 + $0xa4] ss:$8 sps:$4 sm:$0xff]   ;;  %v1370_v3 = vld [vmem:[%s1581_s10 + $0x1f0] ss:$8 sps:$4 sm:$0xff]   ;;  %v1432_v7 = vld [vmem:[%s1581_s10 + $0xa0] ss:$8 sps:$4 sm:$0xff]  }
  0x2a   : > { %955 = vmatprep.subr.bf16.mxu0 %v1336_v17  ;;  %v1375_v5 = vld [vmem:[%s1581_s10 + $0x204] ss:$8 sps:$4 sm:$0xff]   ;;  %v1436_v8 = vld [vmem:[%s1581_s10 + $0xb4] ss:$8 sps:$4 sm:$0xff]   ;;  %v1373_v10 = vld [vmem:[%s1581_s10 + $0x200] ss:$8 sps:$4 sm:$0xff]  }
  0x2b   : > { %911 = vmatpush1.bf16.msra.mxu1 %v1390_v39  ;;  %v1381_v13 = vld [vmem:[%s1581_s10 + $0x214] ss:$8 sps:$4 sm:$0xff]   ;;  %v1438_v14 = vld [vmem:[%s1581_s10 + $0xb0] ss:$8 sps:$4 sm:$0xff]   ;;  %v1442_v15 = vld [vmem:[%s1581_s10 + $0xc4] ss:$8 sps:$4 sm:$0xff]  }
  0x2c   : > { %912 = vmatprep.subr.bf16.mxu1 %v1394_v40  ;;  %v1379_v16 = vld [vmem:[%s1581_s10 + $0x210] ss:$8 sps:$4 sm:$0xff]   ;;  %v1387_v17 = vld [vmem:[%s1581_s10 + $0x224] ss:$8 sps:$4 sm:$0xff]   ;;  %v1385_v21 = vld [vmem:[%s1581_s10 + $0x220] ss:$8 sps:$4 sm:$0xff]  }
  0x2d   : > { %956 = vmatpush1.bf16.msra.mxu0 %v1338_v18  ;;  %v1444_v18 = vld [vmem:[%s1581_s10 + $0xc0] ss:$8 sps:$4 sm:$0xff]   ;;  %v1393_v22 = vld [vmem:[%s1581_s10 + $0x234] ss:$8 sps:$4 sm:$0xff]   ;;  %v1450_v23 = vld [vmem:[%s1581_s10 + $0xd0] ss:$8 sps:$4 sm:$0xff]  }
  0x2e   : > { %957 = vmatprep.subr.bf16.mxu0 %v1339_v20  ;;  %v1448_v20 = vld [vmem:[%s1581_s10 + $0xd4] ss:$8 sps:$4 sm:$0xff]   ;;  %v1391_v25 = vld [vmem:[%s1581_s10 + $0x230] ss:$8 sps:$4 sm:$0xff]   ;;  %v1456_v27 = vld [vmem:[%s1581_s10 + $0xe0] ss:$8 sps:$4 sm:$0xff]  }
  0x2f   : > { %913 = vmatpush1.bf16.msra.mxu1 %v1396_v43  ;;  %v1460_v28 = vld [vmem:[%s1581_s10 + $0xf4] ss:$8 sps:$4 sm:$0xff]   ;;  %v1397_v29 = vld [vmem:[%s1581_s10 + $0x240] ss:$8 sps:$4 sm:$0xff]   ;;  %v1403_v32 = vld [vmem:[%s1581_s10 + $0x250] ss:$8 sps:$4 sm:$0xff]  }
  0x30   : > { %914 = vmatprep.subr.bf16.mxu1 %v1400_v44  ;;  %v1411_v33 = vld [vmem:[%s1581_s10 + $0x264] ss:$8 sps:$4 sm:$0xff]   ;;  %v1409_v34 = vld [vmem:[%s1581_s10 + $0x260] ss:$8 sps:$4 sm:$0xff]   ;;  %v1417_v35 = vld [vmem:[%s1581_s10 + $0x274] ss:$8 sps:$4 sm:$0xff]  }
  0x31   : > { %958 = vmatpush1.bf16.msra.mxu0 %v1341_v24  ;;  %v1454_v24 = vld [vmem:[%s1581_s10 + $0xe4] ss:$8 sps:$4 sm:$0xff]   ;;  %v1429_v39 = vld [vmem:[%s1581_s10 + $0x294] ss:$8 sps:$4 sm:$0xff]   ;;  %v1427_v40 = vld [vmem:[%s1581_s10 + $0x290] ss:$8 sps:$4 sm:$0xff]  }
  0x32   : > { %959 = vmatprep.subr.bf16.mxu0 %v1342_v26  ;;  %v1399_v26 = vld [vmem:[%s1581_s10 + $0x244] ss:$8 sps:$4 sm:$0xff]   ;;  %v1441_v43 = vld [vmem:[%s1581_s10 + $0x2b4] ss:$8 sps:$4 sm:$0xff]   ;;  %v1439_v44 = vld [vmem:[%s1581_s10 + $0x2b0] ss:$8 sps:$4 sm:$0xff]  }
  0x33   : > { %915 = vmatpush1.bf16.msra.mxu1 %v1402_v47  ;;  %v1423_v37 = vld [vmem:[%s1581_s10 + $0x284] ss:$8 sps:$4 sm:$0xff]   ;;  %v1453_v47 = vld [vmem:[%s1581_s10 + $0x2d4] ss:$8 sps:$4 sm:$0xff]   ;;  %p1267_p8 = scmp.ne.s32.totalorder %s1488_s15, 2 }
  0x34   : > { %916 = vmatprep.subr.bf16.mxu1 %v1406_v48  ;;  %v1451_v48 = vld [vmem:[%s1581_s10 + $0x2d0] ss:$8 sps:$4 sm:$0xff]   ;;  %v1056_v6 = vld [vmem:[%s1737_s2] sm:$0x3] (!%p1267_p8) }
  0x35   : > { %960 = vmatpush1.bf16.msra.mxu0 %v1344_v30  ;;  %v1405_v30 = vld [vmem:[%s1581_s10 + $0x254] ss:$8 sps:$4 sm:$0xff]  }
  0x36   : > { %961 = vmatprep.subr.bf16.mxu0 %v1345_v31  ;;  %v1462_v31 = vld [vmem:[%s1581_s10 + $0xf0] ss:$8 sps:$4 sm:$0xff]  }
  0x37   : > { %917 = vmatpush1.bf16.msra.mxu1 %v1408_v51  ;;  %v1465_v51 = vld [vmem:[%s1581_s10 + $0x2f4] ss:$8 sps:$4 sm:$0xff]  }
  0x38   : > { %918 = vmatprep.subr.bf16.mxu1 %v1412_v52  ;;  %v1463_v52 = vld [vmem:[%s1581_s10 + $0x2f0] ss:$8 sps:$4 sm:$0xff]  }
  0x39   : > { %962 = vmatpush1.bf16.msra.mxu0 %v1347_v36  ;;  %v1415_v36 = vld [vmem:[%s1581_s10 + $0x270] ss:$8 sps:$4 sm:$0xff]  }
  0x3a   : > { %963 = vmatprep.subr.bf16.mxu0 %v1348_v38  ;;  %v1421_v38 = vld [vmem:[%s1581_s10 + $0x280] ss:$8 sps:$4 sm:$0xff]  }
  0x3b   : > { %919 = vmatpush1.bf16.msra.mxu1 %v1414_v55 }
  0x3c   : > { %920 = vmatprep.subr.bf16.mxu1 %v1418_v56 }
  0x3d   : > { %964 = vmatpush1.bf16.msra.mxu0 %v1350_v41  ;;  %v1435_v41 = vld [vmem:[%s1581_s10 + $0x2a4] ss:$8 sps:$4 sm:$0xff]  }
  0x3e   : > { %965 = vmatprep.subr.bf16.mxu0 %v1351_v42  ;;  %v1433_v42 = vld [vmem:[%s1581_s10 + $0x2a0] ss:$8 sps:$4 sm:$0xff]  }
  0x3f   : > { %921 = vmatpush1.bf16.msra.mxu1 %v1420_v60 }
  0x40   : > { %922 = vmatprep.subr.bf16.mxu1 %v1424_v61 }
  0x41   : > { %966 = vmatpush1.bf16.msra.mxu0 %v1353_v45  ;;  %v1447_v45 = vld [vmem:[%s1581_s10 + $0x2c4] ss:$8 sps:$4 sm:$0xff]  }
  0x42   : > { %967 = vmatprep.subr.bf16.mxu0 %v1354_v46  ;;  %v1445_v46 = vld [vmem:[%s1581_s10 + $0x2c0] ss:$8 sps:$4 sm:$0xff]  }
  0x43   : > { %923 = vmatpush1.bf16.msra.mxu1 %v1426_v1 }
  0x44   : > { %924 = vmatprep.subr.bf16.mxu1 %v1430_v2 }
  0x45   : > { %968 = vmatpush1.bf16.msra.mxu0 %v1356_v49  ;;  %v1459_v49 = vld [vmem:[%s1581_s10 + $0x2e4] ss:$8 sps:$4 sm:$0xff]  }
  0x46   : > { %969 = vmatprep.subr.bf16.mxu0 %v1357_v50  ;;  %v1457_v50 = vld [vmem:[%s1581_s10 + $0x2e0] ss:$8 sps:$4 sm:$0xff]  }
  0x47   : > { %925 = vmatpush1.bf16.msra.mxu1 %v1432_v7  ;;  %v1058_v7 = vld [vmem:[%s1738_s3] sm:$0x3] (!%p1267_p8) }
  0x48   : > { %926 = vmatprep.subr.bf16.mxu1 %v1436_v8 }
  0x49   : > { %970 = vmatpush1.bf16.msra.mxu0 %v1359_v53  ;;  %v401_v53 = vrot.slane %v1654_v0, %v1597_v19 }
  0x4a   : > { %971 = vmatprep.subr.bf16.mxu0 %v1360_v54 }
  0x4b   : > { %927 = vmatpush1.bf16.msra.mxu1 %v1438_v14 }
  0x4c   : > { %928 = vmatprep.subr.bf16.mxu1 %v1442_v15 }
  0x4d   : > { %972 = vmatpush1.bf16.msra.mxu0 %v1362_v57 }
  0x4e   : > { %973 = vmatprep.subr.bf16.mxu0 %v1363_v58 }
  0x4f   : > { %929 = vmatpush1.bf16.msra.mxu1 %v1444_v18 }
  0x50   : > { %930 = vmatprep.subr.bf16.mxu1 %v1448_v20 }
  0x51   : > { %974 = vmatpush1.bf16.msra.mxu0 %v1365_v62 }
  0x52   : > { %975 = vmatprep.subr.bf16.mxu0 %v1366_v63 }
  0x53   : > { %931 = vmatpush1.bf16.msra.mxu1 %v1450_v23 }
  0x54   : > { %932 = vmatprep.subr.bf16.mxu1 %v1454_v24 }
  0x55   : > { %976 = vmatpush1.bf16.msra.mxu0 %v1370_v3  ;;  %v369_v3 = vld [vmem:[#allocation2] sm:$0x3] }
  0x56   : > { %986 = vmatprep.subr.bf16.mxu0 %v1375_v5 }
  0x57   : > { %933 = vmatpush1.bf16.msra.mxu1 %v1456_v27 }
  0x58   : > { %978 = vmatmul.mubr.bf16.vlgmr.msra.gmra.mrb[0].mxu0 %v416_v9  ;;  %934 = vmatprep.subr.bf16.mxu1 %v1460_v28 }
  0x59   : > { %987 = vmatpush1.bf16.msra.mxu0 %v1373_v10  ;;  %1018 = vmatprep.mubr.bf16.mxu0 %v415_v11 }
  0x5a   : > { %988 = vmatprep.subr.bf16.mxu0 %v1381_v13 }
  0x5b   : > { %935 = vmatpush1.bf16.msra.mxu1 %v1462_v31 }
  0x5d   : > { %989 = vmatpush1.bf16.msra.mxu0 %v1379_v16 }
  0x5e   : > { %990 = vmatprep.subr.bf16.mxu0 %v1387_v17  ;;  %937 = vmatmul.mubr.bf16.vlgmr.msra.gmra.mrb[0].mxu1 %v394_v4 }
  0x61   : > { %991 = vmatpush1.bf16.msra.mxu0 %v1385_v21 }
  0x62   : > { %992 = vmatprep.subr.bf16.mxu0 %v1393_v22 }
  0x65   : > { %993 = vmatpush1.bf16.msra.mxu0 %v1391_v25 }
  0x66   : > { %994 = vmatprep.subr.bf16.mxu0 %v1399_v26 }
  0x69   : > { %995 = vmatpush1.bf16.msra.mxu0 %v1397_v29 }
  0x6a   : > { %996 = vmatprep.subr.bf16.mxu0 %v1405_v30 }
  0x6d   : > { %997 = vmatpush1.bf16.msra.mxu0 %v1403_v32 }
  0x6e   : > { %998 = vmatprep.subr.bf16.mxu0 %v1411_v33 }
  0x71   : > { %999 = vmatpush1.bf16.msra.mxu0 %v1409_v34 }
  0x72   : > { %1000 = vmatprep.subr.bf16.mxu0 %v1417_v35 }
  0x75   : > { %1001 = vmatpush1.bf16.msra.mxu0 %v1415_v36 }
  0x76   : > { %1002 = vmatprep.subr.bf16.mxu0 %v1423_v37 }
  0x79   : > { %1003 = vmatpush1.bf16.msra.mxu0 %v1421_v38 }
  0x7a   : > { %1004 = vmatprep.subr.bf16.mxu0 %v1429_v39 }
  0x7d   : > { %1005 = vmatpush1.bf16.msra.mxu0 %v1427_v40 }
  0x7e   : > { %1006 = vmatprep.subr.bf16.mxu0 %v1435_v41 }
  0x81   : > { %1007 = vmatpush1.bf16.msra.mxu0 %v1433_v42 }
  0x82   : > { %1008 = vmatprep.subr.bf16.mxu0 %v1441_v43 }
  0x85   : > { %1009 = vmatpush1.bf16.msra.mxu0 %v1439_v44 }
  0x86   : > { %1010 = vmatprep.subr.bf16.mxu0 %v1447_v45 }
  0x89   : > { %1011 = vmatpush1.bf16.msra.mxu0 %v1445_v46 }
  0x8a   : > { %1012 = vmatprep.subr.bf16.mxu0 %v1453_v47 }
  0x8d   : > { %1013 = vmatpush1.bf16.msra.mxu0 %v1451_v48 }
  0x8e   : > { %1014 = vmatprep.subr.bf16.mxu0 %v1459_v49 }
  0x91   : > { %1015 = vmatpush1.bf16.msra.mxu0 %v1457_v50 }
  0x92   : > { %1016 = vmatprep.subr.bf16.mxu0 %v1465_v51 }
  0x95   : > { %1017 = vmatpush1.bf16.msra.mxu0 %v1463_v52 }
  0x98   : > { %1019 = vmatmul.mubr.bf16.vlgmr.msra.gmra.mrb[0].mxu0 %v401_v53 }
 0x131   : > { %v938_v54 = vpop.f32.mrb[0].mxu1 }
 0x132   : > { %v940_v55 = vpop.f32.mrb[1].mxu1 }
 0x133   : > { %v942_v56 = vpop.f32.mrb[2].mxu1 }
 0x134   : > { %v943_v57 = vpop.f32.mrb[3].mxu1 }
 0x16b   : > { %v1020_v58 = vpop.f32.mrb[0].mxu0 }
 0x16c   : > { %v1270_v59 = vadd.f32 %v1020_v58, %v938_v54  ;;  %v1022_v60 = vpop.f32.mrb[1].mxu0 }
 0x16d   : > { %v1271_v61 = vadd.f32 %v1022_v60, %v940_v55  ;;  %v1024_v62 = vpop.f32.mrb[2].mxu0 }
 0x16e   : > { %v1025_v63 = vpop.f32.mrb[3].mxu0 }
 0x16f   : > { %v1029_v1 = vcombine.low %v1270_v59, %v1271_v61 }
 0x171   : > { %v1036_v2 = vrot.slane %v1029_v1, %v1597_v19  ;;  %1054 = sbr.rel (%p1267_p8) target bundleno = 390 (0x186), region = 44 }
 0x173   : > { %v1043_v4 = vrot.slane %v1036_v2, %v1597_v19 }
 0x175   : > { %v1045_v0 = vadd.f32 %v1043_v4, %v369_v3 }
 0x177   : > { %1050 = vst.msk [vmem:[#allocation2] sm:$0x3] %vm1048_vm1, %v1045_v0 }
 0x17e   : > { %v1055_v5 = vld [vmem:[#allocation2] sm:$0x3] }
 0x17f   : > { %v1057_v8 = vmul.f32 %v1056_v6, %v1055_v5 }
 0x181   : > { %v1059_v9 = vadd.f32 %v1058_v7, %v1057_v8 }
 0x183   : > { %v1060_v19 = vmax.f32 %v1059_v9, 0.0 }
 0x185   : > { %1061 = vst.msk [vmem:[%s1570_s28] sm:$0x3] %vm1048_vm1, %v1060_v19 }
 0x186 PF: > { %s14_s19 = sadd.s32 1, %s1504_s19   ;;  %s1740_s15 = smov %s1496_s17 }
 0x187   : > { %p11_p9 = scmp.ge.s32.totalorder %s14_s19, 8   ;;  %s1741_s16 = smov %s1500_s18 }
 0x188   : > { %s1742_s17 = smov %s1745_s20  ;;  %s1743_s18 = smov %s1749_s21 }
 0x189   :  { %13 = sbr.rel (!%p11_p9) target bundleno = 3 (0x3), region = 77 }

// kernel: resnet_simclr_forward.41
= control target key start
LH: loop header
LB: loop body
LE: loop exit
PB: predicated region body
PF: predicated region fallthrough
CT: control target
= control target key end

     0   :  { %s1166_s15 = smov 0   ;;  %s1168_s16 = smov 0   ;;  %s1424_s0 = inlined_call_operand.vmem [shape: bf16[2,1,1,256], index: 0, kind: input, shape index: {}]   ;;  %s1425_s1 = inlined_call_operand.vmem [shape: bf16[1,256,512], index: 1, kind: input, shape index: {}]   ;;  %s1426_s2 = inlined_call_operand.vmem [shape: f32[1,512], index: 2, kind: input, shape index: {}]   ;;  %s1427_s3 = inlined_call_operand.vmem [shape: f32[1,512], index: 3, kind: input, shape index: {}]   ;;  %s1428_s4 = inlined_call_operand.vmem [shape: f32[2,1,1,512], index: 4, kind: output, shape index: {}]  }
   0x1   :  { %s1170_s17 = smov 0  }
   0x2 LB: > { %s33_s18 = sadd.s32 1, %s1133_s16  ;;  %p923_p0 = scmp.ge.s32.totalorder %s1137_s17, 1  ;;  %s1137_s17 = sphi %s1170_s17, %s14_s17   ;;  %s1133_s16 = sphi %s1168_s16, %s1432_s16   ;;  %s1129_s15 = sphi %s1166_s15, %s1431_s15  }
   0x3   : > { %p35_p1 = scmp.ge.s32.totalorder %s33_s18, 2  ;;  %p206_p2 = scmp.lt.s32.totalorder %s1137_s17, 3 }
   0x5   : > { %s1434_s18 = smov (%p35_p1, %s33_s18), 0  ;;  %p207_p3 = pnand %p923_p0, %p206_p2 }
   0x6   : > { %v1019_v0 = vld [vmem:[%s1425_s1 + $0x4] ss:$16 sps:$4 sm:$0xff] (!%p207_p3)   ;;  %v1021_v1 = vld [vmem:[%s1425_s1 + $0xc] ss:$16 sps:$4 sm:$0xff] (!%p207_p3)   ;;  %v1023_v2 = vld [vmem:[%s1425_s1] ss:$16 sps:$4 sm:$0xff] (!%p207_p3)   ;;  %v274_v38 = vlaneseq (!%p207_p3) }
   0x7   : > { %210 = sbr.rel (%p207_p3) target bundleno = 307 (0x133), region = 36  ;;  %690 = vmatprep.subr.bf16.mxu0 (!%p207_p3), %v1019_v0  ;;  %v1024_v3 = vld [vmem:[%s1425_s1 + $0x8] ss:$16 sps:$4 sm:$0xff] (!%p207_p3)   ;;  %731 = vmatprep.subr.bf16.mxu1 (!%p207_p3), %v1021_v1  ;;  %v1025_v4 = vld [vmem:[%s1425_s1 + $0x24] ss:$16 sps:$4 sm:$0xff] (!%p207_p3)   ;;  %p247_p4 = scmp.lt.s32.totalorder (!%p207_p3), %s1129_s15, 1 }
   0x8   : > { %691 = vmatpush1.bf16.msra.mxu0 (!%p207_p3), %v1023_v2  ;;  %732 = vmatpush1.bf16.msra.mxu1 (!%p207_p3), %v1024_v3  ;;  %v1027_v5 = vld [vmem:[%s1425_s1 + $0x2c] ss:$16 sps:$4 sm:$0xff] (!%p207_p3)   ;;  %v1029_v6 = vld [vmem:[%s1425_s1 + $0x20] ss:$16 sps:$4 sm:$0xff] (!%p207_p3)   ;;  %v1030_v7 = vld [vmem:[%s1425_s1 + $0x28] ss:$16 sps:$4 sm:$0xff] (!%p207_p3)  }
   0x9   : > { %692 = vmatprep.subr.bf16.mxu0 (!%p207_p3), %v1025_v4  ;;  %733 = vmatprep.subr.bf16.mxu1 (!%p207_p3), %v1027_v5  ;;  %v1031_v8 = vld [vmem:[%s1425_s1 + $0x44] ss:$16 sps:$4 sm:$0xff] (!%p207_p3)   ;;  %v1033_v9 = vld [vmem:[%s1425_s1 + $0x4c] ss:$16 sps:$4 sm:$0xff] (!%p207_p3)   ;;  %v1035_v10 = vld [vmem:[%s1425_s1 + $0x40] ss:$16 sps:$4 sm:$0xff] (!%p207_p3)  }
   0xa   : > { %v1036_v11 = vld [vmem:[%s1425_s1 + $0x48] ss:$16 sps:$4 sm:$0xff] (!%p207_p3)   ;;  %v1037_v12 = vld [vmem:[%s1425_s1 + $0x64] ss:$16 sps:$4 sm:$0xff] (!%p207_p3)   ;;  %v1039_v13 = vld [vmem:[%s1425_s1 + $0x6c] ss:$16 sps:$4 sm:$0xff] (!%p207_p3)  }
   0xb   : > { %v1041_v14 = vld [vmem:[%s1425_s1 + $0x60] ss:$16 sps:$4 sm:$0xff] (!%p207_p3)   ;;  %v1042_v15 = vld [vmem:[%s1425_s1 + $0x68] ss:$16 sps:$4 sm:$0xff] (!%p207_p3)   ;;  %v1043_v16 = vld [vmem:[%s1425_s1 + $0x84] ss:$16 sps:$4 sm:$0xff] (!%p207_p3)  }
   0xc   : > { %693 = vmatpush1.bf16.msra.mxu0 (!%p207_p3), %v1029_v6  ;;  %734 = vmatpush1.bf16.msra.mxu1 (!%p207_p3), %v1030_v7  ;;  %v1045_v17 = vld [vmem:[%s1425_s1 + $0x8c] ss:$16 sps:$4 sm:$0xff] (!%p207_p3)   ;;  %v1047_v18 = vld [vmem:[%s1425_s1 + $0x80] ss:$16 sps:$4 sm:$0xff] (!%p207_p3)   ;;  %v1048_v19 = vld [vmem:[%s1425_s1 + $0x88] ss:$16 sps:$4 sm:$0xff] (!%p207_p3)  }
   0xd   : > { %694 = vmatprep.subr.bf16.mxu0 (!%p207_p3), %v1031_v8  ;;  %735 = vmatprep.subr.bf16.mxu1 (!%p207_p3), %v1033_v9  ;;  %v1049_v20 = vld [vmem:[%s1425_s1 + $0xa4] ss:$16 sps:$4 sm:$0xff] (!%p207_p3)   ;;  %v1051_v21 = vld [vmem:[%s1425_s1 + $0xac] ss:$16 sps:$4 sm:$0xff] (!%p207_p3)   ;;  %v1053_v22 = vld [vmem:[%s1425_s1 + $0xa0] ss:$16 sps:$4 sm:$0xff] (!%p207_p3)  }
   0xe   : > { %v1054_v23 = vld [vmem:[%s1425_s1 + $0xa8] ss:$16 sps:$4 sm:$0xff]   ;;  %v1055_v24 = vld [vmem:[%s1425_s1 + $0xc4] ss:$16 sps:$4 sm:$0xff]   ;;  %v1057_v25 = vld [vmem:[%s1425_s1 + $0xcc] ss:$16 sps:$4 sm:$0xff]  }
   0xf   : > { %v1059_v26 = vld [vmem:[%s1425_s1 + $0xc0] ss:$16 sps:$4 sm:$0xff]   ;;  %v1060_v27 = vld [vmem:[%s1425_s1 + $0xc8] ss:$16 sps:$4 sm:$0xff]   ;;  %v1061_v28 = vld [vmem:[%s1425_s1 + $0xe4] ss:$16 sps:$4 sm:$0xff]  }
  0x10   : > { %695 = vmatpush1.bf16.msra.mxu0 %v1035_v10  ;;  %736 = vmatpush1.bf16.msra.mxu1 %v1036_v11  ;;  %v1063_v29 = vld [vmem:[%s1425_s1 + $0xec] ss:$16 sps:$4 sm:$0xff]   ;;  %v1065_v30 = vld [vmem:[%s1425_s1 + $0xe0] ss:$16 sps:$4 sm:$0xff]   ;;  %v1066_v31 = vld [vmem:[%s1425_s1 + $0xe8] ss:$16 sps:$4 sm:$0xff]  }
  0x11   : > { %696 = vmatprep.subr.bf16.mxu0 %v1037_v12  ;;  %737 = vmatprep.subr.bf16.mxu1 %v1039_v13  ;;  %v1067_v32 = vld [vmem:[%s1425_s1 + $0x104] ss:$16 sps:$4 sm:$0xff]   ;;  %v1069_v33 = vld [vmem:[%s1425_s1 + $0x10c] ss:$16 sps:$4 sm:$0xff]   ;;  %v1071_v34 = vld [vmem:[%s1425_s1 + $0x100] ss:$16 sps:$4 sm:$0xff]  }
  0x12   : > { %v1072_v35 = vld [vmem:[%s1425_s1 + $0x108] ss:$16 sps:$4 sm:$0xff]   ;;  %v1073_v36 = vld [vmem:[%s1425_s1 + $0x124] ss:$16 sps:$4 sm:$0xff]   ;;  %v1075_v37 = vld [vmem:[%s1425_s1 + $0x12c] ss:$16 sps:$4 sm:$0xff]  }
  0x13   : > { %s1436_s15 = smov (!%p247_p4, %s1129_s15), 1  ;;  %v1139_v39 = vmov 1966171168   ;;  %v1077_v41 = vld [vmem:[%s1425_s1 + $0x120] ss:$16 sps:$4 sm:$0xff]   ;;  %v358_v46 = vshrl.u32 %v274_v38, 7 }
  0x14   : > { %697 = vmatpush1.bf16.msra.mxu0 %v1041_v14  ;;  %738 = vmatpush1.bf16.msra.mxu1 %v1042_v15  ;;  %v355_v40 = vunpack.c.l.s4 %v1139_v39  ;;  %v1078_v42 = vld [vmem:[%s1425_s1 + $0x128] ss:$16 sps:$4 sm:$0xff]   ;;  %v1079_v43 = vld [vmem:[%s1425_s1 + $0x144] ss:$16 sps:$4 sm:$0xff]   ;;  %v1081_v44 = vld [vmem:[%s1425_s1 + $0x14c] ss:$16 sps:$4 sm:$0xff]  }
  0x15   : > { %698 = vmatprep.subr.bf16.mxu0 %v1043_v16  ;;  %739 = vmatprep.subr.bf16.mxu1 %v1045_v17  ;;  %s924_s11 = sshll.u32 %s1436_s15, 1  ;;  %v1083_v47 = vld [vmem:[%s1425_s1 + $0x140] ss:$16 sps:$4 sm:$0xff]   ;;  %v1084_v48 = vld [vmem:[%s1425_s1 + $0x148] ss:$16 sps:$4 sm:$0xff]   ;;  %vm1392_vm0 = vcmp.lt.s32.totalorder %v274_v38, 512 }
  0x16   : > { %v356_v45 = vunpack.c.0.s8 %v355_v40  ;;  %v1085_v49 = vld [vmem:[%s1425_s1 + $0x164] ss:$16 sps:$4 sm:$0xff]   ;;  %s254_s24 = scalar_lea.vmem %s1424_s0, %s924_s11  ;;  %v1087_v50 = vld [vmem:[%s1425_s1 + $0x16c] ss:$16 sps:$4 sm:$0xff]   ;;  %v1089_v53 = vld [vmem:[%s1425_s1 + $0x160] ss:$16 sps:$4 sm:$0xff]  }
  0x17   : > { %v926_v52 = vld.sshfl [vmem:[%s254_s24] sm:$0x11 pattern:$0x75316420]  ;;  %v1090_v54 = vld [vmem:[%s1425_s1 + $0x168] ss:$16 sps:$4 sm:$0xff]  }
  0x18   : > { %699 = vmatpush1.bf16.msra.mxu0 %v1047_v18  ;;  %740 = vmatpush1.bf16.msra.mxu1 %v1048_v19  ;;  %v1333_v51 = vsub.s32 %v356_v45, %v358_v46  ;;  %v353_v55 = vcombine.high %v926_v52, %v926_v52  ;;  %v1091_v56 = vld [vmem:[%s1425_s1 + $0x184] ss:$16 sps:$4 sm:$0xff]   ;;  %v1093_v57 = vld [vmem:[%s1425_s1 + $0x18c] ss:$16 sps:$4 sm:$0xff]   ;;  %v1095_v59 = vld [vmem:[%s1425_s1 + $0x180] ss:$16 sps:$4 sm:$0xff]  }
  0x19   : > { %700 = vmatprep.subr.bf16.mxu0 %v1049_v20  ;;  %741 = vmatprep.subr.bf16.mxu1 %v1051_v21  ;;  %v1096_v60 = vld [vmem:[%s1425_s1 + $0x188] ss:$16 sps:$4 sm:$0xff]   ;;  %v1097_v61 = vld [vmem:[%s1425_s1 + $0x1a4] ss:$16 sps:$4 sm:$0xff]   ;;  %v1099_v62 = vld [vmem:[%s1425_s1 + $0x1ac] ss:$16 sps:$4 sm:$0xff]  }
  0x1a   : > { %v367_v58 = vrot.slane %v353_v55, %v1333_v51  ;;  %v1101_v63 = vld [vmem:[%s1425_s1 + $0x1a0] ss:$16 sps:$4 sm:$0xff]   ;;  %v1102_v0 = vld [vmem:[%s1425_s1 + $0x1a8] ss:$16 sps:$4 sm:$0xff]   ;;  %v1103_v1 = vld [vmem:[%s1425_s1 + $0x1c4] ss:$16 sps:$4 sm:$0xff]   ;;  %v360_v9 = vrot.slane %v926_v52, %v1333_v51 }
  0x1b   : > { %v1105_v2 = vld [vmem:[%s1425_s1 + $0x1cc] ss:$16 sps:$4 sm:$0xff]   ;;  %v1107_v3 = vld [vmem:[%s1425_s1 + $0x1c0] ss:$16 sps:$4 sm:$0xff]   ;;  %v1108_v4 = vld [vmem:[%s1425_s1 + $0x1c8] ss:$16 sps:$4 sm:$0xff]  }
  0x1c   : > { %701 = vmatpush1.bf16.msra.mxu0 %v1053_v22  ;;  %742 = vmatpush1.bf16.msra.mxu1 %v1054_v23  ;;  %v1109_v5 = vld [vmem:[%s1425_s1 + $0x1e4] ss:$16 sps:$4 sm:$0xff]   ;;  %v1111_v6 = vld [vmem:[%s1425_s1 + $0x1ec] ss:$16 sps:$4 sm:$0xff]   ;;  %v1113_v7 = vld [vmem:[%s1425_s1 + $0x1e0] ss:$16 sps:$4 sm:$0xff]  }
  0x1d   : > { %702 = vmatprep.subr.bf16.mxu0 %v1055_v24  ;;  %743 = vmatprep.subr.bf16.mxu1 %v1057_v25  ;;  %v1114_v8 = vld [vmem:[%s1425_s1 + $0x1e8] ss:$16 sps:$4 sm:$0xff]   ;;  %v1140_v11 = vmov 0.0   ;;  %s925_s21 = sshll.u32 %s1436_s15, 2 }
  0x1e   : > { %722 = vmatprep.mubr.bf16.mxu0 %v367_v58  ;;  %763 = vmatprep.mubr.bf16.mxu1 %v367_v58  ;;  %278 = vst.msk [vmem:[#allocation2] sm:$0xf] %vm1392_vm0, %v1140_v11  ;;  %s269_s26 = scalar_lea.vmem %s1428_s4, %s925_s21 }
  0x20   : > { %703 = vmatpush1.bf16.msra.mxu0 %v1059_v26  ;;  %744 = vmatpush1.bf16.msra.mxu1 %v1060_v27 }
  0x21   : > { %704 = vmatprep.subr.bf16.mxu0 %v1061_v28  ;;  %745 = vmatprep.subr.bf16.mxu1 %v1063_v29  ;;  %v811_v28 = vld [vmem:[%s1426_s2] sm:$0xf] }
  0x24   : > { %705 = vmatpush1.bf16.msra.mxu0 %v1065_v30  ;;  %746 = vmatpush1.bf16.msra.mxu1 %v1066_v31  ;;  %v813_v30 = vld [vmem:[%s1427_s3] sm:$0xf] }
  0x25   : > { %706 = vmatprep.subr.bf16.mxu0 %v1067_v32  ;;  %747 = vmatprep.subr.bf16.mxu1 %v1069_v33  ;;  %v344_v25 = vld [vmem:[#allocation2] sm:$0xf] }
  0x28   : > { %707 = vmatpush1.bf16.msra.mxu0 %v1071_v34  ;;  %748 = vmatpush1.bf16.msra.mxu1 %v1072_v35 }
  0x29   : > { %708 = vmatprep.subr.bf16.mxu0 %v1073_v36  ;;  %749 = vmatprep.subr.bf16.mxu1 %v1075_v37 }
  0x2c   : > { %709 = vmatpush1.bf16.msra.mxu0 %v1077_v41  ;;  %750 = vmatpush1.bf16.msra.mxu1 %v1078_v42 }
  0x2d   : > { %710 = vmatprep.subr.bf16.mxu0 %v1079_v43  ;;  %751 = vmatprep.subr.bf16.mxu1 %v1081_v44 }
  0x30   : > { %711 = vmatpush1.bf16.msra.mxu0 %v1083_v47  ;;  %752 = vmatpush1.bf16.msra.mxu1 %v1084_v48 }
  0x31   : > { %712 = vmatprep.subr.bf16.mxu0 %v1085_v49  ;;  %753 = vmatprep.subr.bf16.mxu1 %v1087_v50 }
  0x34   : > { %713 = vmatpush1.bf16.msra.mxu0 %v1089_v53  ;;  %754 = vmatpush1.bf16.msra.mxu1 %v1090_v54 }
  0x35   : > { %714 = vmatprep.subr.bf16.mxu0 %v1091_v56  ;;  %755 = vmatprep.subr.bf16.mxu1 %v1093_v57 }
  0x38   : > { %715 = vmatpush1.bf16.msra.mxu0 %v1095_v59  ;;  %756 = vmatpush1.bf16.msra.mxu1 %v1096_v60 }
  0x39   : > { %716 = vmatprep.subr.bf16.mxu0 %v1097_v61  ;;  %757 = vmatprep.subr.bf16.mxu1 %v1099_v62 }
  0x3c   : > { %717 = vmatpush1.bf16.msra.mxu0 %v1101_v63  ;;  %758 = vmatpush1.bf16.msra.mxu1 %v1102_v0 }
  0x3d   : > { %718 = vmatprep.subr.bf16.mxu0 %v1103_v1  ;;  %759 = vmatprep.subr.bf16.mxu1 %v1105_v2 }
  0x40   : > { %719 = vmatpush1.bf16.msra.mxu0 %v1107_v3  ;;  %760 = vmatpush1.bf16.msra.mxu1 %v1108_v4 }
  0x41   : > { %720 = vmatprep.subr.bf16.mxu0 %v1109_v5  ;;  %761 = vmatprep.subr.bf16.mxu1 %v1111_v6 }
  0x44   : > { %721 = vmatpush1.bf16.msra.mxu0 %v1113_v7  ;;  %762 = vmatpush1.bf16.msra.mxu1 %v1114_v8 }
  0x47   : > { %723 = vmatmul.mubr.bf16.vlgmr.msra.gmra.mrb[0].mxu0 %v360_v9  ;;  %764 = vmatmul.mubr.bf16.vlgmr.msra.gmra.mrb[0].mxu1 %v360_v9 }
 0x11a   : > { %v724_v12 = vpop.f32.mrb[0].mxu0  ;;  %v765_v13 = vpop.f32.mrb[0].mxu1 }
 0x11b   : > { %v726_v14 = vpop.f32.mrb[1].mxu0  ;;  %v767_v15 = vpop.f32.mrb[1].mxu1 }
 0x11c   : > { %v776_v16 = vcombine.low %v724_v12, %v726_v14  ;;  %v777_v17 = vcombine.low %v765_v13, %v767_v15  ;;  %v728_v18 = vpop.f32.mrb[2].mxu0  ;;  %v769_v19 = vpop.f32.mrb[2].mxu1 }
 0x11d   : > { %v729_v20 = vpop.f32.mrb[3].mxu0  ;;  %v770_v21 = vpop.f32.mrb[3].mxu1 }
 0x11e   : > { %v784_v22 = vrot.slane %v776_v16, %v1333_v51  ;;  %v791_v23 = vrot.slane %v777_v17, %v1333_v51 }
 0x120   : > { %v792_v24 = vcombine.low %v784_v22, %v791_v23 }
 0x122   : > { %v799_v26 = vrot.slane %v792_v24, %v1333_v51 }
 0x124   : > { %v801_v27 = vadd.f32 %v799_v26, %v344_v25 }
 0x126   : > { %806 = vst.msk [vmem:[#allocation2] sm:$0xf] %vm1392_vm0, %v801_v27 }
 0x12d   : > { %v810_v29 = vld [vmem:[#allocation2] sm:$0xf] }
 0x12e   : > { %v812_v31 = vmul.f32 %v811_v28, %v810_v29 }
 0x130   : > { %v814_v32 = vadd.f32 %v813_v30, %v812_v31 }
 0x132   : > { %815 = vst.msk [vmem:[%s269_s26] sm:$0xf] %vm1392_vm0, %v814_v32 }
 0x133 PF: > { %s14_s17 = sadd.s32 1, %s1137_s17   ;;  %s1431_s15 = smov %s1133_s16 }
 0x134   : > { %p11_p5 = scmp.ge.s32.totalorder %s14_s17, 4   ;;  %s1432_s16 = smov %s1434_s18 }
 0x136   :  { %13 = sbr.rel (!%p11_p5) target bundleno = 2 (0x2), region = 77 }

// kernel: resnet_simclr_forward.40
= control target key start
LH: loop header
LB: loop body
LE: loop exit
PB: predicated region body
PF: predicated region fallthrough
CT: control target
= control target key end

     0   :  { %s2500_s15 = smov 0   ;;  %s2502_s16 = smov 0   ;;  %s2800_s0 = inlined_call_operand.vmem [shape: bf16[2,3,1,768], index: 0, kind: input, shape index: {}]   ;;  %s2801_s1 = inlined_call_operand.vmem [shape: bf16[3,768,512], index: 1, kind: input, shape index: {}]   ;;  %s2802_s2 = inlined_call_operand.vmem [shape: f32[1,512], index: 2, kind: input, shape index: {}]   ;;  %s2803_s3 = inlined_call_operand.vmem [shape: f32[1,512], index: 3, kind: input, shape index: {}]   ;;  %s2804_s4 = inlined_call_operand.vmem [shape: f32[2,1,1,512], index: 4, kind: output, shape index: {}]  }
   0x1   :  { %s2504_s17 = smov 0   ;;  %s2506_s18 = smov 0  }
   0x2   :  { %s2508_s19 = smov 0  }
   0x3 LB: > { %s26_s20 = sadd.s32 1, %s2463_s17  ;;  %s33_s21 = sadd.s32 1, %s2467_s18  ;;  %s2471_s19 = sphi %s2508_s19, %s14_s19   ;;  %s2467_s18 = sphi %s2506_s18, %s2808_s18   ;;  %s2463_s17 = sphi %s2504_s17, %s2807_s17   ;;  %s2459_s16 = sphi %s2502_s16, %s2806_s16   ;;  %s2455_s15 = sphi %s2500_s15, %s2805_s15  }
   0x4   : > { %p27_p0 = scmp.ge.s32.totalorder %s26_s20, 3  ;;  %p1884_p1 = scmp.ge.s32.totalorder %s2471_s19, 1 }
   0x5   : > { %p206_p2 = scmp.lt.s32.totalorder %s2471_s19, 7 }
   0x6   : > { %s2810_s20 = smov (%p27_p0, %s26_s20), 0  ;;  %s2812_s21 = smov (!%p27_p0, %s33_s21), %s2467_s18 }
   0x7   : > { %p207_p3 = pnand %p1884_p1, %p206_p2  ;;  %p35_p4 = scmp.ge.s32.totalorder %s2812_s21, 2 }
   0x8   : > { %p247_p5 = scmp.lt.s32.totalorder (!%p207_p3), %s2459_s16, 1  ;;  %p249_p6 = scmp.lt.s32.totalorder (!%p207_p3), %s2455_s15, 2 }
   0x9   : > { %s2814_s21 = smov (%p35_p4, %s2812_s21), 0  ;;  %210 = sbr.rel (%p207_p3) target bundleno = 454 (0x1c6), region = 36 }
   0xa   : > { %p1887_p7 = scmp.ne.s32.totalorder (!%p207_p3), %s2455_s15, 0 }
  0x10   : > { %s2816_s16 = smov (!%p247_p5, %s2459_s16), 1  ;;  %273 = sbr.rel (%p1887_p7) target bundleno = 23 (0x17), region = 40 }
  0x11   : > { %s250_s22 = scalar_select %p249_p6, %s2455_s15, 2 }
  0x12   : > { %s2100_s23 = smul.u32 18, %s2816_s16  ;;  %s1886_s24 = sshll.u32 %s2816_s16, 2  ;;  %v274_v0 = vlaneseq (!%p1887_p7)  ;;  %v2473_v1 = vmov (!%p1887_p7), 0.0  }
  0x13   : > { %s2099_s25 = smul.u32 6, %s250_s22  ;;  %s2537_s28 = scalar_lea.vmem %s2804_s4, %s1886_s24 }
  0x14   : > { %s2101_s29 = smul.u32 1536, %s250_s22  ;;  %vm276_vm0 = vcmp.lt.s32.totalorder (!%p1887_p7), %v274_v0, 512 }
  0x15   : > { %s2539_s30 = sadd.s32 %s2100_s23, %s2099_s25  ;;  %278 = vst.msk [vmem:[#allocation2] sm:$0xf] (!%p1887_p7), %vm276_vm0, %v2473_v1 }
  0x16   : > { %s254_s7 = scalar_lea.vmem %s2800_s0, %s2539_s30  ;;  %s2548_s10 = scalar_lea.vmem %s2801_s1, %s2101_s29 }
  0x17 PF: > { %v2144_v2 = vld [vmem:[%s2548_s10 + $0x4] ss:$16 sps:$4 sm:$0xff]   ;;  %v2146_v3 = vld [vmem:[%s2548_s10 + $0xc] ss:$16 sps:$4 sm:$0xff]   ;;  %v2148_v4 = vld [vmem:[%s2548_s10] ss:$16 sps:$4 sm:$0xff]   ;;  %v478_v40 = vlaneseq }
  0x18   : > { %1487 = vmatprep.subr.bf16.mxu0 %v2144_v2  ;;  %v2149_v5 = vld [vmem:[%s2548_s10 + $0x8] ss:$16 sps:$4 sm:$0xff]   ;;  %1610 = vmatprep.subr.bf16.mxu1 %v2146_v3  ;;  %v2150_v6 = vld [vmem:[%s2548_s10 + $0x24] ss:$16 sps:$4 sm:$0xff]   ;;  %v2152_v7 = vld [vmem:[%s2548_s10 + $0x2c] ss:$16 sps:$4 sm:$0xff]  }
  0x19   : > { %1488 = vmatpush1.bf16.msra.mxu0 %v2148_v4  ;;  %1611 = vmatpush1.bf16.msra.mxu1 %v2149_v5  ;;  %v2154_v8 = vld [vmem:[%s2548_s10 + $0x20] ss:$16 sps:$4 sm:$0xff]   ;;  %v2155_v9 = vld [vmem:[%s2548_s10 + $0x28] ss:$16 sps:$4 sm:$0xff]   ;;  %v2156_v10 = vld [vmem:[%s2548_s10 + $0x44] ss:$16 sps:$4 sm:$0xff]  }
  0x1a   : > { %1489 = vmatprep.subr.bf16.mxu0 %v2150_v6  ;;  %1612 = vmatprep.subr.bf16.mxu1 %v2152_v7  ;;  %v2158_v11 = vld [vmem:[%s2548_s10 + $0x4c] ss:$16 sps:$4 sm:$0xff]   ;;  %v2160_v12 = vld [vmem:[%s2548_s10 + $0x40] ss:$16 sps:$4 sm:$0xff]   ;;  %v2161_v13 = vld [vmem:[%s2548_s10 + $0x48] ss:$16 sps:$4 sm:$0xff]  }
  0x1b   : > { %v2162_v14 = vld [vmem:[%s2548_s10 + $0x64] ss:$16 sps:$4 sm:$0xff]   ;;  %v2164_v15 = vld [vmem:[%s2548_s10 + $0x6c] ss:$16 sps:$4 sm:$0xff]   ;;  %v2166_v16 = vld [vmem:[%s2548_s10 + $0x60] ss:$16 sps:$4 sm:$0xff]  }
  0x1c   : > { %v2167_v17 = vld [vmem:[%s2548_s10 + $0x68] ss:$16 sps:$4 sm:$0xff]   ;;  %v2168_v18 = vld [vmem:[%s2548_s10 + $0x84] ss:$16 sps:$4 sm:$0xff]   ;;  %v2170_v19 = vld [vmem:[%s2548_s10 + $0x8c] ss:$16 sps:$4 sm:$0xff]  }
  0x1d   : > { %1490 = vmatpush1.bf16.msra.mxu0 %v2154_v8  ;;  %1613 = vmatpush1.bf16.msra.mxu1 %v2155_v9  ;;  %v2172_v20 = vld [vmem:[%s2548_s10 + $0x80] ss:$16 sps:$4 sm:$0xff]   ;;  %v2173_v21 = vld [vmem:[%s2548_s10 + $0x88] ss:$16 sps:$4 sm:$0xff]   ;;  %v2174_v22 = vld [vmem:[%s2548_s10 + $0xa4] ss:$16 sps:$4 sm:$0xff]  }
  0x1e   : > { %1491 = vmatprep.subr.bf16.mxu0 %v2156_v10  ;;  %1614 = vmatprep.subr.bf16.mxu1 %v2158_v11  ;;  %v2176_v23 = vld [vmem:[%s2548_s10 + $0xac] ss:$16 sps:$4 sm:$0xff]   ;;  %v2178_v24 = vld [vmem:[%s2548_s10 + $0xa0] ss:$16 sps:$4 sm:$0xff]   ;;  %v2179_v25 = vld [vmem:[%s2548_s10 + $0xa8] ss:$16 sps:$4 sm:$0xff]  }
  0x1f   : > { %v2180_v26 = vld [vmem:[%s2548_s10 + $0xc4] ss:$16 sps:$4 sm:$0xff]   ;;  %v2182_v27 = vld [vmem:[%s2548_s10 + $0xcc] ss:$16 sps:$4 sm:$0xff]   ;;  %v2184_v28 = vld [vmem:[%s2548_s10 + $0xc0] ss:$16 sps:$4 sm:$0xff]  }
  0x20   : > { %v2185_v29 = vld [vmem:[%s2548_s10 + $0xc8] ss:$16 sps:$4 sm:$0xff]   ;;  %v2186_v30 = vld [vmem:[%s2548_s10 + $0xe4] ss:$16 sps:$4 sm:$0xff]   ;;  %v2188_v31 = vld [vmem:[%s2548_s10 + $0xec] ss:$16 sps:$4 sm:$0xff]  }
  0x21   : > { %1492 = vmatpush1.bf16.msra.mxu0 %v2160_v12  ;;  %1615 = vmatpush1.bf16.msra.mxu1 %v2161_v13  ;;  %v2190_v32 = vld [vmem:[%s2548_s10 + $0xe0] ss:$16 sps:$4 sm:$0xff]   ;;  %v2191_v33 = vld [vmem:[%s2548_s10 + $0xe8] ss:$16 sps:$4 sm:$0xff]   ;;  %v2192_v34 = vld [vmem:[%s2548_s10 + $0x104] ss:$16 sps:$4 sm:$0xff]  }
  0x22   : > { %1493 = vmatprep.subr.bf16.mxu0 %v2162_v14  ;;  %1616 = vmatprep.subr.bf16.mxu1 %v2164_v15  ;;  %v2194_v35 = vld [vmem:[%s2548_s10 + $0x10c] ss:$16 sps:$4 sm:$0xff]   ;;  %v2196_v36 = vld [vmem:[%s2548_s10 + $0x100] ss:$16 sps:$4 sm:$0xff]   ;;  %v2197_v37 = vld [vmem:[%s2548_s10 + $0x108] ss:$16 sps:$4 sm:$0xff]  }
  0x23   : > { %v2474_v38 = vmov 1966171168   ;;  %v2198_v41 = vld [vmem:[%s2548_s10 + $0x124] ss:$16 sps:$4 sm:$0xff]   ;;  %v2200_v42 = vld [vmem:[%s2548_s10 + $0x12c] ss:$16 sps:$4 sm:$0xff]  }
  0x24   : > { %v476_v39 = vunpack.c.l.s4 %v2474_v38  ;;  %v2202_v43 = vld [vmem:[%s2548_s10 + $0x120] ss:$16 sps:$4 sm:$0xff]   ;;  %v479_v45 = vshrl.u32 %v478_v40, 7  ;;  %v2203_v46 = vld [vmem:[%s2548_s10 + $0x128] ss:$16 sps:$4 sm:$0xff]   ;;  %vm1765_vm1 = vcmp.lt.s32.totalorder %v478_v40, 512 }
  0x25   : > { %1494 = vmatpush1.bf16.msra.mxu0 %v2166_v16  ;;  %1617 = vmatpush1.bf16.msra.mxu1 %v2167_v17  ;;  %v2204_v47 = vld [vmem:[%s2548_s10 + $0x144] ss:$16 sps:$4 sm:$0xff]   ;;  %v2206_v48 = vld [vmem:[%s2548_s10 + $0x14c] ss:$16 sps:$4 sm:$0xff]   ;;  %v2208_v49 = vld [vmem:[%s2548_s10 + $0x140] ss:$16 sps:$4 sm:$0xff]  }
  0x26   : > { %1495 = vmatprep.subr.bf16.mxu0 %v2168_v18  ;;  %1618 = vmatprep.subr.bf16.mxu1 %v2170_v19  ;;  %v477_v44 = vunpack.c.0.s8 %v476_v39  ;;  %v2209_v50 = vld [vmem:[%s2548_s10 + $0x148] ss:$16 sps:$4 sm:$0xff]   ;;  %v2210_v52 = vld [vmem:[%s2548_s10 + $0x164] ss:$16 sps:$4 sm:$0xff]   ;;  %v2212_v53 = vld [vmem:[%s2548_s10 + $0x16c] ss:$16 sps:$4 sm:$0xff]  }
  0x27   : > { %v2605_v54 = vld [vmem:[%s254_s7] sm:$0x3f]  ;;  %v2215_v57 = vld [vmem:[%s2548_s10 + $0x168] ss:$16 sps:$4 sm:$0xff]   ;;  %v2218_v59 = vld [vmem:[%s2548_s10 + $0x18c] ss:$16 sps:$4 sm:$0xff]  }
  0x28   : > { %v2596_v51 = vsub.s32 %v477_v44, %v479_v45  ;;  %v2214_v55 = vld [vmem:[%s2548_s10 + $0x160] ss:$16 sps:$4 sm:$0xff]   ;;  %v2216_v58 = vld [vmem:[%s2548_s10 + $0x184] ss:$16 sps:$4 sm:$0xff]   ;;  %v2221_v63 = vld [vmem:[%s2548_s10 + $0x188] ss:$16 sps:$4 sm:$0xff]  }
  0x29   : > { %1496 = vmatpush1.bf16.msra.mxu0 %v2172_v20  ;;  %1619 = vmatpush1.bf16.msra.mxu1 %v2173_v21  ;;  %v2220_v61 = vld [vmem:[%s2548_s10 + $0x180] ss:$16 sps:$4 sm:$0xff]   ;;  %v2222_v0 = vld [vmem:[%s2548_s10 + $0x1a4] ss:$16 sps:$4 sm:$0xff]   ;;  %v2224_v1 = vld [vmem:[%s2548_s10 + $0x1ac] ss:$16 sps:$4 sm:$0xff]  }
  0x2a   : > { %1497 = vmatprep.subr.bf16.mxu0 %v2174_v22  ;;  %1620 = vmatprep.subr.bf16.mxu1 %v2176_v23  ;;  %v481_v56 = vrot.slane %v2605_v54, %v2596_v51  ;;  %v2226_v2 = vld [vmem:[%s2548_s10 + $0x1a0] ss:$16 sps:$4 sm:$0xff]   ;;  %v2227_v3 = vld [vmem:[%s2548_s10 + $0x1a8] ss:$16 sps:$4 sm:$0xff]   ;;  %v2228_v4 = vld [vmem:[%s2548_s10 + $0x1c4] ss:$16 sps:$4 sm:$0xff]  }
  0x2b   : > { %v2230_v5 = vld [vmem:[%s2548_s10 + $0x1cc] ss:$16 sps:$4 sm:$0xff]   ;;  %v2232_v6 = vld [vmem:[%s2548_s10 + $0x1c0] ss:$16 sps:$4 sm:$0xff]   ;;  %v2233_v7 = vld [vmem:[%s2548_s10 + $0x1c8] ss:$16 sps:$4 sm:$0xff]  }
  0x2c   : > { %v489_v60 = vcombine.high %v481_v56, %v481_v56  ;;  %v2234_v8 = vld [vmem:[%s2548_s10 + $0x1e4] ss:$16 sps:$4 sm:$0xff]   ;;  %v2236_v9 = vld [vmem:[%s2548_s10 + $0x1ec] ss:$16 sps:$4 sm:$0xff]   ;;  %v2238_v10 = vld [vmem:[%s2548_s10 + $0x1e0] ss:$16 sps:$4 sm:$0xff]   ;;  %v2632_v15 = vrot.slane %v481_v56, %v2596_v51 }
  0x2d   : > { %1498 = vmatpush1.bf16.msra.mxu0 %v2178_v24  ;;  %1621 = vmatpush1.bf16.msra.mxu1 %v2179_v25  ;;  %v2239_v11 = vld [vmem:[%s2548_s10 + $0x1e8] ss:$16 sps:$4 sm:$0xff]   ;;  %v2242_v12 = vld [vmem:[%s2548_s10 + $0x204] ss:$16 sps:$4 sm:$0xff]   ;;  %v2245_v13 = vld [vmem:[%s2548_s10 + $0x20c] ss:$16 sps:$4 sm:$0xff]  }
  0x2e   : > { %1499 = vmatprep.subr.bf16.mxu0 %v2180_v26  ;;  %1622 = vmatprep.subr.bf16.mxu1 %v2182_v27  ;;  %v511_v62 = vrot.slane %v489_v60, %v2596_v51  ;;  %v2240_v14 = vld [vmem:[%s2548_s10 + $0x200] ss:$16 sps:$4 sm:$0xff]   ;;  %v2243_v16 = vld [vmem:[%s2548_s10 + $0x208] ss:$16 sps:$4 sm:$0xff]   ;;  %v2248_v17 = vld [vmem:[%s2548_s10 + $0x224] ss:$16 sps:$4 sm:$0xff]  }
  0x2f   : > { %v2251_v18 = vld [vmem:[%s2548_s10 + $0x22c] ss:$16 sps:$4 sm:$0xff]   ;;  %v2246_v20 = vld [vmem:[%s2548_s10 + $0x220] ss:$16 sps:$4 sm:$0xff]   ;;  %v2249_v21 = vld [vmem:[%s2548_s10 + $0x228] ss:$16 sps:$4 sm:$0xff]  }
  0x30   : > { %1519 = vmatprep.mubr.bf16.mxu0 %v511_v62  ;;  %1642 = vmatprep.mubr.bf16.mxu1 %v511_v62  ;;  %v520_v19 = vcombine.high %v511_v62, %v511_v62  ;;  %v2254_v22 = vld [vmem:[%s2548_s10 + $0x244] ss:$16 sps:$4 sm:$0xff]   ;;  %v2257_v23 = vld [vmem:[%s2548_s10 + $0x24c] ss:$16 sps:$4 sm:$0xff]   ;;  %v2252_v24 = vld [vmem:[%s2548_s10 + $0x240] ss:$16 sps:$4 sm:$0xff]  }
  0x31   : > { %1500 = vmatpush1.bf16.msra.mxu0 %v2184_v28  ;;  %1623 = vmatpush1.bf16.msra.mxu1 %v2185_v29  ;;  %v2255_v25 = vld [vmem:[%s2548_s10 + $0x248] ss:$16 sps:$4 sm:$0xff]   ;;  %v2260_v26 = vld [vmem:[%s2548_s10 + $0x264] ss:$16 sps:$4 sm:$0xff]   ;;  %v2263_v27 = vld [vmem:[%s2548_s10 + $0x26c] ss:$16 sps:$4 sm:$0xff]  }
  0x32   : > { %1501 = vmatprep.subr.bf16.mxu0 %v2186_v30  ;;  %1624 = vmatprep.subr.bf16.mxu1 %v2188_v31  ;;  %v2258_v28 = vld [vmem:[%s2548_s10 + $0x260] ss:$16 sps:$4 sm:$0xff]   ;;  %v2261_v29 = vld [vmem:[%s2548_s10 + $0x268] ss:$16 sps:$4 sm:$0xff]   ;;  %v2266_v30 = vld [vmem:[%s2548_s10 + $0x284] ss:$16 sps:$4 sm:$0xff]  }
  0x33   : > { %v2269_v31 = vld [vmem:[%s2548_s10 + $0x28c] ss:$16 sps:$4 sm:$0xff]   ;;  %v2278_v38 = vld [vmem:[%s2548_s10 + $0x2c4] ss:$16 sps:$4 sm:$0xff]   ;;  %v2282_v45 = vld [vmem:[%s2548_s10 + $0x2e0] ss:$16 sps:$4 sm:$0xff]  }
  0x34   : > { %v2281_v39 = vld [vmem:[%s2548_s10 + $0x2cc] ss:$16 sps:$4 sm:$0xff]   ;;  %v2297_v56 = vld [vmem:[%s2548_s10 + $0x328] ss:$16 sps:$4 sm:$0xff]   ;;  %p2080_p8 = scmp.ne.s32.totalorder %s2455_s15, 2 }
  0x35   : > { %1502 = vmatpush1.bf16.msra.mxu0 %v2190_v32  ;;  %1625 = vmatpush1.bf16.msra.mxu1 %v2191_v33  ;;  %v2264_v32 = vld [vmem:[%s2548_s10 + $0x280] ss:$16 sps:$4 sm:$0xff]   ;;  %v2267_v33 = vld [vmem:[%s2548_s10 + $0x288] ss:$16 sps:$4 sm:$0xff]   ;;  %v2287_v44 = vld [vmem:[%s2548_s10 + $0x2ec] ss:$16 sps:$4 sm:$0xff]  }
  0x36   : > { %1503 = vmatprep.subr.bf16.mxu0 %v2192_v34  ;;  %1626 = vmatprep.subr.bf16.mxu1 %v2194_v35  ;;  %v2272_v34 = vld [vmem:[%s2548_s10 + $0x2a4] ss:$16 sps:$4 sm:$0xff]   ;;  %v2275_v35 = vld [vmem:[%s2548_s10 + $0x2ac] ss:$16 sps:$4 sm:$0xff]   ;;  %v2303_v60 = vld [vmem:[%s2548_s10 + $0x348] ss:$16 sps:$4 sm:$0xff]  }
  0x37   : > { %v2311_v62 = vld [vmem:[%s2548_s10 + $0x36c] ss:$16 sps:$4 sm:$0xff]  }
  0x39   : > { %1504 = vmatpush1.bf16.msra.mxu0 %v2196_v36  ;;  %1627 = vmatpush1.bf16.msra.mxu1 %v2197_v37  ;;  %v2270_v36 = vld [vmem:[%s2548_s10 + $0x2a0] ss:$16 sps:$4 sm:$0xff]   ;;  %v2273_v37 = vld [vmem:[%s2548_s10 + $0x2a8] ss:$16 sps:$4 sm:$0xff]  }
  0x3a   : > { %1505 = vmatprep.subr.bf16.mxu0 %v2198_v41  ;;  %1628 = vmatprep.subr.bf16.mxu1 %v2200_v42  ;;  %v2276_v41 = vld [vmem:[%s2548_s10 + $0x2c0] ss:$16 sps:$4 sm:$0xff]   ;;  %v2279_v42 = vld [vmem:[%s2548_s10 + $0x2c8] ss:$16 sps:$4 sm:$0xff]  }
  0x3d   : > { %1506 = vmatpush1.bf16.msra.mxu0 %v2202_v43  ;;  %1629 = vmatpush1.bf16.msra.mxu1 %v2203_v46  ;;  %v2284_v43 = vld [vmem:[%s2548_s10 + $0x2e4] ss:$16 sps:$4 sm:$0xff]   ;;  %v2285_v46 = vld [vmem:[%s2548_s10 + $0x2e8] ss:$16 sps:$4 sm:$0xff]  }
  0x3e   : > { %1507 = vmatprep.subr.bf16.mxu0 %v2204_v47  ;;  %1630 = vmatprep.subr.bf16.mxu1 %v2206_v48  ;;  %v2290_v47 = vld [vmem:[%s2548_s10 + $0x304] ss:$16 sps:$4 sm:$0xff]   ;;  %v2293_v48 = vld [vmem:[%s2548_s10 + $0x30c] ss:$16 sps:$4 sm:$0xff]  }
  0x41   : > { %1508 = vmatpush1.bf16.msra.mxu0 %v2208_v49  ;;  %1631 = vmatpush1.bf16.msra.mxu1 %v2209_v50  ;;  %v2288_v49 = vld [vmem:[%s2548_s10 + $0x300] ss:$16 sps:$4 sm:$0xff]   ;;  %v2291_v50 = vld [vmem:[%s2548_s10 + $0x308] ss:$16 sps:$4 sm:$0xff]  }
  0x42   : > { %1509 = vmatprep.subr.bf16.mxu0 %v2210_v52  ;;  %1632 = vmatprep.subr.bf16.mxu1 %v2212_v53  ;;  %v2296_v52 = vld [vmem:[%s2548_s10 + $0x324] ss:$16 sps:$4 sm:$0xff]   ;;  %v2299_v53 = vld [vmem:[%s2548_s10 + $0x32c] ss:$16 sps:$4 sm:$0xff]  }
  0x45   : > { %1510 = vmatpush1.bf16.msra.mxu0 %v2214_v55  ;;  %1633 = vmatpush1.bf16.msra.mxu1 %v2215_v57  ;;  %v2294_v55 = vld [vmem:[%s2548_s10 + $0x320] ss:$16 sps:$4 sm:$0xff]   ;;  %v2302_v57 = vld [vmem:[%s2548_s10 + $0x344] ss:$16 sps:$4 sm:$0xff]  }
  0x46   : > { %1511 = vmatprep.subr.bf16.mxu0 %v2216_v58  ;;  %1634 = vmatprep.subr.bf16.mxu1 %v2218_v59  ;;  %v2305_v58 = vld [vmem:[%s2548_s10 + $0x34c] ss:$16 sps:$4 sm:$0xff]   ;;  %v2300_v59 = vld [vmem:[%s2548_s10 + $0x340] ss:$16 sps:$4 sm:$0xff]  }
  0x49   : > { %1512 = vmatpush1.bf16.msra.mxu0 %v2220_v61  ;;  %1635 = vmatpush1.bf16.msra.mxu1 %v2221_v63  ;;  %v2308_v61 = vld [vmem:[%s2548_s10 + $0x364] ss:$16 sps:$4 sm:$0xff]   ;;  %v2306_v63 = vld [vmem:[%s2548_s10 + $0x360] ss:$16 sps:$4 sm:$0xff]  }
  0x4a   : > { %1513 = vmatprep.subr.bf16.mxu0 %v2222_v0  ;;  %1636 = vmatprep.subr.bf16.mxu1 %v2224_v1  ;;  %v2309_v0 = vld [vmem:[%s2548_s10 + $0x368] ss:$16 sps:$4 sm:$0xff]   ;;  %v2314_v1 = vld [vmem:[%s2548_s10 + $0x384] ss:$16 sps:$4 sm:$0xff]  }
  0x4d   : > { %1514 = vmatpush1.bf16.msra.mxu0 %v2226_v2  ;;  %1637 = vmatpush1.bf16.msra.mxu1 %v2227_v3  ;;  %v2317_v2 = vld [vmem:[%s2548_s10 + $0x38c] ss:$16 sps:$4 sm:$0xff]   ;;  %v2312_v3 = vld [vmem:[%s2548_s10 + $0x380] ss:$16 sps:$4 sm:$0xff]  }
  0x4e   : > { %1515 = vmatprep.subr.bf16.mxu0 %v2228_v4  ;;  %1638 = vmatprep.subr.bf16.mxu1 %v2230_v5  ;;  %v2315_v4 = vld [vmem:[%s2548_s10 + $0x388] ss:$16 sps:$4 sm:$0xff]   ;;  %v2320_v5 = vld [vmem:[%s2548_s10 + $0x3a4] ss:$16 sps:$4 sm:$0xff]  }
  0x51   : > { %1516 = vmatpush1.bf16.msra.mxu0 %v2232_v6  ;;  %1639 = vmatpush1.bf16.msra.mxu1 %v2233_v7  ;;  %v2323_v6 = vld [vmem:[%s2548_s10 + $0x3ac] ss:$16 sps:$4 sm:$0xff]   ;;  %v2318_v7 = vld [vmem:[%s2548_s10 + $0x3a0] ss:$16 sps:$4 sm:$0xff]  }
  0x52   : > { %1517 = vmatprep.subr.bf16.mxu0 %v2234_v8  ;;  %1640 = vmatprep.subr.bf16.mxu1 %v2236_v9  ;;  %v2321_v8 = vld [vmem:[%s2548_s10 + $0x3a8] ss:$16 sps:$4 sm:$0xff]   ;;  %v2326_v9 = vld [vmem:[%s2548_s10 + $0x3c4] ss:$16 sps:$4 sm:$0xff]  }
  0x55   : > { %1518 = vmatpush1.bf16.msra.mxu0 %v2238_v10  ;;  %1641 = vmatpush1.bf16.msra.mxu1 %v2239_v11  ;;  %v2329_v10 = vld [vmem:[%s2548_s10 + $0x3cc] ss:$16 sps:$4 sm:$0xff]   ;;  %v474_v11 = vcombine.high %v2605_v54, %v2605_v54  ;;  %v2333_v54 = vld [vmem:[%s2548_s10 + $0x3e8] ss:$16 sps:$4 sm:$0xff]  }
  0x56   : > { %1528 = vmatprep.subr.bf16.mxu0 %v2242_v12  ;;  %1651 = vmatprep.subr.bf16.mxu1 %v2245_v13  ;;  %v2324_v12 = vld [vmem:[%s2548_s10 + $0x3c0] ss:$16 sps:$4 sm:$0xff]   ;;  %v2327_v13 = vld [vmem:[%s2548_s10 + $0x3c8] ss:$16 sps:$4 sm:$0xff]  }
  0x58   : > { %1520 = vmatmul.mubr.bf16.vlgmr.msra.gmra.mrb[0].mxu0 %v2632_v15  ;;  %1643 = vmatmul.mubr.bf16.vlgmr.msra.gmra.mrb[0].mxu1 %v2632_v15 }
  0x59   : > { %1529 = vmatpush1.bf16.msra.mxu0 %v2240_v14  ;;  %1652 = vmatpush1.bf16.msra.mxu1 %v2243_v16  ;;  %v2332_v14 = vld [vmem:[%s2548_s10 + $0x3e4] ss:$16 sps:$4 sm:$0xff]   ;;  %v2335_v16 = vld [vmem:[%s2548_s10 + $0x3ec] ss:$16 sps:$4 sm:$0xff]  }
  0x5a   : > { %1530 = vmatprep.subr.bf16.mxu0 %v2248_v17  ;;  %1653 = vmatprep.subr.bf16.mxu1 %v2251_v18  ;;  %v2698_v17 = vrot.slane %v474_v11, %v2596_v51  ;;  %v2330_v18 = vld [vmem:[%s2548_s10 + $0x3e0] ss:$16 sps:$4 sm:$0xff]   ;;  %v2411_v11 = vld [vmem:[%s2548_s10 + $0x588] ss:$16 sps:$4 sm:$0xff]  }
  0x5b   : > { %1560 = vmatprep.mubr.bf16.mxu0 %v520_v19  ;;  %1683 = vmatprep.mubr.bf16.mxu1 %v520_v19  ;;  %v2338_v19 = vld [vmem:[%s2548_s10 + $0x404] ss:$16 sps:$4 sm:$0xff]  }
  0x5d   : > { %1531 = vmatpush1.bf16.msra.mxu0 %v2246_v20  ;;  %1654 = vmatpush1.bf16.msra.mxu1 %v2249_v21  ;;  %v2341_v20 = vld [vmem:[%s2548_s10 + $0x40c] ss:$16 sps:$4 sm:$0xff]   ;;  %v490_v21 = vcombine.high %v2698_v17, %v2698_v17 }
  0x5e   : > { %1532 = vmatprep.subr.bf16.mxu0 %v2254_v22  ;;  %1655 = vmatprep.subr.bf16.mxu1 %v2257_v23  ;;  %v519_v22 = vcombine.high %v2632_v15, %v2632_v15  ;;  %v2336_v23 = vld [vmem:[%s2548_s10 + $0x400] ss:$16 sps:$4 sm:$0xff]  }
  0x5f   : > { %v2342_v15 = vld [vmem:[%s2548_s10 + $0x420] ss:$16 sps:$4 sm:$0xff]  }
  0x61   : > { %1533 = vmatpush1.bf16.msra.mxu0 %v2252_v24  ;;  %1656 = vmatpush1.bf16.msra.mxu1 %v2255_v25  ;;  %v2339_v24 = vld [vmem:[%s2548_s10 + $0x408] ss:$16 sps:$4 sm:$0xff]   ;;  %v2344_v25 = vld [vmem:[%s2548_s10 + $0x424] ss:$16 sps:$4 sm:$0xff]  }
  0x62   : > { %1534 = vmatprep.subr.bf16.mxu0 %v2260_v26  ;;  %1657 = vmatprep.subr.bf16.mxu1 %v2263_v27  ;;  %v2347_v26 = vld [vmem:[%s2548_s10 + $0x42c] ss:$16 sps:$4 sm:$0xff]   ;;  %v518_v27 = vrot.slane %v490_v21, %v2596_v51  ;;  %v2428_v21 = vld [vmem:[%s2548_s10 + $0x5e4] ss:$16 sps:$4 sm:$0xff]  }
  0x65   : > { %1535 = vmatpush1.bf16.msra.mxu0 %v2258_v28  ;;  %1658 = vmatpush1.bf16.msra.mxu1 %v2261_v29  ;;  %v2345_v28 = vld [vmem:[%s2548_s10 + $0x428] ss:$16 sps:$4 sm:$0xff]   ;;  %v2350_v29 = vld [vmem:[%s2548_s10 + $0x444] ss:$16 sps:$4 sm:$0xff]  }
  0x66   : > { %1536 = vmatprep.subr.bf16.mxu0 %v2266_v30  ;;  %1659 = vmatprep.subr.bf16.mxu1 %v2269_v31  ;;  %v2353_v30 = vld [vmem:[%s2548_s10 + $0x44c] ss:$16 sps:$4 sm:$0xff]   ;;  %v2348_v31 = vld [vmem:[%s2548_s10 + $0x440] ss:$16 sps:$4 sm:$0xff]  }
  0x69   : > { %1537 = vmatpush1.bf16.msra.mxu0 %v2264_v32  ;;  %1660 = vmatpush1.bf16.msra.mxu1 %v2267_v33  ;;  %v2351_v32 = vld [vmem:[%s2548_s10 + $0x448] ss:$16 sps:$4 sm:$0xff]   ;;  %v2356_v33 = vld [vmem:[%s2548_s10 + $0x464] ss:$16 sps:$4 sm:$0xff]  }
  0x6a   : > { %1538 = vmatprep.subr.bf16.mxu0 %v2272_v34  ;;  %1661 = vmatprep.subr.bf16.mxu1 %v2275_v35  ;;  %v2359_v34 = vld [vmem:[%s2548_s10 + $0x46c] ss:$16 sps:$4 sm:$0xff]   ;;  %v2354_v35 = vld [vmem:[%s2548_s10 + $0x460] ss:$16 sps:$4 sm:$0xff]  }
  0x6d   : > { %1539 = vmatpush1.bf16.msra.mxu0 %v2270_v36  ;;  %1662 = vmatpush1.bf16.msra.mxu1 %v2273_v37  ;;  %v2357_v36 = vld [vmem:[%s2548_s10 + $0x468] ss:$16 sps:$4 sm:$0xff]   ;;  %v2362_v37 = vld [vmem:[%s2548_s10 + $0x484] ss:$16 sps:$4 sm:$0xff]  }
  0x6e   : > { %1540 = vmatprep.subr.bf16.mxu0 %v2278_v38  ;;  %1663 = vmatprep.subr.bf16.mxu1 %v2281_v39  ;;  %v2365_v38 = vld [vmem:[%s2548_s10 + $0x48c] ss:$16 sps:$4 sm:$0xff]   ;;  %v2360_v39 = vld [vmem:[%s2548_s10 + $0x480] ss:$16 sps:$4 sm:$0xff]  }
  0x71   : > { %1541 = vmatpush1.bf16.msra.mxu0 %v2276_v41  ;;  %1664 = vmatpush1.bf16.msra.mxu1 %v2279_v42  ;;  %v2363_v41 = vld [vmem:[%s2548_s10 + $0x488] ss:$16 sps:$4 sm:$0xff]   ;;  %v2368_v42 = vld [vmem:[%s2548_s10 + $0x4a4] ss:$16 sps:$4 sm:$0xff]  }
  0x72   : > { %1542 = vmatprep.subr.bf16.mxu0 %v2284_v43  ;;  %1665 = vmatprep.subr.bf16.mxu1 %v2287_v44  ;;  %v2371_v43 = vld [vmem:[%s2548_s10 + $0x4ac] ss:$16 sps:$4 sm:$0xff]   ;;  %v2366_v44 = vld [vmem:[%s2548_s10 + $0x4a0] ss:$16 sps:$4 sm:$0xff]  }
  0x75   : > { %1543 = vmatpush1.bf16.msra.mxu0 %v2282_v45  ;;  %1666 = vmatpush1.bf16.msra.mxu1 %v2285_v46  ;;  %v2369_v45 = vld [vmem:[%s2548_s10 + $0x4a8] ss:$16 sps:$4 sm:$0xff]   ;;  %v2374_v46 = vld [vmem:[%s2548_s10 + $0x4c4] ss:$16 sps:$4 sm:$0xff]  }
  0x76   : > { %1544 = vmatprep.subr.bf16.mxu0 %v2290_v47  ;;  %1667 = vmatprep.subr.bf16.mxu1 %v2293_v48  ;;  %v2377_v47 = vld [vmem:[%s2548_s10 + $0x4cc] ss:$16 sps:$4 sm:$0xff]   ;;  %v2372_v48 = vld [vmem:[%s2548_s10 + $0x4c0] ss:$16 sps:$4 sm:$0xff]  }
  0x79   : > { %1545 = vmatpush1.bf16.msra.mxu0 %v2288_v49  ;;  %1668 = vmatpush1.bf16.msra.mxu1 %v2291_v50  ;;  %v2375_v49 = vld [vmem:[%s2548_s10 + $0x4c8] ss:$16 sps:$4 sm:$0xff]   ;;  %v2380_v50 = vld [vmem:[%s2548_s10 + $0x4e4] ss:$16 sps:$4 sm:$0xff]  }
  0x7a   : > { %1546 = vmatprep.subr.bf16.mxu0 %v2296_v52  ;;  %1669 = vmatprep.subr.bf16.mxu1 %v2299_v53  ;;  %v2383_v52 = vld [vmem:[%s2548_s10 + $0x4ec] ss:$16 sps:$4 sm:$0xff]   ;;  %v2378_v53 = vld [vmem:[%s2548_s10 + $0x4e0] ss:$16 sps:$4 sm:$0xff]  }
  0x7d   : > { %1547 = vmatpush1.bf16.msra.mxu0 %v2294_v55  ;;  %1670 = vmatpush1.bf16.msra.mxu1 %v2297_v56  ;;  %v2381_v55 = vld [vmem:[%s2548_s10 + $0x4e8] ss:$16 sps:$4 sm:$0xff]   ;;  %v2386_v56 = vld [vmem:[%s2548_s10 + $0x504] ss:$16 sps:$4 sm:$0xff]  }
  0x7e   : > { %1548 = vmatprep.subr.bf16.mxu0 %v2302_v57  ;;  %1671 = vmatprep.subr.bf16.mxu1 %v2305_v58  ;;  %v2389_v57 = vld [vmem:[%s2548_s10 + $0x50c] ss:$16 sps:$4 sm:$0xff]   ;;  %v2384_v58 = vld [vmem:[%s2548_s10 + $0x500] ss:$16 sps:$4 sm:$0xff]  }
  0x81   : > { %1549 = vmatpush1.bf16.msra.mxu0 %v2300_v59  ;;  %1672 = vmatpush1.bf16.msra.mxu1 %v2303_v60  ;;  %v2387_v59 = vld [vmem:[%s2548_s10 + $0x508] ss:$16 sps:$4 sm:$0xff]   ;;  %v2392_v60 = vld [vmem:[%s2548_s10 + $0x524] ss:$16 sps:$4 sm:$0xff]  }
  0x82   : > { %1550 = vmatprep.subr.bf16.mxu0 %v2308_v61  ;;  %1673 = vmatprep.subr.bf16.mxu1 %v2311_v62  ;;  %v2395_v61 = vld [vmem:[%s2548_s10 + $0x52c] ss:$16 sps:$4 sm:$0xff]   ;;  %v2390_v62 = vld [vmem:[%s2548_s10 + $0x520] ss:$16 sps:$4 sm:$0xff]  }
  0x85   : > { %1551 = vmatpush1.bf16.msra.mxu0 %v2306_v63  ;;  %1674 = vmatpush1.bf16.msra.mxu1 %v2309_v0  ;;  %v2393_v63 = vld [vmem:[%s2548_s10 + $0x528] ss:$16 sps:$4 sm:$0xff]   ;;  %v2398_v0 = vld [vmem:[%s2548_s10 + $0x544] ss:$16 sps:$4 sm:$0xff]  }
  0x86   : > { %1552 = vmatprep.subr.bf16.mxu0 %v2314_v1  ;;  %1675 = vmatprep.subr.bf16.mxu1 %v2317_v2  ;;  %v2401_v1 = vld [vmem:[%s2548_s10 + $0x54c] ss:$16 sps:$4 sm:$0xff]   ;;  %v2396_v2 = vld [vmem:[%s2548_s10 + $0x540] ss:$16 sps:$4 sm:$0xff]  }
  0x89   : > { %1553 = vmatpush1.bf16.msra.mxu0 %v2312_v3  ;;  %1676 = vmatpush1.bf16.msra.mxu1 %v2315_v4  ;;  %v2399_v3 = vld [vmem:[%s2548_s10 + $0x548] ss:$16 sps:$4 sm:$0xff]   ;;  %v2404_v4 = vld [vmem:[%s2548_s10 + $0x564] ss:$16 sps:$4 sm:$0xff]  }
  0x8a   : > { %1554 = vmatprep.subr.bf16.mxu0 %v2320_v5  ;;  %1677 = vmatprep.subr.bf16.mxu1 %v2323_v6  ;;  %v2407_v5 = vld [vmem:[%s2548_s10 + $0x56c] ss:$16 sps:$4 sm:$0xff]   ;;  %v2402_v6 = vld [vmem:[%s2548_s10 + $0x560] ss:$16 sps:$4 sm:$0xff]  }
  0x8d   : > { %1555 = vmatpush1.bf16.msra.mxu0 %v2318_v7  ;;  %1678 = vmatpush1.bf16.msra.mxu1 %v2321_v8  ;;  %v2405_v7 = vld [vmem:[%s2548_s10 + $0x568] ss:$16 sps:$4 sm:$0xff]   ;;  %v2410_v8 = vld [vmem:[%s2548_s10 + $0x584] ss:$16 sps:$4 sm:$0xff]  }
  0x8e   : > { %1556 = vmatprep.subr.bf16.mxu0 %v2326_v9  ;;  %1679 = vmatprep.subr.bf16.mxu1 %v2329_v10  ;;  %v2413_v9 = vld [vmem:[%s2548_s10 + $0x58c] ss:$16 sps:$4 sm:$0xff]   ;;  %v2408_v10 = vld [vmem:[%s2548_s10 + $0x580] ss:$16 sps:$4 sm:$0xff]  }
  0x91   : > { %1557 = vmatpush1.bf16.msra.mxu0 %v2324_v12  ;;  %1680 = vmatpush1.bf16.msra.mxu1 %v2327_v13  ;;  %v2416_v12 = vld [vmem:[%s2548_s10 + $0x5a4] ss:$16 sps:$4 sm:$0xff]   ;;  %v2419_v13 = vld [vmem:[%s2548_s10 + $0x5ac] ss:$16 sps:$4 sm:$0xff]  }
  0x92   : > { %1558 = vmatprep.subr.bf16.mxu0 %v2332_v14  ;;  %1681 = vmatprep.subr.bf16.mxu1 %v2335_v16  ;;  %v2414_v14 = vld [vmem:[%s2548_s10 + $0x5a0] ss:$16 sps:$4 sm:$0xff]   ;;  %v2417_v16 = vld [vmem:[%s2548_s10 + $0x5a8] ss:$16 sps:$4 sm:$0xff]  }
  0x95   : > { %1559 = vmatpush1.bf16.msra.mxu0 %v2330_v18  ;;  %1682 = vmatpush1.bf16.msra.mxu1 %v2333_v54  ;;  %v2422_v18 = vld [vmem:[%s2548_s10 + $0x5c4] ss:$16 sps:$4 sm:$0xff]   ;;  %v2425_v54 = vld [vmem:[%s2548_s10 + $0x5cc] ss:$16 sps:$4 sm:$0xff]  }
  0x96   : > { %1569 = vmatprep.subr.bf16.mxu0 %v2338_v19  ;;  %1692 = vmatprep.subr.bf16.mxu1 %v2341_v20  ;;  %v2420_v19 = vld [vmem:[%s2548_s10 + $0x5c0] ss:$16 sps:$4 sm:$0xff]   ;;  %v2423_v20 = vld [vmem:[%s2548_s10 + $0x5c8] ss:$16 sps:$4 sm:$0xff]  }
  0x98   : > { %1561 = vmatmul.mubr.bf16.vlgmr.msra.gmra.mrb[0].mxu0 %v519_v22  ;;  %1684 = vmatmul.mubr.bf16.vlgmr.msra.gmra.mrb[0].mxu1 %v519_v22  ;;  %v2431_v22 = vld [vmem:[%s2548_s10 + $0x5ec] ss:$16 sps:$4 sm:$0xff]  }
  0x99   : > { %1570 = vmatpush1.bf16.msra.mxu0 %v2336_v23  ;;  %1693 = vmatpush1.bf16.msra.mxu1 %v2339_v24  ;;  %v2426_v23 = vld [vmem:[%s2548_s10 + $0x5e0] ss:$16 sps:$4 sm:$0xff]   ;;  %v2429_v24 = vld [vmem:[%s2548_s10 + $0x5e8] ss:$16 sps:$4 sm:$0xff]  }
  0x9a   : > { %1571 = vmatprep.subr.bf16.mxu0 %v2344_v25  ;;  %1694 = vmatprep.subr.bf16.mxu1 %v2347_v26  ;;  %v504_v25 = vrot.slane %v2698_v17, %v2596_v51  ;;  %v472_v17 = vld [vmem:[#allocation2] sm:$0xf] }
  0x9b   : > { %1601 = vmatprep.mubr.bf16.mxu0 %v518_v27  ;;  %1724 = vmatprep.mubr.bf16.mxu1 %v518_v27 }
  0x9d   : > { %1572 = vmatpush1.bf16.msra.mxu0 %v2342_v15  ;;  %1695 = vmatpush1.bf16.msra.mxu1 %v2345_v28 }
  0x9e   : > { %1573 = vmatprep.subr.bf16.mxu0 %v2350_v29  ;;  %1696 = vmatprep.subr.bf16.mxu1 %v2353_v30 }
  0xa1   : > { %1574 = vmatpush1.bf16.msra.mxu0 %v2348_v31  ;;  %1697 = vmatpush1.bf16.msra.mxu1 %v2351_v32 }
  0xa2   : > { %1575 = vmatprep.subr.bf16.mxu0 %v2356_v33  ;;  %1698 = vmatprep.subr.bf16.mxu1 %v2359_v34 }
  0xa5   : > { %1576 = vmatpush1.bf16.msra.mxu0 %v2354_v35  ;;  %1699 = vmatpush1.bf16.msra.mxu1 %v2357_v36 }
  0xa6   : > { %1577 = vmatprep.subr.bf16.mxu0 %v2362_v37  ;;  %1700 = vmatprep.subr.bf16.mxu1 %v2365_v38 }
  0xa9   : > { %1578 = vmatpush1.bf16.msra.mxu0 %v2360_v39  ;;  %1701 = vmatpush1.bf16.msra.mxu1 %v2363_v41 }
  0xaa   : > { %1579 = vmatprep.subr.bf16.mxu0 %v2368_v42  ;;  %1702 = vmatprep.subr.bf16.mxu1 %v2371_v43  ;;  %v1773_v42 = vld [vmem:[%s2802_s2] sm:$0xf] (!%p2080_p8) }
  0xab   : > { %v1775_v43 = vld [vmem:[%s2803_s3] sm:$0xf] (!%p2080_p8) }
  0xad   : > { %1580 = vmatpush1.bf16.msra.mxu0 %v2366_v44  ;;  %1703 = vmatpush1.bf16.msra.mxu1 %v2369_v45 }
  0xae   : > { %1581 = vmatprep.subr.bf16.mxu0 %v2374_v46  ;;  %1704 = vmatprep.subr.bf16.mxu1 %v2377_v47 }
  0xb1   : > { %1582 = vmatpush1.bf16.msra.mxu0 %v2372_v48  ;;  %1705 = vmatpush1.bf16.msra.mxu1 %v2375_v49 }
  0xb2   : > { %1583 = vmatprep.subr.bf16.mxu0 %v2380_v50  ;;  %1706 = vmatprep.subr.bf16.mxu1 %v2383_v52 }
  0xb5   : > { %1584 = vmatpush1.bf16.msra.mxu0 %v2378_v53  ;;  %1707 = vmatpush1.bf16.msra.mxu1 %v2381_v55 }
  0xb6   : > { %1585 = vmatprep.subr.bf16.mxu0 %v2386_v56  ;;  %1708 = vmatprep.subr.bf16.mxu1 %v2389_v57 }
  0xb9   : > { %1586 = vmatpush1.bf16.msra.mxu0 %v2384_v58  ;;  %1709 = vmatpush1.bf16.msra.mxu1 %v2387_v59 }
  0xba   : > { %1587 = vmatprep.subr.bf16.mxu0 %v2392_v60  ;;  %1710 = vmatprep.subr.bf16.mxu1 %v2395_v61 }
  0xbd   : > { %1588 = vmatpush1.bf16.msra.mxu0 %v2390_v62  ;;  %1711 = vmatpush1.bf16.msra.mxu1 %v2393_v63 }
  0xbe   : > { %1589 = vmatprep.subr.bf16.mxu0 %v2398_v0  ;;  %1712 = vmatprep.subr.bf16.mxu1 %v2401_v1 }
  0xc1   : > { %1590 = vmatpush1.bf16.msra.mxu0 %v2396_v2  ;;  %1713 = vmatpush1.bf16.msra.mxu1 %v2399_v3 }
  0xc2   : > { %1591 = vmatprep.subr.bf16.mxu0 %v2404_v4  ;;  %1714 = vmatprep.subr.bf16.mxu1 %v2407_v5 }
  0xc5   : > { %1592 = vmatpush1.bf16.msra.mxu0 %v2402_v6  ;;  %1715 = vmatpush1.bf16.msra.mxu1 %v2405_v7 }
  0xc6   : > { %1593 = vmatprep.subr.bf16.mxu0 %v2410_v8  ;;  %1716 = vmatprep.subr.bf16.mxu1 %v2413_v9 }
  0xc9   : > { %1594 = vmatpush1.bf16.msra.mxu0 %v2408_v10  ;;  %1717 = vmatpush1.bf16.msra.mxu1 %v2411_v11 }
  0xca   : > { %1595 = vmatprep.subr.bf16.mxu0 %v2416_v12  ;;  %1718 = vmatprep.subr.bf16.mxu1 %v2419_v13 }
  0xcd   : > { %1596 = vmatpush1.bf16.msra.mxu0 %v2414_v14  ;;  %1719 = vmatpush1.bf16.msra.mxu1 %v2417_v16 }
  0xce   : > { %1597 = vmatprep.subr.bf16.mxu0 %v2422_v18  ;;  %1720 = vmatprep.subr.bf16.mxu1 %v2425_v54 }
  0xd1   : > { %1598 = vmatpush1.bf16.msra.mxu0 %v2420_v19  ;;  %1721 = vmatpush1.bf16.msra.mxu1 %v2423_v20 }
  0xd2   : > { %1599 = vmatprep.subr.bf16.mxu0 %v2428_v21  ;;  %1722 = vmatprep.subr.bf16.mxu1 %v2431_v22 }
  0xd5   : > { %1600 = vmatpush1.bf16.msra.mxu0 %v2426_v23  ;;  %1723 = vmatpush1.bf16.msra.mxu1 %v2429_v24 }
  0xd8   : > { %1602 = vmatmul.mubr.bf16.vlgmr.msra.gmra.mrb[0].mxu0 %v504_v25  ;;  %1725 = vmatmul.mubr.bf16.vlgmr.msra.gmra.mrb[0].mxu1 %v504_v25 }
 0x1ab   : > { %v1603_v26 = vpop.f32.mrb[0].mxu0  ;;  %v1726_v27 = vpop.f32.mrb[0].mxu1 }
 0x1ac   : > { %v1605_v15 = vpop.f32.mrb[1].mxu0  ;;  %v1728_v28 = vpop.f32.mrb[1].mxu1 }
 0x1ad   : > { %v1737_v29 = vcombine.low %v1603_v26, %v1605_v15  ;;  %v1738_v30 = vcombine.low %v1726_v27, %v1728_v28  ;;  %v1607_v31 = vpop.f32.mrb[2].mxu0  ;;  %v1730_v32 = vpop.f32.mrb[2].mxu1 }
 0x1ae   : > { %v1608_v33 = vpop.f32.mrb[3].mxu0  ;;  %v1731_v34 = vpop.f32.mrb[3].mxu1 }
 0x1af   : > { %v1745_v35 = vrot.slane %v1737_v29, %v2596_v51  ;;  %v1752_v36 = vrot.slane %v1738_v30, %v2596_v51 }
 0x1b1   : > { %v1753_v37 = vcombine.low %v1745_v35, %v1752_v36  ;;  %1771 = sbr.rel (%p2080_p8) target bundleno = 454 (0x1c6), region = 44 }
 0x1b3   : > { %v1760_v38 = vrot.slane %v1753_v37, %v2596_v51 }
 0x1b5   : > { %v1762_v39 = vadd.f32 %v1760_v38, %v472_v17 }
 0x1b7   : > { %1767 = vst.msk [vmem:[#allocation2] sm:$0xf] %vm1765_vm1, %v1762_v39 }
 0x1be   : > { %v1772_v41 = vld [vmem:[#allocation2] sm:$0xf] }
 0x1bf   : > { %v1774_v44 = vmul.f32 %v1773_v42, %v1772_v41 }
 0x1c1   : > { %v1776_v45 = vadd.f32 %v1775_v43, %v1774_v44 }
 0x1c3   : > { %v1777_v51 = vmax.f32 %v1776_v45, 0.0 }
 0x1c5   : > { %1778 = vst.msk [vmem:[%s2537_s28] sm:$0xf] %vm1765_vm1, %v1777_v51 }
 0x1c6 PF: > { %s14_s19 = sadd.s32 1, %s2471_s19   ;;  %s2805_s15 = smov %s2463_s17 }
 0x1c7   : > { %p11_p9 = scmp.ge.s32.totalorder %s14_s19, 8   ;;  %s2806_s16 = smov %s2467_s18 }
 0x1c8   : > { %s2807_s17 = smov %s2810_s20  ;;  %s2808_s18 = smov %s2814_s21 }
 0x1c9   :  { %13 = sbr.rel (!%p11_p9) target bundleno = 3 (0x3), region = 77 }

// kernel: resnet_simclr_forward.45
= control target key start
LH: loop header
LB: loop body
LE: loop exit
PB: predicated region body
PF: predicated region fallthrough
CT: control target
= control target key end

     0   :  { %s193_s6 = smov 0   ;;  %s213_s0 = inlined_call_operand.vmem [shape: f32[2,1,512], index: 0, kind: input, shape index: {}]   ;;  %s214_s1 = inlined_call_operand.vmem [shape: f32[2,1,512], index: 1, kind: output, shape index: {}]  }
   0x1 LB: > { %s172_s7 = sadd.s32 4294967295, %s195_s6   ;;  %p176_p0 = scmp.ge.s32.totalorder %s195_s6, 1  ;;  %s195_s6 = sphi %s193_s6, %s11_s6  }
   0x2   : > { %p86_p1 = scmp.lt.s32.totalorder %s195_s6, 3 }
   0x4   : > { %p87_p2 = pnand %p176_p0, %p86_p1 }
   0x5   : > { %p104_p3 = scmp.lt.s32.totalorder (!%p87_p2), %s172_s7, 1  ;;  %v114_v0 = vlaneseq (!%p87_p2) }
   0x6   : > { %90 = sbr.rel (%p87_p2) target bundleno = 18 (0x12), region = 24 }
   0x7   : > { %vm116_vm0 = vcmp.lt.s32.totalorder (!%p87_p2), %v114_v0, 512 }
   0xd   : > { %s216_s7 = smov (!%p104_p3, %s172_s7), 1 }
   0xe   : > { %s177_s8 = sshll.u32 %s216_s7, 2 }
   0xf   : > { %s107_s11 = scalar_lea.vmem %s213_s0, %s177_s8  ;;  %s111_s14 = scalar_lea.vmem %s214_s1, %s177_s8 }
  0x10   : > { %v112_v1 = vld [vmem:[%s107_s11] sm:$0xf] }
  0x11   : > { %118 = vst.msk [vmem:[%s111_s14] sm:$0xf] %vm116_vm0, %v112_v1 }
  0x12 PF: > { %s11_s6 = sadd.s32 1, %s195_s6  }
  0x13   : > { %p8_p4 = scmp.ge.s32.totalorder %s11_s6, 4  }
  0x15   :  { %10 = sbr.rel (!%p8_p4) target bundleno = 1 (0x1), region = 54 }

// kernel: resnet_simclr_forward.46
= control target key start
LH: loop header
LB: loop body
LE: loop exit
PB: predicated region body
PF: predicated region fallthrough
CT: control target
= control target key end

     0   :  { %s1136_s15 = smov 0   ;;  %s1138_s16 = smov 0   ;;  %s1360_s0 = inlined_call_operand.vmem [shape: bf16[8,512], index: 0, kind: input, shape index: {}]   ;;  %s1361_s1 = inlined_call_operand.vmem [shape: bf16[512,512], index: 1, kind: input, shape index: {}]   ;;  %s1362_s2 = inlined_call_operand.vmem [shape: f32[1,512], index: 2, kind: input, shape index: {}]   ;;  %s1363_s3 = inlined_call_operand.vmem [shape: f32[1,512], index: 3, kind: input, shape index: {}]   ;;  %s1364_s4 = inlined_call_operand.vmem [shape: f32[8,512], index: 4, kind: output, shape index: {}]  }
   0x1   :  { %s1140_s17 = smov 0   ;;  %s1142_s18 = smov 0  }
   0x2   :  { %s1144_s19 = smov 0   ;;  %s1146_s20 = smov 0  }
   0x3   :  { %s1148_s21 = smov 0  }
   0x4 LB: > { %s26_s22 = sadd.s32 1, %s1100_s19  ;;  %s29_s23 = sadd.s32 1, %s1104_s20  ;;  %s1108_s21 = sphi %s1148_s21, %s14_s21   ;;  %s1104_s20 = sphi %s1146_s20, %s1370_s20   ;;  %s1100_s19 = sphi %s1144_s19, %s1369_s19   ;;  %s1096_s18 = sphi %s1142_s18, %s1368_s18   ;;  %s1092_s17 = sphi %s1140_s17, %s1367_s17   ;;  %s1088_s16 = sphi %s1138_s16, %s1366_s16   ;;  %s1084_s15 = sphi %s1136_s15, %s1365_s15  }
   0x5   : > { %p27_p0 = scmp.ge.s32.totalorder %s26_s22, 2  ;;  %p77_p1 = scmp.ne.s32.totalorder %s1088_s16, %s1084_s15 }
   0x6   : > { %p78_p2 = scmp.eq.s32.totalorder %s1108_s21, 0  ;;  %s70_s27 = sadd.s32 1, %s1088_s16 }
   0x7   : > { %s1372_s22 = smov (%p27_p0, %s26_s22), 0  ;;  %s1374_s23 = smov (!%p27_p0, %s29_s23), %s1104_s20 }
   0x8   : > { %p79_p3 = por %p78_p2, %p77_p1  ;;  %p31_p4 = scmp.ge.s32.totalorder %s1374_s23, 2 }
   0x9   : > { %s65_s24 = ssub.s32 %s1100_s19, %s1372_s22  ;;  %p894_p6 = scmp.ge.s32.totalorder %s1108_s21, 4 }
   0xa   : > { %s1376_s23 = smov (%p31_p4, %s1374_s23), 0 }
   0xb   : > { %s66_s25 = ssub.s32 %s1104_s20, %s1376_s23  ;;  %183 = sbr.rel (%p894_p6) target bundleno = 41 (0x29), region = 16 }
   0xc   : > { %s67_s26 = sor.u32 %s66_s25, %s65_s24 }
   0xd   : > { %p68_p5 = scmp.eq.s32.totalorder %s67_s26, 0 }
   0xf   : > { %s1187_s28 = scalar_select %p68_p5, %s1088_s16, %s70_s27  }
  0x12   : > { %199 = sbr.rel (!%p79_p3) target bundleno = 41 (0x29), region = 24  ;;  %s201_s29 = sand.u32 (%p79_p3), 1, %s1088_s16  }
  0x13   : > { %s897_s30 = sshll.u32 (%p79_p3), %s1104_s20, 1  ;;  %s895_s5 = sshll.u32 (%p79_p3), %s201_s29, 8 }
  0x14   : > { %s946_s6 = sshll.u32 (%p79_p3), %s1100_s19, 7  ;;  %s1201_s12 = scalar_lea.vmem (%p79_p3), [#allocation3], %s895_s5 }
  0x15   : > { %s207_s7 = sadd.s32 (%p79_p3), %s946_s6, %s897_s30 }
  0x16   : > { %s899_s8 = sshll.u32 (%p79_p3), %s207_s7, 2 }
  0x17   : > { %s1196_s11 = scalar_lea.vmem (%p79_p3), %s1361_s1, %s899_s8 }
  0x18   : > { %v299_v0 = vld [vmem:[%s1196_s11] sm:$0xff] (%p79_p3)  ;;  %v301_v1 = vld [vmem:[%s1196_s11 + $0x10] sm:$0xff] (%p79_p3) }
  0x19   : > { %v303_v2 = vld [vmem:[%s1196_s11 + $0x20] sm:$0xff]  ;;  %300 = vst [vmem:[%s1201_s12] sm:$0xff] %v299_v0  ;;  %302 = vst [vmem:[%s1201_s12 + $0x8] sm:$0xff] %v301_v1  ;;  %v305_v3 = vld [vmem:[%s1196_s11 + $0x30] sm:$0xff] }
  0x1a   : > { %304 = vst [vmem:[%s1201_s12 + $0x10] sm:$0xff] %v303_v2  ;;  %v307_v4 = vld [vmem:[%s1196_s11 + $0x40] sm:$0xff]  ;;  %v309_v5 = vld [vmem:[%s1196_s11 + $0x50] sm:$0xff]  ;;  %306 = vst [vmem:[%s1201_s12 + $0x18] sm:$0xff] %v305_v3 }
  0x1b   : > { %308 = vst [vmem:[%s1201_s12 + $0x20] sm:$0xff] %v307_v4  ;;  %310 = vst [vmem:[%s1201_s12 + $0x28] sm:$0xff] %v309_v5  ;;  %v311_v6 = vld [vmem:[%s1196_s11 + $0x60] sm:$0xff]  ;;  %v313_v7 = vld [vmem:[%s1196_s11 + $0x70] sm:$0xff] }
  0x1c   : > { %v315_v8 = vld [vmem:[%s1196_s11 + $0x80] sm:$0xff]  ;;  %312 = vst [vmem:[%s1201_s12 + $0x30] sm:$0xff] %v311_v6  ;;  %314 = vst [vmem:[%s1201_s12 + $0x38] sm:$0xff] %v313_v7  ;;  %v317_v9 = vld [vmem:[%s1196_s11 + $0x90] sm:$0xff] }
  0x1d   : > { %316 = vst [vmem:[%s1201_s12 + $0x40] sm:$0xff] %v315_v8  ;;  %v319_v10 = vld [vmem:[%s1196_s11 + $0xa0] sm:$0xff]  ;;  %v321_v11 = vld [vmem:[%s1196_s11 + $0xb0] sm:$0xff]  ;;  %318 = vst [vmem:[%s1201_s12 + $0x48] sm:$0xff] %v317_v9 }
  0x1e   : > { %320 = vst [vmem:[%s1201_s12 + $0x50] sm:$0xff] %v319_v10  ;;  %322 = vst [vmem:[%s1201_s12 + $0x58] sm:$0xff] %v321_v11  ;;  %v323_v12 = vld [vmem:[%s1196_s11 + $0xc0] sm:$0xff]  ;;  %v325_v13 = vld [vmem:[%s1196_s11 + $0xd0] sm:$0xff] }
  0x1f   : > { %v327_v14 = vld [vmem:[%s1196_s11 + $0xe0] sm:$0xff]  ;;  %324 = vst [vmem:[%s1201_s12 + $0x60] sm:$0xff] %v323_v12  ;;  %326 = vst [vmem:[%s1201_s12 + $0x68] sm:$0xff] %v325_v13  ;;  %v329_v15 = vld [vmem:[%s1196_s11 + $0xf0] sm:$0xff] }
  0x20   : > { %328 = vst [vmem:[%s1201_s12 + $0x70] sm:$0xff] %v327_v14  ;;  %v331_v16 = vld [vmem:[%s1196_s11 + $0x100] sm:$0xff]  ;;  %v333_v17 = vld [vmem:[%s1196_s11 + $0x110] sm:$0xff]  ;;  %330 = vst [vmem:[%s1201_s12 + $0x78] sm:$0xff] %v329_v15 }
  0x21   : > { %332 = vst [vmem:[%s1201_s12 + $0x80] sm:$0xff] %v331_v16  ;;  %334 = vst [vmem:[%s1201_s12 + $0x88] sm:$0xff] %v333_v17  ;;  %v335_v18 = vld [vmem:[%s1196_s11 + $0x120] sm:$0xff]  ;;  %v337_v19 = vld [vmem:[%s1196_s11 + $0x130] sm:$0xff] }
  0x22   : > { %v339_v20 = vld [vmem:[%s1196_s11 + $0x140] sm:$0xff]  ;;  %336 = vst [vmem:[%s1201_s12 + $0x90] sm:$0xff] %v335_v18  ;;  %338 = vst [vmem:[%s1201_s12 + $0x98] sm:$0xff] %v337_v19  ;;  %v341_v21 = vld [vmem:[%s1196_s11 + $0x150] sm:$0xff] }
  0x23   : > { %340 = vst [vmem:[%s1201_s12 + $0xa0] sm:$0xff] %v339_v20  ;;  %v343_v22 = vld [vmem:[%s1196_s11 + $0x160] sm:$0xff]  ;;  %v345_v23 = vld [vmem:[%s1196_s11 + $0x170] sm:$0xff]  ;;  %342 = vst [vmem:[%s1201_s12 + $0xa8] sm:$0xff] %v341_v21 }
  0x24   : > { %344 = vst [vmem:[%s1201_s12 + $0xb0] sm:$0xff] %v343_v22  ;;  %346 = vst [vmem:[%s1201_s12 + $0xb8] sm:$0xff] %v345_v23  ;;  %v347_v24 = vld [vmem:[%s1196_s11 + $0x180] sm:$0xff]  ;;  %v349_v25 = vld [vmem:[%s1196_s11 + $0x190] sm:$0xff] }
  0x25   : > { %v351_v26 = vld [vmem:[%s1196_s11 + $0x1a0] sm:$0xff]  ;;  %348 = vst [vmem:[%s1201_s12 + $0xc0] sm:$0xff] %v347_v24  ;;  %350 = vst [vmem:[%s1201_s12 + $0xc8] sm:$0xff] %v349_v25  ;;  %v353_v27 = vld [vmem:[%s1196_s11 + $0x1b0] sm:$0xff] }
  0x26   : > { %352 = vst [vmem:[%s1201_s12 + $0xd0] sm:$0xff] %v351_v26  ;;  %v355_v28 = vld [vmem:[%s1196_s11 + $0x1c0] sm:$0xff]  ;;  %v357_v29 = vld [vmem:[%s1196_s11 + $0x1d0] sm:$0xff]  ;;  %354 = vst [vmem:[%s1201_s12 + $0xd8] sm:$0xff] %v353_v27 }
  0x27   : > { %356 = vst [vmem:[%s1201_s12 + $0xe0] sm:$0xff] %v355_v28  ;;  %358 = vst [vmem:[%s1201_s12 + $0xe8] sm:$0xff] %v357_v29  ;;  %v359_v30 = vld [vmem:[%s1196_s11 + $0x1e0] sm:$0xff]  ;;  %v361_v31 = vld [vmem:[%s1196_s11 + $0x1f0] sm:$0xff] }
  0x28   : > { %360 = vst [vmem:[%s1201_s12 + $0xf0] sm:$0xff] %v359_v30  ;;  %362 = vst [vmem:[%s1201_s12 + $0xf8] sm:$0xff] %v361_v31 }
  0x29 PF: > { %p900_p7 = scmp.ge.s32.totalorder %s1108_s21, 1  ;;  %p383_p8 = scmp.lt.s32.totalorder %s1108_s21, 5 }
  0x2b   : > { %p384_p9 = pnand %p900_p7, %p383_p8 }
  0x2c   : > { %s390_s13 = sand.u32 (!%p384_p9), 1, %s1084_s15   ;;  %s902_s14 = sshll.u32 (!%p384_p9), %s1092_s17, 1 }
  0x2d   : > { %387 = sbr.rel (%p384_p9) target bundleno = 357 (0x165), region = 70  ;;  %s901_s24 = sshll.u32 (!%p384_p9), %s390_s13, 8 }
  0x2e   : > { %p439_p10 = scmp.lt.s32.totalorder (!%p384_p9), %s902_s14, 3  ;;  %s904_s25 = sshll.u32 (!%p384_p9), %s1096_s18, 1 }
  0x2f   : > { %p449_p11 = scmp.lt.s32.totalorder (!%p384_p9), %s904_s25, 3  ;;  %s1290_s13 = scalar_lea.vmem (!%p384_p9), [#allocation3], %s901_s24 }
  0x30   : > { %p908_p12 = scmp.ne.s32.totalorder (!%p384_p9), %s1092_s17, 0 }
  0x34   : > { %s1378_s14 = smov (!%p439_p10, %s902_s14), 3  ;;  %s1380_s25 = smov (!%p449_p11, %s904_s25), 3 }
  0x35   : > { %s903_s26 = sshll.u32 %s1378_s14, 2  ;;  %s451_s15 = scalar_lea.vmem %s1362_s2, %s1380_s25  ;;  %v1110_v32 = vmov (!%p908_p12), 0.0  }
  0x36   : > { %s1272_s30 = scalar_lea.vmem %s1360_s0, %s903_s26  ;;  %s456_s18 = scalar_lea.vmem %s1363_s3, %s1380_s25  ;;  %472 = vst [vmem:[#allocation2] sm:$0xff] (!%p908_p12), %v1110_v32  ;;  %473 = vst [vmem:[#allocation2 + $0x8] sm:$0xff] (!%p908_p12), %v1110_v32 }
  0x37   : > { %s907_s9 = sshll.u32 %s1380_s25, 3  ;;  %471 = sbr.rel (%p908_p12) target bundleno = 62 (0x3e), region = 78 }
  0x38   : > { %s1288_s12 = scalar_lea.vmem %s1364_s4, %s907_s9 }
  0x3e PF: > { %v1004_v33 = vld [vmem:[%s1290_s13 + $0x4] ss:$8 sps:$4 sm:$0xff]   ;;  %v1006_v34 = vld [vmem:[%s1290_s13] ss:$8 sps:$4 sm:$0xff]   ;;  %v1007_v35 = vld [vmem:[%s1290_s13 + $0x14] ss:$8 sps:$4 sm:$0xff]  }
  0x3f   : > { %676 = vmatprep.subr.bf16.mxu0 %v1004_v33  ;;  %v1009_v36 = vld [vmem:[%s1290_s13 + $0x10] ss:$8 sps:$4 sm:$0xff]   ;;  %v1010_v37 = vld [vmem:[%s1290_s13 + $0x24] ss:$8 sps:$4 sm:$0xff]   ;;  %v1012_v38 = vld [vmem:[%s1290_s13 + $0x20] ss:$8 sps:$4 sm:$0xff]  }
  0x40   : > { %677 = vmatpush1.bf16.msra.mxu0 %v1006_v34  ;;  %v1013_v39 = vld [vmem:[%s1290_s13 + $0x34] ss:$8 sps:$4 sm:$0xff]   ;;  %v1015_v40 = vld [vmem:[%s1290_s13 + $0x30] ss:$8 sps:$4 sm:$0xff]   ;;  %v1016_v41 = vld [vmem:[%s1290_s13 + $0x44] ss:$8 sps:$4 sm:$0xff]  }
  0x41   : > { %678 = vmatprep.subr.bf16.mxu0 %v1007_v35  ;;  %v1018_v42 = vld [vmem:[%s1290_s13 + $0x40] ss:$8 sps:$4 sm:$0xff]   ;;  %v1019_v43 = vld [vmem:[%s1290_s13 + $0x54] ss:$8 sps:$4 sm:$0xff]   ;;  %v1021_v44 = vld [vmem:[%s1290_s13 + $0x50] ss:$8 sps:$4 sm:$0xff]  }
  0x42   : > { %v1022_v45 = vld [vmem:[%s1290_s13 + $0x64] ss:$8 sps:$4 sm:$0xff]   ;;  %v476_v46 = vld [vmem:[%s1272_s30] sm:$0xff]  ;;  %v1024_v48 = vld [vmem:[%s1290_s13 + $0x60] ss:$8 sps:$4 sm:$0xff]   ;;  %p943_p13 = scmp.ne.s32.totalorder %s1092_s17, 1 }
  0x43   : > { %v910_v47 = vcombine.high %v476_v46, %v476_v46  ;;  %v1025_v49 = vld [vmem:[%s1290_s13 + $0x74] ss:$8 sps:$4 sm:$0xff]   ;;  %v1027_v50 = vld [vmem:[%s1290_s13 + $0x70] ss:$8 sps:$4 sm:$0xff]   ;;  %v1028_v51 = vld [vmem:[%s1290_s13 + $0x84] ss:$8 sps:$4 sm:$0xff]   ;;  %v909_v3 = vcombine.low %v476_v46, %v476_v46  ;;  %v729_v12 = vlaneseq (!%p943_p13) }
  0x44   : > { %679 = vmatpush1.bf16.msra.mxu0 %v1009_v36  ;;  %v1030_v52 = vld [vmem:[%s1290_s13 + $0x80] ss:$8 sps:$4 sm:$0xff]   ;;  %v1031_v53 = vld [vmem:[%s1290_s13 + $0x94] ss:$8 sps:$4 sm:$0xff]   ;;  %v1033_v54 = vld [vmem:[%s1290_s13 + $0x90] ss:$8 sps:$4 sm:$0xff]  }
  0x45   : > { %680 = vmatprep.subr.bf16.mxu0 %v1010_v37  ;;  %708 = vmatprep.mubr.bf16.mxu0 %v910_v47  ;;  %v1034_v55 = vld [vmem:[%s1290_s13 + $0xa4] ss:$8 sps:$4 sm:$0xff]   ;;  %v1036_v56 = vld [vmem:[%s1290_s13 + $0xa0] ss:$8 sps:$4 sm:$0xff]   ;;  %v1037_v57 = vld [vmem:[%s1290_s13 + $0xb4] ss:$8 sps:$4 sm:$0xff]  }
  0x46   : > { %v1039_v58 = vld [vmem:[%s1290_s13 + $0xb0] ss:$8 sps:$4 sm:$0xff]   ;;  %v1040_v59 = vld [vmem:[%s1290_s13 + $0xc4] ss:$8 sps:$4 sm:$0xff]   ;;  %v1042_v60 = vld [vmem:[%s1290_s13 + $0xc0] ss:$8 sps:$4 sm:$0xff]  }
  0x47   : > { %v1043_v61 = vld [vmem:[%s1290_s13 + $0xd4] ss:$8 sps:$4 sm:$0xff]   ;;  %v1045_v62 = vld [vmem:[%s1290_s13 + $0xd0] ss:$8 sps:$4 sm:$0xff]   ;;  %v1046_v63 = vld [vmem:[%s1290_s13 + $0xe4] ss:$8 sps:$4 sm:$0xff]  }
  0x48   : > { %681 = vmatpush1.bf16.msra.mxu0 %v1012_v38  ;;  %v1048_v0 = vld [vmem:[%s1290_s13 + $0xe0] ss:$8 sps:$4 sm:$0xff]   ;;  %v1049_v1 = vld [vmem:[%s1290_s13 + $0xf4] ss:$8 sps:$4 sm:$0xff]   ;;  %v1051_v2 = vld [vmem:[%s1290_s13 + $0xf0] ss:$8 sps:$4 sm:$0xff]  }
  0x49   : > { %682 = vmatprep.subr.bf16.mxu0 %v1013_v39  ;;  %v474_v4 = vld [vmem:[#allocation2] sm:$0xff]  ;;  %v475_v5 = vld [vmem:[#allocation2 + $0x8] sm:$0xff]  ;;  %v730_v13 = vshrl.u32 (!%p943_p13), %v729_v12, 7 }
  0x4a   : > { %v727_v14 = vld [vmem:[%s451_s15] sm:$0x3] (!%p943_p13) }
  0x4b   : > { %v741_v15 = vld [vmem:[%s456_s18] sm:$0x3] (!%p943_p13)  ;;  %v731_v16 = vsub.s32 (!%p943_p13), 0, %v730_v13  ;;  %v735_v17 = vsub.s32 (!%p943_p13), 1, %v730_v13 }
  0x4c   : > { %683 = vmatpush1.bf16.msra.mxu0 %v1015_v40 }
  0x4d   : > { %684 = vmatprep.subr.bf16.mxu0 %v1016_v41  ;;  %v732_v20 = vrot.slane (!%p943_p13), %v727_v14, %v731_v16  ;;  %v746_v21 = vrot.slane (!%p943_p13), %v741_v15, %v731_v16  ;;  %v736_v22 = vrot.slane (!%p943_p13), %v727_v14, %v735_v17  ;;  %v750_v23 = vrot.slane (!%p943_p13), %v741_v15, %v735_v17 }
  0x50   : > { %685 = vmatpush1.bf16.msra.mxu0 %v1018_v42 }
  0x51   : > { %686 = vmatprep.subr.bf16.mxu0 %v1019_v43 }
  0x54   : > { %687 = vmatpush1.bf16.msra.mxu0 %v1021_v44 }
  0x55   : > { %688 = vmatprep.subr.bf16.mxu0 %v1022_v45 }
  0x58   : > { %689 = vmatpush1.bf16.msra.mxu0 %v1024_v48 }
  0x59   : > { %690 = vmatprep.subr.bf16.mxu0 %v1025_v49 }
  0x5c   : > { %691 = vmatpush1.bf16.msra.mxu0 %v1027_v50 }
  0x5d   : > { %692 = vmatprep.subr.bf16.mxu0 %v1028_v51 }
  0x60   : > { %693 = vmatpush1.bf16.msra.mxu0 %v1030_v52 }
  0x61   : > { %694 = vmatprep.subr.bf16.mxu0 %v1031_v53 }
  0x64   : > { %695 = vmatpush1.bf16.msra.mxu0 %v1033_v54 }
  0x65   : > { %696 = vmatprep.subr.bf16.mxu0 %v1034_v55 }
  0x68   : > { %697 = vmatpush1.bf16.msra.mxu0 %v1036_v56 }
  0x69   : > { %698 = vmatprep.subr.bf16.mxu0 %v1037_v57 }
  0x6c   : > { %699 = vmatpush1.bf16.msra.mxu0 %v1039_v58 }
  0x6d   : > { %700 = vmatprep.subr.bf16.mxu0 %v1040_v59 }
  0x70   : > { %701 = vmatpush1.bf16.msra.mxu0 %v1042_v60 }
  0x71   : > { %702 = vmatprep.subr.bf16.mxu0 %v1043_v61 }
  0x74   : > { %703 = vmatpush1.bf16.msra.mxu0 %v1045_v62 }
  0x75   : > { %704 = vmatprep.subr.bf16.mxu0 %v1046_v63 }
  0x78   : > { %705 = vmatpush1.bf16.msra.mxu0 %v1048_v0 }
  0x79   : > { %706 = vmatprep.subr.bf16.mxu0 %v1049_v1 }
  0x7c   : > { %707 = vmatpush1.bf16.msra.mxu0 %v1051_v2 }
  0x7f   : > { %709 = vmatmul.mubr.bf16.vlgmr.msra.gmra.mrb[0].mxu0 %v909_v3 }
 0x150   : > { %724 = sbr.rel (%p943_p13) target bundleno = 357 (0x165), region = 82 }
 0x152   : > { %v710_v6 = vpop.f32.mrb[0].mxu0 }
 0x153   : > { %v717_v7 = vadd.f32 %v710_v6, %v474_v4  ;;  %v712_v8 = vpop.f32.mrb[1].mxu0 }
 0x154   : > { %v718_v9 = vadd.f32 %v712_v8, %v475_v5  ;;  %v714_v10 = vpop.f32.mrb[2].mxu0 }
 0x155   : > { %719 = vst [vmem:[#allocation2] sm:$0xff] %v717_v7  ;;  %v715_v11 = vpop.f32.mrb[3].mxu0 }
 0x156   : > { %720 = vst [vmem:[#allocation2 + $0x8] sm:$0xff] %v718_v9 }
 0x15c   : > { %v725_v18 = vld [vmem:[#allocation2] sm:$0xff] }
 0x15d   : > { %v726_v19 = vld [vmem:[#allocation2 + $0x8] sm:$0xff]  ;;  %v739_v24 = vmul.f32 %v732_v20, %v725_v18 }
 0x15e   : > { %v740_v25 = vmul.f32 %v736_v22, %v726_v19 }
 0x15f   : > { %v753_v26 = vadd.f32 %v746_v21, %v739_v24 }
 0x160   : > { %v754_v27 = vadd.f32 %v750_v23, %v740_v25 }
 0x161   : > { %v755_v28 = vmax.f32 %v753_v26, 0.0 }
 0x162   : > { %v756_v29 = vmax.f32 %v754_v27, 0.0 }
 0x163   : > { %757 = vst [vmem:[%s1288_s12] sm:$0xff] %v755_v28 }
 0x164   : > { %758 = vst [vmem:[%s1288_s12 + $0x8] sm:$0xff] %v756_v29 }
 0x165 PF: > { %s14_s21 = sadd.s32 1, %s1108_s21   ;;  %s1365_s15 = smov %s1088_s16 }
 0x166   : > { %p11_p0 = scmp.ge.s32.totalorder %s14_s21, 6   ;;  %s1366_s16 = smov %s1187_s28 }
 0x167   : > { %s1367_s17 = smov %s1100_s19  ;;  %s1368_s18 = smov %s1104_s20 }
 0x168   : > { %s1369_s19 = smov %s1372_s22  ;;  %s1370_s20 = smov %s1376_s23 }
 0x169   :  { %13 = sbr.rel (!%p11_p0) target bundleno = 4 (0x4), region = 126 }

// kernel: resnet_simclr_forward.42
= control target key start
LH: loop header
LB: loop body
LE: loop exit
PB: predicated region body
PF: predicated region fallthrough
CT: control target
= control target key end

     0   :  { %s4514_s18 = smov 0   ;;  %s4516_s19 = smov 0   ;;  %s5039_s0 = inlined_call_operand.vmem [shape: bf16[2,3,1,1536], index: 0, kind: input, shape index: {}]   ;;  %s5040_s1 = inlined_call_operand.vmem [shape: bf16[3,1536,512], index: 1, kind: input, shape index: {}]   ;;  %s5041_s2 = inlined_call_operand.vmem [shape: f32[1,512], index: 2, kind: input, shape index: {}]   ;;  %s5042_s3 = inlined_call_operand.vmem [shape: f32[1,512], index: 3, kind: input, shape index: {}]   ;;  %s5043_s4 = inlined_call_operand.vmem [shape: f32[2,1,1,512], index: 4, kind: input, shape index: {}]   ;;  %s5044_s5 = inlined_call_operand.vmem [shape: f32[2,1,1,512], index: 5, kind: output, shape index: {}]  }
   0x1   :  { %s4518_s20 = smov 0   ;;  %s4520_s21 = smov 0  }
   0x2   :  { %s4522_s22 = smov 0  }
   0x3 LB: > { %s27_s23 = sadd.s32 1, %s4472_s20  ;;  %s34_s24 = sadd.s32 1, %s4476_s21  ;;  %s4480_s22 = sphi %s4522_s22, %s15_s22   ;;  %s4476_s21 = sphi %s4520_s21, %s5048_s21   ;;  %s4472_s20 = sphi %s4518_s20, %s5047_s20   ;;  %s4468_s19 = sphi %s4516_s19, %s5046_s19   ;;  %s4464_s18 = sphi %s4514_s18, %s5045_s18  }
   0x4   : > { %p28_p0 = scmp.ge.s32.totalorder %s27_s23, 3  ;;  %p3387_p1 = scmp.ge.s32.totalorder %s4480_s22, 1 }
   0x5   : > { %p242_p2 = scmp.lt.s32.totalorder %s4480_s22, 7 }
   0x6   : > { %s5050_s23 = smov (%p28_p0, %s27_s23), 0  ;;  %s5052_s24 = smov (!%p28_p0, %s34_s24), %s4476_s21 }
   0x7   : > { %p243_p3 = pnand %p3387_p1, %p242_p2  ;;  %p36_p4 = scmp.ge.s32.totalorder %s5052_s24, 2 }
   0x8   : > { %p291_p5 = scmp.lt.s32.totalorder (!%p243_p3), %s4468_s19, 1  ;;  %p293_p6 = scmp.lt.s32.totalorder (!%p243_p3), %s4464_s18, 2 }
   0x9   : > { %s5054_s24 = smov (%p36_p4, %s5052_s24), 0  ;;  %246 = sbr.rel (%p243_p3) target bundleno = 648 (0x288), region = 40 }
   0xa   : > { %p3391_p7 = scmp.ne.s32.totalorder (!%p243_p3), %s4464_s18, 0 }
  0x10   : > { %s5056_s19 = smov (!%p291_p5, %s4468_s19), 1  ;;  %324 = sbr.rel (%p3391_p7) target bundleno = 23 (0x17), region = 44 }
  0x11   : > { %s294_s25 = scalar_select %p293_p6, %s4464_s18, 2 }
  0x12   : > { %s3821_s26 = smul.u32 36, %s5056_s19  ;;  %s3389_s27 = sshll.u32 %s5056_s19, 2  ;;  %v325_v0 = vlaneseq (!%p3391_p7)  ;;  %v4482_v1 = vmov (!%p3391_p7), 0.0  }
  0x13   : > { %s3820_s28 = smul.u32 12, %s294_s25  ;;  %s4551_s6 = scalar_lea.vmem %s5043_s4, %s3389_s27 }
  0x14   : > { %s3822_s7 = smul.u32 3072, %s294_s25  ;;  %s4556_s10 = scalar_lea.vmem %s5044_s5, %s3389_s27  ;;  %vm327_vm0 = vcmp.lt.s32.totalorder (!%p3391_p7), %v325_v0, 512 }
  0x15   : > { %s297_s11 = sadd.s32 %s3821_s26, %s3820_s28  ;;  %329 = vst.msk [vmem:[#allocation2] sm:$0xf] (!%p3391_p7), %vm327_vm0, %v4482_v1 }
  0x16   : > { %s4561_s14 = scalar_lea.vmem %s5039_s0, %s297_s11  ;;  %s4566_s17 = scalar_lea.vmem %s5040_s1, %s3822_s7 }
  0x17 PF: > { %v3865_v2 = vld [vmem:[%s4566_s17 + $0x4] ss:$16 sps:$4 sm:$0xff]   ;;  %v3867_v3 = vld [vmem:[%s4566_s17 + $0xc] ss:$16 sps:$4 sm:$0xff]   ;;  %v3869_v4 = vld [vmem:[%s4566_s17] ss:$16 sps:$4 sm:$0xff]   ;;  %v723_v40 = vlaneseq }
  0x18   : > { %2724 = vmatprep.subr.bf16.mxu0 %v3865_v2  ;;  %v3870_v5 = vld [vmem:[%s4566_s17 + $0x8] ss:$16 sps:$4 sm:$0xff]   ;;  %2970 = vmatprep.subr.bf16.mxu1 %v3867_v3  ;;  %v3871_v6 = vld [vmem:[%s4566_s17 + $0x24] ss:$16 sps:$4 sm:$0xff]   ;;  %v3873_v7 = vld [vmem:[%s4566_s17 + $0x2c] ss:$16 sps:$4 sm:$0xff]  }
  0x19   : > { %2725 = vmatpush1.bf16.msra.mxu0 %v3869_v4  ;;  %2971 = vmatpush1.bf16.msra.mxu1 %v3870_v5  ;;  %v3875_v8 = vld [vmem:[%s4566_s17 + $0x20] ss:$16 sps:$4 sm:$0xff]   ;;  %v3876_v9 = vld [vmem:[%s4566_s17 + $0x28] ss:$16 sps:$4 sm:$0xff]   ;;  %v3877_v10 = vld [vmem:[%s4566_s17 + $0x44] ss:$16 sps:$4 sm:$0xff]  }
  0x1a   : > { %2726 = vmatprep.subr.bf16.mxu0 %v3871_v6  ;;  %2972 = vmatprep.subr.bf16.mxu1 %v3873_v7  ;;  %v3879_v11 = vld [vmem:[%s4566_s17 + $0x4c] ss:$16 sps:$4 sm:$0xff]   ;;  %v3881_v12 = vld [vmem:[%s4566_s17 + $0x40] ss:$16 sps:$4 sm:$0xff]   ;;  %v3882_v13 = vld [vmem:[%s4566_s17 + $0x48] ss:$16 sps:$4 sm:$0xff]  }
  0x1b   : > { %v3883_v14 = vld [vmem:[%s4566_s17 + $0x64] ss:$16 sps:$4 sm:$0xff]   ;;  %v3885_v15 = vld [vmem:[%s4566_s17 + $0x6c] ss:$16 sps:$4 sm:$0xff]   ;;  %v3887_v16 = vld [vmem:[%s4566_s17 + $0x60] ss:$16 sps:$4 sm:$0xff]  }
  0x1c   : > { %v3888_v17 = vld [vmem:[%s4566_s17 + $0x68] ss:$16 sps:$4 sm:$0xff]   ;;  %v3889_v18 = vld [vmem:[%s4566_s17 + $0x84] ss:$16 sps:$4 sm:$0xff]   ;;  %v3891_v19 = vld [vmem:[%s4566_s17 + $0x8c] ss:$16 sps:$4 sm:$0xff]  }
  0x1d   : > { %2727 = vmatpush1.bf16.msra.mxu0 %v3875_v8  ;;  %2973 = vmatpush1.bf16.msra.mxu1 %v3876_v9  ;;  %v3893_v20 = vld [vmem:[%s4566_s17 + $0x80] ss:$16 sps:$4 sm:$0xff]   ;;  %v3894_v21 = vld [vmem:[%s4566_s17 + $0x88] ss:$16 sps:$4 sm:$0xff]   ;;  %v3895_v22 = vld [vmem:[%s4566_s17 + $0xa4] ss:$16 sps:$4 sm:$0xff]  }
  0x1e   : > { %2728 = vmatprep.subr.bf16.mxu0 %v3877_v10  ;;  %2974 = vmatprep.subr.bf16.mxu1 %v3879_v11  ;;  %v3897_v23 = vld [vmem:[%s4566_s17 + $0xac] ss:$16 sps:$4 sm:$0xff]   ;;  %v3899_v24 = vld [vmem:[%s4566_s17 + $0xa0] ss:$16 sps:$4 sm:$0xff]   ;;  %v3900_v25 = vld [vmem:[%s4566_s17 + $0xa8] ss:$16 sps:$4 sm:$0xff]  }
  0x1f   : > { %v3901_v26 = vld [vmem:[%s4566_s17 + $0xc4] ss:$16 sps:$4 sm:$0xff]   ;;  %v3903_v27 = vld [vmem:[%s4566_s17 + $0xcc] ss:$16 sps:$4 sm:$0xff]   ;;  %v3905_v28 = vld [vmem:[%s4566_s17 + $0xc0] ss:$16 sps:$4 sm:$0xff]  }
  0x20   : > { %v3906_v29 = vld [vmem:[%s4566_s17 + $0xc8] ss:$16 sps:$4 sm:$0xff]   ;;  %v3907_v30 = vld [vmem:[%s4566_s17 + $0xe4] ss:$16 sps:$4 sm:$0xff]   ;;  %v3909_v31 = vld [vmem:[%s4566_s17 + $0xec] ss:$16 sps:$4 sm:$0xff]  }
  0x21   : > { %2729 = vmatpush1.bf16.msra.mxu0 %v3881_v12  ;;  %2975 = vmatpush1.bf16.msra.mxu1 %v3882_v13  ;;  %v3911_v32 = vld [vmem:[%s4566_s17 + $0xe0] ss:$16 sps:$4 sm:$0xff]   ;;  %v3912_v33 = vld [vmem:[%s4566_s17 + $0xe8] ss:$16 sps:$4 sm:$0xff]   ;;  %v3913_v34 = vld [vmem:[%s4566_s17 + $0x104] ss:$16 sps:$4 sm:$0xff]  }
  0x22   : > { %2730 = vmatprep.subr.bf16.mxu0 %v3883_v14  ;;  %2976 = vmatprep.subr.bf16.mxu1 %v3885_v15  ;;  %v3915_v35 = vld [vmem:[%s4566_s17 + $0x10c] ss:$16 sps:$4 sm:$0xff]   ;;  %v3917_v36 = vld [vmem:[%s4566_s17 + $0x100] ss:$16 sps:$4 sm:$0xff]   ;;  %v3918_v37 = vld [vmem:[%s4566_s17 + $0x108] ss:$16 sps:$4 sm:$0xff]  }
  0x23   : > { %v4483_v38 = vmov 1966171168   ;;  %v3919_v41 = vld [vmem:[%s4566_s17 + $0x124] ss:$16 sps:$4 sm:$0xff]   ;;  %v3921_v42 = vld [vmem:[%s4566_s17 + $0x12c] ss:$16 sps:$4 sm:$0xff]  }
  0x24   : > { %v721_v39 = vunpack.c.l.s4 %v4483_v38  ;;  %v3923_v43 = vld [vmem:[%s4566_s17 + $0x120] ss:$16 sps:$4 sm:$0xff]   ;;  %v724_v45 = vshrl.u32 %v723_v40, 7  ;;  %v3924_v46 = vld [vmem:[%s4566_s17 + $0x128] ss:$16 sps:$4 sm:$0xff]   ;;  %vm3248_vm1 = vcmp.lt.s32.totalorder %v723_v40, 512 }
  0x25   : > { %2731 = vmatpush1.bf16.msra.mxu0 %v3887_v16  ;;  %2977 = vmatpush1.bf16.msra.mxu1 %v3888_v17  ;;  %v3925_v47 = vld [vmem:[%s4566_s17 + $0x144] ss:$16 sps:$4 sm:$0xff]   ;;  %v3927_v48 = vld [vmem:[%s4566_s17 + $0x14c] ss:$16 sps:$4 sm:$0xff]   ;;  %v3929_v49 = vld [vmem:[%s4566_s17 + $0x140] ss:$16 sps:$4 sm:$0xff]  }
  0x26   : > { %2732 = vmatprep.subr.bf16.mxu0 %v3889_v18  ;;  %2978 = vmatprep.subr.bf16.mxu1 %v3891_v19  ;;  %v722_v44 = vunpack.c.0.s8 %v721_v39  ;;  %v3930_v50 = vld [vmem:[%s4566_s17 + $0x148] ss:$16 sps:$4 sm:$0xff]   ;;  %v3931_v52 = vld [vmem:[%s4566_s17 + $0x164] ss:$16 sps:$4 sm:$0xff]   ;;  %v3933_v53 = vld [vmem:[%s4566_s17 + $0x16c] ss:$16 sps:$4 sm:$0xff]  }
  0x27   : > { %v4619_v54 = vld [vmem:[%s4561_s14] sm:$0xff]  ;;  %v3936_v57 = vld [vmem:[%s4566_s17 + $0x168] ss:$16 sps:$4 sm:$0xff]   ;;  %v3939_v59 = vld [vmem:[%s4566_s17 + $0x18c] ss:$16 sps:$4 sm:$0xff]   ;;  %p3777_p8 = scmp.ne.s32.totalorder %s4464_s18, 2 }
  0x28   : > { %v4614_v51 = vsub.s32 %v722_v44, %v724_v45  ;;  %v3935_v55 = vld [vmem:[%s4566_s17 + $0x160] ss:$16 sps:$4 sm:$0xff]   ;;  %v3937_v58 = vld [vmem:[%s4566_s17 + $0x184] ss:$16 sps:$4 sm:$0xff]   ;;  %v3942_v63 = vld [vmem:[%s4566_s17 + $0x188] ss:$16 sps:$4 sm:$0xff]  }
  0x29   : > { %2733 = vmatpush1.bf16.msra.mxu0 %v3893_v20  ;;  %2979 = vmatpush1.bf16.msra.mxu1 %v3894_v21  ;;  %v3941_v61 = vld [vmem:[%s4566_s17 + $0x180] ss:$16 sps:$4 sm:$0xff]   ;;  %v3943_v0 = vld [vmem:[%s4566_s17 + $0x1a4] ss:$16 sps:$4 sm:$0xff]   ;;  %v3945_v1 = vld [vmem:[%s4566_s17 + $0x1ac] ss:$16 sps:$4 sm:$0xff]  }
  0x2a   : > { %2734 = vmatprep.subr.bf16.mxu0 %v3895_v22  ;;  %2980 = vmatprep.subr.bf16.mxu1 %v3897_v23  ;;  %v726_v56 = vrot.slane %v4619_v54, %v4614_v51  ;;  %v3947_v2 = vld [vmem:[%s4566_s17 + $0x1a0] ss:$16 sps:$4 sm:$0xff]   ;;  %v3948_v3 = vld [vmem:[%s4566_s17 + $0x1a8] ss:$16 sps:$4 sm:$0xff]   ;;  %v3949_v4 = vld [vmem:[%s4566_s17 + $0x1c4] ss:$16 sps:$4 sm:$0xff]  }
  0x2b   : > { %v3951_v5 = vld [vmem:[%s4566_s17 + $0x1cc] ss:$16 sps:$4 sm:$0xff]   ;;  %v3953_v6 = vld [vmem:[%s4566_s17 + $0x1c0] ss:$16 sps:$4 sm:$0xff]   ;;  %v3954_v7 = vld [vmem:[%s4566_s17 + $0x1c8] ss:$16 sps:$4 sm:$0xff]  }
  0x2c   : > { %v734_v60 = vcombine.high %v726_v56, %v726_v56  ;;  %v3955_v8 = vld [vmem:[%s4566_s17 + $0x1e4] ss:$16 sps:$4 sm:$0xff]   ;;  %v3957_v9 = vld [vmem:[%s4566_s17 + $0x1ec] ss:$16 sps:$4 sm:$0xff]   ;;  %v3959_v10 = vld [vmem:[%s4566_s17 + $0x1e0] ss:$16 sps:$4 sm:$0xff]   ;;  %v4646_v15 = vrot.slane %v726_v56, %v4614_v51 }
  0x2d   : > { %2735 = vmatpush1.bf16.msra.mxu0 %v3899_v24  ;;  %2981 = vmatpush1.bf16.msra.mxu1 %v3900_v25  ;;  %v3960_v11 = vld [vmem:[%s4566_s17 + $0x1e8] ss:$16 sps:$4 sm:$0xff]   ;;  %v3963_v12 = vld [vmem:[%s4566_s17 + $0x204] ss:$16 sps:$4 sm:$0xff]   ;;  %v3966_v13 = vld [vmem:[%s4566_s17 + $0x20c] ss:$16 sps:$4 sm:$0xff]  }
  0x2e   : > { %2736 = vmatprep.subr.bf16.mxu0 %v3901_v26  ;;  %2982 = vmatprep.subr.bf16.mxu1 %v3903_v27  ;;  %v756_v62 = vrot.slane %v734_v60, %v4614_v51  ;;  %v3961_v14 = vld [vmem:[%s4566_s17 + $0x200] ss:$16 sps:$4 sm:$0xff]   ;;  %v3964_v16 = vld [vmem:[%s4566_s17 + $0x208] ss:$16 sps:$4 sm:$0xff]   ;;  %v3969_v17 = vld [vmem:[%s4566_s17 + $0x224] ss:$16 sps:$4 sm:$0xff]  }
  0x2f   : > { %v3972_v18 = vld [vmem:[%s4566_s17 + $0x22c] ss:$16 sps:$4 sm:$0xff]   ;;  %v3967_v20 = vld [vmem:[%s4566_s17 + $0x220] ss:$16 sps:$4 sm:$0xff]   ;;  %v3970_v21 = vld [vmem:[%s4566_s17 + $0x228] ss:$16 sps:$4 sm:$0xff]  }
  0x30   : > { %2756 = vmatprep.mubr.bf16.mxu0 %v756_v62  ;;  %3002 = vmatprep.mubr.bf16.mxu1 %v756_v62  ;;  %v766_v19 = vcombine.high %v756_v62, %v756_v62  ;;  %v3975_v22 = vld [vmem:[%s4566_s17 + $0x244] ss:$16 sps:$4 sm:$0xff]   ;;  %v3978_v23 = vld [vmem:[%s4566_s17 + $0x24c] ss:$16 sps:$4 sm:$0xff]   ;;  %v3973_v24 = vld [vmem:[%s4566_s17 + $0x240] ss:$16 sps:$4 sm:$0xff]  }
  0x31   : > { %2737 = vmatpush1.bf16.msra.mxu0 %v3905_v28  ;;  %2983 = vmatpush1.bf16.msra.mxu1 %v3906_v29  ;;  %v3976_v25 = vld [vmem:[%s4566_s17 + $0x248] ss:$16 sps:$4 sm:$0xff]   ;;  %v3981_v26 = vld [vmem:[%s4566_s17 + $0x264] ss:$16 sps:$4 sm:$0xff]   ;;  %v3984_v27 = vld [vmem:[%s4566_s17 + $0x26c] ss:$16 sps:$4 sm:$0xff]  }
  0x32   : > { %2738 = vmatprep.subr.bf16.mxu0 %v3907_v30  ;;  %2984 = vmatprep.subr.bf16.mxu1 %v3909_v31  ;;  %v3979_v28 = vld [vmem:[%s4566_s17 + $0x260] ss:$16 sps:$4 sm:$0xff]   ;;  %v3982_v29 = vld [vmem:[%s4566_s17 + $0x268] ss:$16 sps:$4 sm:$0xff]   ;;  %v3987_v30 = vld [vmem:[%s4566_s17 + $0x284] ss:$16 sps:$4 sm:$0xff]  }
  0x33   : > { %v3990_v31 = vld [vmem:[%s4566_s17 + $0x28c] ss:$16 sps:$4 sm:$0xff]   ;;  %v3999_v38 = vld [vmem:[%s4566_s17 + $0x2c4] ss:$16 sps:$4 sm:$0xff]   ;;  %v4003_v45 = vld [vmem:[%s4566_s17 + $0x2e0] ss:$16 sps:$4 sm:$0xff]  }
  0x34   : > { %v4002_v39 = vld [vmem:[%s4566_s17 + $0x2cc] ss:$16 sps:$4 sm:$0xff]   ;;  %v4018_v56 = vld [vmem:[%s4566_s17 + $0x328] ss:$16 sps:$4 sm:$0xff]  }
  0x35   : > { %2739 = vmatpush1.bf16.msra.mxu0 %v3911_v32  ;;  %2985 = vmatpush1.bf16.msra.mxu1 %v3912_v33  ;;  %v3985_v32 = vld [vmem:[%s4566_s17 + $0x280] ss:$16 sps:$4 sm:$0xff]   ;;  %v3988_v33 = vld [vmem:[%s4566_s17 + $0x288] ss:$16 sps:$4 sm:$0xff]   ;;  %v4008_v44 = vld [vmem:[%s4566_s17 + $0x2ec] ss:$16 sps:$4 sm:$0xff]  }
  0x36   : > { %2740 = vmatprep.subr.bf16.mxu0 %v3913_v34  ;;  %2986 = vmatprep.subr.bf16.mxu1 %v3915_v35  ;;  %v3993_v34 = vld [vmem:[%s4566_s17 + $0x2a4] ss:$16 sps:$4 sm:$0xff]   ;;  %v3996_v35 = vld [vmem:[%s4566_s17 + $0x2ac] ss:$16 sps:$4 sm:$0xff]   ;;  %v4024_v60 = vld [vmem:[%s4566_s17 + $0x348] ss:$16 sps:$4 sm:$0xff]  }
  0x37   : > { %v4032_v62 = vld [vmem:[%s4566_s17 + $0x36c] ss:$16 sps:$4 sm:$0xff]  }
  0x39   : > { %2741 = vmatpush1.bf16.msra.mxu0 %v3917_v36  ;;  %2987 = vmatpush1.bf16.msra.mxu1 %v3918_v37  ;;  %v3991_v36 = vld [vmem:[%s4566_s17 + $0x2a0] ss:$16 sps:$4 sm:$0xff]   ;;  %v3994_v37 = vld [vmem:[%s4566_s17 + $0x2a8] ss:$16 sps:$4 sm:$0xff]  }
  0x3a   : > { %2742 = vmatprep.subr.bf16.mxu0 %v3919_v41  ;;  %2988 = vmatprep.subr.bf16.mxu1 %v3921_v42  ;;  %v3997_v41 = vld [vmem:[%s4566_s17 + $0x2c0] ss:$16 sps:$4 sm:$0xff]   ;;  %v4000_v42 = vld [vmem:[%s4566_s17 + $0x2c8] ss:$16 sps:$4 sm:$0xff]  }
  0x3d   : > { %2743 = vmatpush1.bf16.msra.mxu0 %v3923_v43  ;;  %2989 = vmatpush1.bf16.msra.mxu1 %v3924_v46  ;;  %v4005_v43 = vld [vmem:[%s4566_s17 + $0x2e4] ss:$16 sps:$4 sm:$0xff]   ;;  %v4006_v46 = vld [vmem:[%s4566_s17 + $0x2e8] ss:$16 sps:$4 sm:$0xff]  }
  0x3e   : > { %2744 = vmatprep.subr.bf16.mxu0 %v3925_v47  ;;  %2990 = vmatprep.subr.bf16.mxu1 %v3927_v48  ;;  %v4011_v47 = vld [vmem:[%s4566_s17 + $0x304] ss:$16 sps:$4 sm:$0xff]   ;;  %v4014_v48 = vld [vmem:[%s4566_s17 + $0x30c] ss:$16 sps:$4 sm:$0xff]  }
  0x41   : > { %2745 = vmatpush1.bf16.msra.mxu0 %v3929_v49  ;;  %2991 = vmatpush1.bf16.msra.mxu1 %v3930_v50  ;;  %v4009_v49 = vld [vmem:[%s4566_s17 + $0x300] ss:$16 sps:$4 sm:$0xff]   ;;  %v4012_v50 = vld [vmem:[%s4566_s17 + $0x308] ss:$16 sps:$4 sm:$0xff]  }
  0x42   : > { %2746 = vmatprep.subr.bf16.mxu0 %v3931_v52  ;;  %2992 = vmatprep.subr.bf16.mxu1 %v3933_v53  ;;  %v4017_v52 = vld [vmem:[%s4566_s17 + $0x324] ss:$16 sps:$4 sm:$0xff]   ;;  %v4020_v53 = vld [vmem:[%s4566_s17 + $0x32c] ss:$16 sps:$4 sm:$0xff]  }
  0x45   : > { %2747 = vmatpush1.bf16.msra.mxu0 %v3935_v55  ;;  %2993 = vmatpush1.bf16.msra.mxu1 %v3936_v57  ;;  %v4015_v55 = vld [vmem:[%s4566_s17 + $0x320] ss:$16 sps:$4 sm:$0xff]   ;;  %v4023_v57 = vld [vmem:[%s4566_s17 + $0x344] ss:$16 sps:$4 sm:$0xff]  }
  0x46   : > { %2748 = vmatprep.subr.bf16.mxu0 %v3937_v58  ;;  %2994 = vmatprep.subr.bf16.mxu1 %v3939_v59  ;;  %v4026_v58 = vld [vmem:[%s4566_s17 + $0x34c] ss:$16 sps:$4 sm:$0xff]   ;;  %v4021_v59 = vld [vmem:[%s4566_s17 + $0x340] ss:$16 sps:$4 sm:$0xff]  }
  0x49   : > { %2749 = vmatpush1.bf16.msra.mxu0 %v3941_v61  ;;  %2995 = vmatpush1.bf16.msra.mxu1 %v3942_v63  ;;  %v4029_v61 = vld [vmem:[%s4566_s17 + $0x364] ss:$16 sps:$4 sm:$0xff]   ;;  %v4027_v63 = vld [vmem:[%s4566_s17 + $0x360] ss:$16 sps:$4 sm:$0xff]  }
  0x4a   : > { %2750 = vmatprep.subr.bf16.mxu0 %v3943_v0  ;;  %2996 = vmatprep.subr.bf16.mxu1 %v3945_v1  ;;  %v4030_v0 = vld [vmem:[%s4566_s17 + $0x368] ss:$16 sps:$4 sm:$0xff]   ;;  %v4035_v1 = vld [vmem:[%s4566_s17 + $0x384] ss:$16 sps:$4 sm:$0xff]  }
  0x4d   : > { %2751 = vmatpush1.bf16.msra.mxu0 %v3947_v2  ;;  %2997 = vmatpush1.bf16.msra.mxu1 %v3948_v3  ;;  %v4038_v2 = vld [vmem:[%s4566_s17 + $0x38c] ss:$16 sps:$4 sm:$0xff]   ;;  %v4033_v3 = vld [vmem:[%s4566_s17 + $0x380] ss:$16 sps:$4 sm:$0xff]  }
  0x4e   : > { %2752 = vmatprep.subr.bf16.mxu0 %v3949_v4  ;;  %2998 = vmatprep.subr.bf16.mxu1 %v3951_v5  ;;  %v4036_v4 = vld [vmem:[%s4566_s17 + $0x388] ss:$16 sps:$4 sm:$0xff]   ;;  %v4041_v5 = vld [vmem:[%s4566_s17 + $0x3a4] ss:$16 sps:$4 sm:$0xff]  }
  0x51   : > { %2753 = vmatpush1.bf16.msra.mxu0 %v3953_v6  ;;  %2999 = vmatpush1.bf16.msra.mxu1 %v3954_v7  ;;  %v4044_v6 = vld [vmem:[%s4566_s17 + $0x3ac] ss:$16 sps:$4 sm:$0xff]   ;;  %v4039_v7 = vld [vmem:[%s4566_s17 + $0x3a0] ss:$16 sps:$4 sm:$0xff]  }
  0x52   : > { %2754 = vmatprep.subr.bf16.mxu0 %v3955_v8  ;;  %3000 = vmatprep.subr.bf16.mxu1 %v3957_v9  ;;  %v4042_v8 = vld [vmem:[%s4566_s17 + $0x3a8] ss:$16 sps:$4 sm:$0xff]   ;;  %v4047_v9 = vld [vmem:[%s4566_s17 + $0x3c4] ss:$16 sps:$4 sm:$0xff]  }
  0x55   : > { %2755 = vmatpush1.bf16.msra.mxu0 %v3959_v10  ;;  %3001 = vmatpush1.bf16.msra.mxu1 %v3960_v11  ;;  %v4050_v10 = vld [vmem:[%s4566_s17 + $0x3cc] ss:$16 sps:$4 sm:$0xff]   ;;  %v719_v11 = vcombine.high %v4619_v54, %v4619_v54  ;;  %v4054_v54 = vld [vmem:[%s4566_s17 + $0x3e8] ss:$16 sps:$4 sm:$0xff]  }
  0x56   : > { %2765 = vmatprep.subr.bf16.mxu0 %v3963_v12  ;;  %3011 = vmatprep.subr.bf16.mxu1 %v3966_v13  ;;  %v4045_v12 = vld [vmem:[%s4566_s17 + $0x3c0] ss:$16 sps:$4 sm:$0xff]   ;;  %v4048_v13 = vld [vmem:[%s4566_s17 + $0x3c8] ss:$16 sps:$4 sm:$0xff]  }
  0x58   : > { %2757 = vmatmul.mubr.bf16.vlgmr.msra.gmra.mrb[0].mxu0 %v4646_v15  ;;  %3003 = vmatmul.mubr.bf16.vlgmr.msra.gmra.mrb[0].mxu1 %v4646_v15 }
  0x59   : > { %2766 = vmatpush1.bf16.msra.mxu0 %v3961_v14  ;;  %3012 = vmatpush1.bf16.msra.mxu1 %v3964_v16  ;;  %v4053_v14 = vld [vmem:[%s4566_s17 + $0x3e4] ss:$16 sps:$4 sm:$0xff]   ;;  %v4056_v16 = vld [vmem:[%s4566_s17 + $0x3ec] ss:$16 sps:$4 sm:$0xff]  }
  0x5a   : > { %2767 = vmatprep.subr.bf16.mxu0 %v3969_v17  ;;  %3013 = vmatprep.subr.bf16.mxu1 %v3972_v18  ;;  %v4712_v17 = vrot.slane %v719_v11, %v4614_v51  ;;  %v4051_v18 = vld [vmem:[%s4566_s17 + $0x3e0] ss:$16 sps:$4 sm:$0xff]   ;;  %v4132_v11 = vld [vmem:[%s4566_s17 + $0x588] ss:$16 sps:$4 sm:$0xff]  }
  0x5b   : > { %2797 = vmatprep.mubr.bf16.mxu0 %v766_v19  ;;  %3043 = vmatprep.mubr.bf16.mxu1 %v766_v19  ;;  %v4059_v19 = vld [vmem:[%s4566_s17 + $0x404] ss:$16 sps:$4 sm:$0xff]  }
  0x5d   : > { %2768 = vmatpush1.bf16.msra.mxu0 %v3967_v20  ;;  %3014 = vmatpush1.bf16.msra.mxu1 %v3970_v21  ;;  %v4062_v20 = vld [vmem:[%s4566_s17 + $0x40c] ss:$16 sps:$4 sm:$0xff]   ;;  %v735_v21 = vcombine.high %v4712_v17, %v4712_v17 }
  0x5e   : > { %2769 = vmatprep.subr.bf16.mxu0 %v3975_v22  ;;  %3015 = vmatprep.subr.bf16.mxu1 %v3978_v23  ;;  %v4057_v22 = vld [vmem:[%s4566_s17 + $0x400] ss:$16 sps:$4 sm:$0xff]   ;;  %v764_v23 = vcombine.high %v4646_v15, %v4646_v15  ;;  %v4066_v15 = vld [vmem:[%s4566_s17 + $0x428] ss:$16 sps:$4 sm:$0xff]  }
  0x61   : > { %2770 = vmatpush1.bf16.msra.mxu0 %v3973_v24  ;;  %3016 = vmatpush1.bf16.msra.mxu1 %v3976_v25  ;;  %v4060_v24 = vld [vmem:[%s4566_s17 + $0x408] ss:$16 sps:$4 sm:$0xff]   ;;  %v4065_v25 = vld [vmem:[%s4566_s17 + $0x424] ss:$16 sps:$4 sm:$0xff]  }
  0x62   : > { %2771 = vmatprep.subr.bf16.mxu0 %v3981_v26  ;;  %3017 = vmatprep.subr.bf16.mxu1 %v3984_v27  ;;  %v4068_v26 = vld [vmem:[%s4566_s17 + $0x42c] ss:$16 sps:$4 sm:$0xff]   ;;  %v4727_v27 = vrot.slane %v735_v21, %v4614_v51  ;;  %v4149_v21 = vld [vmem:[%s4566_s17 + $0x5e4] ss:$16 sps:$4 sm:$0xff]  }
  0x65   : > { %2772 = vmatpush1.bf16.msra.mxu0 %v3979_v28  ;;  %3018 = vmatpush1.bf16.msra.mxu1 %v3982_v29  ;;  %v4063_v28 = vld [vmem:[%s4566_s17 + $0x420] ss:$16 sps:$4 sm:$0xff]   ;;  %v4071_v29 = vld [vmem:[%s4566_s17 + $0x444] ss:$16 sps:$4 sm:$0xff]  }
  0x66   : > { %2773 = vmatprep.subr.bf16.mxu0 %v3987_v30  ;;  %3019 = vmatprep.subr.bf16.mxu1 %v3990_v31  ;;  %v4074_v30 = vld [vmem:[%s4566_s17 + $0x44c] ss:$16 sps:$4 sm:$0xff]   ;;  %v4069_v31 = vld [vmem:[%s4566_s17 + $0x440] ss:$16 sps:$4 sm:$0xff]  }
  0x69   : > { %2774 = vmatpush1.bf16.msra.mxu0 %v3985_v32  ;;  %3020 = vmatpush1.bf16.msra.mxu1 %v3988_v33  ;;  %v4072_v32 = vld [vmem:[%s4566_s17 + $0x448] ss:$16 sps:$4 sm:$0xff]   ;;  %v4077_v33 = vld [vmem:[%s4566_s17 + $0x464] ss:$16 sps:$4 sm:$0xff]  }
  0x6a   : > { %2775 = vmatprep.subr.bf16.mxu0 %v3993_v34  ;;  %3021 = vmatprep.subr.bf16.mxu1 %v3996_v35  ;;  %v4080_v34 = vld [vmem:[%s4566_s17 + $0x46c] ss:$16 sps:$4 sm:$0xff]   ;;  %v4075_v35 = vld [vmem:[%s4566_s17 + $0x460] ss:$16 sps:$4 sm:$0xff]  }
  0x6d   : > { %2776 = vmatpush1.bf16.msra.mxu0 %v3991_v36  ;;  %3022 = vmatpush1.bf16.msra.mxu1 %v3994_v37  ;;  %v4078_v36 = vld [vmem:[%s4566_s17 + $0x468] ss:$16 sps:$4 sm:$0xff]   ;;  %v4083_v37 = vld [vmem:[%s4566_s17 + $0x484] ss:$16 sps:$4 sm:$0xff]  }
  0x6e   : > { %2777 = vmatprep.subr.bf16.mxu0 %v3999_v38  ;;  %3023 = vmatprep.subr.bf16.mxu1 %v4002_v39  ;;  %v4086_v38 = vld [vmem:[%s4566_s17 + $0x48c] ss:$16 sps:$4 sm:$0xff]   ;;  %v4081_v39 = vld [vmem:[%s4566_s17 + $0x480] ss:$16 sps:$4 sm:$0xff]  }
  0x71   : > { %2778 = vmatpush1.bf16.msra.mxu0 %v3997_v41  ;;  %3024 = vmatpush1.bf16.msra.mxu1 %v4000_v42  ;;  %v4084_v41 = vld [vmem:[%s4566_s17 + $0x488] ss:$16 sps:$4 sm:$0xff]   ;;  %v4089_v42 = vld [vmem:[%s4566_s17 + $0x4a4] ss:$16 sps:$4 sm:$0xff]  }
  0x72   : > { %2779 = vmatprep.subr.bf16.mxu0 %v4005_v43  ;;  %3025 = vmatprep.subr.bf16.mxu1 %v4008_v44  ;;  %v4092_v43 = vld [vmem:[%s4566_s17 + $0x4ac] ss:$16 sps:$4 sm:$0xff]   ;;  %v4087_v44 = vld [vmem:[%s4566_s17 + $0x4a0] ss:$16 sps:$4 sm:$0xff]  }
  0x75   : > { %2780 = vmatpush1.bf16.msra.mxu0 %v4003_v45  ;;  %3026 = vmatpush1.bf16.msra.mxu1 %v4006_v46  ;;  %v4090_v45 = vld [vmem:[%s4566_s17 + $0x4a8] ss:$16 sps:$4 sm:$0xff]   ;;  %v4095_v46 = vld [vmem:[%s4566_s17 + $0x4c4] ss:$16 sps:$4 sm:$0xff]  }
  0x76   : > { %2781 = vmatprep.subr.bf16.mxu0 %v4011_v47  ;;  %3027 = vmatprep.subr.bf16.mxu1 %v4014_v48  ;;  %v4098_v47 = vld [vmem:[%s4566_s17 + $0x4cc] ss:$16 sps:$4 sm:$0xff]   ;;  %v4093_v48 = vld [vmem:[%s4566_s17 + $0x4c0] ss:$16 sps:$4 sm:$0xff]  }
  0x79   : > { %2782 = vmatpush1.bf16.msra.mxu0 %v4009_v49  ;;  %3028 = vmatpush1.bf16.msra.mxu1 %v4012_v50  ;;  %v4096_v49 = vld [vmem:[%s4566_s17 + $0x4c8] ss:$16 sps:$4 sm:$0xff]   ;;  %v4101_v50 = vld [vmem:[%s4566_s17 + $0x4e4] ss:$16 sps:$4 sm:$0xff]  }
  0x7a   : > { %2783 = vmatprep.subr.bf16.mxu0 %v4017_v52  ;;  %3029 = vmatprep.subr.bf16.mxu1 %v4020_v53  ;;  %v4104_v52 = vld [vmem:[%s4566_s17 + $0x4ec] ss:$16 sps:$4 sm:$0xff]   ;;  %v4099_v53 = vld [vmem:[%s4566_s17 + $0x4e0] ss:$16 sps:$4 sm:$0xff]  }
  0x7d   : > { %2784 = vmatpush1.bf16.msra.mxu0 %v4015_v55  ;;  %3030 = vmatpush1.bf16.msra.mxu1 %v4018_v56  ;;  %v4102_v55 = vld [vmem:[%s4566_s17 + $0x4e8] ss:$16 sps:$4 sm:$0xff]   ;;  %v4107_v56 = vld [vmem:[%s4566_s17 + $0x504] ss:$16 sps:$4 sm:$0xff]  }
  0x7e   : > { %2785 = vmatprep.subr.bf16.mxu0 %v4023_v57  ;;  %3031 = vmatprep.subr.bf16.mxu1 %v4026_v58  ;;  %v4110_v57 = vld [vmem:[%s4566_s17 + $0x50c] ss:$16 sps:$4 sm:$0xff]   ;;  %v4105_v58 = vld [vmem:[%s4566_s17 + $0x500] ss:$16 sps:$4 sm:$0xff]  }
  0x81   : > { %2786 = vmatpush1.bf16.msra.mxu0 %v4021_v59  ;;  %3032 = vmatpush1.bf16.msra.mxu1 %v4024_v60  ;;  %v4108_v59 = vld [vmem:[%s4566_s17 + $0x508] ss:$16 sps:$4 sm:$0xff]   ;;  %v4113_v60 = vld [vmem:[%s4566_s17 + $0x524] ss:$16 sps:$4 sm:$0xff]  }
  0x82   : > { %2787 = vmatprep.subr.bf16.mxu0 %v4029_v61  ;;  %3033 = vmatprep.subr.bf16.mxu1 %v4032_v62  ;;  %v4116_v61 = vld [vmem:[%s4566_s17 + $0x52c] ss:$16 sps:$4 sm:$0xff]   ;;  %v4111_v62 = vld [vmem:[%s4566_s17 + $0x520] ss:$16 sps:$4 sm:$0xff]  }
  0x85   : > { %2788 = vmatpush1.bf16.msra.mxu0 %v4027_v63  ;;  %3034 = vmatpush1.bf16.msra.mxu1 %v4030_v0  ;;  %v4114_v63 = vld [vmem:[%s4566_s17 + $0x528] ss:$16 sps:$4 sm:$0xff]   ;;  %v4119_v0 = vld [vmem:[%s4566_s17 + $0x544] ss:$16 sps:$4 sm:$0xff]  }
  0x86   : > { %2789 = vmatprep.subr.bf16.mxu0 %v4035_v1  ;;  %3035 = vmatprep.subr.bf16.mxu1 %v4038_v2  ;;  %v4122_v1 = vld [vmem:[%s4566_s17 + $0x54c] ss:$16 sps:$4 sm:$0xff]   ;;  %v4117_v2 = vld [vmem:[%s4566_s17 + $0x540] ss:$16 sps:$4 sm:$0xff]  }
  0x89   : > { %2790 = vmatpush1.bf16.msra.mxu0 %v4033_v3  ;;  %3036 = vmatpush1.bf16.msra.mxu1 %v4036_v4  ;;  %v4120_v3 = vld [vmem:[%s4566_s17 + $0x548] ss:$16 sps:$4 sm:$0xff]   ;;  %v4125_v4 = vld [vmem:[%s4566_s17 + $0x564] ss:$16 sps:$4 sm:$0xff]  }
  0x8a   : > { %2791 = vmatprep.subr.bf16.mxu0 %v4041_v5  ;;  %3037 = vmatprep.subr.bf16.mxu1 %v4044_v6  ;;  %v4128_v5 = vld [vmem:[%s4566_s17 + $0x56c] ss:$16 sps:$4 sm:$0xff]   ;;  %v4123_v6 = vld [vmem:[%s4566_s17 + $0x560] ss:$16 sps:$4 sm:$0xff]  }
  0x8d   : > { %2792 = vmatpush1.bf16.msra.mxu0 %v4039_v7  ;;  %3038 = vmatpush1.bf16.msra.mxu1 %v4042_v8  ;;  %v4126_v7 = vld [vmem:[%s4566_s17 + $0x568] ss:$16 sps:$4 sm:$0xff]   ;;  %v4131_v8 = vld [vmem:[%s4566_s17 + $0x584] ss:$16 sps:$4 sm:$0xff]  }
  0x8e   : > { %2793 = vmatprep.subr.bf16.mxu0 %v4047_v9  ;;  %3039 = vmatprep.subr.bf16.mxu1 %v4050_v10  ;;  %v4134_v9 = vld [vmem:[%s4566_s17 + $0x58c] ss:$16 sps:$4 sm:$0xff]   ;;  %v4129_v10 = vld [vmem:[%s4566_s17 + $0x580] ss:$16 sps:$4 sm:$0xff]  }
  0x91   : > { %2794 = vmatpush1.bf16.msra.mxu0 %v4045_v12  ;;  %3040 = vmatpush1.bf16.msra.mxu1 %v4048_v13  ;;  %v4137_v12 = vld [vmem:[%s4566_s17 + $0x5a4] ss:$16 sps:$4 sm:$0xff]   ;;  %v4140_v13 = vld [vmem:[%s4566_s17 + $0x5ac] ss:$16 sps:$4 sm:$0xff]  }
  0x92   : > { %2795 = vmatprep.subr.bf16.mxu0 %v4053_v14  ;;  %3041 = vmatprep.subr.bf16.mxu1 %v4056_v16  ;;  %v4135_v14 = vld [vmem:[%s4566_s17 + $0x5a0] ss:$16 sps:$4 sm:$0xff]   ;;  %v4138_v16 = vld [vmem:[%s4566_s17 + $0x5a8] ss:$16 sps:$4 sm:$0xff]  }
  0x95   : > { %2796 = vmatpush1.bf16.msra.mxu0 %v4051_v18  ;;  %3042 = vmatpush1.bf16.msra.mxu1 %v4054_v54  ;;  %v4143_v18 = vld [vmem:[%s4566_s17 + $0x5c4] ss:$16 sps:$4 sm:$0xff]   ;;  %v4146_v54 = vld [vmem:[%s4566_s17 + $0x5cc] ss:$16 sps:$4 sm:$0xff]  }
  0x96   : > { %2806 = vmatprep.subr.bf16.mxu0 %v4059_v19  ;;  %3052 = vmatprep.subr.bf16.mxu1 %v4062_v20  ;;  %v4141_v19 = vld [vmem:[%s4566_s17 + $0x5c0] ss:$16 sps:$4 sm:$0xff]   ;;  %v4144_v20 = vld [vmem:[%s4566_s17 + $0x5c8] ss:$16 sps:$4 sm:$0xff]  }
  0x98   : > { %2798 = vmatmul.mubr.bf16.vlgmr.msra.gmra.mrb[0].mxu0 %v764_v23  ;;  %3044 = vmatmul.mubr.bf16.vlgmr.msra.gmra.mrb[0].mxu1 %v764_v23  ;;  %v4147_v23 = vld [vmem:[%s4566_s17 + $0x5e0] ss:$16 sps:$4 sm:$0xff]  }
  0x99   : > { %2807 = vmatpush1.bf16.msra.mxu0 %v4057_v22  ;;  %3053 = vmatpush1.bf16.msra.mxu1 %v4060_v24  ;;  %v4152_v22 = vld [vmem:[%s4566_s17 + $0x5ec] ss:$16 sps:$4 sm:$0xff]   ;;  %v4150_v24 = vld [vmem:[%s4566_s17 + $0x5e8] ss:$16 sps:$4 sm:$0xff]  }
  0x9a   : > { %2808 = vmatprep.subr.bf16.mxu0 %v4065_v25  ;;  %3054 = vmatprep.subr.bf16.mxu1 %v4068_v26  ;;  %v4156_v25 = vld [vmem:[%s4566_s17 + $0x604] ss:$16 sps:$4 sm:$0xff]   ;;  %v4159_v26 = vld [vmem:[%s4566_s17 + $0x60c] ss:$16 sps:$4 sm:$0xff]  }
  0x9b   : > { %2838 = vmatprep.mubr.bf16.mxu0 %v4727_v27  ;;  %3084 = vmatprep.mubr.bf16.mxu1 %v4727_v27 }
  0x9d   : > { %2809 = vmatpush1.bf16.msra.mxu0 %v4063_v28  ;;  %3055 = vmatpush1.bf16.msra.mxu1 %v4066_v15  ;;  %v4154_v28 = vld [vmem:[%s4566_s17 + $0x600] ss:$16 sps:$4 sm:$0xff]   ;;  %v4794_v15 = vrot.slane %v4712_v17, %v4614_v51 }
  0x9e   : > { %2810 = vmatprep.subr.bf16.mxu0 %v4071_v29  ;;  %3056 = vmatprep.subr.bf16.mxu1 %v4074_v30  ;;  %v4157_v29 = vld [vmem:[%s4566_s17 + $0x608] ss:$16 sps:$4 sm:$0xff]   ;;  %v4162_v30 = vld [vmem:[%s4566_s17 + $0x624] ss:$16 sps:$4 sm:$0xff]   ;;  %v4160_v17 = vld [vmem:[%s4566_s17 + $0x620] ss:$16 sps:$4 sm:$0xff]  }
  0xa1   : > { %2811 = vmatpush1.bf16.msra.mxu0 %v4069_v31  ;;  %3057 = vmatpush1.bf16.msra.mxu1 %v4072_v32  ;;  %v4165_v31 = vld [vmem:[%s4566_s17 + $0x62c] ss:$16 sps:$4 sm:$0xff]   ;;  %v767_v32 = vcombine.high %v4727_v27, %v4727_v27  ;;  %v4166_v27 = vld [vmem:[%s4566_s17 + $0x640] ss:$16 sps:$4 sm:$0xff]  }
  0xa2   : > { %2812 = vmatprep.subr.bf16.mxu0 %v4077_v33  ;;  %3058 = vmatprep.subr.bf16.mxu1 %v4080_v34  ;;  %v4163_v33 = vld [vmem:[%s4566_s17 + $0x628] ss:$16 sps:$4 sm:$0xff]   ;;  %v4168_v34 = vld [vmem:[%s4566_s17 + $0x644] ss:$16 sps:$4 sm:$0xff]  }
  0xa5   : > { %2813 = vmatpush1.bf16.msra.mxu0 %v4075_v35  ;;  %3059 = vmatpush1.bf16.msra.mxu1 %v4078_v36  ;;  %v4171_v35 = vld [vmem:[%s4566_s17 + $0x64c] ss:$16 sps:$4 sm:$0xff]   ;;  %v4169_v36 = vld [vmem:[%s4566_s17 + $0x648] ss:$16 sps:$4 sm:$0xff]  }
  0xa6   : > { %2814 = vmatprep.subr.bf16.mxu0 %v4083_v37  ;;  %3060 = vmatprep.subr.bf16.mxu1 %v4086_v38  ;;  %v4174_v37 = vld [vmem:[%s4566_s17 + $0x664] ss:$16 sps:$4 sm:$0xff]   ;;  %v4177_v38 = vld [vmem:[%s4566_s17 + $0x66c] ss:$16 sps:$4 sm:$0xff]  }
  0xa9   : > { %2815 = vmatpush1.bf16.msra.mxu0 %v4081_v39  ;;  %3061 = vmatpush1.bf16.msra.mxu1 %v4084_v41  ;;  %v4172_v39 = vld [vmem:[%s4566_s17 + $0x660] ss:$16 sps:$4 sm:$0xff]   ;;  %v4175_v41 = vld [vmem:[%s4566_s17 + $0x668] ss:$16 sps:$4 sm:$0xff]  }
  0xaa   : > { %2816 = vmatprep.subr.bf16.mxu0 %v4089_v42  ;;  %3062 = vmatprep.subr.bf16.mxu1 %v4092_v43  ;;  %v4180_v42 = vld [vmem:[%s4566_s17 + $0x684] ss:$16 sps:$4 sm:$0xff]   ;;  %v4183_v43 = vld [vmem:[%s4566_s17 + $0x68c] ss:$16 sps:$4 sm:$0xff]  }
  0xad   : > { %2817 = vmatpush1.bf16.msra.mxu0 %v4087_v44  ;;  %3063 = vmatpush1.bf16.msra.mxu1 %v4090_v45  ;;  %v4178_v44 = vld [vmem:[%s4566_s17 + $0x680] ss:$16 sps:$4 sm:$0xff]   ;;  %v4181_v45 = vld [vmem:[%s4566_s17 + $0x688] ss:$16 sps:$4 sm:$0xff]  }
  0xae   : > { %2818 = vmatprep.subr.bf16.mxu0 %v4095_v46  ;;  %3064 = vmatprep.subr.bf16.mxu1 %v4098_v47  ;;  %v4186_v46 = vld [vmem:[%s4566_s17 + $0x6a4] ss:$16 sps:$4 sm:$0xff]   ;;  %v4189_v47 = vld [vmem:[%s4566_s17 + $0x6ac] ss:$16 sps:$4 sm:$0xff]  }
  0xb1   : > { %2819 = vmatpush1.bf16.msra.mxu0 %v4093_v48  ;;  %3065 = vmatpush1.bf16.msra.mxu1 %v4096_v49  ;;  %v4184_v48 = vld [vmem:[%s4566_s17 + $0x6a0] ss:$16 sps:$4 sm:$0xff]   ;;  %v4187_v49 = vld [vmem:[%s4566_s17 + $0x6a8] ss:$16 sps:$4 sm:$0xff]  }
  0xb2   : > { %2820 = vmatprep.subr.bf16.mxu0 %v4101_v50  ;;  %3066 = vmatprep.subr.bf16.mxu1 %v4104_v52  ;;  %v4192_v50 = vld [vmem:[%s4566_s17 + $0x6c4] ss:$16 sps:$4 sm:$0xff]   ;;  %v4195_v52 = vld [vmem:[%s4566_s17 + $0x6cc] ss:$16 sps:$4 sm:$0xff]  }
  0xb5   : > { %2821 = vmatpush1.bf16.msra.mxu0 %v4099_v53  ;;  %3067 = vmatpush1.bf16.msra.mxu1 %v4102_v55  ;;  %v4190_v53 = vld [vmem:[%s4566_s17 + $0x6c0] ss:$16 sps:$4 sm:$0xff]   ;;  %v4193_v55 = vld [vmem:[%s4566_s17 + $0x6c8] ss:$16 sps:$4 sm:$0xff]  }
  0xb6   : > { %2822 = vmatprep.subr.bf16.mxu0 %v4107_v56  ;;  %3068 = vmatprep.subr.bf16.mxu1 %v4110_v57  ;;  %v4198_v56 = vld [vmem:[%s4566_s17 + $0x6e4] ss:$16 sps:$4 sm:$0xff]   ;;  %v4201_v57 = vld [vmem:[%s4566_s17 + $0x6ec] ss:$16 sps:$4 sm:$0xff]  }
  0xb9   : > { %2823 = vmatpush1.bf16.msra.mxu0 %v4105_v58  ;;  %3069 = vmatpush1.bf16.msra.mxu1 %v4108_v59  ;;  %v4196_v58 = vld [vmem:[%s4566_s17 + $0x6e0] ss:$16 sps:$4 sm:$0xff]   ;;  %v4199_v59 = vld [vmem:[%s4566_s17 + $0x6e8] ss:$16 sps:$4 sm:$0xff]  }
  0xba   : > { %2824 = vmatprep.subr.bf16.mxu0 %v4113_v60  ;;  %3070 = vmatprep.subr.bf16.mxu1 %v4116_v61  ;;  %v4204_v60 = vld [vmem:[%s4566_s17 + $0x704] ss:$16 sps:$4 sm:$0xff]   ;;  %v4207_v61 = vld [vmem:[%s4566_s17 + $0x70c] ss:$16 sps:$4 sm:$0xff]  }
  0xbd   : > { %2825 = vmatpush1.bf16.msra.mxu0 %v4111_v62  ;;  %3071 = vmatpush1.bf16.msra.mxu1 %v4114_v63  ;;  %v4202_v62 = vld [vmem:[%s4566_s17 + $0x700] ss:$16 sps:$4 sm:$0xff]   ;;  %v4205_v63 = vld [vmem:[%s4566_s17 + $0x708] ss:$16 sps:$4 sm:$0xff]  }
  0xbe   : > { %2826 = vmatprep.subr.bf16.mxu0 %v4119_v0  ;;  %3072 = vmatprep.subr.bf16.mxu1 %v4122_v1  ;;  %v4210_v0 = vld [vmem:[%s4566_s17 + $0x724] ss:$16 sps:$4 sm:$0xff]   ;;  %v4213_v1 = vld [vmem:[%s4566_s17 + $0x72c] ss:$16 sps:$4 sm:$0xff]  }
  0xc1   : > { %2827 = vmatpush1.bf16.msra.mxu0 %v4117_v2  ;;  %3073 = vmatpush1.bf16.msra.mxu1 %v4120_v3  ;;  %v4208_v2 = vld [vmem:[%s4566_s17 + $0x720] ss:$16 sps:$4 sm:$0xff]   ;;  %v4211_v3 = vld [vmem:[%s4566_s17 + $0x728] ss:$16 sps:$4 sm:$0xff]  }
  0xc2   : > { %2828 = vmatprep.subr.bf16.mxu0 %v4125_v4  ;;  %3074 = vmatprep.subr.bf16.mxu1 %v4128_v5  ;;  %v4216_v4 = vld [vmem:[%s4566_s17 + $0x744] ss:$16 sps:$4 sm:$0xff]   ;;  %v4219_v5 = vld [vmem:[%s4566_s17 + $0x74c] ss:$16 sps:$4 sm:$0xff]  }
  0xc5   : > { %2829 = vmatpush1.bf16.msra.mxu0 %v4123_v6  ;;  %3075 = vmatpush1.bf16.msra.mxu1 %v4126_v7  ;;  %v4214_v6 = vld [vmem:[%s4566_s17 + $0x740] ss:$16 sps:$4 sm:$0xff]   ;;  %v4217_v7 = vld [vmem:[%s4566_s17 + $0x748] ss:$16 sps:$4 sm:$0xff]  }
  0xc6   : > { %2830 = vmatprep.subr.bf16.mxu0 %v4131_v8  ;;  %3076 = vmatprep.subr.bf16.mxu1 %v4134_v9  ;;  %v4222_v8 = vld [vmem:[%s4566_s17 + $0x764] ss:$16 sps:$4 sm:$0xff]   ;;  %v4225_v9 = vld [vmem:[%s4566_s17 + $0x76c] ss:$16 sps:$4 sm:$0xff]  }
  0xc9   : > { %2831 = vmatpush1.bf16.msra.mxu0 %v4129_v10  ;;  %3077 = vmatpush1.bf16.msra.mxu1 %v4132_v11  ;;  %v4220_v10 = vld [vmem:[%s4566_s17 + $0x760] ss:$16 sps:$4 sm:$0xff]   ;;  %v4223_v11 = vld [vmem:[%s4566_s17 + $0x768] ss:$16 sps:$4 sm:$0xff]  }
  0xca   : > { %2832 = vmatprep.subr.bf16.mxu0 %v4137_v12  ;;  %3078 = vmatprep.subr.bf16.mxu1 %v4140_v13  ;;  %v4228_v12 = vld [vmem:[%s4566_s17 + $0x784] ss:$16 sps:$4 sm:$0xff]   ;;  %v4231_v13 = vld [vmem:[%s4566_s17 + $0x78c] ss:$16 sps:$4 sm:$0xff]  }
  0xcd   : > { %2833 = vmatpush1.bf16.msra.mxu0 %v4135_v14  ;;  %3079 = vmatpush1.bf16.msra.mxu1 %v4138_v16  ;;  %v4226_v14 = vld [vmem:[%s4566_s17 + $0x780] ss:$16 sps:$4 sm:$0xff]   ;;  %v4229_v16 = vld [vmem:[%s4566_s17 + $0x788] ss:$16 sps:$4 sm:$0xff]  }
  0xce   : > { %2834 = vmatprep.subr.bf16.mxu0 %v4143_v18  ;;  %3080 = vmatprep.subr.bf16.mxu1 %v4146_v54  ;;  %v4234_v18 = vld [vmem:[%s4566_s17 + $0x7a4] ss:$16 sps:$4 sm:$0xff]   ;;  %v4237_v54 = vld [vmem:[%s4566_s17 + $0x7ac] ss:$16 sps:$4 sm:$0xff]  }
  0xd1   : > { %2835 = vmatpush1.bf16.msra.mxu0 %v4141_v19  ;;  %3081 = vmatpush1.bf16.msra.mxu1 %v4144_v20  ;;  %v4232_v19 = vld [vmem:[%s4566_s17 + $0x7a0] ss:$16 sps:$4 sm:$0xff]   ;;  %v4235_v20 = vld [vmem:[%s4566_s17 + $0x7a8] ss:$16 sps:$4 sm:$0xff]  }
  0xd2   : > { %2836 = vmatprep.subr.bf16.mxu0 %v4149_v21  ;;  %3082 = vmatprep.subr.bf16.mxu1 %v4152_v22  ;;  %v4240_v21 = vld [vmem:[%s4566_s17 + $0x7c4] ss:$16 sps:$4 sm:$0xff]   ;;  %v4243_v22 = vld [vmem:[%s4566_s17 + $0x7cc] ss:$16 sps:$4 sm:$0xff]  }
  0xd5   : > { %2837 = vmatpush1.bf16.msra.mxu0 %v4147_v23  ;;  %3083 = vmatpush1.bf16.msra.mxu1 %v4150_v24  ;;  %v4238_v23 = vld [vmem:[%s4566_s17 + $0x7c0] ss:$16 sps:$4 sm:$0xff]   ;;  %v4241_v24 = vld [vmem:[%s4566_s17 + $0x7c8] ss:$16 sps:$4 sm:$0xff]  }
  0xd6   : > { %2847 = vmatprep.subr.bf16.mxu0 %v4156_v25  ;;  %3093 = vmatprep.subr.bf16.mxu1 %v4159_v26  ;;  %v4246_v25 = vld [vmem:[%s4566_s17 + $0x7e4] ss:$16 sps:$4 sm:$0xff]   ;;  %v4249_v26 = vld [vmem:[%s4566_s17 + $0x7ec] ss:$16 sps:$4 sm:$0xff]  }
  0xd8   : > { %2839 = vmatmul.mubr.bf16.vlgmr.msra.gmra.mrb[0].mxu0 %v4794_v15  ;;  %3085 = vmatmul.mubr.bf16.vlgmr.msra.gmra.mrb[0].mxu1 %v4794_v15 }
  0xd9   : > { %2848 = vmatpush1.bf16.msra.mxu0 %v4154_v28  ;;  %3094 = vmatpush1.bf16.msra.mxu1 %v4157_v29  ;;  %v4860_v28 = vld.sshfl [vmem:[%s4561_s14 + $0x8] sm:$0x33 pattern:$0x75316420]  ;;  %v4244_v29 = vld [vmem:[%s4566_s17 + $0x7e0] ss:$16 sps:$4 sm:$0xff]  }
  0xda   : > { %2849 = vmatprep.subr.bf16.mxu0 %v4162_v30  ;;  %3095 = vmatprep.subr.bf16.mxu1 %v4165_v31  ;;  %v4247_v30 = vld [vmem:[%s4566_s17 + $0x7e8] ss:$16 sps:$4 sm:$0xff]   ;;  %v4252_v31 = vld [vmem:[%s4566_s17 + $0x804] ss:$16 sps:$4 sm:$0xff]  }
  0xdb   : > { %2879 = vmatprep.mubr.bf16.mxu0 %v767_v32  ;;  %3125 = vmatprep.mubr.bf16.mxu1 %v767_v32  ;;  %v4255_v32 = vld [vmem:[%s4566_s17 + $0x80c] ss:$16 sps:$4 sm:$0xff]  }
  0xdd   : > { %2850 = vmatpush1.bf16.msra.mxu0 %v4160_v17  ;;  %3096 = vmatpush1.bf16.msra.mxu1 %v4163_v33  ;;  %v775_v17 = vcombine.high %v4860_v28, %v4860_v28  ;;  %v765_v33 = vcombine.high %v4794_v15, %v4794_v15  ;;  %v4256_v15 = vld [vmem:[%s4566_s17 + $0x820] ss:$16 sps:$4 sm:$0xff]  }
  0xde   : > { %2851 = vmatprep.subr.bf16.mxu0 %v4168_v34  ;;  %3097 = vmatprep.subr.bf16.mxu1 %v4171_v35  ;;  %v4250_v34 = vld [vmem:[%s4566_s17 + $0x800] ss:$16 sps:$4 sm:$0xff]   ;;  %v4253_v35 = vld [vmem:[%s4566_s17 + $0x808] ss:$16 sps:$4 sm:$0xff]  }
  0xe1   : > { %2852 = vmatpush1.bf16.msra.mxu0 %v4166_v27  ;;  %3098 = vmatpush1.bf16.msra.mxu1 %v4169_v36  ;;  %v4258_v27 = vld [vmem:[%s4566_s17 + $0x824] ss:$16 sps:$4 sm:$0xff]   ;;  %v4261_v36 = vld [vmem:[%s4566_s17 + $0x82c] ss:$16 sps:$4 sm:$0xff]  }
  0xe2   : > { %2853 = vmatprep.subr.bf16.mxu0 %v4174_v37  ;;  %3099 = vmatprep.subr.bf16.mxu1 %v4177_v38  ;;  %v4875_v37 = vrot.slane %v775_v17, %v4614_v51  ;;  %v4259_v38 = vld [vmem:[%s4566_s17 + $0x828] ss:$16 sps:$4 sm:$0xff]   ;;  %v4342_v17 = vld [vmem:[%s4566_s17 + $0x9e4] ss:$16 sps:$4 sm:$0xff]  }
  0xe5   : > { %2854 = vmatpush1.bf16.msra.mxu0 %v4172_v39  ;;  %3100 = vmatpush1.bf16.msra.mxu1 %v4175_v41  ;;  %v4264_v39 = vld [vmem:[%s4566_s17 + $0x844] ss:$16 sps:$4 sm:$0xff]   ;;  %v4267_v41 = vld [vmem:[%s4566_s17 + $0x84c] ss:$16 sps:$4 sm:$0xff]  }
  0xe6   : > { %2855 = vmatprep.subr.bf16.mxu0 %v4180_v42  ;;  %3101 = vmatprep.subr.bf16.mxu1 %v4183_v43  ;;  %v4262_v42 = vld [vmem:[%s4566_s17 + $0x840] ss:$16 sps:$4 sm:$0xff]   ;;  %v4265_v43 = vld [vmem:[%s4566_s17 + $0x848] ss:$16 sps:$4 sm:$0xff]  }
  0xe9   : > { %2856 = vmatpush1.bf16.msra.mxu0 %v4178_v44  ;;  %3102 = vmatpush1.bf16.msra.mxu1 %v4181_v45  ;;  %v4270_v44 = vld [vmem:[%s4566_s17 + $0x864] ss:$16 sps:$4 sm:$0xff]   ;;  %v4273_v45 = vld [vmem:[%s4566_s17 + $0x86c] ss:$16 sps:$4 sm:$0xff]  }
  0xea   : > { %2857 = vmatprep.subr.bf16.mxu0 %v4186_v46  ;;  %3103 = vmatprep.subr.bf16.mxu1 %v4189_v47  ;;  %v4268_v46 = vld [vmem:[%s4566_s17 + $0x860] ss:$16 sps:$4 sm:$0xff]   ;;  %v4271_v47 = vld [vmem:[%s4566_s17 + $0x868] ss:$16 sps:$4 sm:$0xff]  }
  0xed   : > { %2858 = vmatpush1.bf16.msra.mxu0 %v4184_v48  ;;  %3104 = vmatpush1.bf16.msra.mxu1 %v4187_v49  ;;  %v4276_v48 = vld [vmem:[%s4566_s17 + $0x884] ss:$16 sps:$4 sm:$0xff]   ;;  %v4279_v49 = vld [vmem:[%s4566_s17 + $0x88c] ss:$16 sps:$4 sm:$0xff]  }
  0xee   : > { %2859 = vmatprep.subr.bf16.mxu0 %v4192_v50  ;;  %3105 = vmatprep.subr.bf16.mxu1 %v4195_v52  ;;  %v4274_v50 = vld [vmem:[%s4566_s17 + $0x880] ss:$16 sps:$4 sm:$0xff]   ;;  %v4277_v52 = vld [vmem:[%s4566_s17 + $0x888] ss:$16 sps:$4 sm:$0xff]  }
  0xf1   : > { %2860 = vmatpush1.bf16.msra.mxu0 %v4190_v53  ;;  %3106 = vmatpush1.bf16.msra.mxu1 %v4193_v55  ;;  %v4282_v53 = vld [vmem:[%s4566_s17 + $0x8a4] ss:$16 sps:$4 sm:$0xff]   ;;  %v4285_v55 = vld [vmem:[%s4566_s17 + $0x8ac] ss:$16 sps:$4 sm:$0xff]  }
  0xf2   : > { %2861 = vmatprep.subr.bf16.mxu0 %v4198_v56  ;;  %3107 = vmatprep.subr.bf16.mxu1 %v4201_v57  ;;  %v4280_v56 = vld [vmem:[%s4566_s17 + $0x8a0] ss:$16 sps:$4 sm:$0xff]   ;;  %v4283_v57 = vld [vmem:[%s4566_s17 + $0x8a8] ss:$16 sps:$4 sm:$0xff]  }
  0xf5   : > { %2862 = vmatpush1.bf16.msra.mxu0 %v4196_v58  ;;  %3108 = vmatpush1.bf16.msra.mxu1 %v4199_v59  ;;  %v4288_v58 = vld [vmem:[%s4566_s17 + $0x8c4] ss:$16 sps:$4 sm:$0xff]   ;;  %v4291_v59 = vld [vmem:[%s4566_s17 + $0x8cc] ss:$16 sps:$4 sm:$0xff]  }
  0xf6   : > { %2863 = vmatprep.subr.bf16.mxu0 %v4204_v60  ;;  %3109 = vmatprep.subr.bf16.mxu1 %v4207_v61  ;;  %v4286_v60 = vld [vmem:[%s4566_s17 + $0x8c0] ss:$16 sps:$4 sm:$0xff]   ;;  %v4289_v61 = vld [vmem:[%s4566_s17 + $0x8c8] ss:$16 sps:$4 sm:$0xff]  }
  0xf9   : > { %2864 = vmatpush1.bf16.msra.mxu0 %v4202_v62  ;;  %3110 = vmatpush1.bf16.msra.mxu1 %v4205_v63  ;;  %v4294_v62 = vld [vmem:[%s4566_s17 + $0x8e4] ss:$16 sps:$4 sm:$0xff]   ;;  %v4297_v63 = vld [vmem:[%s4566_s17 + $0x8ec] ss:$16 sps:$4 sm:$0xff]  }
  0xfa   : > { %2865 = vmatprep.subr.bf16.mxu0 %v4210_v0  ;;  %3111 = vmatprep.subr.bf16.mxu1 %v4213_v1  ;;  %v4292_v0 = vld [vmem:[%s4566_s17 + $0x8e0] ss:$16 sps:$4 sm:$0xff]   ;;  %v4295_v1 = vld [vmem:[%s4566_s17 + $0x8e8] ss:$16 sps:$4 sm:$0xff]  }
  0xfd   : > { %2866 = vmatpush1.bf16.msra.mxu0 %v4208_v2  ;;  %3112 = vmatpush1.bf16.msra.mxu1 %v4211_v3  ;;  %v4300_v2 = vld [vmem:[%s4566_s17 + $0x904] ss:$16 sps:$4 sm:$0xff]   ;;  %v4303_v3 = vld [vmem:[%s4566_s17 + $0x90c] ss:$16 sps:$4 sm:$0xff]  }
  0xfe   : > { %2867 = vmatprep.subr.bf16.mxu0 %v4216_v4  ;;  %3113 = vmatprep.subr.bf16.mxu1 %v4219_v5  ;;  %v4298_v4 = vld [vmem:[%s4566_s17 + $0x900] ss:$16 sps:$4 sm:$0xff]   ;;  %v4301_v5 = vld [vmem:[%s4566_s17 + $0x908] ss:$16 sps:$4 sm:$0xff]  }
 0x101   : > { %2868 = vmatpush1.bf16.msra.mxu0 %v4214_v6  ;;  %3114 = vmatpush1.bf16.msra.mxu1 %v4217_v7  ;;  %v4306_v6 = vld [vmem:[%s4566_s17 + $0x924] ss:$16 sps:$4 sm:$0xff]   ;;  %v4309_v7 = vld [vmem:[%s4566_s17 + $0x92c] ss:$16 sps:$4 sm:$0xff]  }
 0x102   : > { %2869 = vmatprep.subr.bf16.mxu0 %v4222_v8  ;;  %3115 = vmatprep.subr.bf16.mxu1 %v4225_v9  ;;  %v4304_v8 = vld [vmem:[%s4566_s17 + $0x920] ss:$16 sps:$4 sm:$0xff]   ;;  %v4307_v9 = vld [vmem:[%s4566_s17 + $0x928] ss:$16 sps:$4 sm:$0xff]  }
 0x105   : > { %2870 = vmatpush1.bf16.msra.mxu0 %v4220_v10  ;;  %3116 = vmatpush1.bf16.msra.mxu1 %v4223_v11  ;;  %v4312_v10 = vld [vmem:[%s4566_s17 + $0x944] ss:$16 sps:$4 sm:$0xff]   ;;  %v4315_v11 = vld [vmem:[%s4566_s17 + $0x94c] ss:$16 sps:$4 sm:$0xff]  }
 0x106   : > { %2871 = vmatprep.subr.bf16.mxu0 %v4228_v12  ;;  %3117 = vmatprep.subr.bf16.mxu1 %v4231_v13  ;;  %v4310_v12 = vld [vmem:[%s4566_s17 + $0x940] ss:$16 sps:$4 sm:$0xff]   ;;  %v4313_v13 = vld [vmem:[%s4566_s17 + $0x948] ss:$16 sps:$4 sm:$0xff]  }
 0x109   : > { %2872 = vmatpush1.bf16.msra.mxu0 %v4226_v14  ;;  %3118 = vmatpush1.bf16.msra.mxu1 %v4229_v16  ;;  %v4318_v14 = vld [vmem:[%s4566_s17 + $0x964] ss:$16 sps:$4 sm:$0xff]   ;;  %v4321_v16 = vld [vmem:[%s4566_s17 + $0x96c] ss:$16 sps:$4 sm:$0xff]  }
 0x10a   : > { %2873 = vmatprep.subr.bf16.mxu0 %v4234_v18  ;;  %3119 = vmatprep.subr.bf16.mxu1 %v4237_v54  ;;  %v4316_v18 = vld [vmem:[%s4566_s17 + $0x960] ss:$16 sps:$4 sm:$0xff]   ;;  %v4319_v54 = vld [vmem:[%s4566_s17 + $0x968] ss:$16 sps:$4 sm:$0xff]  }
 0x10d   : > { %2874 = vmatpush1.bf16.msra.mxu0 %v4232_v19  ;;  %3120 = vmatpush1.bf16.msra.mxu1 %v4235_v20  ;;  %v4324_v19 = vld [vmem:[%s4566_s17 + $0x984] ss:$16 sps:$4 sm:$0xff]   ;;  %v4327_v20 = vld [vmem:[%s4566_s17 + $0x98c] ss:$16 sps:$4 sm:$0xff]  }
 0x10e   : > { %2875 = vmatprep.subr.bf16.mxu0 %v4240_v21  ;;  %3121 = vmatprep.subr.bf16.mxu1 %v4243_v22  ;;  %v4322_v21 = vld [vmem:[%s4566_s17 + $0x980] ss:$16 sps:$4 sm:$0xff]   ;;  %v4325_v22 = vld [vmem:[%s4566_s17 + $0x988] ss:$16 sps:$4 sm:$0xff]  }
 0x111   : > { %2876 = vmatpush1.bf16.msra.mxu0 %v4238_v23  ;;  %3122 = vmatpush1.bf16.msra.mxu1 %v4241_v24  ;;  %v4330_v23 = vld [vmem:[%s4566_s17 + $0x9a4] ss:$16 sps:$4 sm:$0xff]   ;;  %v4333_v24 = vld [vmem:[%s4566_s17 + $0x9ac] ss:$16 sps:$4 sm:$0xff]  }
 0x112   : > { %2877 = vmatprep.subr.bf16.mxu0 %v4246_v25  ;;  %3123 = vmatprep.subr.bf16.mxu1 %v4249_v26  ;;  %v4328_v25 = vld [vmem:[%s4566_s17 + $0x9a0] ss:$16 sps:$4 sm:$0xff]   ;;  %v4331_v26 = vld [vmem:[%s4566_s17 + $0x9a8] ss:$16 sps:$4 sm:$0xff]  }
 0x115   : > { %2878 = vmatpush1.bf16.msra.mxu0 %v4244_v29  ;;  %3124 = vmatpush1.bf16.msra.mxu1 %v4247_v30  ;;  %v4336_v29 = vld [vmem:[%s4566_s17 + $0x9c4] ss:$16 sps:$4 sm:$0xff]   ;;  %v4339_v30 = vld [vmem:[%s4566_s17 + $0x9cc] ss:$16 sps:$4 sm:$0xff]  }
 0x116   : > { %2888 = vmatprep.subr.bf16.mxu0 %v4252_v31  ;;  %3134 = vmatprep.subr.bf16.mxu1 %v4255_v32  ;;  %v4334_v31 = vld [vmem:[%s4566_s17 + $0x9c0] ss:$16 sps:$4 sm:$0xff]   ;;  %v4337_v32 = vld [vmem:[%s4566_s17 + $0x9c8] ss:$16 sps:$4 sm:$0xff]  }
 0x118   : > { %2880 = vmatmul.mubr.bf16.vlgmr.msra.gmra.mrb[0].mxu0 %v765_v33  ;;  %3126 = vmatmul.mubr.bf16.vlgmr.msra.gmra.mrb[0].mxu1 %v765_v33  ;;  %v4345_v33 = vld [vmem:[%s4566_s17 + $0x9ec] ss:$16 sps:$4 sm:$0xff]  }
 0x119   : > { %2889 = vmatpush1.bf16.msra.mxu0 %v4250_v34  ;;  %3135 = vmatpush1.bf16.msra.mxu1 %v4253_v35  ;;  %v4340_v34 = vld [vmem:[%s4566_s17 + $0x9e0] ss:$16 sps:$4 sm:$0xff]   ;;  %v4343_v35 = vld [vmem:[%s4566_s17 + $0x9e8] ss:$16 sps:$4 sm:$0xff]  }
 0x11a   : > { %2890 = vmatprep.subr.bf16.mxu0 %v4258_v27  ;;  %3136 = vmatprep.subr.bf16.mxu1 %v4261_v36  ;;  %v4348_v27 = vld [vmem:[%s4566_s17 + $0xa04] ss:$16 sps:$4 sm:$0xff]   ;;  %v4351_v36 = vld [vmem:[%s4566_s17 + $0xa0c] ss:$16 sps:$4 sm:$0xff]  }
 0x11b   : > { %2920 = vmatprep.mubr.bf16.mxu0 %v4875_v37  ;;  %3166 = vmatprep.mubr.bf16.mxu1 %v4875_v37 }
 0x11d   : > { %2891 = vmatpush1.bf16.msra.mxu0 %v4256_v15  ;;  %3137 = vmatpush1.bf16.msra.mxu1 %v4259_v38  ;;  %v4941_v15 = vrot.slane %v4860_v28, %v4614_v51  ;;  %v4346_v38 = vld [vmem:[%s4566_s17 + $0xa00] ss:$16 sps:$4 sm:$0xff]  }
 0x11e   : > { %2892 = vmatprep.subr.bf16.mxu0 %v4264_v39  ;;  %3138 = vmatprep.subr.bf16.mxu1 %v4267_v41  ;;  %v4349_v39 = vld [vmem:[%s4566_s17 + $0xa08] ss:$16 sps:$4 sm:$0xff]   ;;  %v4354_v41 = vld [vmem:[%s4566_s17 + $0xa24] ss:$16 sps:$4 sm:$0xff]   ;;  %v4352_v28 = vld [vmem:[%s4566_s17 + $0xa20] ss:$16 sps:$4 sm:$0xff]  }
 0x121   : > { %2893 = vmatpush1.bf16.msra.mxu0 %v4262_v42  ;;  %3139 = vmatpush1.bf16.msra.mxu1 %v4265_v43  ;;  %v4357_v42 = vld [vmem:[%s4566_s17 + $0xa2c] ss:$16 sps:$4 sm:$0xff]   ;;  %v791_v43 = vcombine.high %v4875_v37, %v4875_v37  ;;  %v4358_v37 = vld [vmem:[%s4566_s17 + $0xa40] ss:$16 sps:$4 sm:$0xff]  }
 0x122   : > { %2894 = vmatprep.subr.bf16.mxu0 %v4270_v44  ;;  %3140 = vmatprep.subr.bf16.mxu1 %v4273_v45  ;;  %v4355_v44 = vld [vmem:[%s4566_s17 + $0xa28] ss:$16 sps:$4 sm:$0xff]   ;;  %v4360_v45 = vld [vmem:[%s4566_s17 + $0xa44] ss:$16 sps:$4 sm:$0xff]  }
 0x125   : > { %2895 = vmatpush1.bf16.msra.mxu0 %v4268_v46  ;;  %3141 = vmatpush1.bf16.msra.mxu1 %v4271_v47  ;;  %v4363_v46 = vld [vmem:[%s4566_s17 + $0xa4c] ss:$16 sps:$4 sm:$0xff]   ;;  %v4361_v47 = vld [vmem:[%s4566_s17 + $0xa48] ss:$16 sps:$4 sm:$0xff]  }
 0x126   : > { %2896 = vmatprep.subr.bf16.mxu0 %v4276_v48  ;;  %3142 = vmatprep.subr.bf16.mxu1 %v4279_v49  ;;  %v4366_v48 = vld [vmem:[%s4566_s17 + $0xa64] ss:$16 sps:$4 sm:$0xff]   ;;  %v4369_v49 = vld [vmem:[%s4566_s17 + $0xa6c] ss:$16 sps:$4 sm:$0xff]  }
 0x129   : > { %2897 = vmatpush1.bf16.msra.mxu0 %v4274_v50  ;;  %3143 = vmatpush1.bf16.msra.mxu1 %v4277_v52  ;;  %v4364_v50 = vld [vmem:[%s4566_s17 + $0xa60] ss:$16 sps:$4 sm:$0xff]   ;;  %v4367_v52 = vld [vmem:[%s4566_s17 + $0xa68] ss:$16 sps:$4 sm:$0xff]  }
 0x12a   : > { %2898 = vmatprep.subr.bf16.mxu0 %v4282_v53  ;;  %3144 = vmatprep.subr.bf16.mxu1 %v4285_v55  ;;  %v4372_v53 = vld [vmem:[%s4566_s17 + $0xa84] ss:$16 sps:$4 sm:$0xff]   ;;  %v4375_v55 = vld [vmem:[%s4566_s17 + $0xa8c] ss:$16 sps:$4 sm:$0xff]  }
 0x12d   : > { %2899 = vmatpush1.bf16.msra.mxu0 %v4280_v56  ;;  %3145 = vmatpush1.bf16.msra.mxu1 %v4283_v57  ;;  %v4370_v56 = vld [vmem:[%s4566_s17 + $0xa80] ss:$16 sps:$4 sm:$0xff]   ;;  %v4373_v57 = vld [vmem:[%s4566_s17 + $0xa88] ss:$16 sps:$4 sm:$0xff]  }
 0x12e   : > { %2900 = vmatprep.subr.bf16.mxu0 %v4288_v58  ;;  %3146 = vmatprep.subr.bf16.mxu1 %v4291_v59  ;;  %v4378_v58 = vld [vmem:[%s4566_s17 + $0xaa4] ss:$16 sps:$4 sm:$0xff]   ;;  %v4381_v59 = vld [vmem:[%s4566_s17 + $0xaac] ss:$16 sps:$4 sm:$0xff]  }
 0x131   : > { %2901 = vmatpush1.bf16.msra.mxu0 %v4286_v60  ;;  %3147 = vmatpush1.bf16.msra.mxu1 %v4289_v61  ;;  %v4376_v60 = vld [vmem:[%s4566_s17 + $0xaa0] ss:$16 sps:$4 sm:$0xff]   ;;  %v4379_v61 = vld [vmem:[%s4566_s17 + $0xaa8] ss:$16 sps:$4 sm:$0xff]  }
 0x132   : > { %2902 = vmatprep.subr.bf16.mxu0 %v4294_v62  ;;  %3148 = vmatprep.subr.bf16.mxu1 %v4297_v63  ;;  %v4384_v62 = vld [vmem:[%s4566_s17 + $0xac4] ss:$16 sps:$4 sm:$0xff]   ;;  %v4387_v63 = vld [vmem:[%s4566_s17 + $0xacc] ss:$16 sps:$4 sm:$0xff]  }
 0x135   : > { %2903 = vmatpush1.bf16.msra.mxu0 %v4292_v0  ;;  %3149 = vmatpush1.bf16.msra.mxu1 %v4295_v1  ;;  %v4382_v0 = vld [vmem:[%s4566_s17 + $0xac0] ss:$16 sps:$4 sm:$0xff]   ;;  %v4385_v1 = vld [vmem:[%s4566_s17 + $0xac8] ss:$16 sps:$4 sm:$0xff]  }
 0x136   : > { %2904 = vmatprep.subr.bf16.mxu0 %v4300_v2  ;;  %3150 = vmatprep.subr.bf16.mxu1 %v4303_v3  ;;  %v4390_v2 = vld [vmem:[%s4566_s17 + $0xae4] ss:$16 sps:$4 sm:$0xff]   ;;  %v4393_v3 = vld [vmem:[%s4566_s17 + $0xaec] ss:$16 sps:$4 sm:$0xff]  }
 0x139   : > { %2905 = vmatpush1.bf16.msra.mxu0 %v4298_v4  ;;  %3151 = vmatpush1.bf16.msra.mxu1 %v4301_v5  ;;  %v4388_v4 = vld [vmem:[%s4566_s17 + $0xae0] ss:$16 sps:$4 sm:$0xff]   ;;  %v4391_v5 = vld [vmem:[%s4566_s17 + $0xae8] ss:$16 sps:$4 sm:$0xff]  }
 0x13a   : > { %2906 = vmatprep.subr.bf16.mxu0 %v4306_v6  ;;  %3152 = vmatprep.subr.bf16.mxu1 %v4309_v7  ;;  %v4396_v6 = vld [vmem:[%s4566_s17 + $0xb04] ss:$16 sps:$4 sm:$0xff]   ;;  %v4399_v7 = vld [vmem:[%s4566_s17 + $0xb0c] ss:$16 sps:$4 sm:$0xff]  }
 0x13d   : > { %2907 = vmatpush1.bf16.msra.mxu0 %v4304_v8  ;;  %3153 = vmatpush1.bf16.msra.mxu1 %v4307_v9  ;;  %v4394_v8 = vld [vmem:[%s4566_s17 + $0xb00] ss:$16 sps:$4 sm:$0xff]   ;;  %v4397_v9 = vld [vmem:[%s4566_s17 + $0xb08] ss:$16 sps:$4 sm:$0xff]  }
 0x13e   : > { %2908 = vmatprep.subr.bf16.mxu0 %v4312_v10  ;;  %3154 = vmatprep.subr.bf16.mxu1 %v4315_v11  ;;  %v4402_v10 = vld [vmem:[%s4566_s17 + $0xb24] ss:$16 sps:$4 sm:$0xff]   ;;  %v4405_v11 = vld [vmem:[%s4566_s17 + $0xb2c] ss:$16 sps:$4 sm:$0xff]  }
 0x141   : > { %2909 = vmatpush1.bf16.msra.mxu0 %v4310_v12  ;;  %3155 = vmatpush1.bf16.msra.mxu1 %v4313_v13  ;;  %v4400_v12 = vld [vmem:[%s4566_s17 + $0xb20] ss:$16 sps:$4 sm:$0xff]   ;;  %v4403_v13 = vld [vmem:[%s4566_s17 + $0xb28] ss:$16 sps:$4 sm:$0xff]  }
 0x142   : > { %2910 = vmatprep.subr.bf16.mxu0 %v4318_v14  ;;  %3156 = vmatprep.subr.bf16.mxu1 %v4321_v16  ;;  %v4408_v14 = vld [vmem:[%s4566_s17 + $0xb44] ss:$16 sps:$4 sm:$0xff]   ;;  %v4411_v16 = vld [vmem:[%s4566_s17 + $0xb4c] ss:$16 sps:$4 sm:$0xff]  }
 0x145   : > { %2911 = vmatpush1.bf16.msra.mxu0 %v4316_v18  ;;  %3157 = vmatpush1.bf16.msra.mxu1 %v4319_v54  ;;  %v4406_v18 = vld [vmem:[%s4566_s17 + $0xb40] ss:$16 sps:$4 sm:$0xff]   ;;  %v4409_v54 = vld [vmem:[%s4566_s17 + $0xb48] ss:$16 sps:$4 sm:$0xff]  }
 0x146   : > { %2912 = vmatprep.subr.bf16.mxu0 %v4324_v19  ;;  %3158 = vmatprep.subr.bf16.mxu1 %v4327_v20  ;;  %v4414_v19 = vld [vmem:[%s4566_s17 + $0xb64] ss:$16 sps:$4 sm:$0xff]   ;;  %v4417_v20 = vld [vmem:[%s4566_s17 + $0xb6c] ss:$16 sps:$4 sm:$0xff]  }
 0x149   : > { %2913 = vmatpush1.bf16.msra.mxu0 %v4322_v21  ;;  %3159 = vmatpush1.bf16.msra.mxu1 %v4325_v22  ;;  %v4412_v21 = vld [vmem:[%s4566_s17 + $0xb60] ss:$16 sps:$4 sm:$0xff]   ;;  %v4415_v22 = vld [vmem:[%s4566_s17 + $0xb68] ss:$16 sps:$4 sm:$0xff]  }
 0x14a   : > { %2914 = vmatprep.subr.bf16.mxu0 %v4330_v23  ;;  %3160 = vmatprep.subr.bf16.mxu1 %v4333_v24  ;;  %v4420_v23 = vld [vmem:[%s4566_s17 + $0xb84] ss:$16 sps:$4 sm:$0xff]   ;;  %v4423_v24 = vld [vmem:[%s4566_s17 + $0xb8c] ss:$16 sps:$4 sm:$0xff]  }
 0x14d   : > { %2915 = vmatpush1.bf16.msra.mxu0 %v4328_v25  ;;  %3161 = vmatpush1.bf16.msra.mxu1 %v4331_v26  ;;  %v4418_v25 = vld [vmem:[%s4566_s17 + $0xb80] ss:$16 sps:$4 sm:$0xff]   ;;  %v4421_v26 = vld [vmem:[%s4566_s17 + $0xb88] ss:$16 sps:$4 sm:$0xff]  }
 0x14e   : > { %2916 = vmatprep.subr.bf16.mxu0 %v4336_v29  ;;  %3162 = vmatprep.subr.bf16.mxu1 %v4339_v30  ;;  %v4426_v29 = vld [vmem:[%s4566_s17 + $0xba4] ss:$16 sps:$4 sm:$0xff]   ;;  %v4429_v30 = vld [vmem:[%s4566_s17 + $0xbac] ss:$16 sps:$4 sm:$0xff]  }
 0x151   : > { %2917 = vmatpush1.bf16.msra.mxu0 %v4334_v31  ;;  %3163 = vmatpush1.bf16.msra.mxu1 %v4337_v32  ;;  %v4424_v31 = vld [vmem:[%s4566_s17 + $0xba0] ss:$16 sps:$4 sm:$0xff]   ;;  %v4427_v32 = vld [vmem:[%s4566_s17 + $0xba8] ss:$16 sps:$4 sm:$0xff]  }
 0x152   : > { %2918 = vmatprep.subr.bf16.mxu0 %v4342_v17  ;;  %3164 = vmatprep.subr.bf16.mxu1 %v4345_v33  ;;  %v4432_v17 = vld [vmem:[%s4566_s17 + $0xbc4] ss:$16 sps:$4 sm:$0xff]   ;;  %v4435_v33 = vld [vmem:[%s4566_s17 + $0xbcc] ss:$16 sps:$4 sm:$0xff]  }
 0x155   : > { %2919 = vmatpush1.bf16.msra.mxu0 %v4340_v34  ;;  %3165 = vmatpush1.bf16.msra.mxu1 %v4343_v35  ;;  %v4430_v34 = vld [vmem:[%s4566_s17 + $0xbc0] ss:$16 sps:$4 sm:$0xff]   ;;  %v4433_v35 = vld [vmem:[%s4566_s17 + $0xbc8] ss:$16 sps:$4 sm:$0xff]  }
 0x156   : > { %2929 = vmatprep.subr.bf16.mxu0 %v4348_v27  ;;  %3175 = vmatprep.subr.bf16.mxu1 %v4351_v36  ;;  %v4438_v27 = vld [vmem:[%s4566_s17 + $0xbe4] ss:$16 sps:$4 sm:$0xff]   ;;  %v4441_v36 = vld [vmem:[%s4566_s17 + $0xbec] ss:$16 sps:$4 sm:$0xff]  }
 0x158   : > { %2921 = vmatmul.mubr.bf16.vlgmr.msra.gmra.mrb[0].mxu0 %v4941_v15  ;;  %3167 = vmatmul.mubr.bf16.vlgmr.msra.gmra.mrb[0].mxu1 %v4941_v15 }
 0x159   : > { %2930 = vmatpush1.bf16.msra.mxu0 %v4346_v38  ;;  %3176 = vmatpush1.bf16.msra.mxu1 %v4349_v39  ;;  %v4436_v38 = vld [vmem:[%s4566_s17 + $0xbe0] ss:$16 sps:$4 sm:$0xff]   ;;  %v4439_v39 = vld [vmem:[%s4566_s17 + $0xbe8] ss:$16 sps:$4 sm:$0xff]  }
 0x15a   : > { %2931 = vmatprep.subr.bf16.mxu0 %v4354_v41  ;;  %3177 = vmatprep.subr.bf16.mxu1 %v4357_v42  ;;  %v790_v41 = vcombine.high %v4941_v15, %v4941_v15  ;;  %v716_v15 = vld [vmem:[#allocation2] sm:$0xf] }
 0x15b   : > { %2961 = vmatprep.mubr.bf16.mxu0 %v791_v43  ;;  %3207 = vmatprep.mubr.bf16.mxu1 %v791_v43 }
 0x15d   : > { %2932 = vmatpush1.bf16.msra.mxu0 %v4352_v28  ;;  %3178 = vmatpush1.bf16.msra.mxu1 %v4355_v44 }
 0x15e   : > { %2933 = vmatprep.subr.bf16.mxu0 %v4360_v45  ;;  %3179 = vmatprep.subr.bf16.mxu1 %v4363_v46 }
 0x161   : > { %2934 = vmatpush1.bf16.msra.mxu0 %v4358_v37  ;;  %3180 = vmatpush1.bf16.msra.mxu1 %v4361_v47 }
 0x162   : > { %2935 = vmatprep.subr.bf16.mxu0 %v4366_v48  ;;  %3181 = vmatprep.subr.bf16.mxu1 %v4369_v49 }
 0x165   : > { %2936 = vmatpush1.bf16.msra.mxu0 %v4364_v50  ;;  %3182 = vmatpush1.bf16.msra.mxu1 %v4367_v52 }
 0x166   : > { %2937 = vmatprep.subr.bf16.mxu0 %v4372_v53  ;;  %3183 = vmatprep.subr.bf16.mxu1 %v4375_v55 }
 0x169   : > { %2938 = vmatpush1.bf16.msra.mxu0 %v4370_v56  ;;  %3184 = vmatpush1.bf16.msra.mxu1 %v4373_v57 }
 0x16a   : > { %2939 = vmatprep.subr.bf16.mxu0 %v4378_v58  ;;  %3185 = vmatprep.subr.bf16.mxu1 %v4381_v59  ;;  %v3256_v58 = vld [vmem:[%s5041_s2] sm:$0xf] (!%p3777_p8) }
 0x16b   : > { %v3258_v59 = vld [vmem:[%s5042_s3] sm:$0xf] (!%p3777_p8) }
 0x16d   : > { %2940 = vmatpush1.bf16.msra.mxu0 %v4376_v60  ;;  %3186 = vmatpush1.bf16.msra.mxu1 %v4379_v61 }
 0x16e   : > { %2941 = vmatprep.subr.bf16.mxu0 %v4384_v62  ;;  %3187 = vmatprep.subr.bf16.mxu1 %v4387_v63 }
 0x171   : > { %2942 = vmatpush1.bf16.msra.mxu0 %v4382_v0  ;;  %3188 = vmatpush1.bf16.msra.mxu1 %v4385_v1 }
 0x172   : > { %2943 = vmatprep.subr.bf16.mxu0 %v4390_v2  ;;  %3189 = vmatprep.subr.bf16.mxu1 %v4393_v3 }
 0x175   : > { %2944 = vmatpush1.bf16.msra.mxu0 %v4388_v4  ;;  %3190 = vmatpush1.bf16.msra.mxu1 %v4391_v5 }
 0x176   : > { %2945 = vmatprep.subr.bf16.mxu0 %v4396_v6  ;;  %3191 = vmatprep.subr.bf16.mxu1 %v4399_v7 }
 0x179   : > { %2946 = vmatpush1.bf16.msra.mxu0 %v4394_v8  ;;  %3192 = vmatpush1.bf16.msra.mxu1 %v4397_v9 }
 0x17a   : > { %2947 = vmatprep.subr.bf16.mxu0 %v4402_v10  ;;  %3193 = vmatprep.subr.bf16.mxu1 %v4405_v11 }
 0x17d   : > { %2948 = vmatpush1.bf16.msra.mxu0 %v4400_v12  ;;  %3194 = vmatpush1.bf16.msra.mxu1 %v4403_v13 }
 0x17e   : > { %2949 = vmatprep.subr.bf16.mxu0 %v4408_v14  ;;  %3195 = vmatprep.subr.bf16.mxu1 %v4411_v16 }
 0x181   : > { %2950 = vmatpush1.bf16.msra.mxu0 %v4406_v18  ;;  %3196 = vmatpush1.bf16.msra.mxu1 %v4409_v54 }
 0x182   : > { %2951 = vmatprep.subr.bf16.mxu0 %v4414_v19  ;;  %3197 = vmatprep.subr.bf16.mxu1 %v4417_v20 }
 0x185   : > { %2952 = vmatpush1.bf16.msra.mxu0 %v4412_v21  ;;  %3198 = vmatpush1.bf16.msra.mxu1 %v4415_v22 }
 0x186   : > { %2953 = vmatprep.subr.bf16.mxu0 %v4420_v23  ;;  %3199 = vmatprep.subr.bf16.mxu1 %v4423_v24 }
 0x189   : > { %2954 = vmatpush1.bf16.msra.mxu0 %v4418_v25  ;;  %3200 = vmatpush1.bf16.msra.mxu1 %v4421_v26 }
 0x18a   : > { %2955 = vmatprep.subr.bf16.mxu0 %v4426_v29  ;;  %3201 = vmatprep.subr.bf16.mxu1 %v4429_v30 }
 0x18d   : > { %2956 = vmatpush1.bf16.msra.mxu0 %v4424_v31  ;;  %3202 = vmatpush1.bf16.msra.mxu1 %v4427_v32 }
 0x18e   : > { %2957 = vmatprep.subr.bf16.mxu0 %v4432_v17  ;;  %3203 = vmatprep.subr.bf16.mxu1 %v4435_v33 }
 0x191   : > { %2958 = vmatpush1.bf16.msra.mxu0 %v4430_v34  ;;  %3204 = vmatpush1.bf16.msra.mxu1 %v4433_v35 }
 0x192   : > { %2959 = vmatprep.subr.bf16.mxu0 %v4438_v27  ;;  %3205 = vmatprep.subr.bf16.mxu1 %v4441_v36 }
 0x195   : > { %2960 = vmatpush1.bf16.msra.mxu0 %v4436_v38  ;;  %3206 = vmatpush1.bf16.msra.mxu1 %v4439_v39 }
 0x198   : > { %2962 = vmatmul.mubr.bf16.vlgmr.msra.gmra.mrb[0].mxu0 %v790_v41  ;;  %3208 = vmatmul.mubr.bf16.vlgmr.msra.gmra.mrb[0].mxu1 %v790_v41 }
 0x26b   : > { %v2963_v42 = vpop.f32.mrb[0].mxu0  ;;  %v3209_v43 = vpop.f32.mrb[0].mxu1 }
 0x26c   : > { %v2965_v28 = vpop.f32.mrb[1].mxu0  ;;  %v3211_v44 = vpop.f32.mrb[1].mxu1 }
 0x26d   : > { %v3220_v45 = vcombine.low %v2963_v42, %v2965_v28  ;;  %v3221_v46 = vcombine.low %v3209_v43, %v3211_v44  ;;  %v2967_v37 = vpop.f32.mrb[2].mxu0  ;;  %v3213_v47 = vpop.f32.mrb[2].mxu1 }
 0x26e   : > { %v2968_v48 = vpop.f32.mrb[3].mxu0  ;;  %v3214_v49 = vpop.f32.mrb[3].mxu1 }
 0x26f   : > { %v3228_v50 = vrot.slane %v3220_v45, %v4614_v51  ;;  %v3235_v52 = vrot.slane %v3221_v46, %v4614_v51 }
 0x271   : > { %v3236_v53 = vcombine.low %v3228_v50, %v3235_v52  ;;  %3254 = sbr.rel (%p3777_p8) target bundleno = 648 (0x288), region = 48 }
 0x273   : > { %v3243_v55 = vrot.slane %v3236_v53, %v4614_v51  ;;  %v3260_v51 = vld [vmem:[%s4551_s6] sm:$0xf] (!%p3777_p8) }
 0x275   : > { %v3245_v56 = vadd.f32 %v3243_v55, %v716_v15 }
 0x277   : > { %3250 = vst.msk [vmem:[#allocation2] sm:$0xf] %vm3248_vm1, %v3245_v56 }
 0x27e   : > { %v3255_v57 = vld [vmem:[#allocation2] sm:$0xf] }
 0x27f   : > { %v3257_v60 = vmul.f32 %v3256_v58, %v3255_v57 }
 0x281   : > { %v3259_v61 = vadd.f32 %v3258_v59, %v3257_v60 }
 0x283   : > { %v3261_v40 = vadd.f32 %v3260_v51, %v3259_v61 }
 0x285   : > { %v3262_v62 = vmax.f32 %v3261_v40, 0.0 }
 0x287   : > { %3263 = vst.msk [vmem:[%s4556_s10] sm:$0xf] %vm3248_vm1, %v3262_v62 }
 0x288 PF: > { %s15_s22 = sadd.s32 1, %s4480_s22   ;;  %s5045_s18 = smov %s4472_s20 }
 0x289   : > { %p12_p9 = scmp.ge.s32.totalorder %s15_s22, 8   ;;  %s5046_s19 = smov %s4476_s21 }
 0x28a   : > { %s5047_s20 = smov %s5050_s23  ;;  %s5048_s21 = smov %s5054_s24 }
 0x28b   :  { %14 = sbr.rel (!%p12_p9) target bundleno = 3 (0x3), region = 84 }

// kernel: resnet_simclr_forward.43
= control target key start
LH: loop header
LB: loop body
LE: loop exit
PB: predicated region body
PF: predicated region fallthrough
CT: control target
= control target key end

     0   :  { %s4430_s15 = smov 0   ;;  %s4432_s16 = smov 0   ;;  %s4949_s0 = inlined_call_operand.vmem [shape: bf16[2,3,1,1536], index: 0, kind: input, shape index: {}]   ;;  %s4950_s1 = inlined_call_operand.vmem [shape: bf16[3,1536,512], index: 1, kind: input, shape index: {}]   ;;  %s4951_s2 = inlined_call_operand.vmem [shape: f32[1,512], index: 2, kind: input, shape index: {}]   ;;  %s4952_s3 = inlined_call_operand.vmem [shape: f32[1,512], index: 3, kind: input, shape index: {}]   ;;  %s4953_s4 = inlined_call_operand.vmem [shape: f32[2,1,1,512], index: 4, kind: output, shape index: {}]  }
   0x1   :  { %s4434_s17 = smov 0   ;;  %s4436_s18 = smov 0  }
   0x2   :  { %s4438_s19 = smov 0  }
   0x3 LB: > { %s26_s20 = sadd.s32 1, %s4393_s17  ;;  %s33_s21 = sadd.s32 1, %s4397_s18  ;;  %s4401_s19 = sphi %s4438_s19, %s14_s19   ;;  %s4397_s18 = sphi %s4436_s18, %s4957_s18   ;;  %s4393_s17 = sphi %s4434_s17, %s4956_s17   ;;  %s4389_s16 = sphi %s4432_s16, %s4955_s16   ;;  %s4385_s15 = sphi %s4430_s15, %s4954_s15  }
   0x4   : > { %p27_p0 = scmp.ge.s32.totalorder %s26_s20, 3  ;;  %p3309_p1 = scmp.ge.s32.totalorder %s4401_s19, 1 }
   0x5   : > { %p202_p2 = scmp.lt.s32.totalorder %s4401_s19, 7 }
   0x6   : > { %s4959_s20 = smov (%p27_p0, %s26_s20), 0  ;;  %s4961_s21 = smov (!%p27_p0, %s33_s21), %s4397_s18 }
   0x7   : > { %p203_p3 = pnand %p3309_p1, %p202_p2  ;;  %p35_p4 = scmp.ge.s32.totalorder %s4961_s21, 2 }
   0x8   : > { %p241_p5 = scmp.lt.s32.totalorder (!%p203_p3), %s4389_s16, 1  ;;  %p243_p6 = scmp.lt.s32.totalorder (!%p203_p3), %s4385_s15, 2 }
   0x9   : > { %s4963_s21 = smov (%p35_p4, %s4961_s21), 0  ;;  %206 = sbr.rel (%p203_p3) target bundleno = 646 (0x286), region = 36 }
   0xa   : > { %p3312_p7 = scmp.ne.s32.totalorder (!%p203_p3), %s4385_s15, 0 }
  0x10   : > { %s4965_s16 = smov (!%p241_p5, %s4389_s16), 1  ;;  %266 = sbr.rel (%p3312_p7) target bundleno = 23 (0x17), region = 40 }
  0x11   : > { %s244_s22 = scalar_select %p243_p6, %s4385_s15, 2 }
  0x12   : > { %s3742_s23 = smul.u32 36, %s4965_s16  ;;  %s3311_s24 = sshll.u32 %s4965_s16, 2  ;;  %v267_v0 = vlaneseq (!%p3312_p7)  ;;  %v4403_v1 = vmov (!%p3312_p7), 0.0  }
  0x13   : > { %s3741_s25 = smul.u32 12, %s244_s22  ;;  %s4467_s28 = scalar_lea.vmem %s4953_s4, %s3311_s24 }
  0x14   : > { %s3743_s29 = smul.u32 3072, %s244_s22  ;;  %vm269_vm0 = vcmp.lt.s32.totalorder (!%p3312_p7), %v267_v0, 512 }
  0x15   : > { %s247_s30 = sadd.s32 %s3742_s23, %s3741_s25  ;;  %271 = vst.msk [vmem:[#allocation2] sm:$0xf] (!%p3312_p7), %vm269_vm0, %v4403_v1 }
  0x16   : > { %s4472_s7 = scalar_lea.vmem %s4949_s0, %s247_s30  ;;  %s4477_s10 = scalar_lea.vmem %s4950_s1, %s3743_s29 }
  0x17 PF: > { %v3786_v2 = vld [vmem:[%s4477_s10 + $0x4] ss:$16 sps:$4 sm:$0xff]   ;;  %v3788_v3 = vld [vmem:[%s4477_s10 + $0xc] ss:$16 sps:$4 sm:$0xff]   ;;  %v3790_v4 = vld [vmem:[%s4477_s10] ss:$16 sps:$4 sm:$0xff]   ;;  %v665_v40 = vlaneseq }
  0x18   : > { %2666 = vmatprep.subr.bf16.mxu0 %v3786_v2  ;;  %v3791_v5 = vld [vmem:[%s4477_s10 + $0x8] ss:$16 sps:$4 sm:$0xff]   ;;  %2912 = vmatprep.subr.bf16.mxu1 %v3788_v3  ;;  %v3792_v6 = vld [vmem:[%s4477_s10 + $0x24] ss:$16 sps:$4 sm:$0xff]   ;;  %v3794_v7 = vld [vmem:[%s4477_s10 + $0x2c] ss:$16 sps:$4 sm:$0xff]  }
  0x19   : > { %2667 = vmatpush1.bf16.msra.mxu0 %v3790_v4  ;;  %2913 = vmatpush1.bf16.msra.mxu1 %v3791_v5  ;;  %v3796_v8 = vld [vmem:[%s4477_s10 + $0x20] ss:$16 sps:$4 sm:$0xff]   ;;  %v3797_v9 = vld [vmem:[%s4477_s10 + $0x28] ss:$16 sps:$4 sm:$0xff]   ;;  %v3798_v10 = vld [vmem:[%s4477_s10 + $0x44] ss:$16 sps:$4 sm:$0xff]  }
  0x1a   : > { %2668 = vmatprep.subr.bf16.mxu0 %v3792_v6  ;;  %2914 = vmatprep.subr.bf16.mxu1 %v3794_v7  ;;  %v3800_v11 = vld [vmem:[%s4477_s10 + $0x4c] ss:$16 sps:$4 sm:$0xff]   ;;  %v3802_v12 = vld [vmem:[%s4477_s10 + $0x40] ss:$16 sps:$4 sm:$0xff]   ;;  %v3803_v13 = vld [vmem:[%s4477_s10 + $0x48] ss:$16 sps:$4 sm:$0xff]  }
  0x1b   : > { %v3804_v14 = vld [vmem:[%s4477_s10 + $0x64] ss:$16 sps:$4 sm:$0xff]   ;;  %v3806_v15 = vld [vmem:[%s4477_s10 + $0x6c] ss:$16 sps:$4 sm:$0xff]   ;;  %v3808_v16 = vld [vmem:[%s4477_s10 + $0x60] ss:$16 sps:$4 sm:$0xff]  }
  0x1c   : > { %v3809_v17 = vld [vmem:[%s4477_s10 + $0x68] ss:$16 sps:$4 sm:$0xff]   ;;  %v3810_v18 = vld [vmem:[%s4477_s10 + $0x84] ss:$16 sps:$4 sm:$0xff]   ;;  %v3812_v19 = vld [vmem:[%s4477_s10 + $0x8c] ss:$16 sps:$4 sm:$0xff]  }
  0x1d   : > { %2669 = vmatpush1.bf16.msra.mxu0 %v3796_v8  ;;  %2915 = vmatpush1.bf16.msra.mxu1 %v3797_v9  ;;  %v3814_v20 = vld [vmem:[%s4477_s10 + $0x80] ss:$16 sps:$4 sm:$0xff]   ;;  %v3815_v21 = vld [vmem:[%s4477_s10 + $0x88] ss:$16 sps:$4 sm:$0xff]   ;;  %v3816_v22 = vld [vmem:[%s4477_s10 + $0xa4] ss:$16 sps:$4 sm:$0xff]  }
  0x1e   : > { %2670 = vmatprep.subr.bf16.mxu0 %v3798_v10  ;;  %2916 = vmatprep.subr.bf16.mxu1 %v3800_v11  ;;  %v3818_v23 = vld [vmem:[%s4477_s10 + $0xac] ss:$16 sps:$4 sm:$0xff]   ;;  %v3820_v24 = vld [vmem:[%s4477_s10 + $0xa0] ss:$16 sps:$4 sm:$0xff]   ;;  %v3821_v25 = vld [vmem:[%s4477_s10 + $0xa8] ss:$16 sps:$4 sm:$0xff]  }
  0x1f   : > { %v3822_v26 = vld [vmem:[%s4477_s10 + $0xc4] ss:$16 sps:$4 sm:$0xff]   ;;  %v3824_v27 = vld [vmem:[%s4477_s10 + $0xcc] ss:$16 sps:$4 sm:$0xff]   ;;  %v3826_v28 = vld [vmem:[%s4477_s10 + $0xc0] ss:$16 sps:$4 sm:$0xff]  }
  0x20   : > { %v3827_v29 = vld [vmem:[%s4477_s10 + $0xc8] ss:$16 sps:$4 sm:$0xff]   ;;  %v3828_v30 = vld [vmem:[%s4477_s10 + $0xe4] ss:$16 sps:$4 sm:$0xff]   ;;  %v3830_v31 = vld [vmem:[%s4477_s10 + $0xec] ss:$16 sps:$4 sm:$0xff]  }
  0x21   : > { %2671 = vmatpush1.bf16.msra.mxu0 %v3802_v12  ;;  %2917 = vmatpush1.bf16.msra.mxu1 %v3803_v13  ;;  %v3832_v32 = vld [vmem:[%s4477_s10 + $0xe0] ss:$16 sps:$4 sm:$0xff]   ;;  %v3833_v33 = vld [vmem:[%s4477_s10 + $0xe8] ss:$16 sps:$4 sm:$0xff]   ;;  %v3834_v34 = vld [vmem:[%s4477_s10 + $0x104] ss:$16 sps:$4 sm:$0xff]  }
  0x22   : > { %2672 = vmatprep.subr.bf16.mxu0 %v3804_v14  ;;  %2918 = vmatprep.subr.bf16.mxu1 %v3806_v15  ;;  %v3836_v35 = vld [vmem:[%s4477_s10 + $0x10c] ss:$16 sps:$4 sm:$0xff]   ;;  %v3838_v36 = vld [vmem:[%s4477_s10 + $0x100] ss:$16 sps:$4 sm:$0xff]   ;;  %v3839_v37 = vld [vmem:[%s4477_s10 + $0x108] ss:$16 sps:$4 sm:$0xff]  }
  0x23   : > { %v4404_v38 = vmov 1966171168   ;;  %v3840_v41 = vld [vmem:[%s4477_s10 + $0x124] ss:$16 sps:$4 sm:$0xff]   ;;  %v3842_v42 = vld [vmem:[%s4477_s10 + $0x12c] ss:$16 sps:$4 sm:$0xff]  }
  0x24   : > { %v663_v39 = vunpack.c.l.s4 %v4404_v38  ;;  %v3844_v43 = vld [vmem:[%s4477_s10 + $0x120] ss:$16 sps:$4 sm:$0xff]   ;;  %v666_v45 = vshrl.u32 %v665_v40, 7  ;;  %v3845_v46 = vld [vmem:[%s4477_s10 + $0x128] ss:$16 sps:$4 sm:$0xff]   ;;  %vm3190_vm1 = vcmp.lt.s32.totalorder %v665_v40, 512 }
  0x25   : > { %2673 = vmatpush1.bf16.msra.mxu0 %v3808_v16  ;;  %2919 = vmatpush1.bf16.msra.mxu1 %v3809_v17  ;;  %v3846_v47 = vld [vmem:[%s4477_s10 + $0x144] ss:$16 sps:$4 sm:$0xff]   ;;  %v3848_v48 = vld [vmem:[%s4477_s10 + $0x14c] ss:$16 sps:$4 sm:$0xff]   ;;  %v3850_v49 = vld [vmem:[%s4477_s10 + $0x140] ss:$16 sps:$4 sm:$0xff]  }
  0x26   : > { %2674 = vmatprep.subr.bf16.mxu0 %v3810_v18  ;;  %2920 = vmatprep.subr.bf16.mxu1 %v3812_v19  ;;  %v664_v44 = vunpack.c.0.s8 %v663_v39  ;;  %v3851_v50 = vld [vmem:[%s4477_s10 + $0x148] ss:$16 sps:$4 sm:$0xff]   ;;  %v3852_v52 = vld [vmem:[%s4477_s10 + $0x164] ss:$16 sps:$4 sm:$0xff]   ;;  %v3854_v53 = vld [vmem:[%s4477_s10 + $0x16c] ss:$16 sps:$4 sm:$0xff]  }
  0x27   : > { %v4530_v54 = vld [vmem:[%s4472_s7] sm:$0xff]  ;;  %v3857_v57 = vld [vmem:[%s4477_s10 + $0x168] ss:$16 sps:$4 sm:$0xff]   ;;  %v3860_v59 = vld [vmem:[%s4477_s10 + $0x18c] ss:$16 sps:$4 sm:$0xff]   ;;  %p3698_p8 = scmp.ne.s32.totalorder %s4385_s15, 2 }
  0x28   : > { %v4525_v51 = vsub.s32 %v664_v44, %v666_v45  ;;  %v3856_v55 = vld [vmem:[%s4477_s10 + $0x160] ss:$16 sps:$4 sm:$0xff]   ;;  %v3858_v58 = vld [vmem:[%s4477_s10 + $0x184] ss:$16 sps:$4 sm:$0xff]   ;;  %v3863_v63 = vld [vmem:[%s4477_s10 + $0x188] ss:$16 sps:$4 sm:$0xff]  }
  0x29   : > { %2675 = vmatpush1.bf16.msra.mxu0 %v3814_v20  ;;  %2921 = vmatpush1.bf16.msra.mxu1 %v3815_v21  ;;  %v3862_v61 = vld [vmem:[%s4477_s10 + $0x180] ss:$16 sps:$4 sm:$0xff]   ;;  %v3864_v0 = vld [vmem:[%s4477_s10 + $0x1a4] ss:$16 sps:$4 sm:$0xff]   ;;  %v3866_v1 = vld [vmem:[%s4477_s10 + $0x1ac] ss:$16 sps:$4 sm:$0xff]  }
  0x2a   : > { %2676 = vmatprep.subr.bf16.mxu0 %v3816_v22  ;;  %2922 = vmatprep.subr.bf16.mxu1 %v3818_v23  ;;  %v668_v56 = vrot.slane %v4530_v54, %v4525_v51  ;;  %v3868_v2 = vld [vmem:[%s4477_s10 + $0x1a0] ss:$16 sps:$4 sm:$0xff]   ;;  %v3869_v3 = vld [vmem:[%s4477_s10 + $0x1a8] ss:$16 sps:$4 sm:$0xff]   ;;  %v3870_v4 = vld [vmem:[%s4477_s10 + $0x1c4] ss:$16 sps:$4 sm:$0xff]  }
  0x2b   : > { %v3872_v5 = vld [vmem:[%s4477_s10 + $0x1cc] ss:$16 sps:$4 sm:$0xff]   ;;  %v3874_v6 = vld [vmem:[%s4477_s10 + $0x1c0] ss:$16 sps:$4 sm:$0xff]   ;;  %v3875_v7 = vld [vmem:[%s4477_s10 + $0x1c8] ss:$16 sps:$4 sm:$0xff]  }
  0x2c   : > { %v676_v60 = vcombine.high %v668_v56, %v668_v56  ;;  %v3876_v8 = vld [vmem:[%s4477_s10 + $0x1e4] ss:$16 sps:$4 sm:$0xff]   ;;  %v3878_v9 = vld [vmem:[%s4477_s10 + $0x1ec] ss:$16 sps:$4 sm:$0xff]   ;;  %v3880_v10 = vld [vmem:[%s4477_s10 + $0x1e0] ss:$16 sps:$4 sm:$0xff]   ;;  %v4557_v15 = vrot.slane %v668_v56, %v4525_v51 }
  0x2d   : > { %2677 = vmatpush1.bf16.msra.mxu0 %v3820_v24  ;;  %2923 = vmatpush1.bf16.msra.mxu1 %v3821_v25  ;;  %v3881_v11 = vld [vmem:[%s4477_s10 + $0x1e8] ss:$16 sps:$4 sm:$0xff]   ;;  %v3884_v12 = vld [vmem:[%s4477_s10 + $0x204] ss:$16 sps:$4 sm:$0xff]   ;;  %v3887_v13 = vld [vmem:[%s4477_s10 + $0x20c] ss:$16 sps:$4 sm:$0xff]  }
  0x2e   : > { %2678 = vmatprep.subr.bf16.mxu0 %v3822_v26  ;;  %2924 = vmatprep.subr.bf16.mxu1 %v3824_v27  ;;  %v698_v62 = vrot.slane %v676_v60, %v4525_v51  ;;  %v3882_v14 = vld [vmem:[%s4477_s10 + $0x200] ss:$16 sps:$4 sm:$0xff]   ;;  %v3885_v16 = vld [vmem:[%s4477_s10 + $0x208] ss:$16 sps:$4 sm:$0xff]   ;;  %v3890_v17 = vld [vmem:[%s4477_s10 + $0x224] ss:$16 sps:$4 sm:$0xff]  }
  0x2f   : > { %v3893_v18 = vld [vmem:[%s4477_s10 + $0x22c] ss:$16 sps:$4 sm:$0xff]   ;;  %v3888_v20 = vld [vmem:[%s4477_s10 + $0x220] ss:$16 sps:$4 sm:$0xff]   ;;  %v3891_v21 = vld [vmem:[%s4477_s10 + $0x228] ss:$16 sps:$4 sm:$0xff]  }
  0x30   : > { %2698 = vmatprep.mubr.bf16.mxu0 %v698_v62  ;;  %2944 = vmatprep.mubr.bf16.mxu1 %v698_v62  ;;  %v708_v19 = vcombine.high %v698_v62, %v698_v62  ;;  %v3896_v22 = vld [vmem:[%s4477_s10 + $0x244] ss:$16 sps:$4 sm:$0xff]   ;;  %v3899_v23 = vld [vmem:[%s4477_s10 + $0x24c] ss:$16 sps:$4 sm:$0xff]   ;;  %v3894_v24 = vld [vmem:[%s4477_s10 + $0x240] ss:$16 sps:$4 sm:$0xff]  }
  0x31   : > { %2679 = vmatpush1.bf16.msra.mxu0 %v3826_v28  ;;  %2925 = vmatpush1.bf16.msra.mxu1 %v3827_v29  ;;  %v3897_v25 = vld [vmem:[%s4477_s10 + $0x248] ss:$16 sps:$4 sm:$0xff]   ;;  %v3902_v26 = vld [vmem:[%s4477_s10 + $0x264] ss:$16 sps:$4 sm:$0xff]   ;;  %v3905_v27 = vld [vmem:[%s4477_s10 + $0x26c] ss:$16 sps:$4 sm:$0xff]  }
  0x32   : > { %2680 = vmatprep.subr.bf16.mxu0 %v3828_v30  ;;  %2926 = vmatprep.subr.bf16.mxu1 %v3830_v31  ;;  %v3900_v28 = vld [vmem:[%s4477_s10 + $0x260] ss:$16 sps:$4 sm:$0xff]   ;;  %v3903_v29 = vld [vmem:[%s4477_s10 + $0x268] ss:$16 sps:$4 sm:$0xff]   ;;  %v3908_v30 = vld [vmem:[%s4477_s10 + $0x284] ss:$16 sps:$4 sm:$0xff]  }
  0x33   : > { %v3911_v31 = vld [vmem:[%s4477_s10 + $0x28c] ss:$16 sps:$4 sm:$0xff]   ;;  %v3920_v38 = vld [vmem:[%s4477_s10 + $0x2c4] ss:$16 sps:$4 sm:$0xff]   ;;  %v3924_v45 = vld [vmem:[%s4477_s10 + $0x2e0] ss:$16 sps:$4 sm:$0xff]  }
  0x34   : > { %v3923_v39 = vld [vmem:[%s4477_s10 + $0x2cc] ss:$16 sps:$4 sm:$0xff]   ;;  %v3939_v56 = vld [vmem:[%s4477_s10 + $0x328] ss:$16 sps:$4 sm:$0xff]  }
  0x35   : > { %2681 = vmatpush1.bf16.msra.mxu0 %v3832_v32  ;;  %2927 = vmatpush1.bf16.msra.mxu1 %v3833_v33  ;;  %v3906_v32 = vld [vmem:[%s4477_s10 + $0x280] ss:$16 sps:$4 sm:$0xff]   ;;  %v3909_v33 = vld [vmem:[%s4477_s10 + $0x288] ss:$16 sps:$4 sm:$0xff]   ;;  %v3929_v44 = vld [vmem:[%s4477_s10 + $0x2ec] ss:$16 sps:$4 sm:$0xff]  }
  0x36   : > { %2682 = vmatprep.subr.bf16.mxu0 %v3834_v34  ;;  %2928 = vmatprep.subr.bf16.mxu1 %v3836_v35  ;;  %v3914_v34 = vld [vmem:[%s4477_s10 + $0x2a4] ss:$16 sps:$4 sm:$0xff]   ;;  %v3917_v35 = vld [vmem:[%s4477_s10 + $0x2ac] ss:$16 sps:$4 sm:$0xff]   ;;  %v3945_v60 = vld [vmem:[%s4477_s10 + $0x348] ss:$16 sps:$4 sm:$0xff]  }
  0x37   : > { %v3953_v62 = vld [vmem:[%s4477_s10 + $0x36c] ss:$16 sps:$4 sm:$0xff]  }
  0x39   : > { %2683 = vmatpush1.bf16.msra.mxu0 %v3838_v36  ;;  %2929 = vmatpush1.bf16.msra.mxu1 %v3839_v37  ;;  %v3912_v36 = vld [vmem:[%s4477_s10 + $0x2a0] ss:$16 sps:$4 sm:$0xff]   ;;  %v3915_v37 = vld [vmem:[%s4477_s10 + $0x2a8] ss:$16 sps:$4 sm:$0xff]  }
  0x3a   : > { %2684 = vmatprep.subr.bf16.mxu0 %v3840_v41  ;;  %2930 = vmatprep.subr.bf16.mxu1 %v3842_v42  ;;  %v3918_v41 = vld [vmem:[%s4477_s10 + $0x2c0] ss:$16 sps:$4 sm:$0xff]   ;;  %v3921_v42 = vld [vmem:[%s4477_s10 + $0x2c8] ss:$16 sps:$4 sm:$0xff]  }
  0x3d   : > { %2685 = vmatpush1.bf16.msra.mxu0 %v3844_v43  ;;  %2931 = vmatpush1.bf16.msra.mxu1 %v3845_v46  ;;  %v3926_v43 = vld [vmem:[%s4477_s10 + $0x2e4] ss:$16 sps:$4 sm:$0xff]   ;;  %v3927_v46 = vld [vmem:[%s4477_s10 + $0x2e8] ss:$16 sps:$4 sm:$0xff]  }
  0x3e   : > { %2686 = vmatprep.subr.bf16.mxu0 %v3846_v47  ;;  %2932 = vmatprep.subr.bf16.mxu1 %v3848_v48  ;;  %v3932_v47 = vld [vmem:[%s4477_s10 + $0x304] ss:$16 sps:$4 sm:$0xff]   ;;  %v3935_v48 = vld [vmem:[%s4477_s10 + $0x30c] ss:$16 sps:$4 sm:$0xff]  }
  0x41   : > { %2687 = vmatpush1.bf16.msra.mxu0 %v3850_v49  ;;  %2933 = vmatpush1.bf16.msra.mxu1 %v3851_v50  ;;  %v3930_v49 = vld [vmem:[%s4477_s10 + $0x300] ss:$16 sps:$4 sm:$0xff]   ;;  %v3933_v50 = vld [vmem:[%s4477_s10 + $0x308] ss:$16 sps:$4 sm:$0xff]  }
  0x42   : > { %2688 = vmatprep.subr.bf16.mxu0 %v3852_v52  ;;  %2934 = vmatprep.subr.bf16.mxu1 %v3854_v53  ;;  %v3938_v52 = vld [vmem:[%s4477_s10 + $0x324] ss:$16 sps:$4 sm:$0xff]   ;;  %v3941_v53 = vld [vmem:[%s4477_s10 + $0x32c] ss:$16 sps:$4 sm:$0xff]  }
  0x45   : > { %2689 = vmatpush1.bf16.msra.mxu0 %v3856_v55  ;;  %2935 = vmatpush1.bf16.msra.mxu1 %v3857_v57  ;;  %v3936_v55 = vld [vmem:[%s4477_s10 + $0x320] ss:$16 sps:$4 sm:$0xff]   ;;  %v3944_v57 = vld [vmem:[%s4477_s10 + $0x344] ss:$16 sps:$4 sm:$0xff]  }
  0x46   : > { %2690 = vmatprep.subr.bf16.mxu0 %v3858_v58  ;;  %2936 = vmatprep.subr.bf16.mxu1 %v3860_v59  ;;  %v3947_v58 = vld [vmem:[%s4477_s10 + $0x34c] ss:$16 sps:$4 sm:$0xff]   ;;  %v3942_v59 = vld [vmem:[%s4477_s10 + $0x340] ss:$16 sps:$4 sm:$0xff]  }
  0x49   : > { %2691 = vmatpush1.bf16.msra.mxu0 %v3862_v61  ;;  %2937 = vmatpush1.bf16.msra.mxu1 %v3863_v63  ;;  %v3950_v61 = vld [vmem:[%s4477_s10 + $0x364] ss:$16 sps:$4 sm:$0xff]   ;;  %v3948_v63 = vld [vmem:[%s4477_s10 + $0x360] ss:$16 sps:$4 sm:$0xff]  }
  0x4a   : > { %2692 = vmatprep.subr.bf16.mxu0 %v3864_v0  ;;  %2938 = vmatprep.subr.bf16.mxu1 %v3866_v1  ;;  %v3951_v0 = vld [vmem:[%s4477_s10 + $0x368] ss:$16 sps:$4 sm:$0xff]   ;;  %v3956_v1 = vld [vmem:[%s4477_s10 + $0x384] ss:$16 sps:$4 sm:$0xff]  }
  0x4d   : > { %2693 = vmatpush1.bf16.msra.mxu0 %v3868_v2  ;;  %2939 = vmatpush1.bf16.msra.mxu1 %v3869_v3  ;;  %v3959_v2 = vld [vmem:[%s4477_s10 + $0x38c] ss:$16 sps:$4 sm:$0xff]   ;;  %v3954_v3 = vld [vmem:[%s4477_s10 + $0x380] ss:$16 sps:$4 sm:$0xff]  }
  0x4e   : > { %2694 = vmatprep.subr.bf16.mxu0 %v3870_v4  ;;  %2940 = vmatprep.subr.bf16.mxu1 %v3872_v5  ;;  %v3957_v4 = vld [vmem:[%s4477_s10 + $0x388] ss:$16 sps:$4 sm:$0xff]   ;;  %v3962_v5 = vld [vmem:[%s4477_s10 + $0x3a4] ss:$16 sps:$4 sm:$0xff]  }
  0x51   : > { %2695 = vmatpush1.bf16.msra.mxu0 %v3874_v6  ;;  %2941 = vmatpush1.bf16.msra.mxu1 %v3875_v7  ;;  %v3965_v6 = vld [vmem:[%s4477_s10 + $0x3ac] ss:$16 sps:$4 sm:$0xff]   ;;  %v3960_v7 = vld [vmem:[%s4477_s10 + $0x3a0] ss:$16 sps:$4 sm:$0xff]  }
  0x52   : > { %2696 = vmatprep.subr.bf16.mxu0 %v3876_v8  ;;  %2942 = vmatprep.subr.bf16.mxu1 %v3878_v9  ;;  %v3963_v8 = vld [vmem:[%s4477_s10 + $0x3a8] ss:$16 sps:$4 sm:$0xff]   ;;  %v3968_v9 = vld [vmem:[%s4477_s10 + $0x3c4] ss:$16 sps:$4 sm:$0xff]  }
  0x55   : > { %2697 = vmatpush1.bf16.msra.mxu0 %v3880_v10  ;;  %2943 = vmatpush1.bf16.msra.mxu1 %v3881_v11  ;;  %v3971_v10 = vld [vmem:[%s4477_s10 + $0x3cc] ss:$16 sps:$4 sm:$0xff]   ;;  %v661_v11 = vcombine.high %v4530_v54, %v4530_v54  ;;  %v3975_v54 = vld [vmem:[%s4477_s10 + $0x3e8] ss:$16 sps:$4 sm:$0xff]  }
  0x56   : > { %2707 = vmatprep.subr.bf16.mxu0 %v3884_v12  ;;  %2953 = vmatprep.subr.bf16.mxu1 %v3887_v13  ;;  %v3966_v12 = vld [vmem:[%s4477_s10 + $0x3c0] ss:$16 sps:$4 sm:$0xff]   ;;  %v3969_v13 = vld [vmem:[%s4477_s10 + $0x3c8] ss:$16 sps:$4 sm:$0xff]  }
  0x58   : > { %2699 = vmatmul.mubr.bf16.vlgmr.msra.gmra.mrb[0].mxu0 %v4557_v15  ;;  %2945 = vmatmul.mubr.bf16.vlgmr.msra.gmra.mrb[0].mxu1 %v4557_v15 }
  0x59   : > { %2708 = vmatpush1.bf16.msra.mxu0 %v3882_v14  ;;  %2954 = vmatpush1.bf16.msra.mxu1 %v3885_v16  ;;  %v3974_v14 = vld [vmem:[%s4477_s10 + $0x3e4] ss:$16 sps:$4 sm:$0xff]   ;;  %v3977_v16 = vld [vmem:[%s4477_s10 + $0x3ec] ss:$16 sps:$4 sm:$0xff]  }
  0x5a   : > { %2709 = vmatprep.subr.bf16.mxu0 %v3890_v17  ;;  %2955 = vmatprep.subr.bf16.mxu1 %v3893_v18  ;;  %v4623_v17 = vrot.slane %v661_v11, %v4525_v51  ;;  %v3972_v18 = vld [vmem:[%s4477_s10 + $0x3e0] ss:$16 sps:$4 sm:$0xff]   ;;  %v4053_v11 = vld [vmem:[%s4477_s10 + $0x588] ss:$16 sps:$4 sm:$0xff]  }
  0x5b   : > { %2739 = vmatprep.mubr.bf16.mxu0 %v708_v19  ;;  %2985 = vmatprep.mubr.bf16.mxu1 %v708_v19  ;;  %v3980_v19 = vld [vmem:[%s4477_s10 + $0x404] ss:$16 sps:$4 sm:$0xff]  }
  0x5d   : > { %2710 = vmatpush1.bf16.msra.mxu0 %v3888_v20  ;;  %2956 = vmatpush1.bf16.msra.mxu1 %v3891_v21  ;;  %v3983_v20 = vld [vmem:[%s4477_s10 + $0x40c] ss:$16 sps:$4 sm:$0xff]   ;;  %v677_v21 = vcombine.high %v4623_v17, %v4623_v17 }
  0x5e   : > { %2711 = vmatprep.subr.bf16.mxu0 %v3896_v22  ;;  %2957 = vmatprep.subr.bf16.mxu1 %v3899_v23  ;;  %v3978_v22 = vld [vmem:[%s4477_s10 + $0x400] ss:$16 sps:$4 sm:$0xff]   ;;  %v706_v23 = vcombine.high %v4557_v15, %v4557_v15  ;;  %v3987_v15 = vld [vmem:[%s4477_s10 + $0x428] ss:$16 sps:$4 sm:$0xff]  }
  0x61   : > { %2712 = vmatpush1.bf16.msra.mxu0 %v3894_v24  ;;  %2958 = vmatpush1.bf16.msra.mxu1 %v3897_v25  ;;  %v3981_v24 = vld [vmem:[%s4477_s10 + $0x408] ss:$16 sps:$4 sm:$0xff]   ;;  %v3986_v25 = vld [vmem:[%s4477_s10 + $0x424] ss:$16 sps:$4 sm:$0xff]  }
  0x62   : > { %2713 = vmatprep.subr.bf16.mxu0 %v3902_v26  ;;  %2959 = vmatprep.subr.bf16.mxu1 %v3905_v27  ;;  %v3989_v26 = vld [vmem:[%s4477_s10 + $0x42c] ss:$16 sps:$4 sm:$0xff]   ;;  %v4638_v27 = vrot.slane %v677_v21, %v4525_v51  ;;  %v4070_v21 = vld [vmem:[%s4477_s10 + $0x5e4] ss:$16 sps:$4 sm:$0xff]  }
  0x65   : > { %2714 = vmatpush1.bf16.msra.mxu0 %v3900_v28  ;;  %2960 = vmatpush1.bf16.msra.mxu1 %v3903_v29  ;;  %v3984_v28 = vld [vmem:[%s4477_s10 + $0x420] ss:$16 sps:$4 sm:$0xff]   ;;  %v3992_v29 = vld [vmem:[%s4477_s10 + $0x444] ss:$16 sps:$4 sm:$0xff]  }
  0x66   : > { %2715 = vmatprep.subr.bf16.mxu0 %v3908_v30  ;;  %2961 = vmatprep.subr.bf16.mxu1 %v3911_v31  ;;  %v3995_v30 = vld [vmem:[%s4477_s10 + $0x44c] ss:$16 sps:$4 sm:$0xff]   ;;  %v3990_v31 = vld [vmem:[%s4477_s10 + $0x440] ss:$16 sps:$4 sm:$0xff]  }
  0x69   : > { %2716 = vmatpush1.bf16.msra.mxu0 %v3906_v32  ;;  %2962 = vmatpush1.bf16.msra.mxu1 %v3909_v33  ;;  %v3993_v32 = vld [vmem:[%s4477_s10 + $0x448] ss:$16 sps:$4 sm:$0xff]   ;;  %v3998_v33 = vld [vmem:[%s4477_s10 + $0x464] ss:$16 sps:$4 sm:$0xff]  }
  0x6a   : > { %2717 = vmatprep.subr.bf16.mxu0 %v3914_v34  ;;  %2963 = vmatprep.subr.bf16.mxu1 %v3917_v35  ;;  %v4001_v34 = vld [vmem:[%s4477_s10 + $0x46c] ss:$16 sps:$4 sm:$0xff]   ;;  %v3996_v35 = vld [vmem:[%s4477_s10 + $0x460] ss:$16 sps:$4 sm:$0xff]  }
  0x6d   : > { %2718 = vmatpush1.bf16.msra.mxu0 %v3912_v36  ;;  %2964 = vmatpush1.bf16.msra.mxu1 %v3915_v37  ;;  %v3999_v36 = vld [vmem:[%s4477_s10 + $0x468] ss:$16 sps:$4 sm:$0xff]   ;;  %v4004_v37 = vld [vmem:[%s4477_s10 + $0x484] ss:$16 sps:$4 sm:$0xff]  }
  0x6e   : > { %2719 = vmatprep.subr.bf16.mxu0 %v3920_v38  ;;  %2965 = vmatprep.subr.bf16.mxu1 %v3923_v39  ;;  %v4007_v38 = vld [vmem:[%s4477_s10 + $0x48c] ss:$16 sps:$4 sm:$0xff]   ;;  %v4002_v39 = vld [vmem:[%s4477_s10 + $0x480] ss:$16 sps:$4 sm:$0xff]  }
  0x71   : > { %2720 = vmatpush1.bf16.msra.mxu0 %v3918_v41  ;;  %2966 = vmatpush1.bf16.msra.mxu1 %v3921_v42  ;;  %v4005_v41 = vld [vmem:[%s4477_s10 + $0x488] ss:$16 sps:$4 sm:$0xff]   ;;  %v4010_v42 = vld [vmem:[%s4477_s10 + $0x4a4] ss:$16 sps:$4 sm:$0xff]  }
  0x72   : > { %2721 = vmatprep.subr.bf16.mxu0 %v3926_v43  ;;  %2967 = vmatprep.subr.bf16.mxu1 %v3929_v44  ;;  %v4013_v43 = vld [vmem:[%s4477_s10 + $0x4ac] ss:$16 sps:$4 sm:$0xff]   ;;  %v4008_v44 = vld [vmem:[%s4477_s10 + $0x4a0] ss:$16 sps:$4 sm:$0xff]  }
  0x75   : > { %2722 = vmatpush1.bf16.msra.mxu0 %v3924_v45  ;;  %2968 = vmatpush1.bf16.msra.mxu1 %v3927_v46  ;;  %v4011_v45 = vld [vmem:[%s4477_s10 + $0x4a8] ss:$16 sps:$4 sm:$0xff]   ;;  %v4016_v46 = vld [vmem:[%s4477_s10 + $0x4c4] ss:$16 sps:$4 sm:$0xff]  }
  0x76   : > { %2723 = vmatprep.subr.bf16.mxu0 %v3932_v47  ;;  %2969 = vmatprep.subr.bf16.mxu1 %v3935_v48  ;;  %v4019_v47 = vld [vmem:[%s4477_s10 + $0x4cc] ss:$16 sps:$4 sm:$0xff]   ;;  %v4014_v48 = vld [vmem:[%s4477_s10 + $0x4c0] ss:$16 sps:$4 sm:$0xff]  }
  0x79   : > { %2724 = vmatpush1.bf16.msra.mxu0 %v3930_v49  ;;  %2970 = vmatpush1.bf16.msra.mxu1 %v3933_v50  ;;  %v4017_v49 = vld [vmem:[%s4477_s10 + $0x4c8] ss:$16 sps:$4 sm:$0xff]   ;;  %v4022_v50 = vld [vmem:[%s4477_s10 + $0x4e4] ss:$16 sps:$4 sm:$0xff]  }
  0x7a   : > { %2725 = vmatprep.subr.bf16.mxu0 %v3938_v52  ;;  %2971 = vmatprep.subr.bf16.mxu1 %v3941_v53  ;;  %v4025_v52 = vld [vmem:[%s4477_s10 + $0x4ec] ss:$16 sps:$4 sm:$0xff]   ;;  %v4020_v53 = vld [vmem:[%s4477_s10 + $0x4e0] ss:$16 sps:$4 sm:$0xff]  }
  0x7d   : > { %2726 = vmatpush1.bf16.msra.mxu0 %v3936_v55  ;;  %2972 = vmatpush1.bf16.msra.mxu1 %v3939_v56  ;;  %v4023_v55 = vld [vmem:[%s4477_s10 + $0x4e8] ss:$16 sps:$4 sm:$0xff]   ;;  %v4028_v56 = vld [vmem:[%s4477_s10 + $0x504] ss:$16 sps:$4 sm:$0xff]  }
  0x7e   : > { %2727 = vmatprep.subr.bf16.mxu0 %v3944_v57  ;;  %2973 = vmatprep.subr.bf16.mxu1 %v3947_v58  ;;  %v4031_v57 = vld [vmem:[%s4477_s10 + $0x50c] ss:$16 sps:$4 sm:$0xff]   ;;  %v4026_v58 = vld [vmem:[%s4477_s10 + $0x500] ss:$16 sps:$4 sm:$0xff]  }
  0x81   : > { %2728 = vmatpush1.bf16.msra.mxu0 %v3942_v59  ;;  %2974 = vmatpush1.bf16.msra.mxu1 %v3945_v60  ;;  %v4029_v59 = vld [vmem:[%s4477_s10 + $0x508] ss:$16 sps:$4 sm:$0xff]   ;;  %v4034_v60 = vld [vmem:[%s4477_s10 + $0x524] ss:$16 sps:$4 sm:$0xff]  }
  0x82   : > { %2729 = vmatprep.subr.bf16.mxu0 %v3950_v61  ;;  %2975 = vmatprep.subr.bf16.mxu1 %v3953_v62  ;;  %v4037_v61 = vld [vmem:[%s4477_s10 + $0x52c] ss:$16 sps:$4 sm:$0xff]   ;;  %v4032_v62 = vld [vmem:[%s4477_s10 + $0x520] ss:$16 sps:$4 sm:$0xff]  }
  0x85   : > { %2730 = vmatpush1.bf16.msra.mxu0 %v3948_v63  ;;  %2976 = vmatpush1.bf16.msra.mxu1 %v3951_v0  ;;  %v4035_v63 = vld [vmem:[%s4477_s10 + $0x528] ss:$16 sps:$4 sm:$0xff]   ;;  %v4040_v0 = vld [vmem:[%s4477_s10 + $0x544] ss:$16 sps:$4 sm:$0xff]  }
  0x86   : > { %2731 = vmatprep.subr.bf16.mxu0 %v3956_v1  ;;  %2977 = vmatprep.subr.bf16.mxu1 %v3959_v2  ;;  %v4043_v1 = vld [vmem:[%s4477_s10 + $0x54c] ss:$16 sps:$4 sm:$0xff]   ;;  %v4038_v2 = vld [vmem:[%s4477_s10 + $0x540] ss:$16 sps:$4 sm:$0xff]  }
  0x89   : > { %2732 = vmatpush1.bf16.msra.mxu0 %v3954_v3  ;;  %2978 = vmatpush1.bf16.msra.mxu1 %v3957_v4  ;;  %v4041_v3 = vld [vmem:[%s4477_s10 + $0x548] ss:$16 sps:$4 sm:$0xff]   ;;  %v4046_v4 = vld [vmem:[%s4477_s10 + $0x564] ss:$16 sps:$4 sm:$0xff]  }
  0x8a   : > { %2733 = vmatprep.subr.bf16.mxu0 %v3962_v5  ;;  %2979 = vmatprep.subr.bf16.mxu1 %v3965_v6  ;;  %v4049_v5 = vld [vmem:[%s4477_s10 + $0x56c] ss:$16 sps:$4 sm:$0xff]   ;;  %v4044_v6 = vld [vmem:[%s4477_s10 + $0x560] ss:$16 sps:$4 sm:$0xff]  }
  0x8d   : > { %2734 = vmatpush1.bf16.msra.mxu0 %v3960_v7  ;;  %2980 = vmatpush1.bf16.msra.mxu1 %v3963_v8  ;;  %v4047_v7 = vld [vmem:[%s4477_s10 + $0x568] ss:$16 sps:$4 sm:$0xff]   ;;  %v4052_v8 = vld [vmem:[%s4477_s10 + $0x584] ss:$16 sps:$4 sm:$0xff]  }
  0x8e   : > { %2735 = vmatprep.subr.bf16.mxu0 %v3968_v9  ;;  %2981 = vmatprep.subr.bf16.mxu1 %v3971_v10  ;;  %v4055_v9 = vld [vmem:[%s4477_s10 + $0x58c] ss:$16 sps:$4 sm:$0xff]   ;;  %v4050_v10 = vld [vmem:[%s4477_s10 + $0x580] ss:$16 sps:$4 sm:$0xff]  }
  0x91   : > { %2736 = vmatpush1.bf16.msra.mxu0 %v3966_v12  ;;  %2982 = vmatpush1.bf16.msra.mxu1 %v3969_v13  ;;  %v4058_v12 = vld [vmem:[%s4477_s10 + $0x5a4] ss:$16 sps:$4 sm:$0xff]   ;;  %v4061_v13 = vld [vmem:[%s4477_s10 + $0x5ac] ss:$16 sps:$4 sm:$0xff]  }
  0x92   : > { %2737 = vmatprep.subr.bf16.mxu0 %v3974_v14  ;;  %2983 = vmatprep.subr.bf16.mxu1 %v3977_v16  ;;  %v4056_v14 = vld [vmem:[%s4477_s10 + $0x5a0] ss:$16 sps:$4 sm:$0xff]   ;;  %v4059_v16 = vld [vmem:[%s4477_s10 + $0x5a8] ss:$16 sps:$4 sm:$0xff]  }
  0x95   : > { %2738 = vmatpush1.bf16.msra.mxu0 %v3972_v18  ;;  %2984 = vmatpush1.bf16.msra.mxu1 %v3975_v54  ;;  %v4064_v18 = vld [vmem:[%s4477_s10 + $0x5c4] ss:$16 sps:$4 sm:$0xff]   ;;  %v4067_v54 = vld [vmem:[%s4477_s10 + $0x5cc] ss:$16 sps:$4 sm:$0xff]  }
  0x96   : > { %2748 = vmatprep.subr.bf16.mxu0 %v3980_v19  ;;  %2994 = vmatprep.subr.bf16.mxu1 %v3983_v20  ;;  %v4062_v19 = vld [vmem:[%s4477_s10 + $0x5c0] ss:$16 sps:$4 sm:$0xff]   ;;  %v4065_v20 = vld [vmem:[%s4477_s10 + $0x5c8] ss:$16 sps:$4 sm:$0xff]  }
  0x98   : > { %2740 = vmatmul.mubr.bf16.vlgmr.msra.gmra.mrb[0].mxu0 %v706_v23  ;;  %2986 = vmatmul.mubr.bf16.vlgmr.msra.gmra.mrb[0].mxu1 %v706_v23  ;;  %v4068_v23 = vld [vmem:[%s4477_s10 + $0x5e0] ss:$16 sps:$4 sm:$0xff]  }
  0x99   : > { %2749 = vmatpush1.bf16.msra.mxu0 %v3978_v22  ;;  %2995 = vmatpush1.bf16.msra.mxu1 %v3981_v24  ;;  %v4073_v22 = vld [vmem:[%s4477_s10 + $0x5ec] ss:$16 sps:$4 sm:$0xff]   ;;  %v4071_v24 = vld [vmem:[%s4477_s10 + $0x5e8] ss:$16 sps:$4 sm:$0xff]  }
  0x9a   : > { %2750 = vmatprep.subr.bf16.mxu0 %v3986_v25  ;;  %2996 = vmatprep.subr.bf16.mxu1 %v3989_v26  ;;  %v4077_v25 = vld [vmem:[%s4477_s10 + $0x604] ss:$16 sps:$4 sm:$0xff]   ;;  %v4080_v26 = vld [vmem:[%s4477_s10 + $0x60c] ss:$16 sps:$4 sm:$0xff]  }
  0x9b   : > { %2780 = vmatprep.mubr.bf16.mxu0 %v4638_v27  ;;  %3026 = vmatprep.mubr.bf16.mxu1 %v4638_v27 }
  0x9d   : > { %2751 = vmatpush1.bf16.msra.mxu0 %v3984_v28  ;;  %2997 = vmatpush1.bf16.msra.mxu1 %v3987_v15  ;;  %v4075_v28 = vld [vmem:[%s4477_s10 + $0x600] ss:$16 sps:$4 sm:$0xff]   ;;  %v4705_v15 = vrot.slane %v4623_v17, %v4525_v51 }
  0x9e   : > { %2752 = vmatprep.subr.bf16.mxu0 %v3992_v29  ;;  %2998 = vmatprep.subr.bf16.mxu1 %v3995_v30  ;;  %v4078_v29 = vld [vmem:[%s4477_s10 + $0x608] ss:$16 sps:$4 sm:$0xff]   ;;  %v4083_v30 = vld [vmem:[%s4477_s10 + $0x624] ss:$16 sps:$4 sm:$0xff]   ;;  %v4081_v17 = vld [vmem:[%s4477_s10 + $0x620] ss:$16 sps:$4 sm:$0xff]  }
  0xa1   : > { %2753 = vmatpush1.bf16.msra.mxu0 %v3990_v31  ;;  %2999 = vmatpush1.bf16.msra.mxu1 %v3993_v32  ;;  %v4086_v31 = vld [vmem:[%s4477_s10 + $0x62c] ss:$16 sps:$4 sm:$0xff]   ;;  %v709_v32 = vcombine.high %v4638_v27, %v4638_v27  ;;  %v4087_v27 = vld [vmem:[%s4477_s10 + $0x640] ss:$16 sps:$4 sm:$0xff]  }
  0xa2   : > { %2754 = vmatprep.subr.bf16.mxu0 %v3998_v33  ;;  %3000 = vmatprep.subr.bf16.mxu1 %v4001_v34  ;;  %v4084_v33 = vld [vmem:[%s4477_s10 + $0x628] ss:$16 sps:$4 sm:$0xff]   ;;  %v4089_v34 = vld [vmem:[%s4477_s10 + $0x644] ss:$16 sps:$4 sm:$0xff]  }
  0xa5   : > { %2755 = vmatpush1.bf16.msra.mxu0 %v3996_v35  ;;  %3001 = vmatpush1.bf16.msra.mxu1 %v3999_v36  ;;  %v4092_v35 = vld [vmem:[%s4477_s10 + $0x64c] ss:$16 sps:$4 sm:$0xff]   ;;  %v4090_v36 = vld [vmem:[%s4477_s10 + $0x648] ss:$16 sps:$4 sm:$0xff]  }
  0xa6   : > { %2756 = vmatprep.subr.bf16.mxu0 %v4004_v37  ;;  %3002 = vmatprep.subr.bf16.mxu1 %v4007_v38  ;;  %v4095_v37 = vld [vmem:[%s4477_s10 + $0x664] ss:$16 sps:$4 sm:$0xff]   ;;  %v4098_v38 = vld [vmem:[%s4477_s10 + $0x66c] ss:$16 sps:$4 sm:$0xff]  }
  0xa9   : > { %2757 = vmatpush1.bf16.msra.mxu0 %v4002_v39  ;;  %3003 = vmatpush1.bf16.msra.mxu1 %v4005_v41  ;;  %v4093_v39 = vld [vmem:[%s4477_s10 + $0x660] ss:$16 sps:$4 sm:$0xff]   ;;  %v4096_v41 = vld [vmem:[%s4477_s10 + $0x668] ss:$16 sps:$4 sm:$0xff]  }
  0xaa   : > { %2758 = vmatprep.subr.bf16.mxu0 %v4010_v42  ;;  %3004 = vmatprep.subr.bf16.mxu1 %v4013_v43  ;;  %v4101_v42 = vld [vmem:[%s4477_s10 + $0x684] ss:$16 sps:$4 sm:$0xff]   ;;  %v4104_v43 = vld [vmem:[%s4477_s10 + $0x68c] ss:$16 sps:$4 sm:$0xff]  }
  0xad   : > { %2759 = vmatpush1.bf16.msra.mxu0 %v4008_v44  ;;  %3005 = vmatpush1.bf16.msra.mxu1 %v4011_v45  ;;  %v4099_v44 = vld [vmem:[%s4477_s10 + $0x680] ss:$16 sps:$4 sm:$0xff]   ;;  %v4102_v45 = vld [vmem:[%s4477_s10 + $0x688] ss:$16 sps:$4 sm:$0xff]  }
  0xae   : > { %2760 = vmatprep.subr.bf16.mxu0 %v4016_v46  ;;  %3006 = vmatprep.subr.bf16.mxu1 %v4019_v47  ;;  %v4107_v46 = vld [vmem:[%s4477_s10 + $0x6a4] ss:$16 sps:$4 sm:$0xff]   ;;  %v4110_v47 = vld [vmem:[%s4477_s10 + $0x6ac] ss:$16 sps:$4 sm:$0xff]  }
  0xb1   : > { %2761 = vmatpush1.bf16.msra.mxu0 %v4014_v48  ;;  %3007 = vmatpush1.bf16.msra.mxu1 %v4017_v49  ;;  %v4105_v48 = vld [vmem:[%s4477_s10 + $0x6a0] ss:$16 sps:$4 sm:$0xff]   ;;  %v4108_v49 = vld [vmem:[%s4477_s10 + $0x6a8] ss:$16 sps:$4 sm:$0xff]  }
  0xb2   : > { %2762 = vmatprep.subr.bf16.mxu0 %v4022_v50  ;;  %3008 = vmatprep.subr.bf16.mxu1 %v4025_v52  ;;  %v4113_v50 = vld [vmem:[%s4477_s10 + $0x6c4] ss:$16 sps:$4 sm:$0xff]   ;;  %v4116_v52 = vld [vmem:[%s4477_s10 + $0x6cc] ss:$16 sps:$4 sm:$0xff]  }
  0xb5   : > { %2763 = vmatpush1.bf16.msra.mxu0 %v4020_v53  ;;  %3009 = vmatpush1.bf16.msra.mxu1 %v4023_v55  ;;  %v4111_v53 = vld [vmem:[%s4477_s10 + $0x6c0] ss:$16 sps:$4 sm:$0xff]   ;;  %v4114_v55 = vld [vmem:[%s4477_s10 + $0x6c8] ss:$16 sps:$4 sm:$0xff]  }
  0xb6   : > { %2764 = vmatprep.subr.bf16.mxu0 %v4028_v56  ;;  %3010 = vmatprep.subr.bf16.mxu1 %v4031_v57  ;;  %v4119_v56 = vld [vmem:[%s4477_s10 + $0x6e4] ss:$16 sps:$4 sm:$0xff]   ;;  %v4122_v57 = vld [vmem:[%s4477_s10 + $0x6ec] ss:$16 sps:$4 sm:$0xff]  }
  0xb9   : > { %2765 = vmatpush1.bf16.msra.mxu0 %v4026_v58  ;;  %3011 = vmatpush1.bf16.msra.mxu1 %v4029_v59  ;;  %v4117_v58 = vld [vmem:[%s4477_s10 + $0x6e0] ss:$16 sps:$4 sm:$0xff]   ;;  %v4120_v59 = vld [vmem:[%s4477_s10 + $0x6e8] ss:$16 sps:$4 sm:$0xff]  }
  0xba   : > { %2766 = vmatprep.subr.bf16.mxu0 %v4034_v60  ;;  %3012 = vmatprep.subr.bf16.mxu1 %v4037_v61  ;;  %v4125_v60 = vld [vmem:[%s4477_s10 + $0x704] ss:$16 sps:$4 sm:$0xff]   ;;  %v4128_v61 = vld [vmem:[%s4477_s10 + $0x70c] ss:$16 sps:$4 sm:$0xff]  }
  0xbd   : > { %2767 = vmatpush1.bf16.msra.mxu0 %v4032_v62  ;;  %3013 = vmatpush1.bf16.msra.mxu1 %v4035_v63  ;;  %v4123_v62 = vld [vmem:[%s4477_s10 + $0x700] ss:$16 sps:$4 sm:$0xff]   ;;  %v4126_v63 = vld [vmem:[%s4477_s10 + $0x708] ss:$16 sps:$4 sm:$0xff]  }
  0xbe   : > { %2768 = vmatprep.subr.bf16.mxu0 %v4040_v0  ;;  %3014 = vmatprep.subr.bf16.mxu1 %v4043_v1  ;;  %v4131_v0 = vld [vmem:[%s4477_s10 + $0x724] ss:$16 sps:$4 sm:$0xff]   ;;  %v4134_v1 = vld [vmem:[%s4477_s10 + $0x72c] ss:$16 sps:$4 sm:$0xff]  }
  0xc1   : > { %2769 = vmatpush1.bf16.msra.mxu0 %v4038_v2  ;;  %3015 = vmatpush1.bf16.msra.mxu1 %v4041_v3  ;;  %v4129_v2 = vld [vmem:[%s4477_s10 + $0x720] ss:$16 sps:$4 sm:$0xff]   ;;  %v4132_v3 = vld [vmem:[%s4477_s10 + $0x728] ss:$16 sps:$4 sm:$0xff]  }
  0xc2   : > { %2770 = vmatprep.subr.bf16.mxu0 %v4046_v4  ;;  %3016 = vmatprep.subr.bf16.mxu1 %v4049_v5  ;;  %v4137_v4 = vld [vmem:[%s4477_s10 + $0x744] ss:$16 sps:$4 sm:$0xff]   ;;  %v4140_v5 = vld [vmem:[%s4477_s10 + $0x74c] ss:$16 sps:$4 sm:$0xff]  }
  0xc5   : > { %2771 = vmatpush1.bf16.msra.mxu0 %v4044_v6  ;;  %3017 = vmatpush1.bf16.msra.mxu1 %v4047_v7  ;;  %v4135_v6 = vld [vmem:[%s4477_s10 + $0x740] ss:$16 sps:$4 sm:$0xff]   ;;  %v4138_v7 = vld [vmem:[%s4477_s10 + $0x748] ss:$16 sps:$4 sm:$0xff]  }
  0xc6   : > { %2772 = vmatprep.subr.bf16.mxu0 %v4052_v8  ;;  %3018 = vmatprep.subr.bf16.mxu1 %v4055_v9  ;;  %v4143_v8 = vld [vmem:[%s4477_s10 + $0x764] ss:$16 sps:$4 sm:$0xff]   ;;  %v4146_v9 = vld [vmem:[%s4477_s10 + $0x76c] ss:$16 sps:$4 sm:$0xff]  }
  0xc9   : > { %2773 = vmatpush1.bf16.msra.mxu0 %v4050_v10  ;;  %3019 = vmatpush1.bf16.msra.mxu1 %v4053_v11  ;;  %v4141_v10 = vld [vmem:[%s4477_s10 + $0x760] ss:$16 sps:$4 sm:$0xff]   ;;  %v4144_v11 = vld [vmem:[%s4477_s10 + $0x768] ss:$16 sps:$4 sm:$0xff]  }
  0xca   : > { %2774 = vmatprep.subr.bf16.mxu0 %v4058_v12  ;;  %3020 = vmatprep.subr.bf16.mxu1 %v4061_v13  ;;  %v4149_v12 = vld [vmem:[%s4477_s10 + $0x784] ss:$16 sps:$4 sm:$0xff]   ;;  %v4152_v13 = vld [vmem:[%s4477_s10 + $0x78c] ss:$16 sps:$4 sm:$0xff]  }
  0xcd   : > { %2775 = vmatpush1.bf16.msra.mxu0 %v4056_v14  ;;  %3021 = vmatpush1.bf16.msra.mxu1 %v4059_v16  ;;  %v4147_v14 = vld [vmem:[%s4477_s10 + $0x780] ss:$16 sps:$4 sm:$0xff]   ;;  %v4150_v16 = vld [vmem:[%s4477_s10 + $0x788] ss:$16 sps:$4 sm:$0xff]  }
  0xce   : > { %2776 = vmatprep.subr.bf16.mxu0 %v4064_v18  ;;  %3022 = vmatprep.subr.bf16.mxu1 %v4067_v54  ;;  %v4155_v18 = vld [vmem:[%s4477_s10 + $0x7a4] ss:$16 sps:$4 sm:$0xff]   ;;  %v4158_v54 = vld [vmem:[%s4477_s10 + $0x7ac] ss:$16 sps:$4 sm:$0xff]  }
  0xd1   : > { %2777 = vmatpush1.bf16.msra.mxu0 %v4062_v19  ;;  %3023 = vmatpush1.bf16.msra.mxu1 %v4065_v20  ;;  %v4153_v19 = vld [vmem:[%s4477_s10 + $0x7a0] ss:$16 sps:$4 sm:$0xff]   ;;  %v4156_v20 = vld [vmem:[%s4477_s10 + $0x7a8] ss:$16 sps:$4 sm:$0xff]  }
  0xd2   : > { %2778 = vmatprep.subr.bf16.mxu0 %v4070_v21  ;;  %3024 = vmatprep.subr.bf16.mxu1 %v4073_v22  ;;  %v4161_v21 = vld [vmem:[%s4477_s10 + $0x7c4] ss:$16 sps:$4 sm:$0xff]   ;;  %v4164_v22 = vld [vmem:[%s4477_s10 + $0x7cc] ss:$16 sps:$4 sm:$0xff]  }
  0xd5   : > { %2779 = vmatpush1.bf16.msra.mxu0 %v4068_v23  ;;  %3025 = vmatpush1.bf16.msra.mxu1 %v4071_v24  ;;  %v4159_v23 = vld [vmem:[%s4477_s10 + $0x7c0] ss:$16 sps:$4 sm:$0xff]   ;;  %v4162_v24 = vld [vmem:[%s4477_s10 + $0x7c8] ss:$16 sps:$4 sm:$0xff]  }
  0xd6   : > { %2789 = vmatprep.subr.bf16.mxu0 %v4077_v25  ;;  %3035 = vmatprep.subr.bf16.mxu1 %v4080_v26  ;;  %v4167_v25 = vld [vmem:[%s4477_s10 + $0x7e4] ss:$16 sps:$4 sm:$0xff]   ;;  %v4170_v26 = vld [vmem:[%s4477_s10 + $0x7ec] ss:$16 sps:$4 sm:$0xff]  }
  0xd8   : > { %2781 = vmatmul.mubr.bf16.vlgmr.msra.gmra.mrb[0].mxu0 %v4705_v15  ;;  %3027 = vmatmul.mubr.bf16.vlgmr.msra.gmra.mrb[0].mxu1 %v4705_v15 }
  0xd9   : > { %2790 = vmatpush1.bf16.msra.mxu0 %v4075_v28  ;;  %3036 = vmatpush1.bf16.msra.mxu1 %v4078_v29  ;;  %v4771_v28 = vld.sshfl [vmem:[%s4472_s7 + $0x8] sm:$0x33 pattern:$0x75316420]  ;;  %v4165_v29 = vld [vmem:[%s4477_s10 + $0x7e0] ss:$16 sps:$4 sm:$0xff]  }
  0xda   : > { %2791 = vmatprep.subr.bf16.mxu0 %v4083_v30  ;;  %3037 = vmatprep.subr.bf16.mxu1 %v4086_v31  ;;  %v4168_v30 = vld [vmem:[%s4477_s10 + $0x7e8] ss:$16 sps:$4 sm:$0xff]   ;;  %v4173_v31 = vld [vmem:[%s4477_s10 + $0x804] ss:$16 sps:$4 sm:$0xff]  }
  0xdb   : > { %2821 = vmatprep.mubr.bf16.mxu0 %v709_v32  ;;  %3067 = vmatprep.mubr.bf16.mxu1 %v709_v32  ;;  %v4176_v32 = vld [vmem:[%s4477_s10 + $0x80c] ss:$16 sps:$4 sm:$0xff]  }
  0xdd   : > { %2792 = vmatpush1.bf16.msra.mxu0 %v4081_v17  ;;  %3038 = vmatpush1.bf16.msra.mxu1 %v4084_v33  ;;  %v717_v17 = vcombine.high %v4771_v28, %v4771_v28  ;;  %v707_v33 = vcombine.high %v4705_v15, %v4705_v15  ;;  %v4177_v15 = vld [vmem:[%s4477_s10 + $0x820] ss:$16 sps:$4 sm:$0xff]  }
  0xde   : > { %2793 = vmatprep.subr.bf16.mxu0 %v4089_v34  ;;  %3039 = vmatprep.subr.bf16.mxu1 %v4092_v35  ;;  %v4171_v34 = vld [vmem:[%s4477_s10 + $0x800] ss:$16 sps:$4 sm:$0xff]   ;;  %v4174_v35 = vld [vmem:[%s4477_s10 + $0x808] ss:$16 sps:$4 sm:$0xff]  }
  0xe1   : > { %2794 = vmatpush1.bf16.msra.mxu0 %v4087_v27  ;;  %3040 = vmatpush1.bf16.msra.mxu1 %v4090_v36  ;;  %v4179_v27 = vld [vmem:[%s4477_s10 + $0x824] ss:$16 sps:$4 sm:$0xff]   ;;  %v4182_v36 = vld [vmem:[%s4477_s10 + $0x82c] ss:$16 sps:$4 sm:$0xff]  }
  0xe2   : > { %2795 = vmatprep.subr.bf16.mxu0 %v4095_v37  ;;  %3041 = vmatprep.subr.bf16.mxu1 %v4098_v38  ;;  %v4786_v37 = vrot.slane %v717_v17, %v4525_v51  ;;  %v4180_v38 = vld [vmem:[%s4477_s10 + $0x828] ss:$16 sps:$4 sm:$0xff]   ;;  %v4263_v17 = vld [vmem:[%s4477_s10 + $0x9e4] ss:$16 sps:$4 sm:$0xff]  }
  0xe5   : > { %2796 = vmatpush1.bf16.msra.mxu0 %v4093_v39  ;;  %3042 = vmatpush1.bf16.msra.mxu1 %v4096_v41  ;;  %v4185_v39 = vld [vmem:[%s4477_s10 + $0x844] ss:$16 sps:$4 sm:$0xff]   ;;  %v4188_v41 = vld [vmem:[%s4477_s10 + $0x84c] ss:$16 sps:$4 sm:$0xff]  }
  0xe6   : > { %2797 = vmatprep.subr.bf16.mxu0 %v4101_v42  ;;  %3043 = vmatprep.subr.bf16.mxu1 %v4104_v43  ;;  %v4183_v42 = vld [vmem:[%s4477_s10 + $0x840] ss:$16 sps:$4 sm:$0xff]   ;;  %v4186_v43 = vld [vmem:[%s4477_s10 + $0x848] ss:$16 sps:$4 sm:$0xff]  }
  0xe9   : > { %2798 = vmatpush1.bf16.msra.mxu0 %v4099_v44  ;;  %3044 = vmatpush1.bf16.msra.mxu1 %v4102_v45  ;;  %v4191_v44 = vld [vmem:[%s4477_s10 + $0x864] ss:$16 sps:$4 sm:$0xff]   ;;  %v4194_v45 = vld [vmem:[%s4477_s10 + $0x86c] ss:$16 sps:$4 sm:$0xff]  }
  0xea   : > { %2799 = vmatprep.subr.bf16.mxu0 %v4107_v46  ;;  %3045 = vmatprep.subr.bf16.mxu1 %v4110_v47  ;;  %v4189_v46 = vld [vmem:[%s4477_s10 + $0x860] ss:$16 sps:$4 sm:$0xff]   ;;  %v4192_v47 = vld [vmem:[%s4477_s10 + $0x868] ss:$16 sps:$4 sm:$0xff]  }
  0xed   : > { %2800 = vmatpush1.bf16.msra.mxu0 %v4105_v48  ;;  %3046 = vmatpush1.bf16.msra.mxu1 %v4108_v49  ;;  %v4197_v48 = vld [vmem:[%s4477_s10 + $0x884] ss:$16 sps:$4 sm:$0xff]   ;;  %v4200_v49 = vld [vmem:[%s4477_s10 + $0x88c] ss:$16 sps:$4 sm:$0xff]  }
  0xee   : > { %2801 = vmatprep.subr.bf16.mxu0 %v4113_v50  ;;  %3047 = vmatprep.subr.bf16.mxu1 %v4116_v52  ;;  %v4195_v50 = vld [vmem:[%s4477_s10 + $0x880] ss:$16 sps:$4 sm:$0xff]   ;;  %v4198_v52 = vld [vmem:[%s4477_s10 + $0x888] ss:$16 sps:$4 sm:$0xff]  }
  0xf1   : > { %2802 = vmatpush1.bf16.msra.mxu0 %v4111_v53  ;;  %3048 = vmatpush1.bf16.msra.mxu1 %v4114_v55  ;;  %v4203_v53 = vld [vmem:[%s4477_s10 + $0x8a4] ss:$16 sps:$4 sm:$0xff]   ;;  %v4206_v55 = vld [vmem:[%s4477_s10 + $0x8ac] ss:$16 sps:$4 sm:$0xff]  }
  0xf2   : > { %2803 = vmatprep.subr.bf16.mxu0 %v4119_v56  ;;  %3049 = vmatprep.subr.bf16.mxu1 %v4122_v57  ;;  %v4201_v56 = vld [vmem:[%s4477_s10 + $0x8a0] ss:$16 sps:$4 sm:$0xff]   ;;  %v4204_v57 = vld [vmem:[%s4477_s10 + $0x8a8] ss:$16 sps:$4 sm:$0xff]  }
  0xf5   : > { %2804 = vmatpush1.bf16.msra.mxu0 %v4117_v58  ;;  %3050 = vmatpush1.bf16.msra.mxu1 %v4120_v59  ;;  %v4209_v58 = vld [vmem:[%s4477_s10 + $0x8c4] ss:$16 sps:$4 sm:$0xff]   ;;  %v4212_v59 = vld [vmem:[%s4477_s10 + $0x8cc] ss:$16 sps:$4 sm:$0xff]  }
  0xf6   : > { %2805 = vmatprep.subr.bf16.mxu0 %v4125_v60  ;;  %3051 = vmatprep.subr.bf16.mxu1 %v4128_v61  ;;  %v4207_v60 = vld [vmem:[%s4477_s10 + $0x8c0] ss:$16 sps:$4 sm:$0xff]   ;;  %v4210_v61 = vld [vmem:[%s4477_s10 + $0x8c8] ss:$16 sps:$4 sm:$0xff]  }
  0xf9   : > { %2806 = vmatpush1.bf16.msra.mxu0 %v4123_v62  ;;  %3052 = vmatpush1.bf16.msra.mxu1 %v4126_v63  ;;  %v4215_v62 = vld [vmem:[%s4477_s10 + $0x8e4] ss:$16 sps:$4 sm:$0xff]   ;;  %v4218_v63 = vld [vmem:[%s4477_s10 + $0x8ec] ss:$16 sps:$4 sm:$0xff]  }
  0xfa   : > { %2807 = vmatprep.subr.bf16.mxu0 %v4131_v0  ;;  %3053 = vmatprep.subr.bf16.mxu1 %v4134_v1  ;;  %v4213_v0 = vld [vmem:[%s4477_s10 + $0x8e0] ss:$16 sps:$4 sm:$0xff]   ;;  %v4216_v1 = vld [vmem:[%s4477_s10 + $0x8e8] ss:$16 sps:$4 sm:$0xff]  }
  0xfd   : > { %2808 = vmatpush1.bf16.msra.mxu0 %v4129_v2  ;;  %3054 = vmatpush1.bf16.msra.mxu1 %v4132_v3  ;;  %v4221_v2 = vld [vmem:[%s4477_s10 + $0x904] ss:$16 sps:$4 sm:$0xff]   ;;  %v4224_v3 = vld [vmem:[%s4477_s10 + $0x90c] ss:$16 sps:$4 sm:$0xff]  }
  0xfe   : > { %2809 = vmatprep.subr.bf16.mxu0 %v4137_v4  ;;  %3055 = vmatprep.subr.bf16.mxu1 %v4140_v5  ;;  %v4219_v4 = vld [vmem:[%s4477_s10 + $0x900] ss:$16 sps:$4 sm:$0xff]   ;;  %v4222_v5 = vld [vmem:[%s4477_s10 + $0x908] ss:$16 sps:$4 sm:$0xff]  }
 0x101   : > { %2810 = vmatpush1.bf16.msra.mxu0 %v4135_v6  ;;  %3056 = vmatpush1.bf16.msra.mxu1 %v4138_v7  ;;  %v4227_v6 = vld [vmem:[%s4477_s10 + $0x924] ss:$16 sps:$4 sm:$0xff]   ;;  %v4230_v7 = vld [vmem:[%s4477_s10 + $0x92c] ss:$16 sps:$4 sm:$0xff]  }
 0x102   : > { %2811 = vmatprep.subr.bf16.mxu0 %v4143_v8  ;;  %3057 = vmatprep.subr.bf16.mxu1 %v4146_v9  ;;  %v4225_v8 = vld [vmem:[%s4477_s10 + $0x920] ss:$16 sps:$4 sm:$0xff]   ;;  %v4228_v9 = vld [vmem:[%s4477_s10 + $0x928] ss:$16 sps:$4 sm:$0xff]  }
 0x105   : > { %2812 = vmatpush1.bf16.msra.mxu0 %v4141_v10  ;;  %3058 = vmatpush1.bf16.msra.mxu1 %v4144_v11  ;;  %v4233_v10 = vld [vmem:[%s4477_s10 + $0x944] ss:$16 sps:$4 sm:$0xff]   ;;  %v4236_v11 = vld [vmem:[%s4477_s10 + $0x94c] ss:$16 sps:$4 sm:$0xff]  }
 0x106   : > { %2813 = vmatprep.subr.bf16.mxu0 %v4149_v12  ;;  %3059 = vmatprep.subr.bf16.mxu1 %v4152_v13  ;;  %v4231_v12 = vld [vmem:[%s4477_s10 + $0x940] ss:$16 sps:$4 sm:$0xff]   ;;  %v4234_v13 = vld [vmem:[%s4477_s10 + $0x948] ss:$16 sps:$4 sm:$0xff]  }
 0x109   : > { %2814 = vmatpush1.bf16.msra.mxu0 %v4147_v14  ;;  %3060 = vmatpush1.bf16.msra.mxu1 %v4150_v16  ;;  %v4239_v14 = vld [vmem:[%s4477_s10 + $0x964] ss:$16 sps:$4 sm:$0xff]   ;;  %v4242_v16 = vld [vmem:[%s4477_s10 + $0x96c] ss:$16 sps:$4 sm:$0xff]  }
 0x10a   : > { %2815 = vmatprep.subr.bf16.mxu0 %v4155_v18  ;;  %3061 = vmatprep.subr.bf16.mxu1 %v4158_v54  ;;  %v4237_v18 = vld [vmem:[%s4477_s10 + $0x960] ss:$16 sps:$4 sm:$0xff]   ;;  %v4240_v54 = vld [vmem:[%s4477_s10 + $0x968] ss:$16 sps:$4 sm:$0xff]  }
 0x10d   : > { %2816 = vmatpush1.bf16.msra.mxu0 %v4153_v19  ;;  %3062 = vmatpush1.bf16.msra.mxu1 %v4156_v20  ;;  %v4245_v19 = vld [vmem:[%s4477_s10 + $0x984] ss:$16 sps:$4 sm:$0xff]   ;;  %v4248_v20 = vld [vmem:[%s4477_s10 + $0x98c] ss:$16 sps:$4 sm:$0xff]  }
 0x10e   : > { %2817 = vmatprep.subr.bf16.mxu0 %v4161_v21  ;;  %3063 = vmatprep.subr.bf16.mxu1 %v4164_v22  ;;  %v4243_v21 = vld [vmem:[%s4477_s10 + $0x980] ss:$16 sps:$4 sm:$0xff]   ;;  %v4246_v22 = vld [vmem:[%s4477_s10 + $0x988] ss:$16 sps:$4 sm:$0xff]  }
 0x111   : > { %2818 = vmatpush1.bf16.msra.mxu0 %v4159_v23  ;;  %3064 = vmatpush1.bf16.msra.mxu1 %v4162_v24  ;;  %v4251_v23 = vld [vmem:[%s4477_s10 + $0x9a4] ss:$16 sps:$4 sm:$0xff]   ;;  %v4254_v24 = vld [vmem:[%s4477_s10 + $0x9ac] ss:$16 sps:$4 sm:$0xff]  }
 0x112   : > { %2819 = vmatprep.subr.bf16.mxu0 %v4167_v25  ;;  %3065 = vmatprep.subr.bf16.mxu1 %v4170_v26  ;;  %v4249_v25 = vld [vmem:[%s4477_s10 + $0x9a0] ss:$16 sps:$4 sm:$0xff]   ;;  %v4252_v26 = vld [vmem:[%s4477_s10 + $0x9a8] ss:$16 sps:$4 sm:$0xff]  }
 0x115   : > { %2820 = vmatpush1.bf16.msra.mxu0 %v4165_v29  ;;  %3066 = vmatpush1.bf16.msra.mxu1 %v4168_v30  ;;  %v4257_v29 = vld [vmem:[%s4477_s10 + $0x9c4] ss:$16 sps:$4 sm:$0xff]   ;;  %v4260_v30 = vld [vmem:[%s4477_s10 + $0x9cc] ss:$16 sps:$4 sm:$0xff]  }
 0x116   : > { %2830 = vmatprep.subr.bf16.mxu0 %v4173_v31  ;;  %3076 = vmatprep.subr.bf16.mxu1 %v4176_v32  ;;  %v4255_v31 = vld [vmem:[%s4477_s10 + $0x9c0] ss:$16 sps:$4 sm:$0xff]   ;;  %v4258_v32 = vld [vmem:[%s4477_s10 + $0x9c8] ss:$16 sps:$4 sm:$0xff]  }
 0x118   : > { %2822 = vmatmul.mubr.bf16.vlgmr.msra.gmra.mrb[0].mxu0 %v707_v33  ;;  %3068 = vmatmul.mubr.bf16.vlgmr.msra.gmra.mrb[0].mxu1 %v707_v33  ;;  %v4266_v33 = vld [vmem:[%s4477_s10 + $0x9ec] ss:$16 sps:$4 sm:$0xff]  }
 0x119   : > { %2831 = vmatpush1.bf16.msra.mxu0 %v4171_v34  ;;  %3077 = vmatpush1.bf16.msra.mxu1 %v4174_v35  ;;  %v4261_v34 = vld [vmem:[%s4477_s10 + $0x9e0] ss:$16 sps:$4 sm:$0xff]   ;;  %v4264_v35 = vld [vmem:[%s4477_s10 + $0x9e8] ss:$16 sps:$4 sm:$0xff]  }
 0x11a   : > { %2832 = vmatprep.subr.bf16.mxu0 %v4179_v27  ;;  %3078 = vmatprep.subr.bf16.mxu1 %v4182_v36  ;;  %v4269_v27 = vld [vmem:[%s4477_s10 + $0xa04] ss:$16 sps:$4 sm:$0xff]   ;;  %v4272_v36 = vld [vmem:[%s4477_s10 + $0xa0c] ss:$16 sps:$4 sm:$0xff]  }
 0x11b   : > { %2862 = vmatprep.mubr.bf16.mxu0 %v4786_v37  ;;  %3108 = vmatprep.mubr.bf16.mxu1 %v4786_v37 }
 0x11d   : > { %2833 = vmatpush1.bf16.msra.mxu0 %v4177_v15  ;;  %3079 = vmatpush1.bf16.msra.mxu1 %v4180_v38  ;;  %v4852_v15 = vrot.slane %v4771_v28, %v4525_v51  ;;  %v4267_v38 = vld [vmem:[%s4477_s10 + $0xa00] ss:$16 sps:$4 sm:$0xff]  }
 0x11e   : > { %2834 = vmatprep.subr.bf16.mxu0 %v4185_v39  ;;  %3080 = vmatprep.subr.bf16.mxu1 %v4188_v41  ;;  %v4270_v39 = vld [vmem:[%s4477_s10 + $0xa08] ss:$16 sps:$4 sm:$0xff]   ;;  %v4275_v41 = vld [vmem:[%s4477_s10 + $0xa24] ss:$16 sps:$4 sm:$0xff]   ;;  %v4273_v28 = vld [vmem:[%s4477_s10 + $0xa20] ss:$16 sps:$4 sm:$0xff]  }
 0x121   : > { %2835 = vmatpush1.bf16.msra.mxu0 %v4183_v42  ;;  %3081 = vmatpush1.bf16.msra.mxu1 %v4186_v43  ;;  %v4278_v42 = vld [vmem:[%s4477_s10 + $0xa2c] ss:$16 sps:$4 sm:$0xff]   ;;  %v733_v43 = vcombine.high %v4786_v37, %v4786_v37  ;;  %v4279_v37 = vld [vmem:[%s4477_s10 + $0xa40] ss:$16 sps:$4 sm:$0xff]  }
 0x122   : > { %2836 = vmatprep.subr.bf16.mxu0 %v4191_v44  ;;  %3082 = vmatprep.subr.bf16.mxu1 %v4194_v45  ;;  %v4276_v44 = vld [vmem:[%s4477_s10 + $0xa28] ss:$16 sps:$4 sm:$0xff]   ;;  %v4281_v45 = vld [vmem:[%s4477_s10 + $0xa44] ss:$16 sps:$4 sm:$0xff]  }
 0x125   : > { %2837 = vmatpush1.bf16.msra.mxu0 %v4189_v46  ;;  %3083 = vmatpush1.bf16.msra.mxu1 %v4192_v47  ;;  %v4284_v46 = vld [vmem:[%s4477_s10 + $0xa4c] ss:$16 sps:$4 sm:$0xff]   ;;  %v4282_v47 = vld [vmem:[%s4477_s10 + $0xa48] ss:$16 sps:$4 sm:$0xff]  }
 0x126   : > { %2838 = vmatprep.subr.bf16.mxu0 %v4197_v48  ;;  %3084 = vmatprep.subr.bf16.mxu1 %v4200_v49  ;;  %v4287_v48 = vld [vmem:[%s4477_s10 + $0xa64] ss:$16 sps:$4 sm:$0xff]   ;;  %v4290_v49 = vld [vmem:[%s4477_s10 + $0xa6c] ss:$16 sps:$4 sm:$0xff]  }
 0x129   : > { %2839 = vmatpush1.bf16.msra.mxu0 %v4195_v50  ;;  %3085 = vmatpush1.bf16.msra.mxu1 %v4198_v52  ;;  %v4285_v50 = vld [vmem:[%s4477_s10 + $0xa60] ss:$16 sps:$4 sm:$0xff]   ;;  %v4288_v52 = vld [vmem:[%s4477_s10 + $0xa68] ss:$16 sps:$4 sm:$0xff]  }
 0x12a   : > { %2840 = vmatprep.subr.bf16.mxu0 %v4203_v53  ;;  %3086 = vmatprep.subr.bf16.mxu1 %v4206_v55  ;;  %v4293_v53 = vld [vmem:[%s4477_s10 + $0xa84] ss:$16 sps:$4 sm:$0xff]   ;;  %v4296_v55 = vld [vmem:[%s4477_s10 + $0xa8c] ss:$16 sps:$4 sm:$0xff]  }
 0x12d   : > { %2841 = vmatpush1.bf16.msra.mxu0 %v4201_v56  ;;  %3087 = vmatpush1.bf16.msra.mxu1 %v4204_v57  ;;  %v4291_v56 = vld [vmem:[%s4477_s10 + $0xa80] ss:$16 sps:$4 sm:$0xff]   ;;  %v4294_v57 = vld [vmem:[%s4477_s10 + $0xa88] ss:$16 sps:$4 sm:$0xff]  }
 0x12e   : > { %2842 = vmatprep.subr.bf16.mxu0 %v4209_v58  ;;  %3088 = vmatprep.subr.bf16.mxu1 %v4212_v59  ;;  %v4299_v58 = vld [vmem:[%s4477_s10 + $0xaa4] ss:$16 sps:$4 sm:$0xff]   ;;  %v4302_v59 = vld [vmem:[%s4477_s10 + $0xaac] ss:$16 sps:$4 sm:$0xff]  }
 0x131   : > { %2843 = vmatpush1.bf16.msra.mxu0 %v4207_v60  ;;  %3089 = vmatpush1.bf16.msra.mxu1 %v4210_v61  ;;  %v4297_v60 = vld [vmem:[%s4477_s10 + $0xaa0] ss:$16 sps:$4 sm:$0xff]   ;;  %v4300_v61 = vld [vmem:[%s4477_s10 + $0xaa8] ss:$16 sps:$4 sm:$0xff]  }
 0x132   : > { %2844 = vmatprep.subr.bf16.mxu0 %v4215_v62  ;;  %3090 = vmatprep.subr.bf16.mxu1 %v4218_v63  ;;  %v4305_v62 = vld [vmem:[%s4477_s10 + $0xac4] ss:$16 sps:$4 sm:$0xff]   ;;  %v4308_v63 = vld [vmem:[%s4477_s10 + $0xacc] ss:$16 sps:$4 sm:$0xff]  }
 0x135   : > { %2845 = vmatpush1.bf16.msra.mxu0 %v4213_v0  ;;  %3091 = vmatpush1.bf16.msra.mxu1 %v4216_v1  ;;  %v4303_v0 = vld [vmem:[%s4477_s10 + $0xac0] ss:$16 sps:$4 sm:$0xff]   ;;  %v4306_v1 = vld [vmem:[%s4477_s10 + $0xac8] ss:$16 sps:$4 sm:$0xff]  }
 0x136   : > { %2846 = vmatprep.subr.bf16.mxu0 %v4221_v2  ;;  %3092 = vmatprep.subr.bf16.mxu1 %v4224_v3  ;;  %v4311_v2 = vld [vmem:[%s4477_s10 + $0xae4] ss:$16 sps:$4 sm:$0xff]   ;;  %v4314_v3 = vld [vmem:[%s4477_s10 + $0xaec] ss:$16 sps:$4 sm:$0xff]  }
 0x139   : > { %2847 = vmatpush1.bf16.msra.mxu0 %v4219_v4  ;;  %3093 = vmatpush1.bf16.msra.mxu1 %v4222_v5  ;;  %v4309_v4 = vld [vmem:[%s4477_s10 + $0xae0] ss:$16 sps:$4 sm:$0xff]   ;;  %v4312_v5 = vld [vmem:[%s4477_s10 + $0xae8] ss:$16 sps:$4 sm:$0xff]  }
 0x13a   : > { %2848 = vmatprep.subr.bf16.mxu0 %v4227_v6  ;;  %3094 = vmatprep.subr.bf16.mxu1 %v4230_v7  ;;  %v4317_v6 = vld [vmem:[%s4477_s10 + $0xb04] ss:$16 sps:$4 sm:$0xff]   ;;  %v4320_v7 = vld [vmem:[%s4477_s10 + $0xb0c] ss:$16 sps:$4 sm:$0xff]  }
 0x13d   : > { %2849 = vmatpush1.bf16.msra.mxu0 %v4225_v8  ;;  %3095 = vmatpush1.bf16.msra.mxu1 %v4228_v9  ;;  %v4315_v8 = vld [vmem:[%s4477_s10 + $0xb00] ss:$16 sps:$4 sm:$0xff]   ;;  %v4318_v9 = vld [vmem:[%s4477_s10 + $0xb08] ss:$16 sps:$4 sm:$0xff]  }
 0x13e   : > { %2850 = vmatprep.subr.bf16.mxu0 %v4233_v10  ;;  %3096 = vmatprep.subr.bf16.mxu1 %v4236_v11  ;;  %v4323_v10 = vld [vmem:[%s4477_s10 + $0xb24] ss:$16 sps:$4 sm:$0xff]   ;;  %v4326_v11 = vld [vmem:[%s4477_s10 + $0xb2c] ss:$16 sps:$4 sm:$0xff]  }
 0x141   : > { %2851 = vmatpush1.bf16.msra.mxu0 %v4231_v12  ;;  %3097 = vmatpush1.bf16.msra.mxu1 %v4234_v13  ;;  %v4321_v12 = vld [vmem:[%s4477_s10 + $0xb20] ss:$16 sps:$4 sm:$0xff]   ;;  %v4324_v13 = vld [vmem:[%s4477_s10 + $0xb28] ss:$16 sps:$4 sm:$0xff]  }
 0x142   : > { %2852 = vmatprep.subr.bf16.mxu0 %v4239_v14  ;;  %3098 = vmatprep.subr.bf16.mxu1 %v4242_v16  ;;  %v4329_v14 = vld [vmem:[%s4477_s10 + $0xb44] ss:$16 sps:$4 sm:$0xff]   ;;  %v4332_v16 = vld [vmem:[%s4477_s10 + $0xb4c] ss:$16 sps:$4 sm:$0xff]  }
 0x145   : > { %2853 = vmatpush1.bf16.msra.mxu0 %v4237_v18  ;;  %3099 = vmatpush1.bf16.msra.mxu1 %v4240_v54  ;;  %v4327_v18 = vld [vmem:[%s4477_s10 + $0xb40] ss:$16 sps:$4 sm:$0xff]   ;;  %v4330_v54 = vld [vmem:[%s4477_s10 + $0xb48] ss:$16 sps:$4 sm:$0xff]  }
 0x146   : > { %2854 = vmatprep.subr.bf16.mxu0 %v4245_v19  ;;  %3100 = vmatprep.subr.bf16.mxu1 %v4248_v20  ;;  %v4335_v19 = vld [vmem:[%s4477_s10 + $0xb64] ss:$16 sps:$4 sm:$0xff]   ;;  %v4338_v20 = vld [vmem:[%s4477_s10 + $0xb6c] ss:$16 sps:$4 sm:$0xff]  }
 0x149   : > { %2855 = vmatpush1.bf16.msra.mxu0 %v4243_v21  ;;  %3101 = vmatpush1.bf16.msra.mxu1 %v4246_v22  ;;  %v4333_v21 = vld [vmem:[%s4477_s10 + $0xb60] ss:$16 sps:$4 sm:$0xff]   ;;  %v4336_v22 = vld [vmem:[%s4477_s10 + $0xb68] ss:$16 sps:$4 sm:$0xff]  }
 0x14a   : > { %2856 = vmatprep.subr.bf16.mxu0 %v4251_v23  ;;  %3102 = vmatprep.subr.bf16.mxu1 %v4254_v24  ;;  %v4341_v23 = vld [vmem:[%s4477_s10 + $0xb84] ss:$16 sps:$4 sm:$0xff]   ;;  %v4344_v24 = vld [vmem:[%s4477_s10 + $0xb8c] ss:$16 sps:$4 sm:$0xff]  }
 0x14d   : > { %2857 = vmatpush1.bf16.msra.mxu0 %v4249_v25  ;;  %3103 = vmatpush1.bf16.msra.mxu1 %v4252_v26  ;;  %v4339_v25 = vld [vmem:[%s4477_s10 + $0xb80] ss:$16 sps:$4 sm:$0xff]   ;;  %v4342_v26 = vld [vmem:[%s4477_s10 + $0xb88] ss:$16 sps:$4 sm:$0xff]  }
 0x14e   : > { %2858 = vmatprep.subr.bf16.mxu0 %v4257_v29  ;;  %3104 = vmatprep.subr.bf16.mxu1 %v4260_v30  ;;  %v4347_v29 = vld [vmem:[%s4477_s10 + $0xba4] ss:$16 sps:$4 sm:$0xff]   ;;  %v4350_v30 = vld [vmem:[%s4477_s10 + $0xbac] ss:$16 sps:$4 sm:$0xff]  }
 0x151   : > { %2859 = vmatpush1.bf16.msra.mxu0 %v4255_v31  ;;  %3105 = vmatpush1.bf16.msra.mxu1 %v4258_v32  ;;  %v4345_v31 = vld [vmem:[%s4477_s10 + $0xba0] ss:$16 sps:$4 sm:$0xff]   ;;  %v4348_v32 = vld [vmem:[%s4477_s10 + $0xba8] ss:$16 sps:$4 sm:$0xff]  }
 0x152   : > { %2860 = vmatprep.subr.bf16.mxu0 %v4263_v17  ;;  %3106 = vmatprep.subr.bf16.mxu1 %v4266_v33  ;;  %v4353_v17 = vld [vmem:[%s4477_s10 + $0xbc4] ss:$16 sps:$4 sm:$0xff]   ;;  %v4356_v33 = vld [vmem:[%s4477_s10 + $0xbcc] ss:$16 sps:$4 sm:$0xff]  }
 0x155   : > { %2861 = vmatpush1.bf16.msra.mxu0 %v4261_v34  ;;  %3107 = vmatpush1.bf16.msra.mxu1 %v4264_v35  ;;  %v4351_v34 = vld [vmem:[%s4477_s10 + $0xbc0] ss:$16 sps:$4 sm:$0xff]   ;;  %v4354_v35 = vld [vmem:[%s4477_s10 + $0xbc8] ss:$16 sps:$4 sm:$0xff]  }
 0x156   : > { %2871 = vmatprep.subr.bf16.mxu0 %v4269_v27  ;;  %3117 = vmatprep.subr.bf16.mxu1 %v4272_v36  ;;  %v4359_v27 = vld [vmem:[%s4477_s10 + $0xbe4] ss:$16 sps:$4 sm:$0xff]   ;;  %v4362_v36 = vld [vmem:[%s4477_s10 + $0xbec] ss:$16 sps:$4 sm:$0xff]  }
 0x158   : > { %2863 = vmatmul.mubr.bf16.vlgmr.msra.gmra.mrb[0].mxu0 %v4852_v15  ;;  %3109 = vmatmul.mubr.bf16.vlgmr.msra.gmra.mrb[0].mxu1 %v4852_v15 }
 0x159   : > { %2872 = vmatpush1.bf16.msra.mxu0 %v4267_v38  ;;  %3118 = vmatpush1.bf16.msra.mxu1 %v4270_v39  ;;  %v4357_v38 = vld [vmem:[%s4477_s10 + $0xbe0] ss:$16 sps:$4 sm:$0xff]   ;;  %v4360_v39 = vld [vmem:[%s4477_s10 + $0xbe8] ss:$16 sps:$4 sm:$0xff]  }
 0x15a   : > { %2873 = vmatprep.subr.bf16.mxu0 %v4275_v41  ;;  %3119 = vmatprep.subr.bf16.mxu1 %v4278_v42  ;;  %v732_v41 = vcombine.high %v4852_v15, %v4852_v15  ;;  %v658_v15 = vld [vmem:[#allocation2] sm:$0xf] }
 0x15b   : > { %2903 = vmatprep.mubr.bf16.mxu0 %v733_v43  ;;  %3149 = vmatprep.mubr.bf16.mxu1 %v733_v43 }
 0x15d   : > { %2874 = vmatpush1.bf16.msra.mxu0 %v4273_v28  ;;  %3120 = vmatpush1.bf16.msra.mxu1 %v4276_v44 }
 0x15e   : > { %2875 = vmatprep.subr.bf16.mxu0 %v4281_v45  ;;  %3121 = vmatprep.subr.bf16.mxu1 %v4284_v46 }
 0x161   : > { %2876 = vmatpush1.bf16.msra.mxu0 %v4279_v37  ;;  %3122 = vmatpush1.bf16.msra.mxu1 %v4282_v47 }
 0x162   : > { %2877 = vmatprep.subr.bf16.mxu0 %v4287_v48  ;;  %3123 = vmatprep.subr.bf16.mxu1 %v4290_v49 }
 0x165   : > { %2878 = vmatpush1.bf16.msra.mxu0 %v4285_v50  ;;  %3124 = vmatpush1.bf16.msra.mxu1 %v4288_v52 }
 0x166   : > { %2879 = vmatprep.subr.bf16.mxu0 %v4293_v53  ;;  %3125 = vmatprep.subr.bf16.mxu1 %v4296_v55 }
 0x169   : > { %2880 = vmatpush1.bf16.msra.mxu0 %v4291_v56  ;;  %3126 = vmatpush1.bf16.msra.mxu1 %v4294_v57 }
 0x16a   : > { %2881 = vmatprep.subr.bf16.mxu0 %v4299_v58  ;;  %3127 = vmatprep.subr.bf16.mxu1 %v4302_v59  ;;  %v3198_v58 = vld [vmem:[%s4951_s2] sm:$0xf] (!%p3698_p8) }
 0x16b   : > { %v3200_v59 = vld [vmem:[%s4952_s3] sm:$0xf] (!%p3698_p8) }
 0x16d   : > { %2882 = vmatpush1.bf16.msra.mxu0 %v4297_v60  ;;  %3128 = vmatpush1.bf16.msra.mxu1 %v4300_v61 }
 0x16e   : > { %2883 = vmatprep.subr.bf16.mxu0 %v4305_v62  ;;  %3129 = vmatprep.subr.bf16.mxu1 %v4308_v63 }
 0x171   : > { %2884 = vmatpush1.bf16.msra.mxu0 %v4303_v0  ;;  %3130 = vmatpush1.bf16.msra.mxu1 %v4306_v1 }
 0x172   : > { %2885 = vmatprep.subr.bf16.mxu0 %v4311_v2  ;;  %3131 = vmatprep.subr.bf16.mxu1 %v4314_v3 }
 0x175   : > { %2886 = vmatpush1.bf16.msra.mxu0 %v4309_v4  ;;  %3132 = vmatpush1.bf16.msra.mxu1 %v4312_v5 }
 0x176   : > { %2887 = vmatprep.subr.bf16.mxu0 %v4317_v6  ;;  %3133 = vmatprep.subr.bf16.mxu1 %v4320_v7 }
 0x179   : > { %2888 = vmatpush1.bf16.msra.mxu0 %v4315_v8  ;;  %3134 = vmatpush1.bf16.msra.mxu1 %v4318_v9 }
 0x17a   : > { %2889 = vmatprep.subr.bf16.mxu0 %v4323_v10  ;;  %3135 = vmatprep.subr.bf16.mxu1 %v4326_v11 }
 0x17d   : > { %2890 = vmatpush1.bf16.msra.mxu0 %v4321_v12  ;;  %3136 = vmatpush1.bf16.msra.mxu1 %v4324_v13 }
 0x17e   : > { %2891 = vmatprep.subr.bf16.mxu0 %v4329_v14  ;;  %3137 = vmatprep.subr.bf16.mxu1 %v4332_v16 }
 0x181   : > { %2892 = vmatpush1.bf16.msra.mxu0 %v4327_v18  ;;  %3138 = vmatpush1.bf16.msra.mxu1 %v4330_v54 }
 0x182   : > { %2893 = vmatprep.subr.bf16.mxu0 %v4335_v19  ;;  %3139 = vmatprep.subr.bf16.mxu1 %v4338_v20 }
 0x185   : > { %2894 = vmatpush1.bf16.msra.mxu0 %v4333_v21  ;;  %3140 = vmatpush1.bf16.msra.mxu1 %v4336_v22 }
 0x186   : > { %2895 = vmatprep.subr.bf16.mxu0 %v4341_v23  ;;  %3141 = vmatprep.subr.bf16.mxu1 %v4344_v24 }
 0x189   : > { %2896 = vmatpush1.bf16.msra.mxu0 %v4339_v25  ;;  %3142 = vmatpush1.bf16.msra.mxu1 %v4342_v26 }
 0x18a   : > { %2897 = vmatprep.subr.bf16.mxu0 %v4347_v29  ;;  %3143 = vmatprep.subr.bf16.mxu1 %v4350_v30 }
 0x18d   : > { %2898 = vmatpush1.bf16.msra.mxu0 %v4345_v31  ;;  %3144 = vmatpush1.bf16.msra.mxu1 %v4348_v32 }
 0x18e   : > { %2899 = vmatprep.subr.bf16.mxu0 %v4353_v17  ;;  %3145 = vmatprep.subr.bf16.mxu1 %v4356_v33 }
 0x191   : > { %2900 = vmatpush1.bf16.msra.mxu0 %v4351_v34  ;;  %3146 = vmatpush1.bf16.msra.mxu1 %v4354_v35 }
 0x192   : > { %2901 = vmatprep.subr.bf16.mxu0 %v4359_v27  ;;  %3147 = vmatprep.subr.bf16.mxu1 %v4362_v36 }
 0x195   : > { %2902 = vmatpush1.bf16.msra.mxu0 %v4357_v38  ;;  %3148 = vmatpush1.bf16.msra.mxu1 %v4360_v39 }
 0x198   : > { %2904 = vmatmul.mubr.bf16.vlgmr.msra.gmra.mrb[0].mxu0 %v732_v41  ;;  %3150 = vmatmul.mubr.bf16.vlgmr.msra.gmra.mrb[0].mxu1 %v732_v41 }
 0x26b   : > { %v2905_v42 = vpop.f32.mrb[0].mxu0  ;;  %v3151_v43 = vpop.f32.mrb[0].mxu1 }
 0x26c   : > { %v2907_v28 = vpop.f32.mrb[1].mxu0  ;;  %v3153_v44 = vpop.f32.mrb[1].mxu1 }
 0x26d   : > { %v3162_v45 = vcombine.low %v2905_v42, %v2907_v28  ;;  %v3163_v46 = vcombine.low %v3151_v43, %v3153_v44  ;;  %v2909_v37 = vpop.f32.mrb[2].mxu0  ;;  %v3155_v47 = vpop.f32.mrb[2].mxu1 }
 0x26e   : > { %v2910_v48 = vpop.f32.mrb[3].mxu0  ;;  %v3156_v49 = vpop.f32.mrb[3].mxu1 }
 0x26f   : > { %v3170_v50 = vrot.slane %v3162_v45, %v4525_v51  ;;  %v3177_v52 = vrot.slane %v3163_v46, %v4525_v51 }
 0x271   : > { %v3178_v53 = vcombine.low %v3170_v50, %v3177_v52  ;;  %3196 = sbr.rel (%p3698_p8) target bundleno = 646 (0x286), region = 44 }
 0x273   : > { %v3185_v55 = vrot.slane %v3178_v53, %v4525_v51 }
 0x275   : > { %v3187_v56 = vadd.f32 %v3185_v55, %v658_v15 }
 0x277   : > { %3192 = vst.msk [vmem:[#allocation2] sm:$0xf] %vm3190_vm1, %v3187_v56 }
 0x27e   : > { %v3197_v57 = vld [vmem:[#allocation2] sm:$0xf] }
 0x27f   : > { %v3199_v60 = vmul.f32 %v3198_v58, %v3197_v57 }
 0x281   : > { %v3201_v61 = vadd.f32 %v3200_v59, %v3199_v60 }
 0x283   : > { %v3202_v51 = vmax.f32 %v3201_v61, 0.0 }
 0x285   : > { %3203 = vst.msk [vmem:[%s4467_s28] sm:$0xf] %vm3190_vm1, %v3202_v51 }
 0x286 PF: > { %s14_s19 = sadd.s32 1, %s4401_s19   ;;  %s4954_s15 = smov %s4393_s17 }
 0x287   : > { %p11_p9 = scmp.ge.s32.totalorder %s14_s19, 8   ;;  %s4955_s16 = smov %s4397_s18 }
 0x288   : > { %s4956_s17 = smov %s4959_s20  ;;  %s4957_s18 = smov %s4963_s21 }
 0x289   :  { %13 = sbr.rel (!%p11_p9) target bundleno = 3 (0x3), region = 77 }

// kernel: resnet_simclr_forward.47
= control target key start
LH: loop header
LB: loop body
LE: loop exit
PB: predicated region body
PF: predicated region fallthrough
CT: control target
= control target key end

     0   :  { %s774_s15 = smov 0   ;;  %s776_s16 = smov 0   ;;  %s840_s0 = inlined_call_operand.vmem [shape: bf16[8,512], index: 0, kind: input, shape index: {}]   ;;  %s841_s1 = inlined_call_operand.vmem [shape: bf16[512,128], index: 1, kind: input, shape index: {}]   ;;  %s842_s2 = inlined_call_operand.vmem [shape: f32[1,128], index: 2, kind: input, shape index: {}]   ;;  %s843_s3 = inlined_call_operand.vmem [shape: f32[1,128], index: 3, kind: input, shape index: {}]   ;;  %s844_s4 = inlined_call_operand.vmem [shape: f32[8,128], index: 4, kind: output, shape index: {}]  }
   0x1   :  { %s778_s17 = smov 0  }
   0x2 LB: > { %s26_s18 = sadd.s32 1, %s742_s16  ;;  %p629_p0 = scmp.ge.s32.totalorder %s746_s17, 1  ;;  %s746_s17 = sphi %s778_s17, %s14_s17   ;;  %s742_s16 = sphi %s776_s16, %s846_s16   ;;  %s738_s15 = sphi %s774_s15, %s845_s15  }
   0x3   : > { %p27_p1 = scmp.ge.s32.totalorder %s26_s18, 2  ;;  %p222_p2 = scmp.lt.s32.totalorder %s746_s17, 3 }
   0x5   : > { %s848_s18 = smov (%p27_p1, %s26_s18), 0  ;;  %p223_p3 = pnand %p629_p0, %p222_p2 }
   0x6   : > { %s630_s19 = sshll.u32 (!%p223_p3), %s738_s15, 1  ;;  %s632_s20 = sshll.u32 (!%p223_p3), %s738_s15, 5 }
   0x7   : > { %226 = sbr.rel (%p223_p3) target bundleno = 287 (0x11f), region = 36  ;;  %p271_p4 = scmp.lt.s32.totalorder (!%p223_p3), %s630_s19, 3 }
   0x8   : > { %p279_p5 = scmp.lt.s32.totalorder (!%p223_p3), %s632_s20, 63  ;;  %p634_p6 = scmp.ne.s32.totalorder (!%p223_p3), %s738_s15, 0 }
   0xe   : > { %s850_s19 = smov (!%p271_p4, %s630_s19), 3  ;;  %s852_s20 = smov (!%p279_p5, %s632_s20), 63 }
   0xf   : > { %s631_s21 = sshll.u32 %s850_s19, 2  ;;  %s633_s25 = sshll.u32 %s852_s20, 2  ;;  %v748_v0 = vmov (!%p634_p6), 0.0  }
  0x10   : > { %s276_s24 = scalar_lea.vmem %s840_s0, %s631_s21  ;;  %s802_s28 = scalar_lea.vmem %s841_s1, %s633_s25  ;;  %305 = vst [vmem:[#allocation2] sm:$0xff] (!%p634_p6), %v748_v0 }
  0x11   : > { %304 = sbr.rel (%p634_p6) target bundleno = 24 (0x18), region = 40 }
  0x18 PF: > { %v706_v1 = vld [vmem:[%s802_s28 + $0x40] sm:$0xff]   ;;  %v708_v3 = vld [vmem:[%s802_s28 + $0x48] sm:$0xff]   ;;  %v710_v5 = vld [vmem:[%s802_s28 + $0x50] sm:$0xff]   ;;  %p653_p7 = scmp.ne.s32.totalorder %s738_s15, 1 }
  0x19   : > { %v707_v2 = vld [vmem:[%s802_s28] sm:$0xff]   ;;  %659 = vmatprep.subr.bf16.mxu0 %v706_v1  ;;  %v709_v4 = vld [vmem:[%s802_s28 + $0x8] sm:$0xff]   ;;  %v711_v6 = vld [vmem:[%s802_s28 + $0x10] sm:$0xff]  }
  0x1a   : > { %660 = vmatpush3.bf16.msra.mxu0 %v707_v2  ;;  %v712_v7 = vld [vmem:[%s802_s28 + $0x58] sm:$0xff]   ;;  %v714_v9 = vld [vmem:[%s802_s28 + $0x60] sm:$0xff]   ;;  %v716_v11 = vld [vmem:[%s802_s28 + $0x68] sm:$0xff]  }
  0x1b   : > { %661 = vmatprep.subr.bf16.mxu0 %v708_v3  ;;  %v713_v8 = vld [vmem:[%s802_s28 + $0x18] sm:$0xff]   ;;  %v715_v10 = vld [vmem:[%s802_s28 + $0x20] sm:$0xff]   ;;  %v717_v14 = vld [vmem:[%s802_s28 + $0x28] sm:$0xff]  }
  0x1c   : > { %v307_v12 = vld [vmem:[%s276_s24] sm:$0xff]  ;;  %v718_v15 = vld [vmem:[%s802_s28 + $0x70] sm:$0xff]   ;;  %v720_v17 = vld [vmem:[%s802_s28 + $0x78] sm:$0xff]  }
  0x1d   : > { %v636_v13 = vcombine.high %v307_v12, %v307_v12  ;;  %v719_v16 = vld [vmem:[%s802_s28 + $0x30] sm:$0xff]   ;;  %v721_v18 = vld [vmem:[%s802_s28 + $0x38] sm:$0xff]   ;;  %v635_v19 = vcombine.low %v307_v12, %v307_v12  ;;  %v306_v21 = vld [vmem:[#allocation2] sm:$0xff] }
  0x1e   : > { %662 = vmatpush3.bf16.msra.mxu0 %v709_v4  ;;  %v654_v28 = vld [vmem:[%s842_s2] ss:$0 sm:$0xff] (!%p653_p7) }
  0x1f   : > { %663 = vmatprep.subr.bf16.mxu0 %v710_v5  ;;  %475 = vmatprep.mubr.bf16.mxu0 %v636_v13  ;;  %v655_v29 = vld [vmem:[%s843_s3] ss:$0 sm:$0xff] (!%p653_p7) }
  0x22   : > { %664 = vmatpush3.bf16.msra.mxu0 %v711_v6 }
  0x23   : > { %665 = vmatprep.subr.bf16.mxu0 %v712_v7 }
  0x26   : > { %666 = vmatpush3.bf16.msra.mxu0 %v713_v8 }
  0x27   : > { %667 = vmatprep.subr.bf16.mxu0 %v714_v9 }
  0x2a   : > { %668 = vmatpush3.bf16.msra.mxu0 %v715_v10 }
  0x2b   : > { %669 = vmatprep.subr.bf16.mxu0 %v716_v11 }
  0x2e   : > { %670 = vmatpush3.bf16.msra.mxu0 %v717_v14 }
  0x2f   : > { %671 = vmatprep.subr.bf16.mxu0 %v718_v15 }
  0x32   : > { %672 = vmatpush3.bf16.msra.mxu0 %v719_v16 }
  0x33   : > { %673 = vmatprep.subr.bf16.mxu0 %v720_v17 }
  0x36   : > { %674 = vmatpush3.bf16.msra.mxu0 %v721_v18 }
  0x39   : > { %476 = vmatmul.mubr.bf16.vlgmr.msra.gmra.mrb[0].mxu0 %v635_v19 }
 0x10c   : > { %v675_v20 = vpop.f32.mrb[0].mxu0  ;;  %488 = sbr.rel (%p653_p7) target bundleno = 287 (0x11f), region = 44 }
 0x10d   : > { %v676_v22 = vpop.f32.mrb[1].mxu0 }
 0x10e   : > { %v677_v23 = vadd.f32 %v676_v22, %v675_v20  ;;  %v678_v24 = vpop.f32.mrb[2].mxu0 }
 0x10f   : > { %v679_v25 = vpop.f32.mrb[3].mxu0 }
 0x110   : > { %v483_v26 = vadd.f32 %v677_v23, %v306_v21 }
 0x112   : > { %484 = vst [vmem:[#allocation2] sm:$0xff] %v483_v26 }
 0x119   : > { %v489_v27 = vld [vmem:[#allocation2] sm:$0xff] }
 0x11a   : > { %v497_v30 = vmul.f32 %v654_v28, %v489_v27 }
 0x11c   : > { %v505_v31 = vadd.f32 %v655_v29, %v497_v30 }
 0x11e   : > { %506 = vst [vmem:[%s844_s4] sm:$0xff] %v505_v31 }
 0x11f PF: > { %s14_s17 = sadd.s32 1, %s746_s17   ;;  %s845_s15 = smov %s742_s16 }
 0x120   : > { %p11_p8 = scmp.ge.s32.totalorder %s14_s17, 4   ;;  %s846_s16 = smov %s848_s18 }
 0x122   :  { %13 = sbr.rel (!%p11_p8) target bundleno = 2 (0x2), region = 83 }

</bundles_post_ra>
